<compile_context>
chip_gen: v5e
topology: v5e:2x2
jax: 0.10.0
libtpu: 0.0.40
codegen_flags: <defaults>
</compile_context>

<pallas_src>
import functools

import numpy as np

import jax
import jax.numpy as jnp
from jax.experimental import pallas as pl
from jax.experimental.pallas import tpu as pltpu


# ----------------------------------------------------------------------------
# Kernels
# ----------------------------------------------------------------------------
def _matmul_bias_kernel(x_ref, w_ref, b_ref, o_ref, *, relu):
    """o = relu?(x @ w + b), f32 accumulation. b broadcasts (M,1) or (1,N)."""
    acc = jnp.dot(x_ref[...], w_ref[...], preferred_element_type=jnp.float32)
    acc = acc + b_ref[...]
    if relu:
        acc = jnp.maximum(acc, 0.0)
    o_ref[...] = acc.astype(o_ref.dtype)


def _fc_fused_kernel(a2_ref, fw1_ref, fb1_ref, fw2_ref, fb2_ref, o_ref):
    """Fused fc1(+ReLU)+fc2 reading a2 channel-major: a2_ref is (32, tm, 81),
    fw1_ref is (32, 81, 256).  h accumulates 32 per-channel matmuls, so the
    (tm, 2592) flatten never exists; h never leaves VMEM."""
    n_ch = a2_ref.shape[0]
    h = jnp.zeros((a2_ref.shape[1], fw1_ref.shape[2]), jnp.float32)
    for c in range(n_ch):
        h = h + jnp.dot(a2_ref[c], fw1_ref[c],
                        preferred_element_type=jnp.float32)
    h = jnp.maximum(h + fb1_ref[...], 0.0).astype(jnp.bfloat16)
    out = jnp.dot(h, fw2_ref[...],
                  preferred_element_type=jnp.float32) + fb2_ref[...]
    o_ref[...] = out.astype(o_ref.dtype)


def _fused_b1_kernel(p1_ref, w1_ref, b1_ref, s_ref, w2k_ref, b2_ref,
                     fw1_ref, fb1_ref, fw2_ref, fb2_ref, o_ref):
    """Whole B=1 forward in one kernel.

    p1: (64, 400) im2col patches of the 84x84 input (tiny XLA glue outside).
    conv2's im2col is done in-kernel with 16 selection-matrix matmuls
    (s_ref[k] gathers the stride-2 window for kernel position k), and fc1 is
    accumulated per channel, so no in-kernel reshape/transpose is needed.
    """
    # conv1: (16,64) @ (64,400) + b, ReLU
    a1 = jnp.dot(w1_ref[...], p1_ref[...], preferred_element_type=jnp.float32)
    a1 = jnp.maximum(a1 + b1_ref[...], 0.0).astype(jnp.bfloat16)      # (16,400)

    # conv2 with in-kernel im2col-as-matmul over the 16 (kh,kw) positions
    acc = jnp.zeros((w2k_ref.shape[1], s_ref.shape[2]), jnp.float32)  # (32,81)
    for k in range(s_ref.shape[0]):
        g = jnp.dot(a1, s_ref[k], preferred_element_type=jnp.float32)  # (16,81)
        acc = acc + jnp.dot(w2k_ref[k], g.astype(jnp.bfloat16),
                            preferred_element_type=jnp.float32)        # (32,81)
    a2 = jnp.maximum(acc + b2_ref[...], 0.0).astype(jnp.bfloat16)      # (32,81)

    # fc1 from channel-major a2 (no flatten): h = sum_c a2[c] @ fw1r[c]
    h = jnp.zeros((1, fw1_ref.shape[2]), jnp.float32)                  # (1,256)
    for c in range(fw1_ref.shape[0]):
        h = h + jnp.dot(a2[c:c + 1, :], fw1_ref[c],
                        preferred_element_type=jnp.float32)
    h = jnp.maximum(h + fb1_ref[...], 0.0).astype(jnp.bfloat16)

    # fc2
    out = jnp.dot(h, fw2_ref[...],
                  preferred_element_type=jnp.float32) + fb2_ref[...]
    o_ref[...] = out.astype(o_ref.dtype)


# ----------------------------------------------------------------------------
# pallas_call wrappers
# ----------------------------------------------------------------------------
def _pick_tn(n, target):
    """Largest multiple of 128 that divides n and is <= target (no ragged
    tail); fall back to min(target, n)."""
    if n <= target:
        return n
    best = 0
    for cand in range(128, target + 1, 128):
        if n % cand == 0:
            best = cand
    return best if best > 0 else min(target, n)


def _conv_matmul(w2, patches, b_col, *, relu, out_dtype, tn_target):
    """(Cout, CKK) @ (CKK, N) + b_col, tiled over N (lane-dense output)."""
    M, K = w2.shape
    K2, N = patches.shape
    assert K == K2, (K, K2)
    tn = _pick_tn(N, tn_target)
    return pl.pallas_call(
        functools.partial(_matmul_bias_kernel, relu=relu),
        out_shape=jax.ShapeDtypeStruct((M, N), out_dtype),
        grid=(pl.cdiv(N, tn),),
        in_specs=[
            pl.BlockSpec((M, K), lambda i: (0, 0)),    # weights resident
            pl.BlockSpec((K, tn), lambda i: (0, i)),   # streamed patch columns
            pl.BlockSpec((M, 1), lambda i: (0, 0)),    # per-channel bias
        ],
        out_specs=pl.BlockSpec((M, tn), lambda i: (0, i)),
        compiler_params=pltpu.CompilerParams(
            dimension_semantics=("parallel",)),
    )(w2, patches, b_col)


def _fc_fused(a2_cm, fw1r, fb1, fw2, fb2, *, tm=128):
    """Fused fc1+fc2 from channel-major a2_cm (32, B, 81) -> (B, n_actions)."""
    C, B, J = a2_cm.shape
    n_act = fw2.shape[-1]
    tm = min(tm, B)
    return pl.pallas_call(
        _fc_fused_kernel,
        out_shape=jax.ShapeDtypeStruct((B, n_act), jnp.float32),
        grid=(pl.cdiv(B, tm),),
        in_specs=[
            pl.BlockSpec((C, tm, J), lambda i: (0, i, 0)),
            pl.BlockSpec(fw1r.shape, lambda i: (0, 0, 0)),   # resident
            pl.BlockSpec(fb1.shape, lambda i: (0, 0)),
            pl.BlockSpec(fw2.shape, lambda i: (0, 0)),
            pl.BlockSpec(fb2.shape, lambda i: (0, 0)),
        ],
        out_specs=pl.BlockSpec((tm, n_act), lambda i: (i, 0)),
        compiler_params=pltpu.CompilerParams(
            dimension_semantics=("parallel",)),
    )(a2_cm, fw1r, fb1, fw2, fb2)


def _resident_spec(a):
    return pl.BlockSpec(a.shape, lambda i, _nd=a.ndim: (0,) * _nd)


# ----------------------------------------------------------------------------
# im2col (XLA glue, channel-major)
# ----------------------------------------------------------------------------
def _im2col_cm(x_cm, K, stride):
    """x_cm: (Cin, B, H, W) -> (Cin*K*K, B*Ho*Wo); row order (cin, kh, kw)
    matches w.reshape(Cout, Cin*K*K); column order is (b, oh, ow)."""
    Cin, B, H, W = x_cm.shape
    Ho = (H - K) // stride + 1
    Wo = (W - K) // stride + 1
    cols = []
    for i in range(K):
        for j in range(K):
            cols.append(
                x_cm[:, :, i:i + stride * Ho:stride, j:j + stride * Wo:stride])
    p = jnp.stack(cols, axis=1)                       # (Cin, K*K, B, Ho, Wo)
    return p.reshape(Cin * K * K, B * Ho * Wo), Ho, Wo


def _build_conv2_select():
    """Selection matrices for conv2's in-kernel im2col (B=1 fused kernel).
    S[k, i, oh*9+ow] = 1 iff i == 20*(2*oh+kh) + (2*ow+kw), k = kh*4+kw."""
    S = np.zeros((16, 400, 81), np.float32)
    for kh in range(4):
        for kw in range(4):
            k = kh * 4 + kw
            for oh in range(9):
                for ow in range(9):
                    S[k, 20 * (2 * oh + kh) + (2 * ow + kw), oh * 9 + ow] = 1.0
    return jnp.asarray(S, dtype=jnp.bfloat16)


# ----------------------------------------------------------------------------
# Parameters
# ----------------------------------------------------------------------------
def _uniform(key, shape, fan_in):
    bound = 1.0 / jnp.sqrt(jnp.float32(fan_in))
    return jax.random.uniform(key, shape, jnp.float32, -bound, bound)


def init_params(n_actions, key):
    ks = jax.random.split(key, 8)
    return {
        "conv1_w": _uniform(ks[0], (16, 1, 8, 8), 1 * 8 * 8),
        "conv1_b": _uniform(ks[1], (16,), 1 * 8 * 8),
        "conv2_w": _uniform(ks[2], (32, 16, 4, 4), 16 * 4 * 4),
        "conv2_b": _uniform(ks[3], (32,), 16 * 4 * 4),
        "fc1_w": _uniform(ks[4], (32 * 9 * 9, 256), 32 * 9 * 9),  # (in, out)
        "fc1_b": _uniform(ks[5], (256,), 32 * 9 * 9),
        "fc2_w": _uniform(ks[6], (256, n_actions), 256),          # (in, out)
        "fc2_b": _uniform(ks[7], (n_actions,), 256),
    }


def prepare_params(params):
    """One-time cast/reshape to kernel-ready bf16/f32 layouts (hoisted out of
    the per-forward jit, so no per-call weight casts)."""
    w2 = params["conv2_w"]
    return {
        "conv1_w2": params["conv1_w"].reshape(16, 64).astype(jnp.bfloat16),
        "conv1_bc": params["conv1_b"].reshape(16, 1).astype(jnp.float32),
        "conv2_w2": w2.reshape(32, 256).astype(jnp.bfloat16),
        # per-(kh,kw) weight slices for the B=1 fused kernel: (16, 32, 16)
        "conv2_wk": w2.transpose(2, 3, 0, 1).reshape(16, 32, 16)
                      .astype(jnp.bfloat16),
        "conv2_bc": params["conv2_b"].reshape(32, 1).astype(jnp.float32),
        "s2": _build_conv2_select(),                               # (16,400,81)
        "fc1_wr": params["fc1_w"].reshape(32, 81, 256).astype(jnp.bfloat16),
        "fc1_br": params["fc1_b"].reshape(1, 256).astype(jnp.float32),
        "fc2_w": params["fc2_w"].astype(jnp.bfloat16),
        "fc2_br": params["fc2_b"].reshape(1, -1).astype(jnp.float32),
    }


# ----------------------------------------------------------------------------
# Forward
# ----------------------------------------------------------------------------
def _forward_b1(p, x):
    x_cm = x.reshape(1, 1, 84, 84).astype(jnp.bfloat16)
    p1, _, _ = _im2col_cm(x_cm, 8, 4)                 # (64, 400), tiny glue
    n_act = p["fc2_w"].shape[-1]
    args = (p1, p["conv1_w2"], p["conv1_bc"], p["s2"], p["conv2_wk"],
            p["conv2_bc"], p["fc1_wr"], p["fc1_br"], p["fc2_w"], p["fc2_br"])
    return pl.pallas_call(
        _fused_b1_kernel,
        out_shape=jax.ShapeDtypeStruct((1, n_act), jnp.float32),
        grid=(1,),
        in_specs=[_resident_spec(a) for a in args],
        out_specs=pl.BlockSpec((1, n_act), lambda i: (0, 0)),
        compiler_params=pltpu.CompilerParams(
            dimension_semantics=("arbitrary",)),
    )(*args)


def _forward_batch(p, x, B):
    # Cin == 1 so (B,1,H,W) -> (1,B,H,W) is a pure reshape (channel-major).
    x_cm = x.reshape(B, 1, 84, 84).reshape(1, B, 84, 84).astype(jnp.bfloat16)

    patches1, _, _ = _im2col_cm(x_cm, 8, 4)                    # (64, B*400)
    a1 = _conv_matmul(p["conv1_w2"], patches1, p["conv1_bc"], relu=True,
                      out_dtype=jnp.bfloat16, tn_target=12800)  # (16, B*400)
    a1_cm = a1.reshape(16, B, 20, 20)

    patches2, _, _ = _im2col_cm(a1_cm, 4, 2)                   # (256, B*81)
    a2 = _conv_matmul(p["conv2_w2"], patches2, p["conv2_bc"], relu=True,
                      out_dtype=jnp.bfloat16, tn_target=3456)   # (32, B*81)
    a2_cm = a2.reshape(32, B, 81)

    return _fc_fused(a2_cm, p["fc1_wr"], p["fc1_br"],
                     p["fc2_w"], p["fc2_br"], tm=128)           # (B, n_act)


@jax.jit
def convnet2_forward(params, x):
    # Mirrors the PyTorch module: batch inferred as 1 or 256 from x.size.
    if x.size == 84 * 84:
        return _forward_b1(params, x)
    return _forward_batch(params, x, 256)


# ----------------------------------------------------------------------------
# f32 reference (for a loose tolerance check of the bf16 kernels)
# ----------------------------------------------------------------------------
def reference_forward(params, x):
    if x.size == 84 * 84:
        xr = x.reshape(1, 1, 84, 84)
    else:
        xr = x.reshape(256, 1, 84, 84)
    dn = ("NCHW", "OIHW", "NCHW")
    a1 = jax.nn.relu(jax.lax.conv_general_dilated(
        xr, params["conv1_w"], (4, 4), "VALID", dimension_numbers=dn)
        + params["conv1_b"].reshape(1, -1, 1, 1))
    a2 = jax.nn.relu(jax.lax.conv_general_dilated(
        a1, params["conv2_w"], (2, 2), "VALID", dimension_numbers=dn)
        + params["conv2_b"].reshape(1, -1, 1, 1))
    flat = a2.reshape(a2.shape[0], -1)
    h = jax.nn.relu(flat @ params["fc1_w"] + params["fc1_b"])
    return h @ params["fc2_w"] + params["fc2_b"]


def _check_close(out, ref, tol=0.08):
    err = float(jnp.max(jnp.abs(out.astype(jnp.float32) - ref)))
    scale = float(jnp.max(jnp.abs(ref))) + 1e-6
    rel = err / scale
    assert rel < tol, f"mismatch vs f32 reference: rel-max err {rel:.4f}"


if __name__ == "__main__":
    n_actions = 6
    key = jax.random.PRNGKey(0)
    k_param, k_x1, k_x2 = jax.random.split(key, 3)

    params = init_params(n_actions, k_param)
    prepped = prepare_params(params)

    # B=1 branch: flat 84*84 input (the module reshapes it to (1,1,84,84)).
    x1 = jax.random.normal(k_x1, (84 * 84,), dtype=jnp.float32)
    out1 = jax.block_until_ready(convnet2_forward(prepped, x1))
    assert out1.shape == (1, n_actions), out1.shape
    assert bool(jnp.all(jnp.isfinite(out1)))
    _check_close(out1, reference_forward(params, x1))

    # B=256 branch.
    x2 = jax.random.normal(k_x2, (256 * 84 * 84,), dtype=jnp.float32)
    out2 = jax.block_until_ready(convnet2_forward(prepped, x2))
    assert out2.shape == (256, n_actions), out2.shape
    assert bool(jnp.all(jnp.isfinite(out2)))
    _check_close(out2, reference_forward(params, x2))

    print("KERNEL_OK")
</pallas_src>

<mosaic_0001>
module attributes {stable_mosaic.version = 11 : i64} {
  func.func @_fused_b1_kernel(%arg0: i32, %arg1: memref<64x400xbf16, #tpu.memory_space<vmem>>, %arg2: memref<16x64xbf16, #tpu.memory_space<vmem>>, %arg3: memref<16x1xf32, #tpu.memory_space<vmem>>, %arg4: memref<16x400x81xbf16, #tpu.memory_space<vmem>>, %arg5: memref<16x32x16xbf16, #tpu.memory_space<vmem>>, %arg6: memref<32x1xf32, #tpu.memory_space<vmem>>, %arg7: memref<32x81x256xbf16, #tpu.memory_space<vmem>>, %arg8: memref<1x256xf32, #tpu.memory_space<vmem>>, %arg9: memref<256x6xbf16, #tpu.memory_space<vmem>>, %arg10: memref<1x6xf32, #tpu.memory_space<vmem>>, %arg11: memref<1x6xf32, #tpu.memory_space<vmem>>) attributes {dimension_semantics = [#tpu.dimension_semantics<arbitrary>], iteration_bounds = array<i64: 1>, scalar_prefetch = 0 : i64, scratch_operands = 0 : i64, tpu.core_type = #tpu.core_type<tc>, window_params = [{pipeline_mode = #tpu.pipeline_mode<synchronous>, transform_indices = @transform_0, window_bounds = array<i64: 64, 400>}, {pipeline_mode = #tpu.pipeline_mode<synchronous>, transform_indices = @transform_1, window_bounds = array<i64: 16, 64>}, {pipeline_mode = #tpu.pipeline_mode<synchronous>, transform_indices = @transform_2, window_bounds = array<i64: 16, 1>}, {pipeline_mode = #tpu.pipeline_mode<synchronous>, transform_indices = @transform_3, window_bounds = array<i64: 16, 400, 81>}, {pipeline_mode = #tpu.pipeline_mode<synchronous>, transform_indices = @transform_4, window_bounds = array<i64: 16, 32, 16>}, {pipeline_mode = #tpu.pipeline_mode<synchronous>, transform_indices = @transform_5, window_bounds = array<i64: 32, 1>}, {pipeline_mode = #tpu.pipeline_mode<synchronous>, transform_indices = @transform_6, window_bounds = array<i64: 32, 81, 256>}, {pipeline_mode = #tpu.pipeline_mode<synchronous>, transform_indices = @transform_7, window_bounds = array<i64: 1, 256>}, {pipeline_mode = #tpu.pipeline_mode<synchronous>, transform_indices = @transform_8, window_bounds = array<i64: 256, 6>}, {pipeline_mode = #tpu.pipeline_mode<synchronous>, transform_indices = @transform_9, window_bounds = array<i64: 1, 6>}, {pipeline_mode = #tpu.pipeline_mode<synchronous>, transform_indices = @transform_10, window_bounds = array<i64: 1, 6>}]} {
    %c0 = arith.constant 0 : index
    %c0_0 = arith.constant 0 : index
    %0 = vector.load %arg2[%c0, %c0_0] : memref<16x64xbf16, #tpu.memory_space<vmem>>, vector<16x64xbf16>
    %c0_1 = arith.constant 0 : index
    %c0_2 = arith.constant 0 : index
    %1 = vector.load %arg1[%c0_1, %c0_2] : memref<64x400xbf16, #tpu.memory_space<vmem>>, vector<64x400xbf16>
    %cst = arith.constant dense<0.000000e+00> : vector<16x400xf32>
    %2 = tpu.matmul %0, %1, %cst {dimension_numbers = #tpu.dot_dimension_numbers<[1], [0], [0], [1], [0, 0, 1, 1], [], []>} : vector<16x64xbf16>, vector<64x400xbf16>, vector<16x400xf32> -> vector<16x400xf32>
    %c0_3 = arith.constant 0 : index
    %c0_4 = arith.constant 0 : index
    %3 = vector.load %arg3[%c0_3, %c0_4] : memref<16x1xf32, #tpu.memory_space<vmem>>, vector<16x1xf32>
    %4 = vector.broadcast %3 : vector<16x1xf32> to vector<16x400xf32>
    %5 = arith.addf %2, %4 : vector<16x400xf32>
    %cst_5 = arith.constant 0.000000e+00 : f32
    %6 = vector.broadcast %cst_5 : f32 to vector<16x400xf32>
    %7 = arith.maximumf %5, %6 : vector<16x400xf32>
    %8 = arith.truncf %7 : vector<16x400xf32> to vector<16x400xbf16>
    %cst_6 = arith.constant 0.000000e+00 : f32
    %9 = vector.broadcast %cst_6 : f32 to vector<32x81xf32>
    %c0_7 = arith.constant 0 : index
    %c0_8 = arith.constant 0 : index
    %c0_9 = arith.constant 0 : index
    %10 = vector.load %arg4[%c0_7, %c0_8, %c0_9] : memref<16x400x81xbf16, #tpu.memory_space<vmem>>, vector<1x400x81xbf16>
    %11 = vector.shape_cast %10 : vector<1x400x81xbf16> to vector<400x81xbf16>
    %cst_10 = arith.constant dense<0.000000e+00> : vector<16x81xf32>
    %12 = tpu.matmul %8, %11, %cst_10 {dimension_numbers = #tpu.dot_dimension_numbers<[1], [0], [0], [1], [0, 0, 1, 1], [], []>} : vector<16x400xbf16>, vector<400x81xbf16>, vector<16x81xf32> -> vector<16x81xf32>
    %c0_11 = arith.constant 0 : index
    %c0_12 = arith.constant 0 : index
    %c0_13 = arith.constant 0 : index
    %13 = vector.load %arg5[%c0_11, %c0_12, %c0_13] : memref<16x32x16xbf16, #tpu.memory_space<vmem>>, vector<1x32x16xbf16>
    %14 = vector.shape_cast %13 : vector<1x32x16xbf16> to vector<32x16xbf16>
    %15 = arith.truncf %12 : vector<16x81xf32> to vector<16x81xbf16>
    %cst_14 = arith.constant dense<0.000000e+00> : vector<32x81xf32>
    %16 = tpu.matmul %14, %15, %cst_14 {dimension_numbers = #tpu.dot_dimension_numbers<[1], [0], [0], [1], [0, 0, 1, 1], [], []>} : vector<32x16xbf16>, vector<16x81xbf16>, vector<32x81xf32> -> vector<32x81xf32>
    %17 = arith.addf %9, %16 : vector<32x81xf32>
    %c1 = arith.constant 1 : index
    %c0_15 = arith.constant 0 : index
    %c0_16 = arith.constant 0 : index
    %18 = vector.load %arg4[%c1, %c0_15, %c0_16] : memref<16x400x81xbf16, #tpu.memory_space<vmem>>, vector<1x400x81xbf16>
    %19 = vector.shape_cast %18 : vector<1x400x81xbf16> to vector<400x81xbf16>
    %cst_17 = arith.constant dense<0.000000e+00> : vector<16x81xf32>
    %20 = tpu.matmul %8, %19, %cst_17 {dimension_numbers = #tpu.dot_dimension_numbers<[1], [0], [0], [1], [0, 0, 1, 1], [], []>} : vector<16x400xbf16>, vector<400x81xbf16>, vector<16x81xf32> -> vector<16x81xf32>
    %c1_18 = arith.constant 1 : index
    %c0_19 = arith.constant 0 : index
    %c0_20 = arith.constant 0 : index
    %21 = vector.load %arg5[%c1_18, %c0_19, %c0_20] : memref<16x32x16xbf16, #tpu.memory_space<vmem>>, vector<1x32x16xbf16>
    %22 = vector.shape_cast %21 : vector<1x32x16xbf16> to vector<32x16xbf16>
    %23 = arith.truncf %20 : vector<16x81xf32> to vector<16x81xbf16>
    %cst_21 = arith.constant dense<0.000000e+00> : vector<32x81xf32>
    %24 = tpu.matmul %22, %23, %cst_21 {dimension_numbers = #tpu.dot_dimension_numbers<[1], [0], [0], [1], [0, 0, 1, 1], [], []>} : vector<32x16xbf16>, vector<16x81xbf16>, vector<32x81xf32> -> vector<32x81xf32>
    %25 = arith.addf %17, %24 : vector<32x81xf32>
    %c2 = arith.constant 2 : index
    %c0_22 = arith.constant 0 : index
    %c0_23 = arith.constant 0 : index
    %26 = vector.load %arg4[%c2, %c0_22, %c0_23] : memref<16x400x81xbf16, #tpu.memory_space<vmem>>, vector<1x400x81xbf16>
    %27 = vector.shape_cast %26 : vector<1x400x81xbf16> to vector<400x81xbf16>
    %cst_24 = arith.constant dense<0.000000e+00> : vector<16x81xf32>
    %28 = tpu.matmul %8, %27, %cst_24 {dimension_numbers = #tpu.dot_dimension_numbers<[1], [0], [0], [1], [0, 0, 1, 1], [], []>} : vector<16x400xbf16>, vector<400x81xbf16>, vector<16x81xf32> -> vector<16x81xf32>
    %c2_25 = arith.constant 2 : index
    %c0_26 = arith.constant 0 : index
    %c0_27 = arith.constant 0 : index
    %29 = vector.load %arg5[%c2_25, %c0_26, %c0_27] : memref<16x32x16xbf16, #tpu.memory_space<vmem>>, vector<1x32x16xbf16>
    %30 = vector.shape_cast %29 : vector<1x32x16xbf16> to vector<32x16xbf16>
    %31 = arith.truncf %28 : vector<16x81xf32> to vector<16x81xbf16>
    %cst_28 = arith.constant dense<0.000000e+00> : vector<32x81xf32>
    %32 = tpu.matmul %30, %31, %cst_28 {dimension_numbers = #tpu.dot_dimension_numbers<[1], [0], [0], [1], [0, 0, 1, 1], [], []>} : vector<32x16xbf16>, vector<16x81xbf16>, vector<32x81xf32> -> vector<32x81xf32>
    %33 = arith.addf %25, %32 : vector<32x81xf32>
    %c3 = arith.constant 3 : index
    %c0_29 = arith.constant 0 : index
    %c0_30 = arith.constant 0 : index
    %34 = vector.load %arg4[%c3, %c0_29, %c0_30] : memref<16x400x81xbf16, #tpu.memory_space<vmem>>, vector<1x400x81xbf16>
    %35 = vector.shape_cast %34 : vector<1x400x81xbf16> to vector<400x81xbf16>
    %cst_31 = arith.constant dense<0.000000e+00> : vector<16x81xf32>
    %36 = tpu.matmul %8, %35, %cst_31 {dimension_numbers = #tpu.dot_dimension_numbers<[1], [0], [0], [1], [0, 0, 1, 1], [], []>} : vector<16x400xbf16>, vector<400x81xbf16>, vector<16x81xf32> -> vector<16x81xf32>
    %c3_32 = arith.constant 3 : index
    %c0_33 = arith.constant 0 : index
    %c0_34 = arith.constant 0 : index
    %37 = vector.load %arg5[%c3_32, %c0_33, %c0_34] : memref<16x32x16xbf16, #tpu.memory_space<vmem>>, vector<1x32x16xbf16>
    %38 = vector.shape_cast %37 : vector<1x32x16xbf16> to vector<32x16xbf16>
    %39 = arith.truncf %36 : vector<16x81xf32> to vector<16x81xbf16>
    %cst_35 = arith.constant dense<0.000000e+00> : vector<32x81xf32>
    %40 = tpu.matmul %38, %39, %cst_35 {dimension_numbers = #tpu.dot_dimension_numbers<[1], [0], [0], [1], [0, 0, 1, 1], [], []>} : vector<32x16xbf16>, vector<16x81xbf16>, vector<32x81xf32> -> vector<32x81xf32>
    %41 = arith.addf %33, %40 : vector<32x81xf32>
    %c4 = arith.constant 4 : index
    %c0_36 = arith.constant 0 : index
    %c0_37 = arith.constant 0 : index
    %42 = vector.load %arg4[%c4, %c0_36, %c0_37] : memref<16x400x81xbf16, #tpu.memory_space<vmem>>, vector<1x400x81xbf16>
    %43 = vector.shape_cast %42 : vector<1x400x81xbf16> to vector<400x81xbf16>
    %cst_38 = arith.constant dense<0.000000e+00> : vector<16x81xf32>
    %44 = tpu.matmul %8, %43, %cst_38 {dimension_numbers = #tpu.dot_dimension_numbers<[1], [0], [0], [1], [0, 0, 1, 1], [], []>} : vector<16x400xbf16>, vector<400x81xbf16>, vector<16x81xf32> -> vector<16x81xf32>
    %c4_39 = arith.constant 4 : index
    %c0_40 = arith.constant 0 : index
    %c0_41 = arith.constant 0 : index
    %45 = vector.load %arg5[%c4_39, %c0_40, %c0_41] : memref<16x32x16xbf16, #tpu.memory_space<vmem>>, vector<1x32x16xbf16>
    %46 = vector.shape_cast %45 : vector<1x32x16xbf16> to vector<32x16xbf16>
    %47 = arith.truncf %44 : vector<16x81xf32> to vector<16x81xbf16>
    %cst_42 = arith.constant dense<0.000000e+00> : vector<32x81xf32>
    %48 = tpu.matmul %46, %47, %cst_42 {dimension_numbers = #tpu.dot_dimension_numbers<[1], [0], [0], [1], [0, 0, 1, 1], [], []>} : vector<32x16xbf16>, vector<16x81xbf16>, vector<32x81xf32> -> vector<32x81xf32>
    %49 = arith.addf %41, %48 : vector<32x81xf32>
    %c5 = arith.constant 5 : index
    %c0_43 = arith.constant 0 : index
    %c0_44 = arith.constant 0 : index
    %50 = vector.load %arg4[%c5, %c0_43, %c0_44] : memref<16x400x81xbf16, #tpu.memory_space<vmem>>, vector<1x400x81xbf16>
    %51 = vector.shape_cast %50 : vector<1x400x81xbf16> to vector<400x81xbf16>
    %cst_45 = arith.constant dense<0.000000e+00> : vector<16x81xf32>
    %52 = tpu.matmul %8, %51, %cst_45 {dimension_numbers = #tpu.dot_dimension_numbers<[1], [0], [0], [1], [0, 0, 1, 1], [], []>} : vector<16x400xbf16>, vector<400x81xbf16>, vector<16x81xf32> -> vector<16x81xf32>
    %c5_46 = arith.constant 5 : index
    %c0_47 = arith.constant 0 : index
    %c0_48 = arith.constant 0 : index
    %53 = vector.load %arg5[%c5_46, %c0_47, %c0_48] : memref<16x32x16xbf16, #tpu.memory_space<vmem>>, vector<1x32x16xbf16>
    %54 = vector.shape_cast %53 : vector<1x32x16xbf16> to vector<32x16xbf16>
    %55 = arith.truncf %52 : vector<16x81xf32> to vector<16x81xbf16>
    %cst_49 = arith.constant dense<0.000000e+00> : vector<32x81xf32>
    %56 = tpu.matmul %54, %55, %cst_49 {dimension_numbers = #tpu.dot_dimension_numbers<[1], [0], [0], [1], [0, 0, 1, 1], [], []>} : vector<32x16xbf16>, vector<16x81xbf16>, vector<32x81xf32> -> vector<32x81xf32>
    %57 = arith.addf %49, %56 : vector<32x81xf32>
    %c6 = arith.constant 6 : index
    %c0_50 = arith.constant 0 : index
    %c0_51 = arith.constant 0 : index
    %58 = vector.load %arg4[%c6, %c0_50, %c0_51] : memref<16x400x81xbf16, #tpu.memory_space<vmem>>, vector<1x400x81xbf16>
    %59 = vector.shape_cast %58 : vector<1x400x81xbf16> to vector<400x81xbf16>
    %cst_52 = arith.constant dense<0.000000e+00> : vector<16x81xf32>
    %60 = tpu.matmul %8, %59, %cst_52 {dimension_numbers = #tpu.dot_dimension_numbers<[1], [0], [0], [1], [0, 0, 1, 1], [], []>} : vector<16x400xbf16>, vector<400x81xbf16>, vector<16x81xf32> -> vector<16x81xf32>
    %c6_53 = arith.constant 6 : index
    %c0_54 = arith.constant 0 : index
    %c0_55 = arith.constant 0 : index
    %61 = vector.load %arg5[%c6_53, %c0_54, %c0_55] : memref<16x32x16xbf16, #tpu.memory_space<vmem>>, vector<1x32x16xbf16>
    %62 = vector.shape_cast %61 : vector<1x32x16xbf16> to vector<32x16xbf16>
    %63 = arith.truncf %60 : vector<16x81xf32> to vector<16x81xbf16>
    %cst_56 = arith.constant dense<0.000000e+00> : vector<32x81xf32>
    %64 = tpu.matmul %62, %63, %cst_56 {dimension_numbers = #tpu.dot_dimension_numbers<[1], [0], [0], [1], [0, 0, 1, 1], [], []>} : vector<32x16xbf16>, vector<16x81xbf16>, vector<32x81xf32> -> vector<32x81xf32>
    %65 = arith.addf %57, %64 : vector<32x81xf32>
    %c7 = arith.constant 7 : index
    %c0_57 = arith.constant 0 : index
    %c0_58 = arith.constant 0 : index
    %66 = vector.load %arg4[%c7, %c0_57, %c0_58] : memref<16x400x81xbf16, #tpu.memory_space<vmem>>, vector<1x400x81xbf16>
    %67 = vector.shape_cast %66 : vector<1x400x81xbf16> to vector<400x81xbf16>
    %cst_59 = arith.constant dense<0.000000e+00> : vector<16x81xf32>
    %68 = tpu.matmul %8, %67, %cst_59 {dimension_numbers = #tpu.dot_dimension_numbers<[1], [0], [0], [1], [0, 0, 1, 1], [], []>} : vector<16x400xbf16>, vector<400x81xbf16>, vector<16x81xf32> -> vector<16x81xf32>
    %c7_60 = arith.constant 7 : index
    %c0_61 = arith.constant 0 : index
    %c0_62 = arith.constant 0 : index
    %69 = vector.load %arg5[%c7_60, %c0_61, %c0_62] : memref<16x32x16xbf16, #tpu.memory_space<vmem>>, vector<1x32x16xbf16>
    %70 = vector.shape_cast %69 : vector<1x32x16xbf16> to vector<32x16xbf16>
    %71 = arith.truncf %68 : vector<16x81xf32> to vector<16x81xbf16>
    %cst_63 = arith.constant dense<0.000000e+00> : vector<32x81xf32>
    %72 = tpu.matmul %70, %71, %cst_63 {dimension_numbers = #tpu.dot_dimension_numbers<[1], [0], [0], [1], [0, 0, 1, 1], [], []>} : vector<32x16xbf16>, vector<16x81xbf16>, vector<32x81xf32> -> vector<32x81xf32>
    %73 = arith.addf %65, %72 : vector<32x81xf32>
    %c8 = arith.constant 8 : index
    %c0_64 = arith.constant 0 : index
    %c0_65 = arith.constant 0 : index
    %74 = vector.load %arg4[%c8, %c0_64, %c0_65] : memref<16x400x81xbf16, #tpu.memory_space<vmem>>, vector<1x400x81xbf16>
    %75 = vector.shape_cast %74 : vector<1x400x81xbf16> to vector<400x81xbf16>
    %cst_66 = arith.constant dense<0.000000e+00> : vector<16x81xf32>
    %76 = tpu.matmul %8, %75, %cst_66 {dimension_numbers = #tpu.dot_dimension_numbers<[1], [0], [0], [1], [0, 0, 1, 1], [], []>} : vector<16x400xbf16>, vector<400x81xbf16>, vector<16x81xf32> -> vector<16x81xf32>
    %c8_67 = arith.constant 8 : index
    %c0_68 = arith.constant 0 : index
    %c0_69 = arith.constant 0 : index
    %77 = vector.load %arg5[%c8_67, %c0_68, %c0_69] : memref<16x32x16xbf16, #tpu.memory_space<vmem>>, vector<1x32x16xbf16>
    %78 = vector.shape_cast %77 : vector<1x32x16xbf16> to vector<32x16xbf16>
    %79 = arith.truncf %76 : vector<16x81xf32> to vector<16x81xbf16>
    %cst_70 = arith.constant dense<0.000000e+00> : vector<32x81xf32>
    %80 = tpu.matmul %78, %79, %cst_70 {dimension_numbers = #tpu.dot_dimension_numbers<[1], [0], [0], [1], [0, 0, 1, 1], [], []>} : vector<32x16xbf16>, vector<16x81xbf16>, vector<32x81xf32> -> vector<32x81xf32>
    %81 = arith.addf %73, %80 : vector<32x81xf32>
    %c9 = arith.constant 9 : index
    %c0_71 = arith.constant 0 : index
    %c0_72 = arith.constant 0 : index
    %82 = vector.load %arg4[%c9, %c0_71, %c0_72] : memref<16x400x81xbf16, #tpu.memory_space<vmem>>, vector<1x400x81xbf16>
    %83 = vector.shape_cast %82 : vector<1x400x81xbf16> to vector<400x81xbf16>
    %cst_73 = arith.constant dense<0.000000e+00> : vector<16x81xf32>
    %84 = tpu.matmul %8, %83, %cst_73 {dimension_numbers = #tpu.dot_dimension_numbers<[1], [0], [0], [1], [0, 0, 1, 1], [], []>} : vector<16x400xbf16>, vector<400x81xbf16>, vector<16x81xf32> -> vector<16x81xf32>
    %c9_74 = arith.constant 9 : index
    %c0_75 = arith.constant 0 : index
    %c0_76 = arith.constant 0 : index
    %85 = vector.load %arg5[%c9_74, %c0_75, %c0_76] : memref<16x32x16xbf16, #tpu.memory_space<vmem>>, vector<1x32x16xbf16>
    %86 = vector.shape_cast %85 : vector<1x32x16xbf16> to vector<32x16xbf16>
    %87 = arith.truncf %84 : vector<16x81xf32> to vector<16x81xbf16>
    %cst_77 = arith.constant dense<0.000000e+00> : vector<32x81xf32>
    %88 = tpu.matmul %86, %87, %cst_77 {dimension_numbers = #tpu.dot_dimension_numbers<[1], [0], [0], [1], [0, 0, 1, 1], [], []>} : vector<32x16xbf16>, vector<16x81xbf16>, vector<32x81xf32> -> vector<32x81xf32>
    %89 = arith.addf %81, %88 : vector<32x81xf32>
    %c10 = arith.constant 10 : index
    %c0_78 = arith.constant 0 : index
    %c0_79 = arith.constant 0 : index
    %90 = vector.load %arg4[%c10, %c0_78, %c0_79] : memref<16x400x81xbf16, #tpu.memory_space<vmem>>, vector<1x400x81xbf16>
    %91 = vector.shape_cast %90 : vector<1x400x81xbf16> to vector<400x81xbf16>
    %cst_80 = arith.constant dense<0.000000e+00> : vector<16x81xf32>
    %92 = tpu.matmul %8, %91, %cst_80 {dimension_numbers = #tpu.dot_dimension_numbers<[1], [0], [0], [1], [0, 0, 1, 1], [], []>} : vector<16x400xbf16>, vector<400x81xbf16>, vector<16x81xf32> -> vector<16x81xf32>
    %c10_81 = arith.constant 10 : index
    %c0_82 = arith.constant 0 : index
    %c0_83 = arith.constant 0 : index
    %93 = vector.load %arg5[%c10_81, %c0_82, %c0_83] : memref<16x32x16xbf16, #tpu.memory_space<vmem>>, vector<1x32x16xbf16>
    %94 = vector.shape_cast %93 : vector<1x32x16xbf16> to vector<32x16xbf16>
    %95 = arith.truncf %92 : vector<16x81xf32> to vector<16x81xbf16>
    %cst_84 = arith.constant dense<0.000000e+00> : vector<32x81xf32>
    %96 = tpu.matmul %94, %95, %cst_84 {dimension_numbers = #tpu.dot_dimension_numbers<[1], [0], [0], [1], [0, 0, 1, 1], [], []>} : vector<32x16xbf16>, vector<16x81xbf16>, vector<32x81xf32> -> vector<32x81xf32>
    %97 = arith.addf %89, %96 : vector<32x81xf32>
    %c11 = arith.constant 11 : index
    %c0_85 = arith.constant 0 : index
    %c0_86 = arith.constant 0 : index
    %98 = vector.load %arg4[%c11, %c0_85, %c0_86] : memref<16x400x81xbf16, #tpu.memory_space<vmem>>, vector<1x400x81xbf16>
    %99 = vector.shape_cast %98 : vector<1x400x81xbf16> to vector<400x81xbf16>
    %cst_87 = arith.constant dense<0.000000e+00> : vector<16x81xf32>
    %100 = tpu.matmul %8, %99, %cst_87 {dimension_numbers = #tpu.dot_dimension_numbers<[1], [0], [0], [1], [0, 0, 1, 1], [], []>} : vector<16x400xbf16>, vector<400x81xbf16>, vector<16x81xf32> -> vector<16x81xf32>
    %c11_88 = arith.constant 11 : index
    %c0_89 = arith.constant 0 : index
    %c0_90 = arith.constant 0 : index
    %101 = vector.load %arg5[%c11_88, %c0_89, %c0_90] : memref<16x32x16xbf16, #tpu.memory_space<vmem>>, vector<1x32x16xbf16>
    %102 = vector.shape_cast %101 : vector<1x32x16xbf16> to vector<32x16xbf16>
    %103 = arith.truncf %100 : vector<16x81xf32> to vector<16x81xbf16>
    %cst_91 = arith.constant dense<0.000000e+00> : vector<32x81xf32>
    %104 = tpu.matmul %102, %103, %cst_91 {dimension_numbers = #tpu.dot_dimension_numbers<[1], [0], [0], [1], [0, 0, 1, 1], [], []>} : vector<32x16xbf16>, vector<16x81xbf16>, vector<32x81xf32> -> vector<32x81xf32>
    %105 = arith.addf %97, %104 : vector<32x81xf32>
    %c12 = arith.constant 12 : index
    %c0_92 = arith.constant 0 : index
    %c0_93 = arith.constant 0 : index
    %106 = vector.load %arg4[%c12, %c0_92, %c0_93] : memref<16x400x81xbf16, #tpu.memory_space<vmem>>, vector<1x400x81xbf16>
    %107 = vector.shape_cast %106 : vector<1x400x81xbf16> to vector<400x81xbf16>
    %cst_94 = arith.constant dense<0.000000e+00> : vector<16x81xf32>
    %108 = tpu.matmul %8, %107, %cst_94 {dimension_numbers = #tpu.dot_dimension_numbers<[1], [0], [0], [1], [0, 0, 1, 1], [], []>} : vector<16x400xbf16>, vector<400x81xbf16>, vector<16x81xf32> -> vector<16x81xf32>
    %c12_95 = arith.constant 12 : index
    %c0_96 = arith.constant 0 : index
    %c0_97 = arith.constant 0 : index
    %109 = vector.load %arg5[%c12_95, %c0_96, %c0_97] : memref<16x32x16xbf16, #tpu.memory_space<vmem>>, vector<1x32x16xbf16>
    %110 = vector.shape_cast %109 : vector<1x32x16xbf16> to vector<32x16xbf16>
    %111 = arith.truncf %108 : vector<16x81xf32> to vector<16x81xbf16>
    %cst_98 = arith.constant dense<0.000000e+00> : vector<32x81xf32>
    %112 = tpu.matmul %110, %111, %cst_98 {dimension_numbers = #tpu.dot_dimension_numbers<[1], [0], [0], [1], [0, 0, 1, 1], [], []>} : vector<32x16xbf16>, vector<16x81xbf16>, vector<32x81xf32> -> vector<32x81xf32>
    %113 = arith.addf %105, %112 : vector<32x81xf32>
    %c13 = arith.constant 13 : index
    %c0_99 = arith.constant 0 : index
    %c0_100 = arith.constant 0 : index
    %114 = vector.load %arg4[%c13, %c0_99, %c0_100] : memref<16x400x81xbf16, #tpu.memory_space<vmem>>, vector<1x400x81xbf16>
    %115 = vector.shape_cast %114 : vector<1x400x81xbf16> to vector<400x81xbf16>
    %cst_101 = arith.constant dense<0.000000e+00> : vector<16x81xf32>
    %116 = tpu.matmul %8, %115, %cst_101 {dimension_numbers = #tpu.dot_dimension_numbers<[1], [0], [0], [1], [0, 0, 1, 1], [], []>} : vector<16x400xbf16>, vector<400x81xbf16>, vector<16x81xf32> -> vector<16x81xf32>
    %c13_102 = arith.constant 13 : index
    %c0_103 = arith.constant 0 : index
    %c0_104 = arith.constant 0 : index
    %117 = vector.load %arg5[%c13_102, %c0_103, %c0_104] : memref<16x32x16xbf16, #tpu.memory_space<vmem>>, vector<1x32x16xbf16>
    %118 = vector.shape_cast %117 : vector<1x32x16xbf16> to vector<32x16xbf16>
    %119 = arith.truncf %116 : vector<16x81xf32> to vector<16x81xbf16>
    %cst_105 = arith.constant dense<0.000000e+00> : vector<32x81xf32>
    %120 = tpu.matmul %118, %119, %cst_105 {dimension_numbers = #tpu.dot_dimension_numbers<[1], [0], [0], [1], [0, 0, 1, 1], [], []>} : vector<32x16xbf16>, vector<16x81xbf16>, vector<32x81xf32> -> vector<32x81xf32>
    %121 = arith.addf %113, %120 : vector<32x81xf32>
    %c14 = arith.constant 14 : index
    %c0_106 = arith.constant 0 : index
    %c0_107 = arith.constant 0 : index
    %122 = vector.load %arg4[%c14, %c0_106, %c0_107] : memref<16x400x81xbf16, #tpu.memory_space<vmem>>, vector<1x400x81xbf16>
    %123 = vector.shape_cast %122 : vector<1x400x81xbf16> to vector<400x81xbf16>
    %cst_108 = arith.constant dense<0.000000e+00> : vector<16x81xf32>
    %124 = tpu.matmul %8, %123, %cst_108 {dimension_numbers = #tpu.dot_dimension_numbers<[1], [0], [0], [1], [0, 0, 1, 1], [], []>} : vector<16x400xbf16>, vector<400x81xbf16>, vector<16x81xf32> -> vector<16x81xf32>
    %c14_109 = arith.constant 14 : index
    %c0_110 = arith.constant 0 : index
    %c0_111 = arith.constant 0 : index
    %125 = vector.load %arg5[%c14_109, %c0_110, %c0_111] : memref<16x32x16xbf16, #tpu.memory_space<vmem>>, vector<1x32x16xbf16>
    %126 = vector.shape_cast %125 : vector<1x32x16xbf16> to vector<32x16xbf16>
    %127 = arith.truncf %124 : vector<16x81xf32> to vector<16x81xbf16>
    %cst_112 = arith.constant dense<0.000000e+00> : vector<32x81xf32>
    %128 = tpu.matmul %126, %127, %cst_112 {dimension_numbers = #tpu.dot_dimension_numbers<[1], [0], [0], [1], [0, 0, 1, 1], [], []>} : vector<32x16xbf16>, vector<16x81xbf16>, vector<32x81xf32> -> vector<32x81xf32>
    %129 = arith.addf %121, %128 : vector<32x81xf32>
    %c15 = arith.constant 15 : index
    %c0_113 = arith.constant 0 : index
    %c0_114 = arith.constant 0 : index
    %130 = vector.load %arg4[%c15, %c0_113, %c0_114] : memref<16x400x81xbf16, #tpu.memory_space<vmem>>, vector<1x400x81xbf16>
    %131 = vector.shape_cast %130 : vector<1x400x81xbf16> to vector<400x81xbf16>
    %cst_115 = arith.constant dense<0.000000e+00> : vector<16x81xf32>
    %132 = tpu.matmul %8, %131, %cst_115 {dimension_numbers = #tpu.dot_dimension_numbers<[1], [0], [0], [1], [0, 0, 1, 1], [], []>} : vector<16x400xbf16>, vector<400x81xbf16>, vector<16x81xf32> -> vector<16x81xf32>
    %c15_116 = arith.constant 15 : index
    %c0_117 = arith.constant 0 : index
    %c0_118 = arith.constant 0 : index
    %133 = vector.load %arg5[%c15_116, %c0_117, %c0_118] : memref<16x32x16xbf16, #tpu.memory_space<vmem>>, vector<1x32x16xbf16>
    %134 = vector.shape_cast %133 : vector<1x32x16xbf16> to vector<32x16xbf16>
    %135 = arith.truncf %132 : vector<16x81xf32> to vector<16x81xbf16>
    %cst_119 = arith.constant dense<0.000000e+00> : vector<32x81xf32>
    %136 = tpu.matmul %134, %135, %cst_119 {dimension_numbers = #tpu.dot_dimension_numbers<[1], [0], [0], [1], [0, 0, 1, 1], [], []>} : vector<32x16xbf16>, vector<16x81xbf16>, vector<32x81xf32> -> vector<32x81xf32>
    %137 = arith.addf %129, %136 : vector<32x81xf32>
    %c0_120 = arith.constant 0 : index
    %c0_121 = arith.constant 0 : index
    %138 = vector.load %arg6[%c0_120, %c0_121] : memref<32x1xf32, #tpu.memory_space<vmem>>, vector<32x1xf32>
    %139 = vector.broadcast %138 : vector<32x1xf32> to vector<32x81xf32>
    %140 = arith.addf %137, %139 : vector<32x81xf32>
    %cst_122 = arith.constant 0.000000e+00 : f32
    %141 = vector.broadcast %cst_122 : f32 to vector<32x81xf32>
    %142 = arith.maximumf %140, %141 : vector<32x81xf32>
    %143 = arith.truncf %142 : vector<32x81xf32> to vector<32x81xbf16>
    %cst_123 = arith.constant 0.000000e+00 : f32
    %144 = vector.broadcast %cst_123 : f32 to vector<1x256xf32>
    %145 = vector.extract_strided_slice %143 {offsets = [0, 0], sizes = [1, 81], strides = [1, 1]} : vector<32x81xbf16> to vector<1x81xbf16>
    %c0_124 = arith.constant 0 : index
    %c0_125 = arith.constant 0 : index
    %c0_126 = arith.constant 0 : index
    %146 = vector.load %arg7[%c0_124, %c0_125, %c0_126] : memref<32x81x256xbf16, #tpu.memory_space<vmem>>, vector<1x81x256xbf16>
    %147 = vector.shape_cast %146 : vector<1x81x256xbf16> to vector<81x256xbf16>
    %cst_127 = arith.constant dense<0.000000e+00> : vector<1x256xf32>
    %148 = tpu.matmul %145, %147, %cst_127 {dimension_numbers = #tpu.dot_dimension_numbers<[1], [0], [0], [1], [0, 0, 1, 1], [], []>} : vector<1x81xbf16>, vector<81x256xbf16>, vector<1x256xf32> -> vector<1x256xf32>
    %149 = arith.addf %144, %148 : vector<1x256xf32>
    %150 = vector.extract_strided_slice %143 {offsets = [1, 0], sizes = [1, 81], strides = [1, 1]} : vector<32x81xbf16> to vector<1x81xbf16>
    %c1_128 = arith.constant 1 : index
    %c0_129 = arith.constant 0 : index
    %c0_130 = arith.constant 0 : index
    %151 = vector.load %arg7[%c1_128, %c0_129, %c0_130] : memref<32x81x256xbf16, #tpu.memory_space<vmem>>, vector<1x81x256xbf16>
    %152 = vector.shape_cast %151 : vector<1x81x256xbf16> to vector<81x256xbf16>
    %cst_131 = arith.constant dense<0.000000e+00> : vector<1x256xf32>
    %153 = tpu.matmul %150, %152, %cst_131 {dimension_numbers = #tpu.dot_dimension_numbers<[1], [0], [0], [1], [0, 0, 1, 1], [], []>} : vector<1x81xbf16>, vector<81x256xbf16>, vector<1x256xf32> -> vector<1x256xf32>
    %154 = arith.addf %149, %153 : vector<1x256xf32>
    %155 = vector.extract_strided_slice %143 {offsets = [2, 0], sizes = [1, 81], strides = [1, 1]} : vector<32x81xbf16> to vector<1x81xbf16>
    %c2_132 = arith.constant 2 : index
    %c0_133 = arith.constant 0 : index
    %c0_134 = arith.constant 0 : index
    %156 = vector.load %arg7[%c2_132, %c0_133, %c0_134] : memref<32x81x256xbf16, #tpu.memory_space<vmem>>, vector<1x81x256xbf16>
    %157 = vector.shape_cast %156 : vector<1x81x256xbf16> to vector<81x256xbf16>
    %cst_135 = arith.constant dense<0.000000e+00> : vector<1x256xf32>
    %158 = tpu.matmul %155, %157, %cst_135 {dimension_numbers = #tpu.dot_dimension_numbers<[1], [0], [0], [1], [0, 0, 1, 1], [], []>} : vector<1x81xbf16>, vector<81x256xbf16>, vector<1x256xf32> -> vector<1x256xf32>
    %159 = arith.addf %154, %158 : vector<1x256xf32>
    %160 = vector.extract_strided_slice %143 {offsets = [3, 0], sizes = [1, 81], strides = [1, 1]} : vector<32x81xbf16> to vector<1x81xbf16>
    %c3_136 = arith.constant 3 : index
    %c0_137 = arith.constant 0 : index
    %c0_138 = arith.constant 0 : index
    %161 = vector.load %arg7[%c3_136, %c0_137, %c0_138] : memref<32x81x256xbf16, #tpu.memory_space<vmem>>, vector<1x81x256xbf16>
    %162 = vector.shape_cast %161 : vector<1x81x256xbf16> to vector<81x256xbf16>
    %cst_139 = arith.constant dense<0.000000e+00> : vector<1x256xf32>
    %163 = tpu.matmul %160, %162, %cst_139 {dimension_numbers = #tpu.dot_dimension_numbers<[1], [0], [0], [1], [0, 0, 1, 1], [], []>} : vector<1x81xbf16>, vector<81x256xbf16>, vector<1x256xf32> -> vector<1x256xf32>
    %164 = arith.addf %159, %163 : vector<1x256xf32>
    %165 = vector.extract_strided_slice %143 {offsets = [4, 0], sizes = [1, 81], strides = [1, 1]} : vector<32x81xbf16> to vector<1x81xbf16>
    %c4_140 = arith.constant 4 : index
    %c0_141 = arith.constant 0 : index
    %c0_142 = arith.constant 0 : index
    %166 = vector.load %arg7[%c4_140, %c0_141, %c0_142] : memref<32x81x256xbf16, #tpu.memory_space<vmem>>, vector<1x81x256xbf16>
    %167 = vector.shape_cast %166 : vector<1x81x256xbf16> to vector<81x256xbf16>
    %cst_143 = arith.constant dense<0.000000e+00> : vector<1x256xf32>
    %168 = tpu.matmul %165, %167, %cst_143 {dimension_numbers = #tpu.dot_dimension_numbers<[1], [0], [0], [1], [0, 0, 1, 1], [], []>} : vector<1x81xbf16>, vector<81x256xbf16>, vector<1x256xf32> -> vector<1x256xf32>
    %169 = arith.addf %164, %168 : vector<1x256xf32>
    %170 = vector.extract_strided_slice %143 {offsets = [5, 0], sizes = [1, 81], strides = [1, 1]} : vector<32x81xbf16> to vector<1x81xbf16>
    %c5_144 = arith.constant 5 : index
    %c0_145 = arith.constant 0 : index
    %c0_146 = arith.constant 0 : index
    %171 = vector.load %arg7[%c5_144, %c0_145, %c0_146] : memref<32x81x256xbf16, #tpu.memory_space<vmem>>, vector<1x81x256xbf16>
    %172 = vector.shape_cast %171 : vector<1x81x256xbf16> to vector<81x256xbf16>
    %cst_147 = arith.constant dense<0.000000e+00> : vector<1x256xf32>
    %173 = tpu.matmul %170, %172, %cst_147 {dimension_numbers = #tpu.dot_dimension_numbers<[1], [0], [0], [1], [0, 0, 1, 1], [], []>} : vector<1x81xbf16>, vector<81x256xbf16>, vector<1x256xf32> -> vector<1x256xf32>
    %174 = arith.addf %169, %173 : vector<1x256xf32>
    %175 = vector.extract_strided_slice %143 {offsets = [6, 0], sizes = [1, 81], strides = [1, 1]} : vector<32x81xbf16> to vector<1x81xbf16>
    %c6_148 = arith.constant 6 : index
    %c0_149 = arith.constant 0 : index
    %c0_150 = arith.constant 0 : index
    %176 = vector.load %arg7[%c6_148, %c0_149, %c0_150] : memref<32x81x256xbf16, #tpu.memory_space<vmem>>, vector<1x81x256xbf16>
    %177 = vector.shape_cast %176 : vector<1x81x256xbf16> to vector<81x256xbf16>
    %cst_151 = arith.constant dense<0.000000e+00> : vector<1x256xf32>
    %178 = tpu.matmul %175, %177, %cst_151 {dimension_numbers = #tpu.dot_dimension_numbers<[1], [0], [0], [1], [0, 0, 1, 1], [], []>} : vector<1x81xbf16>, vector<81x256xbf16>, vector<1x256xf32> -> vector<1x256xf32>
    %179 = arith.addf %174, %178 : vector<1x256xf32>
    %180 = vector.extract_strided_slice %143 {offsets = [7, 0], sizes = [1, 81], strides = [1, 1]} : vector<32x81xbf16> to vector<1x81xbf16>
    %c7_152 = arith.constant 7 : index
    %c0_153 = arith.constant 0 : index
    %c0_154 = arith.constant 0 : index
    %181 = vector.load %arg7[%c7_152, %c0_153, %c0_154] : memref<32x81x256xbf16, #tpu.memory_space<vmem>>, vector<1x81x256xbf16>
    %182 = vector.shape_cast %181 : vector<1x81x256xbf16> to vector<81x256xbf16>
    %cst_155 = arith.constant dense<0.000000e+00> : vector<1x256xf32>
    %183 = tpu.matmul %180, %182, %cst_155 {dimension_numbers = #tpu.dot_dimension_numbers<[1], [0], [0], [1], [0, 0, 1, 1], [], []>} : vector<1x81xbf16>, vector<81x256xbf16>, vector<1x256xf32> -> vector<1x256xf32>
    %184 = arith.addf %179, %183 : vector<1x256xf32>
    %185 = vector.extract_strided_slice %143 {offsets = [8, 0], sizes = [1, 81], strides = [1, 1]} : vector<32x81xbf16> to vector<1x81xbf16>
    %c8_156 = arith.constant 8 : index
    %c0_157 = arith.constant 0 : index
    %c0_158 = arith.constant 0 : index
    %186 = vector.load %arg7[%c8_156, %c0_157, %c0_158] : memref<32x81x256xbf16, #tpu.memory_space<vmem>>, vector<1x81x256xbf16>
    %187 = vector.shape_cast %186 : vector<1x81x256xbf16> to vector<81x256xbf16>
    %cst_159 = arith.constant dense<0.000000e+00> : vector<1x256xf32>
    %188 = tpu.matmul %185, %187, %cst_159 {dimension_numbers = #tpu.dot_dimension_numbers<[1], [0], [0], [1], [0, 0, 1, 1], [], []>} : vector<1x81xbf16>, vector<81x256xbf16>, vector<1x256xf32> -> vector<1x256xf32>
    %189 = arith.addf %184, %188 : vector<1x256xf32>
    %190 = vector.extract_strided_slice %143 {offsets = [9, 0], sizes = [1, 81], strides = [1, 1]} : vector<32x81xbf16> to vector<1x81xbf16>
    %c9_160 = arith.constant 9 : index
    %c0_161 = arith.constant 0 : index
    %c0_162 = arith.constant 0 : index
    %191 = vector.load %arg7[%c9_160, %c0_161, %c0_162] : memref<32x81x256xbf16, #tpu.memory_space<vmem>>, vector<1x81x256xbf16>
    %192 = vector.shape_cast %191 : vector<1x81x256xbf16> to vector<81x256xbf16>
    %cst_163 = arith.constant dense<0.000000e+00> : vector<1x256xf32>
    %193 = tpu.matmul %190, %192, %cst_163 {dimension_numbers = #tpu.dot_dimension_numbers<[1], [0], [0], [1], [0, 0, 1, 1], [], []>} : vector<1x81xbf16>, vector<81x256xbf16>, vector<1x256xf32> -> vector<1x256xf32>
    %194 = arith.addf %189, %193 : vector<1x256xf32>
    %195 = vector.extract_strided_slice %143 {offsets = [10, 0], sizes = [1, 81], strides = [1, 1]} : vector<32x81xbf16> to vector<1x81xbf16>
    %c10_164 = arith.constant 10 : index
    %c0_165 = arith.constant 0 : index
    %c0_166 = arith.constant 0 : index
    %196 = vector.load %arg7[%c10_164, %c0_165, %c0_166] : memref<32x81x256xbf16, #tpu.memory_space<vmem>>, vector<1x81x256xbf16>
    %197 = vector.shape_cast %196 : vector<1x81x256xbf16> to vector<81x256xbf16>
    %cst_167 = arith.constant dense<0.000000e+00> : vector<1x256xf32>
    %198 = tpu.matmul %195, %197, %cst_167 {dimension_numbers = #tpu.dot_dimension_numbers<[1], [0], [0], [1], [0, 0, 1, 1], [], []>} : vector<1x81xbf16>, vector<81x256xbf16>, vector<1x256xf32> -> vector<1x256xf32>
    %199 = arith.addf %194, %198 : vector<1x256xf32>
    %200 = vector.extract_strided_slice %143 {offsets = [11, 0], sizes = [1, 81], strides = [1, 1]} : vector<32x81xbf16> to vector<1x81xbf16>
    %c11_168 = arith.constant 11 : index
    %c0_169 = arith.constant 0 : index
    %c0_170 = arith.constant 0 : index
    %201 = vector.load %arg7[%c11_168, %c0_169, %c0_170] : memref<32x81x256xbf16, #tpu.memory_space<vmem>>, vector<1x81x256xbf16>
    %202 = vector.shape_cast %201 : vector<1x81x256xbf16> to vector<81x256xbf16>
    %cst_171 = arith.constant dense<0.000000e+00> : vector<1x256xf32>
    %203 = tpu.matmul %200, %202, %cst_171 {dimension_numbers = #tpu.dot_dimension_numbers<[1], [0], [0], [1], [0, 0, 1, 1], [], []>} : vector<1x81xbf16>, vector<81x256xbf16>, vector<1x256xf32> -> vector<1x256xf32>
    %204 = arith.addf %199, %203 : vector<1x256xf32>
    %205 = vector.extract_strided_slice %143 {offsets = [12, 0], sizes = [1, 81], strides = [1, 1]} : vector<32x81xbf16> to vector<1x81xbf16>
    %c12_172 = arith.constant 12 : index
    %c0_173 = arith.constant 0 : index
    %c0_174 = arith.constant 0 : index
    %206 = vector.load %arg7[%c12_172, %c0_173, %c0_174] : memref<32x81x256xbf16, #tpu.memory_space<vmem>>, vector<1x81x256xbf16>
    %207 = vector.shape_cast %206 : vector<1x81x256xbf16> to vector<81x256xbf16>
    %cst_175 = arith.constant dense<0.000000e+00> : vector<1x256xf32>
    %208 = tpu.matmul %205, %207, %cst_175 {dimension_numbers = #tpu.dot_dimension_numbers<[1], [0], [0], [1], [0, 0, 1, 1], [], []>} : vector<1x81xbf16>, vector<81x256xbf16>, vector<1x256xf32> -> vector<1x256xf32>
    %209 = arith.addf %204, %208 : vector<1x256xf32>
    %210 = vector.extract_strided_slice %143 {offsets = [13, 0], sizes = [1, 81], strides = [1, 1]} : vector<32x81xbf16> to vector<1x81xbf16>
    %c13_176 = arith.constant 13 : index
    %c0_177 = arith.constant 0 : index
    %c0_178 = arith.constant 0 : index
    %211 = vector.load %arg7[%c13_176, %c0_177, %c0_178] : memref<32x81x256xbf16, #tpu.memory_space<vmem>>, vector<1x81x256xbf16>
    %212 = vector.shape_cast %211 : vector<1x81x256xbf16> to vector<81x256xbf16>
    %cst_179 = arith.constant dense<0.000000e+00> : vector<1x256xf32>
    %213 = tpu.matmul %210, %212, %cst_179 {dimension_numbers = #tpu.dot_dimension_numbers<[1], [0], [0], [1], [0, 0, 1, 1], [], []>} : vector<1x81xbf16>, vector<81x256xbf16>, vector<1x256xf32> -> vector<1x256xf32>
    %214 = arith.addf %209, %213 : vector<1x256xf32>
    %215 = vector.extract_strided_slice %143 {offsets = [14, 0], sizes = [1, 81], strides = [1, 1]} : vector<32x81xbf16> to vector<1x81xbf16>
    %c14_180 = arith.constant 14 : index
    %c0_181 = arith.constant 0 : index
    %c0_182 = arith.constant 0 : index
    %216 = vector.load %arg7[%c14_180, %c0_181, %c0_182] : memref<32x81x256xbf16, #tpu.memory_space<vmem>>, vector<1x81x256xbf16>
    %217 = vector.shape_cast %216 : vector<1x81x256xbf16> to vector<81x256xbf16>
    %cst_183 = arith.constant dense<0.000000e+00> : vector<1x256xf32>
    %218 = tpu.matmul %215, %217, %cst_183 {dimension_numbers = #tpu.dot_dimension_numbers<[1], [0], [0], [1], [0, 0, 1, 1], [], []>} : vector<1x81xbf16>, vector<81x256xbf16>, vector<1x256xf32> -> vector<1x256xf32>
    %219 = arith.addf %214, %218 : vector<1x256xf32>
    %220 = vector.extract_strided_slice %143 {offsets = [15, 0], sizes = [1, 81], strides = [1, 1]} : vector<32x81xbf16> to vector<1x81xbf16>
    %c15_184 = arith.constant 15 : index
    %c0_185 = arith.constant 0 : index
    %c0_186 = arith.constant 0 : index
    %221 = vector.load %arg7[%c15_184, %c0_185, %c0_186] : memref<32x81x256xbf16, #tpu.memory_space<vmem>>, vector<1x81x256xbf16>
    %222 = vector.shape_cast %221 : vector<1x81x256xbf16> to vector<81x256xbf16>
    %cst_187 = arith.constant dense<0.000000e+00> : vector<1x256xf32>
    %223 = tpu.matmul %220, %222, %cst_187 {dimension_numbers = #tpu.dot_dimension_numbers<[1], [0], [0], [1], [0, 0, 1, 1], [], []>} : vector<1x81xbf16>, vector<81x256xbf16>, vector<1x256xf32> -> vector<1x256xf32>
    %224 = arith.addf %219, %223 : vector<1x256xf32>
    %225 = vector.extract_strided_slice %143 {offsets = [16, 0], sizes = [1, 81], strides = [1, 1]} : vector<32x81xbf16> to vector<1x81xbf16>
    %c16 = arith.constant 16 : index
    %c0_188 = arith.constant 0 : index
    %c0_189 = arith.constant 0 : index
    %226 = vector.load %arg7[%c16, %c0_188, %c0_189] : memref<32x81x256xbf16, #tpu.memory_space<vmem>>, vector<1x81x256xbf16>
    %227 = vector.shape_cast %226 : vector<1x81x256xbf16> to vector<81x256xbf16>
    %cst_190 = arith.constant dense<0.000000e+00> : vector<1x256xf32>
    %228 = tpu.matmul %225, %227, %cst_190 {dimension_numbers = #tpu.dot_dimension_numbers<[1], [0], [0], [1], [0, 0, 1, 1], [], []>} : vector<1x81xbf16>, vector<81x256xbf16>, vector<1x256xf32> -> vector<1x256xf32>
    %229 = arith.addf %224, %228 : vector<1x256xf32>
    %230 = vector.extract_strided_slice %143 {offsets = [17, 0], sizes = [1, 81], strides = [1, 1]} : vector<32x81xbf16> to vector<1x81xbf16>
    %c17 = arith.constant 17 : index
    %c0_191 = arith.constant 0 : index
    %c0_192 = arith.constant 0 : index
    %231 = vector.load %arg7[%c17, %c0_191, %c0_192] : memref<32x81x256xbf16, #tpu.memory_space<vmem>>, vector<1x81x256xbf16>
    %232 = vector.shape_cast %231 : vector<1x81x256xbf16> to vector<81x256xbf16>
    %cst_193 = arith.constant dense<0.000000e+00> : vector<1x256xf32>
    %233 = tpu.matmul %230, %232, %cst_193 {dimension_numbers = #tpu.dot_dimension_numbers<[1], [0], [0], [1], [0, 0, 1, 1], [], []>} : vector<1x81xbf16>, vector<81x256xbf16>, vector<1x256xf32> -> vector<1x256xf32>
    %234 = arith.addf %229, %233 : vector<1x256xf32>
    %235 = vector.extract_strided_slice %143 {offsets = [18, 0], sizes = [1, 81], strides = [1, 1]} : vector<32x81xbf16> to vector<1x81xbf16>
    %c18 = arith.constant 18 : index
    %c0_194 = arith.constant 0 : index
    %c0_195 = arith.constant 0 : index
    %236 = vector.load %arg7[%c18, %c0_194, %c0_195] : memref<32x81x256xbf16, #tpu.memory_space<vmem>>, vector<1x81x256xbf16>
    %237 = vector.shape_cast %236 : vector<1x81x256xbf16> to vector<81x256xbf16>
    %cst_196 = arith.constant dense<0.000000e+00> : vector<1x256xf32>
    %238 = tpu.matmul %235, %237, %cst_196 {dimension_numbers = #tpu.dot_dimension_numbers<[1], [0], [0], [1], [0, 0, 1, 1], [], []>} : vector<1x81xbf16>, vector<81x256xbf16>, vector<1x256xf32> -> vector<1x256xf32>
    %239 = arith.addf %234, %238 : vector<1x256xf32>
    %240 = vector.extract_strided_slice %143 {offsets = [19, 0], sizes = [1, 81], strides = [1, 1]} : vector<32x81xbf16> to vector<1x81xbf16>
    %c19 = arith.constant 19 : index
    %c0_197 = arith.constant 0 : index
    %c0_198 = arith.constant 0 : index
    %241 = vector.load %arg7[%c19, %c0_197, %c0_198] : memref<32x81x256xbf16, #tpu.memory_space<vmem>>, vector<1x81x256xbf16>
    %242 = vector.shape_cast %241 : vector<1x81x256xbf16> to vector<81x256xbf16>
    %cst_199 = arith.constant dense<0.000000e+00> : vector<1x256xf32>
    %243 = tpu.matmul %240, %242, %cst_199 {dimension_numbers = #tpu.dot_dimension_numbers<[1], [0], [0], [1], [0, 0, 1, 1], [], []>} : vector<1x81xbf16>, vector<81x256xbf16>, vector<1x256xf32> -> vector<1x256xf32>
    %244 = arith.addf %239, %243 : vector<1x256xf32>
    %245 = vector.extract_strided_slice %143 {offsets = [20, 0], sizes = [1, 81], strides = [1, 1]} : vector<32x81xbf16> to vector<1x81xbf16>
    %c20 = arith.constant 20 : index
    %c0_200 = arith.constant 0 : index
    %c0_201 = arith.constant 0 : index
    %246 = vector.load %arg7[%c20, %c0_200, %c0_201] : memref<32x81x256xbf16, #tpu.memory_space<vmem>>, vector<1x81x256xbf16>
    %247 = vector.shape_cast %246 : vector<1x81x256xbf16> to vector<81x256xbf16>
    %cst_202 = arith.constant dense<0.000000e+00> : vector<1x256xf32>
    %248 = tpu.matmul %245, %247, %cst_202 {dimension_numbers = #tpu.dot_dimension_numbers<[1], [0], [0], [1], [0, 0, 1, 1], [], []>} : vector<1x81xbf16>, vector<81x256xbf16>, vector<1x256xf32> -> vector<1x256xf32>
    %249 = arith.addf %244, %248 : vector<1x256xf32>
    %250 = vector.extract_strided_slice %143 {offsets = [21, 0], sizes = [1, 81], strides = [1, 1]} : vector<32x81xbf16> to vector<1x81xbf16>
    %c21 = arith.constant 21 : index
    %c0_203 = arith.constant 0 : index
    %c0_204 = arith.constant 0 : index
    %251 = vector.load %arg7[%c21, %c0_203, %c0_204] : memref<32x81x256xbf16, #tpu.memory_space<vmem>>, vector<1x81x256xbf16>
    %252 = vector.shape_cast %251 : vector<1x81x256xbf16> to vector<81x256xbf16>
    %cst_205 = arith.constant dense<0.000000e+00> : vector<1x256xf32>
    %253 = tpu.matmul %250, %252, %cst_205 {dimension_numbers = #tpu.dot_dimension_numbers<[1], [0], [0], [1], [0, 0, 1, 1], [], []>} : vector<1x81xbf16>, vector<81x256xbf16>, vector<1x256xf32> -> vector<1x256xf32>
    %254 = arith.addf %249, %253 : vector<1x256xf32>
    %255 = vector.extract_strided_slice %143 {offsets = [22, 0], sizes = [1, 81], strides = [1, 1]} : vector<32x81xbf16> to vector<1x81xbf16>
    %c22 = arith.constant 22 : index
    %c0_206 = arith.constant 0 : index
    %c0_207 = arith.constant 0 : index
    %256 = vector.load %arg7[%c22, %c0_206, %c0_207] : memref<32x81x256xbf16, #tpu.memory_space<vmem>>, vector<1x81x256xbf16>
    %257 = vector.shape_cast %256 : vector<1x81x256xbf16> to vector<81x256xbf16>
    %cst_208 = arith.constant dense<0.000000e+00> : vector<1x256xf32>
    %258 = tpu.matmul %255, %257, %cst_208 {dimension_numbers = #tpu.dot_dimension_numbers<[1], [0], [0], [1], [0, 0, 1, 1], [], []>} : vector<1x81xbf16>, vector<81x256xbf16>, vector<1x256xf32> -> vector<1x256xf32>
    %259 = arith.addf %254, %258 : vector<1x256xf32>
    %260 = vector.extract_strided_slice %143 {offsets = [23, 0], sizes = [1, 81], strides = [1, 1]} : vector<32x81xbf16> to vector<1x81xbf16>
    %c23 = arith.constant 23 : index
    %c0_209 = arith.constant 0 : index
    %c0_210 = arith.constant 0 : index
    %261 = vector.load %arg7[%c23, %c0_209, %c0_210] : memref<32x81x256xbf16, #tpu.memory_space<vmem>>, vector<1x81x256xbf16>
    %262 = vector.shape_cast %261 : vector<1x81x256xbf16> to vector<81x256xbf16>
    %cst_211 = arith.constant dense<0.000000e+00> : vector<1x256xf32>
    %263 = tpu.matmul %260, %262, %cst_211 {dimension_numbers = #tpu.dot_dimension_numbers<[1], [0], [0], [1], [0, 0, 1, 1], [], []>} : vector<1x81xbf16>, vector<81x256xbf16>, vector<1x256xf32> -> vector<1x256xf32>
    %264 = arith.addf %259, %263 : vector<1x256xf32>
    %265 = vector.extract_strided_slice %143 {offsets = [24, 0], sizes = [1, 81], strides = [1, 1]} : vector<32x81xbf16> to vector<1x81xbf16>
    %c24 = arith.constant 24 : index
    %c0_212 = arith.constant 0 : index
    %c0_213 = arith.constant 0 : index
    %266 = vector.load %arg7[%c24, %c0_212, %c0_213] : memref<32x81x256xbf16, #tpu.memory_space<vmem>>, vector<1x81x256xbf16>
    %267 = vector.shape_cast %266 : vector<1x81x256xbf16> to vector<81x256xbf16>
    %cst_214 = arith.constant dense<0.000000e+00> : vector<1x256xf32>
    %268 = tpu.matmul %265, %267, %cst_214 {dimension_numbers = #tpu.dot_dimension_numbers<[1], [0], [0], [1], [0, 0, 1, 1], [], []>} : vector<1x81xbf16>, vector<81x256xbf16>, vector<1x256xf32> -> vector<1x256xf32>
    %269 = arith.addf %264, %268 : vector<1x256xf32>
    %270 = vector.extract_strided_slice %143 {offsets = [25, 0], sizes = [1, 81], strides = [1, 1]} : vector<32x81xbf16> to vector<1x81xbf16>
    %c25 = arith.constant 25 : index
    %c0_215 = arith.constant 0 : index
    %c0_216 = arith.constant 0 : index
    %271 = vector.load %arg7[%c25, %c0_215, %c0_216] : memref<32x81x256xbf16, #tpu.memory_space<vmem>>, vector<1x81x256xbf16>
    %272 = vector.shape_cast %271 : vector<1x81x256xbf16> to vector<81x256xbf16>
    %cst_217 = arith.constant dense<0.000000e+00> : vector<1x256xf32>
    %273 = tpu.matmul %270, %272, %cst_217 {dimension_numbers = #tpu.dot_dimension_numbers<[1], [0], [0], [1], [0, 0, 1, 1], [], []>} : vector<1x81xbf16>, vector<81x256xbf16>, vector<1x256xf32> -> vector<1x256xf32>
    %274 = arith.addf %269, %273 : vector<1x256xf32>
    %275 = vector.extract_strided_slice %143 {offsets = [26, 0], sizes = [1, 81], strides = [1, 1]} : vector<32x81xbf16> to vector<1x81xbf16>
    %c26 = arith.constant 26 : index
    %c0_218 = arith.constant 0 : index
    %c0_219 = arith.constant 0 : index
    %276 = vector.load %arg7[%c26, %c0_218, %c0_219] : memref<32x81x256xbf16, #tpu.memory_space<vmem>>, vector<1x81x256xbf16>
    %277 = vector.shape_cast %276 : vector<1x81x256xbf16> to vector<81x256xbf16>
    %cst_220 = arith.constant dense<0.000000e+00> : vector<1x256xf32>
    %278 = tpu.matmul %275, %277, %cst_220 {dimension_numbers = #tpu.dot_dimension_numbers<[1], [0], [0], [1], [0, 0, 1, 1], [], []>} : vector<1x81xbf16>, vector<81x256xbf16>, vector<1x256xf32> -> vector<1x256xf32>
    %279 = arith.addf %274, %278 : vector<1x256xf32>
    %280 = vector.extract_strided_slice %143 {offsets = [27, 0], sizes = [1, 81], strides = [1, 1]} : vector<32x81xbf16> to vector<1x81xbf16>
    %c27 = arith.constant 27 : index
    %c0_221 = arith.constant 0 : index
    %c0_222 = arith.constant 0 : index
    %281 = vector.load %arg7[%c27, %c0_221, %c0_222] : memref<32x81x256xbf16, #tpu.memory_space<vmem>>, vector<1x81x256xbf16>
    %282 = vector.shape_cast %281 : vector<1x81x256xbf16> to vector<81x256xbf16>
    %cst_223 = arith.constant dense<0.000000e+00> : vector<1x256xf32>
    %283 = tpu.matmul %280, %282, %cst_223 {dimension_numbers = #tpu.dot_dimension_numbers<[1], [0], [0], [1], [0, 0, 1, 1], [], []>} : vector<1x81xbf16>, vector<81x256xbf16>, vector<1x256xf32> -> vector<1x256xf32>
    %284 = arith.addf %279, %283 : vector<1x256xf32>
    %285 = vector.extract_strided_slice %143 {offsets = [28, 0], sizes = [1, 81], strides = [1, 1]} : vector<32x81xbf16> to vector<1x81xbf16>
    %c28 = arith.constant 28 : index
    %c0_224 = arith.constant 0 : index
    %c0_225 = arith.constant 0 : index
    %286 = vector.load %arg7[%c28, %c0_224, %c0_225] : memref<32x81x256xbf16, #tpu.memory_space<vmem>>, vector<1x81x256xbf16>
    %287 = vector.shape_cast %286 : vector<1x81x256xbf16> to vector<81x256xbf16>
    %cst_226 = arith.constant dense<0.000000e+00> : vector<1x256xf32>
    %288 = tpu.matmul %285, %287, %cst_226 {dimension_numbers = #tpu.dot_dimension_numbers<[1], [0], [0], [1], [0, 0, 1, 1], [], []>} : vector<1x81xbf16>, vector<81x256xbf16>, vector<1x256xf32> -> vector<1x256xf32>
    %289 = arith.addf %284, %288 : vector<1x256xf32>
    %290 = vector.extract_strided_slice %143 {offsets = [29, 0], sizes = [1, 81], strides = [1, 1]} : vector<32x81xbf16> to vector<1x81xbf16>
    %c29 = arith.constant 29 : index
    %c0_227 = arith.constant 0 : index
    %c0_228 = arith.constant 0 : index
    %291 = vector.load %arg7[%c29, %c0_227, %c0_228] : memref<32x81x256xbf16, #tpu.memory_space<vmem>>, vector<1x81x256xbf16>
    %292 = vector.shape_cast %291 : vector<1x81x256xbf16> to vector<81x256xbf16>
    %cst_229 = arith.constant dense<0.000000e+00> : vector<1x256xf32>
    %293 = tpu.matmul %290, %292, %cst_229 {dimension_numbers = #tpu.dot_dimension_numbers<[1], [0], [0], [1], [0, 0, 1, 1], [], []>} : vector<1x81xbf16>, vector<81x256xbf16>, vector<1x256xf32> -> vector<1x256xf32>
    %294 = arith.addf %289, %293 : vector<1x256xf32>
    %295 = vector.extract_strided_slice %143 {offsets = [30, 0], sizes = [1, 81], strides = [1, 1]} : vector<32x81xbf16> to vector<1x81xbf16>
    %c30 = arith.constant 30 : index
    %c0_230 = arith.constant 0 : index
    %c0_231 = arith.constant 0 : index
    %296 = vector.load %arg7[%c30, %c0_230, %c0_231] : memref<32x81x256xbf16, #tpu.memory_space<vmem>>, vector<1x81x256xbf16>
    %297 = vector.shape_cast %296 : vector<1x81x256xbf16> to vector<81x256xbf16>
    %cst_232 = arith.constant dense<0.000000e+00> : vector<1x256xf32>
    %298 = tpu.matmul %295, %297, %cst_232 {dimension_numbers = #tpu.dot_dimension_numbers<[1], [0], [0], [1], [0, 0, 1, 1], [], []>} : vector<1x81xbf16>, vector<81x256xbf16>, vector<1x256xf32> -> vector<1x256xf32>
    %299 = arith.addf %294, %298 : vector<1x256xf32>
    %300 = vector.extract_strided_slice %143 {offsets = [31, 0], sizes = [1, 81], strides = [1, 1]} : vector<32x81xbf16> to vector<1x81xbf16>
    %c31 = arith.constant 31 : index
    %c0_233 = arith.constant 0 : index
    %c0_234 = arith.constant 0 : index
    %301 = vector.load %arg7[%c31, %c0_233, %c0_234] : memref<32x81x256xbf16, #tpu.memory_space<vmem>>, vector<1x81x256xbf16>
    %302 = vector.shape_cast %301 : vector<1x81x256xbf16> to vector<81x256xbf16>
    %cst_235 = arith.constant dense<0.000000e+00> : vector<1x256xf32>
    %303 = tpu.matmul %300, %302, %cst_235 {dimension_numbers = #tpu.dot_dimension_numbers<[1], [0], [0], [1], [0, 0, 1, 1], [], []>} : vector<1x81xbf16>, vector<81x256xbf16>, vector<1x256xf32> -> vector<1x256xf32>
    %304 = arith.addf %299, %303 : vector<1x256xf32>
    %c0_236 = arith.constant 0 : index
    %c0_237 = arith.constant 0 : index
    %305 = vector.load %arg8[%c0_236, %c0_237] : memref<1x256xf32, #tpu.memory_space<vmem>>, vector<1x256xf32>
    %306 = arith.addf %304, %305 : vector<1x256xf32>
    %cst_238 = arith.constant 0.000000e+00 : f32
    %307 = vector.broadcast %cst_238 : f32 to vector<1x256xf32>
    %308 = arith.maximumf %306, %307 : vector<1x256xf32>
    %309 = arith.truncf %308 : vector<1x256xf32> to vector<1x256xbf16>
    %c0_239 = arith.constant 0 : index
    %c0_240 = arith.constant 0 : index
    %310 = vector.load %arg9[%c0_239, %c0_240] : memref<256x6xbf16, #tpu.memory_space<vmem>>, vector<256x6xbf16>
    %cst_241 = arith.constant dense<0.000000e+00> : vector<1x6xf32>
    %311 = tpu.matmul %309, %310, %cst_241 {dimension_numbers = #tpu.dot_dimension_numbers<[1], [0], [0], [1], [0, 0, 1, 1], [], []>} : vector<1x256xbf16>, vector<256x6xbf16>, vector<1x6xf32> -> vector<1x6xf32>
    %c0_242 = arith.constant 0 : index
    %c0_243 = arith.constant 0 : index
    %312 = vector.load %arg10[%c0_242, %c0_243] : memref<1x6xf32, #tpu.memory_space<vmem>>, vector<1x6xf32>
    %313 = arith.addf %311, %312 : vector<1x6xf32>
    %c0_244 = arith.constant 0 : index
    %c0_245 = arith.constant 0 : index
    %314 = vector.load %arg11[%c0_244, %c0_245] : memref<1x6xf32, #tpu.memory_space<vmem>>, vector<1x6xf32>
    tpu.vector_store %arg11[%c0_244, %c0_245], %313 {strides = array<i32>} : memref<1x6xf32, #tpu.memory_space<vmem>>, vector<1x6xf32>,
    return
  }
  func.func @transform_0(%arg0: i32) -> (i32, i32) {
    %c0_i32 = arith.constant 0 : i32
    %c0_i32_0 = arith.constant 0 : i32
    %c0_i32_1 = arith.constant 0 : i32
    return %c0_i32, %c0_i32_0 : i32, i32
  }
  func.func @transform_1(%arg0: i32) -> (i32, i32) {
    %c0_i32 = arith.constant 0 : i32
    %c0_i32_0 = arith.constant 0 : i32
    %c0_i32_1 = arith.constant 0 : i32
    return %c0_i32, %c0_i32_0 : i32, i32
  }
  func.func @transform_2(%arg0: i32) -> (i32, i32) {
    %c0_i32 = arith.constant 0 : i32
    %c0_i32_0 = arith.constant 0 : i32
    %c0_i32_1 = arith.constant 0 : i32
    return %c0_i32, %c0_i32_0 : i32, i32
  }
  func.func @transform_3(%arg0: i32) -> (i32, i32, i32) {
    %c0_i32 = arith.constant 0 : i32
    %c0_i32_0 = arith.constant 0 : i32
    %c0_i32_1 = arith.constant 0 : i32
    %c0_i32_2 = arith.constant 0 : i32
    return %c0_i32, %c0_i32_0, %c0_i32_1 : i32, i32, i32
  }
  func.func @transform_4(%arg0: i32) -> (i32, i32, i32) {
    %c0_i32 = arith.constant 0 : i32
    %c0_i32_0 = arith.constant 0 : i32
    %c0_i32_1 = arith.constant 0 : i32
    %c0_i32_2 = arith.constant 0 : i32
    return %c0_i32, %c0_i32_0, %c0_i32_1 : i32, i32, i32
  }
  func.func @transform_5(%arg0: i32) -> (i32, i32) {
    %c0_i32 = arith.constant 0 : i32
    %c0_i32_0 = arith.constant 0 : i32
    %c0_i32_1 = arith.constant 0 : i32
    return %c0_i32, %c0_i32_0 : i32, i32
  }
  func.func @transform_6(%arg0: i32) -> (i32, i32, i32) {
    %c0_i32 = arith.constant 0 : i32
    %c0_i32_0 = arith.constant 0 : i32
    %c0_i32_1 = arith.constant 0 : i32
    %c0_i32_2 = arith.constant 0 : i32
    return %c0_i32, %c0_i32_0, %c0_i32_1 : i32, i32, i32
  }
  func.func @transform_7(%arg0: i32) -> (i32, i32) {
    %c0_i32 = arith.constant 0 : i32
    %c0_i32_0 = arith.constant 0 : i32
    %c0_i32_1 = arith.constant 0 : i32
    return %c0_i32, %c0_i32_0 : i32, i32
  }
  func.func @transform_8(%arg0: i32) -> (i32, i32) {
    %c0_i32 = arith.constant 0 : i32
    %c0_i32_0 = arith.constant 0 : i32
    %c0_i32_1 = arith.constant 0 : i32
    return %c0_i32, %c0_i32_0 : i32, i32
  }
  func.func @transform_9(%arg0: i32) -> (i32, i32) {
    %c0_i32 = arith.constant 0 : i32
    %c0_i32_0 = arith.constant 0 : i32
    %c0_i32_1 = arith.constant 0 : i32
    return %c0_i32, %c0_i32_0 : i32, i32
  }
  func.func @transform_10(%arg0: i32) -> (i32, i32) {
    %c0_i32 = arith.constant 0 : i32
    %c0_i32_0 = arith.constant 0 : i32
    %c0_i32_1 = arith.constant 0 : i32
    return %c0_i32, %c0_i32_0 : i32, i32
  }
}

</mosaic_0001>

<bundles_post_ra>
// kernel: convnet2_forward.1
= control target key start
LH: loop header
LB: loop body
LE: loop exit
PB: predicated region body
PF: predicated region fallthrough
CT: control target
= control target key end

     0   :  { %v13869_v49 = vmov 0   ;;  %vm152_vm0 = vcmask 523264   ;;  %s18003_s0 = inlined_call_operand.vmem [shape: bf16[64,400], index: 0, kind: input, shape index: {}]   ;;  %s18004_s1 = inlined_call_operand.vmem [shape: bf16[16,64], index: 1, kind: input, shape index: {}]   ;;  %s18005_s2 = inlined_call_operand.vmem [shape: f32[16,1], index: 2, kind: input, shape index: {}]   ;;  %s18006_s3 = inlined_call_operand.vmem [shape: bf16[16,400,81], index: 3, kind: input, shape index: {}]   ;;  %s18007_s4 = inlined_call_operand.vmem [shape: bf16[16,32,16], index: 4, kind: input, shape index: {}]   ;;  %s18008_s5 = inlined_call_operand.vmem [shape: f32[32,1], index: 5, kind: input, shape index: {}]   ;;  %s18009_s6 = inlined_call_operand.vmem [shape: bf16[32,81,256], index: 6, kind: input, shape index: {}]   ;;  %s18010_s7 = inlined_call_operand.vmem [shape: f32[1,256], index: 7, kind: input, shape index: {}]   ;;  %s18011_s8 = inlined_call_operand.vmem [shape: bf16[256,6], index: 8, kind: input, shape index: {}]   ;;  %s18012_s9 = inlined_call_operand.vmem [shape: f32[1,6], index: 9, kind: input, shape index: {}]   ;;  %s18013_s10 = inlined_call_operand.hbm [shape: f32[1,6], index: 10, kind: output, shape index: {}]  }
   0x1   :  { %v8700_v0 = vld [vmem:[%s18003_s0 + $0x60] sm:$0xf]  ;;  %v13068_v1 = vld [vmem:[%s18003_s0 + $0x6c] sm:$0xf0]  ;;  %v13066_v2 = vld [vmem:[%s18003_s0 + $0x64] sm:$0xf]  ;;  %13840 = vset.pattern.permute.xlu0 %v13869_v49  ;;  %13841 = vset.pattern.permute.xlu1 %v13869_v49 }
   0x2   :  { %v8701_v3 = vor.u32 %v13068_v1, %v8700_v0  ;;  %v8702_v4 = vld [vmem:[%s18003_s0 + $0x70] sm:$0xf0]  ;;  %v8708_v5 = vld [vmem:[%s18003_s0 + $0x68] sm:$0xf]  ;;  %v13069_v6 = vld [vmem:[%s18003_s0 + $0x74] sm:$0xf0]  ;;  %13842 = vset.pattern.permute.xlu2 %v13869_v49 }
   0x3   :  { %v8705_v7 = vor.u32 %v13066_v2, %v8702_v4  ;;  %v8709_v8 = vor.u32 %v13069_v6, %v8708_v5  ;;  %v13067_v9 = vld [vmem:[%s18003_s0 + $0x6c] sm:$0xf]  ;;  %v8710_v10 = vld [vmem:[%s18003_s0 + $0x78] sm:$0xf0]  ;;  %v8684_v11 = vld [vmem:[%s18003_s0 + $0x40] sm:$0xf] }
   0x4   :  { %160 = vmatpush.bf16.msra.mxu0 %v8701_v3  ;;  %v8713_v12 = vor.u32 %v13067_v9, %v8710_v10  ;;  %v13064_v13 = vld [vmem:[%s18003_s0 + $0x4c] sm:$0xf0]  ;;  %v13062_v14 = vld [vmem:[%s18003_s0 + $0x44] sm:$0xf]  ;;  %v8686_v15 = vld [vmem:[%s18003_s0 + $0x50] sm:$0xf0] }
   0x5   :  { %174 = vmatpush.bf16.msra.mxu1 %v8705_v7  ;;  %188 = vmatpush.bf16.msra.mxu2 %v8709_v8  ;;  %v8685_v16 = vor.u32 %v13064_v13, %v8684_v11  ;;  %v8689_v17 = vor.u32 %v13062_v14, %v8686_v15  ;;  %v8692_v18 = vld [vmem:[%s18003_s0 + $0x48] sm:$0xf]  ;;  %v13065_v19 = vld [vmem:[%s18003_s0 + $0x54] sm:$0xf0]  ;;  %v13063_v20 = vld [vmem:[%s18003_s0 + $0x4c] sm:$0xf] }
   0x6   :  { %202 = vmatpush.bf16.msra.mxu3 %v8713_v12  ;;  %v8693_v21 = vor.u32 %v13065_v19, %v8692_v18  ;;  %v8694_v22 = vld [vmem:[%s18003_s0 + $0x58] sm:$0xf0]  ;;  %v8668_v23 = vld [vmem:[%s18003_s0 + $0x20] sm:$0xf]  ;;  %v13060_v24 = vld [vmem:[%s18003_s0 + $0x2c] sm:$0xf0] }
   0x7   :  { %v8697_v25 = vor.u32 %v13063_v20, %v8694_v22  ;;  %v13058_v26 = vld [vmem:[%s18003_s0 + $0x24] sm:$0xf]  ;;  %v8670_v27 = vld [vmem:[%s18003_s0 + $0x30] sm:$0xf0]  ;;  %v8676_v28 = vld [vmem:[%s18003_s0 + $0x28] sm:$0xf]  ;;  %v8669_v29 = vor.u32 %v13060_v24, %v8668_v23 }
   0x8   :  { %161 = vmatpush.bf16.msra.mxu0 %v8685_v16  ;;  %v13061_v30 = vld [vmem:[%s18003_s0 + $0x34] sm:$0xf0]  ;;  %v13059_v31 = vld [vmem:[%s18003_s0 + $0x2c] sm:$0xf]  ;;  %v8678_v32 = vld [vmem:[%s18003_s0 + $0x38] sm:$0xf0]  ;;  %v8673_v33 = vor.u32 %v13058_v26, %v8670_v27 }
   0x9   :  { %175 = vmatpush.bf16.msra.mxu1 %v8689_v17  ;;  %189 = vmatpush.bf16.msra.mxu2 %v8693_v21  ;;  %v8677_v34 = vor.u32 %v13061_v30, %v8676_v28  ;;  %v8652_v35 = vld [vmem:[%s18003_s0] sm:$0xf]  ;;  %v13056_v36 = vld [vmem:[%s18003_s0 + $0xc] sm:$0xf0]  ;;  %v13054_v37 = vld [vmem:[%s18003_s0 + $0x4] sm:$0xf]  ;;  %v8681_v38 = vor.u32 %v13059_v31, %v8678_v32 }
   0xa   :  { %203 = vmatpush.bf16.msra.mxu3 %v8697_v25  ;;  %v8654_v39 = vld [vmem:[%s18003_s0 + $0x10] sm:$0xf0]  ;;  %v8660_v40 = vld [vmem:[%s18003_s0 + $0x8] sm:$0xf]  ;;  %v13057_v41 = vld [vmem:[%s18003_s0 + $0x14] sm:$0xf0]  ;;  %v8653_v44 = vor.u32 %v13056_v36, %v8652_v35 }
   0xb   :  { %v13055_v42 = vld [vmem:[%s18003_s0 + $0xc] sm:$0xf]  ;;  %v8662_v43 = vld [vmem:[%s18003_s0 + $0x18] sm:$0xf0]  ;;  %v55_v45 = vld [vmem:[%s18005_s2] sm:$0xff]  ;;  %v8657_v46 = vor.u32 %v13054_v37, %v8654_v39  ;;  %v8661_v47 = vor.u32 %v13057_v41, %v8660_v40 }
   0xc   :  { %162 = vmatpush.bf16.msra.mxu0 %v8669_v29  ;;  %v8665_v48 = vor.u32 %v13055_v42, %v8662_v43  ;;  %v13085_v50 = vld [vmem:[%s18006_s3 + $0x78] sm:$0xff]  ;;  %v13053_v51 = vld [vmem:[%s18004_s1] sm:$0xff]  ;;  %59 = vperm.xlu0 %13840, %v55_v45   ;;  %v13084_v53 = vld [vmem:[%s18006_s3 + $0x70] sm:$0xff] }
   0xd   :  { %176 = vmatpush.bf16.msra.mxu1 %v8673_v33  ;;  %190 = vmatpush.bf16.msra.mxu2 %v8677_v34  ;;  %v13077_v52 = vld [vmem:[%s18006_s3 + $0x38] sm:$0xff] }
   0xe   :  { %204 = vmatpush.bf16.msra.mxu3 %v8681_v38  ;;  %v13093_v54 = vld [vmem:[%s18006_s3 + $0xb8] sm:$0xff] }
  0x10   :  { %163 = vmatpush.bf16.msra.mxu0 %v8653_v44 }
  0x11   :  { %177 = vmatpush.bf16.msra.mxu1 %v8657_v46  ;;  %191 = vmatpush.bf16.msra.mxu2 %v8661_v47 }
  0x12   :  { %205 = vmatpush.bf16.msra.mxu3 %v8665_v48 }
  0x13   :  { %8714 = vmatmul.msk.bf16.vlgmr.msra.gmra.mxu0 %vm152_vm0, %v13053_v51 }
  0x15   :  { %442 = vmatpush.bf16.msrb.mxu1 %v13085_v50 }
  0x16   :  { %15 = vsyncpa [#allocation3], 0  ;;  %8715 = vmatmul.msk.bf16.vlgmr.msra.gmra.mxu1 %vm152_vm0, %v13053_v51  ;;  %8716 = vmatmul.msk.bf16.vlgmr.msra.gmra.mxu2 %vm152_vm0, %v13053_v51  ;;  %v56_v55 = vld [vmem:[%s18005_s2 + $0x8] sm:$0xff]  ;;  %v13076_v56 = vld [vmem:[%s18006_s3 + $0x30] sm:$0xff]  ;;  %vm424_vm1 = vcmask 130048   ;;  %vm5174_vm2 = vcmask 1040384  }
  0x17   :  { %8717 = vmatmul.msk.bf16.vlgmr.msra.gmra.mxu3 %vm152_vm0, %v13053_v51  ;;  %428 = vmatpush.bf16.msrb.mxu0 %v13077_v52  ;;  %v13083_v57 = vld [vmem:[%s18006_s3 + $0x68] sm:$0xff]  ;;  %v13092_v58 = vld [vmem:[%s18006_s3 + $0xb0] sm:$0xff]  ;;  %v13082_v60 = vld [vmem:[%s18006_s3 + $0x60] sm:$0xff]  ;;  %vm5170_vm3 = vcmask 662528   ;;  %s13870_s0 = smov [#allocation2]   ;;  %s8637_s24 = sshll.u32 %s18013_s10, 4  ;;  %s8638_s24 = int_to_ptr.hbm [resolvable:$true] %s8637_s24 }
  0x18   :  { %456 = vmatpush.bf16.msrb.mxu2 %v13093_v54  ;;  %64 = vperm.xlu0 %13840, %v56_v55   ;;  %v13075_v59 = vld [vmem:[%s18006_s3 + $0x28] sm:$0xff]  ;;  %v13074_v61 = vld [vmem:[%s18006_s3 + $0x20] sm:$0xff]  ;;  %v13081_v62 = vld [vmem:[%s18006_s3 + $0x58] sm:$0xff]  ;;  %s8635_s21 = sshll.u32 %s13870_s0, 4  ;;  %vm8628_vm4 = vcmask 40960   ;;  %s8636_s21 = int_to_ptr.vmem [resolvable:$true] %s8635_s21 }
  0x19   :  { %443 = vmatpush.bf16.msrb.mxu1 %v13084_v53  ;;  %v13073_v63 = vld [vmem:[%s18006_s3 + $0x18] sm:$0xff]  ;;  %v13080_v0 = vld [vmem:[%s18006_s3 + $0x50] sm:$0xff]  ;;  %v13079_v2 = vld [vmem:[%s18006_s3 + $0x48] sm:$0xff] }
  0x1a   :  { %v13072_v1 = vld [vmem:[%s18006_s3 + $0x10] sm:$0xff]  ;;  %v13071_v3 = vld [vmem:[%s18006_s3 + $0x8] sm:$0xff]  ;;  %v13078_v4 = vld [vmem:[%s18006_s3 + $0x40] sm:$0xff] }
  0x1b   :  { %429 = vmatpush.bf16.msrb.mxu0 %v13076_v56  ;;  %v13120_v5 = vld [vmem:[%s18006_s3 + $0x180] sm:$0xff]  ;;  %v13119_v8 = vld [vmem:[%s18006_s3 + $0x178] sm:$0xff]  ;;  %v13118_v10 = vld [vmem:[%s18006_s3 + $0x170] sm:$0xff] }
  0x1c   :  { %457 = vmatpush.bf16.msrb.mxu2 %v13092_v58  ;;  %v13070_v6 = vld [vmem:[%s18006_s3] sm:$0xff]  ;;  %v13111_v9 = vld [vmem:[%s18006_s3 + $0x138] sm:$0xff]  ;;  %v13110_v11 = vld [vmem:[%s18006_s3 + $0x130] sm:$0xff] }
  0x1d   :  { %444 = vmatpush.bf16.msrb.mxu1 %v13083_v57  ;;  %v13112_v7 = vld [vmem:[%s18006_s3 + $0x140] sm:$0xff]  ;;  %v13091_v12 = vld [vmem:[%s18006_s3 + $0xa8] sm:$0xff]  ;;  %v13089_v19 = vld [vmem:[%s18006_s3 + $0x98] sm:$0xff] }
  0x1e   :  { %v13117_v13 = vld [vmem:[%s18006_s3 + $0x168] sm:$0xff]  ;;  %v13090_v15 = vld [vmem:[%s18006_s3 + $0xa0] sm:$0xff]  ;;  %v13115_v21 = vld [vmem:[%s18006_s3 + $0x158] sm:$0xff] }
  0x1f   :  { %430 = vmatpush.bf16.msrb.mxu0 %v13075_v59  ;;  %v13109_v14 = vld [vmem:[%s18006_s3 + $0x128] sm:$0xff]  ;;  %v13116_v16 = vld [vmem:[%s18006_s3 + $0x160] sm:$0xff]  ;;  %v13107_v22 = vld [vmem:[%s18006_s3 + $0x118] sm:$0xff] }
  0x20   :  { %458 = vmatpush.bf16.msrb.mxu2 %v13091_v12  ;;  %v13108_v17 = vld [vmem:[%s18006_s3 + $0x120] sm:$0xff]  ;;  %v13088_v23 = vld [vmem:[%s18006_s3 + $0x90] sm:$0xff]  ;;  %v13103_v24 = vld [vmem:[%s18006_s3 + $0xf8] sm:$0xff] }
  0x21   :  { %445 = vmatpush.bf16.msrb.mxu1 %v13082_v60  ;;  %v13094_v18 = vld [vmem:[%s18006_s3 + $0xc0] sm:$0xff]  ;;  %v13114_v25 = vld [vmem:[%s18006_s3 + $0x150] sm:$0xff]  ;;  %v13087_v27 = vld [vmem:[%s18006_s3 + $0x88] sm:$0xff] }
  0x22   :  { %477 = vmatpush.bf16.msrb.mxu3 %v13094_v18  ;;  %v13104_v20 = vld [vmem:[%s18006_s3 + $0x100] sm:$0xff]  ;;  %v13106_v26 = vld [vmem:[%s18006_s3 + $0x110] sm:$0xff]  ;;  %v13113_v29 = vld [vmem:[%s18006_s3 + $0x148] sm:$0xff] }
  0x23   :  { %431 = vmatpush.bf16.msrb.mxu0 %v13074_v61  ;;  %v13102_v28 = vld [vmem:[%s18006_s3 + $0xf0] sm:$0xff]  ;;  %v13105_v30 = vld [vmem:[%s18006_s3 + $0x108] sm:$0xff]  ;;  %v13086_v31 = vld [vmem:[%s18006_s3 + $0x80] sm:$0xff] }
  0x24   :  { %459 = vmatpush.bf16.msrb.mxu2 %v13090_v15  ;;  %v13101_v32 = vld [vmem:[%s18006_s3 + $0xe8] sm:$0xff]  ;;  %v13100_v33 = vld [vmem:[%s18006_s3 + $0xe0] sm:$0xff]  ;;  %v13099_v34 = vld [vmem:[%s18006_s3 + $0xd8] sm:$0xff] }
  0x25   :  { %446 = vmatpush.bf16.msrb.mxu1 %v13081_v62  ;;  %v13098_v36 = vld [vmem:[%s18006_s3 + $0xd0] sm:$0xff]  ;;  %v13097_v39 = vld [vmem:[%s18006_s3 + $0xc8] sm:$0xff]  ;;  %v13126_v15 = vld [vmem:[%s18006_s3 + $0x1a0] sm:$0xff] }
  0x26   :  { %690 = vmatpush.bf16.msra.mxu3 %v13104_v20  ;;  %v13121_v40 = vld [vmem:[%s18006_s3 + $0x188] sm:$0xff]  ;;  %v13136_v12 = vld [vmem:[%s18006_s3 + $0x1f0] sm:$0xff]  ;;  %v13133_v18 = vld [vmem:[%s18006_s3 + $0x1d8] sm:$0xff] }
  0x27   :  { %432 = vmatpush.bf16.msrb.mxu0 %v13073_v63  ;;  %v13131_v55 = vld [vmem:[%s18006_s3 + $0x1c8] sm:$0xff]  ;;  %v13132_v20 = vld [vmem:[%s18006_s3 + $0x1d0] sm:$0xff] }
  0x28   :  { %460 = vmatpush.bf16.msrb.mxu2 %v13089_v19  ;;  %v13139_v57 = vld [vmem:[%s18006_s3 + $0x208] sm:$0xff]  ;;  %v13124_v19 = vld [vmem:[%s18006_s3 + $0x190] sm:$0xff] }
  0x29   :  { %447 = vmatpush.bf16.msrb.mxu1 %v13080_v0  ;;  %v13130_v0 = vld [vmem:[%s18006_s3 + $0x1c0] sm:$0xff] }
  0x2a   :  { %691 = vmatpush.bf16.msra.mxu3 %v13103_v24  ;;  %v13155_v24 = vld [vmem:[%s18006_s3 + $0x278] sm:$0xff] }
  0x2b   :  { %433 = vmatpush.bf16.msrb.mxu0 %v13072_v1 }
  0x2c   :  { %461 = vmatpush.bf16.msrb.mxu2 %v13088_v23  ;;  %v13156_v23 = vld [vmem:[%s18006_s3 + $0x280] sm:$0xff] }
  0x2d   :  { %448 = vmatpush.bf16.msrb.mxu1 %v13079_v2  ;;  %v13138_v2 = vld [vmem:[%s18006_s3 + $0x200] sm:$0xff] }
  0x2e   :  { %692 = vmatpush.bf16.msra.mxu3 %v13102_v28  ;;  %v13151_v28 = vld [vmem:[%s18006_s3 + $0x258] sm:$0xff] }
  0x2f   :  { %434 = vmatpush.bf16.msrb.mxu0 %v13071_v3 }
  0x30   :  { %462 = vmatpush.bf16.msrb.mxu2 %v13087_v27  ;;  %v13152_v27 = vld [vmem:[%s18006_s3 + $0x260] sm:$0xff] }
  0x31   :  { %449 = vmatpush.bf16.msrb.mxu1 %v13078_v4 }
  0x32   :  { %693 = vmatpush.bf16.msra.mxu3 %v13101_v32 }
  0x33   :  { %435 = vmatpush.bf16.msrb.mxu0 %v13070_v6 }
  0x34   :  { %463 = vmatpush.bf16.msrb.mxu2 %v13086_v31 }
  0x35   :  { %718 = vmatpush.bf16.msra.mxu1 %v13120_v5 }
  0x36   :  { %694 = vmatpush.bf16.msra.mxu3 %v13100_v33 }
  0x37   :  { %704 = vmatpush.bf16.msra.mxu0 %v13112_v7 }
  0x38   :  { %739 = vmatpush.bf16.msra.mxu2 %v13121_v40 }
  0x39   :  { %719 = vmatpush.bf16.msra.mxu1 %v13119_v8  ;;  %v13129_v8 = vld [vmem:[%s18006_s3 + $0x1b8] sm:$0xff] }
  0x3a   :  { %695 = vmatpush.bf16.msra.mxu3 %v13099_v34 }
  0x3b   :  { %705 = vmatpush.bf16.msra.mxu0 %v13111_v9 }
  0x3d   :  { %720 = vmatpush.bf16.msra.mxu1 %v13118_v10  ;;  %v13137_v10 = vld [vmem:[%s18006_s3 + $0x1f8] sm:$0xff] }
  0x3e   :  { %696 = vmatpush.bf16.msra.mxu3 %v13098_v36 }
  0x3f   :  { %706 = vmatpush.bf16.msra.mxu0 %v13110_v11  ;;  %v13128_v11 = vld [vmem:[%s18006_s3 + $0x1b0] sm:$0xff] }
  0x41   :  { %721 = vmatpush.bf16.msra.mxu1 %v13117_v13  ;;  %v13127_v13 = vld [vmem:[%s18006_s3 + $0x1a8] sm:$0xff] }
  0x42   :  { %697 = vmatpush.bf16.msra.mxu3 %v13097_v39 }
  0x43   :  { %707 = vmatpush.bf16.msra.mxu0 %v13109_v14  ;;  %v13135_v14 = vld [vmem:[%s18006_s3 + $0x1e8] sm:$0xff] }
  0x45   :  { %722 = vmatpush.bf16.msra.mxu1 %v13116_v16  ;;  %v13134_v16 = vld [vmem:[%s18006_s3 + $0x1e0] sm:$0xff] }
  0x47   :  { %708 = vmatpush.bf16.msra.mxu0 %v13108_v17  ;;  %v13125_v17 = vld [vmem:[%s18006_s3 + $0x198] sm:$0xff] }
  0x49   :  { %723 = vmatpush.bf16.msra.mxu1 %v13115_v21  ;;  %v13158_v21 = vld [vmem:[%s18006_s3 + $0x290] sm:$0xff] }
  0x4b   :  { %709 = vmatpush.bf16.msra.mxu0 %v13107_v22  ;;  %v13157_v22 = vld [vmem:[%s18006_s3 + $0x288] sm:$0xff] }
  0x4d   :  { %724 = vmatpush.bf16.msra.mxu1 %v13114_v25  ;;  %v13154_v25 = vld [vmem:[%s18006_s3 + $0x270] sm:$0xff] }
  0x4f   :  { %710 = vmatpush.bf16.msra.mxu0 %v13106_v26  ;;  %v13153_v26 = vld [vmem:[%s18006_s3 + $0x268] sm:$0xff] }
  0x51   :  { %725 = vmatpush.bf16.msra.mxu1 %v13113_v29 }
  0x53   :  { %711 = vmatpush.bf16.msra.mxu0 %v13105_v30 }
  0x7e   :  { %v60_v35 = vpop.permute.xlu0 %59 }
  0x8a   :  { %v65_v42 = vpop.permute.xlu0 %64 }
  0x90   :  { %v165_v37 = vpop.f32.mrf.mxu0 }
  0x91   :  { %v166_v41 = vadd.f32 %v165_v37, %v60_v35 }
  0x93   :  { %v179_v38 = vpop.f32.mrf.mxu1  ;;  %v212_v51 = vmax.f32 %v166_v41, 0.0 }
  0x94   :  { %v180_v44 = vadd.f32 %v179_v38, %v60_v35 }
  0x96   :  { %v213_v53 = vmax.f32 %v180_v44, 0.0 }
  0x98   :  { %v167_v46 = vpop.f32.mrf.mxu0 }
  0x99   :  { %v193_v43 = vpop.f32.mrf.mxu2  ;;  %v168_v47 = vadd.f32 %v167_v46, %v65_v42 }
  0x9a   :  { %v207_v45 = vpop.f32.mrf.mxu3  ;;  %v194_v58 = vadd.f32 %v193_v43, %v60_v35  ;;  %v13148_v43 = vld [vmem:[%s18006_s3 + $0x250] sm:$0xff] }
  0x9b   :  { %v181_v48 = vpop.f32.mrf.mxu1  ;;  %v216_v52 = vmax.f32 %v168_v47, 0.0  ;;  %v208_v60 = vadd.f32 %v207_v45, %v60_v35  ;;  %v13095_v45 = vld [vmem:[%s18007_s4] sm:$0xff]  ;;  %v13174_v47 = vld [vmem:[%s18006_s3 + $0x310] sm:$0xff] }
  0x9c   :  { %v182_v50 = vadd.f32 %v181_v48, %v65_v42  ;;  %v214_v3 = vmax.f32 %v194_v58, 0.0 }
  0x9d   :  { %v14187_v56 = vpack.c.bf16 %v216_v52, %v212_v51  ;;  %v215_v5 = vmax.f32 %v208_v60, 0.0  ;;  %v13173_v52 = vld [vmem:[%s18006_s3 + $0x308] sm:$0xff] }
  0x9e   :  { %v217_v54 = vmax.f32 %v182_v50, 0.0 }
  0x9f   :  { %436 = vmatmul.bf16.vlgmr.msrb.gmra.mxu0 %v14187_v56 }
  0xa0   :  { %v14192_v59 = vpack.c.bf16 %v217_v54, %v213_v53  ;;  %1023 = vmatpush.bf16.msrb.mxu0 %v13131_v55  ;;  %v13172_v54 = vld [vmem:[%s18006_s3 + $0x300] sm:$0xff] }
  0xa1   :  { %v195_v61 = vpop.f32.mrf.mxu2 }
  0xa2   :  { %v196_v62 = vadd.f32 %v195_v61, %v65_v42  ;;  %v209_v63 = vpop.f32.mrf.mxu3  ;;  %450 = vmatmul.bf16.vlgmr.msrb.gmra.mxu1 %v14192_v59 }
  0xa3   :  { %v210_v1 = vadd.f32 %v209_v63, %v65_v42  ;;  %1037 = vmatpush.bf16.msrb.mxu1 %v13139_v57 }
  0xa4   :  { %v218_v4 = vmax.f32 %v196_v62, 0.0  ;;  %1024 = vmatpush.bf16.msrb.mxu0 %v13130_v0  ;;  %v13171_v62 = vld [vmem:[%s18006_s3 + $0x2f8] sm:$0xff] }
  0xa5   :  { %v219_v6 = vmax.f32 %v210_v1, 0.0 }
  0xa6   :  { %v14202_v7 = vpack.c.bf16 %v218_v4, %v214_v3  ;;  %v13096_v3 = vld [vmem:[%s18007_s4 + $0x8] sm:$0xff] }
  0xa7   :  { %v14207_v9 = vpack.c.bf16 %v219_v6, %v215_v5  ;;  %1038 = vmatpush.bf16.msrb.mxu1 %v13138_v2  ;;  %v13147_v4 = vld [vmem:[%s18006_s3 + $0x248] sm:$0xff]  ;;  %v13170_v5 = vld [vmem:[%s18006_s3 + $0x2f0] sm:$0xff] }
  0xa8   :  { %464 = vmatmul.bf16.vlgmr.msrb.gmra.mxu2 %v14202_v7  ;;  %1025 = vmatpush.bf16.msrb.mxu0 %v13129_v8  ;;  %v13122_v8 = vld [vmem:[%s18007_s4 + $0x10] sm:$0xff] }
  0xa9   :  { %8818 = vmatmul.msk.bf16.vlgmr.msrb.gmra.mxu3 %vm424_vm1, %v14207_v9 }
  0xab   :  { %1039 = vmatpush.bf16.msrb.mxu1 %v13137_v10  ;;  %v13146_v10 = vld [vmem:[%s18006_s3 + $0x240] sm:$0xff] }
  0xac   :  { %1026 = vmatpush.bf16.msrb.mxu0 %v13128_v11  ;;  %v13169_v11 = vld [vmem:[%s18006_s3 + $0x2e8] sm:$0xff] }
  0xaf   :  { %1040 = vmatpush.bf16.msrb.mxu1 %v13136_v12  ;;  %712 = vmatmul.bf16.vlgmr.msra.gmra.mxu0 %v14192_v59  ;;  %v13145_v12 = vld [vmem:[%s18006_s3 + $0x238] sm:$0xff] }
  0xb0   :  { %1027 = vmatpush.bf16.msrb.mxu0 %v13127_v13  ;;  %v13168_v13 = vld [vmem:[%s18006_s3 + $0x2e0] sm:$0xff] }
  0xb2   :  { %726 = vmatmul.bf16.vlgmr.msra.gmra.mxu1 %v14202_v7 }
  0xb3   :  { %1041 = vmatpush.bf16.msrb.mxu1 %v13135_v14  ;;  %v13144_v14 = vld [vmem:[%s18006_s3 + $0x230] sm:$0xff] }
  0xb4   :  { %1028 = vmatpush.bf16.msrb.mxu0 %v13126_v15  ;;  %v13167_v15 = vld [vmem:[%s18006_s3 + $0x2d8] sm:$0xff] }
  0xb7   :  { %1042 = vmatpush.bf16.msrb.mxu1 %v13134_v16  ;;  %v13143_v16 = vld [vmem:[%s18006_s3 + $0x228] sm:$0xff] }
  0xb8   :  { %8969 = vmatmul.msk.bf16.vlgmr.msra.gmra.mxu2 %vm424_vm1, %v14207_v9  ;;  %1029 = vmatpush.bf16.msrb.mxu0 %v13125_v17  ;;  %v13193_v17 = vld [vmem:[%s18006_s3 + $0x398] sm:$0xff] }
  0xb9   :  { %698 = vmatmul.bf16.vlgmr.msra.gmra.mxu3 %v14187_v56 }
  0xbb   :  { %1043 = vmatpush.bf16.msrb.mxu1 %v13133_v18  ;;  %v13123_v18 = vld [vmem:[%s18007_s4 + $0x18] sm:$0xff] }
  0xbc   :  { %1030 = vmatpush.bf16.msrb.mxu0 %v13124_v19  ;;  %v13142_v19 = vld [vmem:[%s18006_s3 + $0x220] sm:$0xff] }
  0xbf   :  { %1044 = vmatpush.bf16.msrb.mxu1 %v13132_v20  ;;  %1031 = vmatmul.bf16.vlgmr.msrb.gmra.mxu0 %v14187_v56  ;;  %v13192_v20 = vld [vmem:[%s18006_s3 + $0x390] sm:$0xff] }
  0xc2   :  { %1045 = vmatmul.bf16.vlgmr.msrb.gmra.mxu1 %v14192_v59 }
  0xc3   :  { %1325 = vmatpush.bf16.msra.mxu1 %v13158_v21  ;;  %v13141_v21 = vld [vmem:[%s18006_s3 + $0x218] sm:$0xff] }
  0xc7   :  { %1326 = vmatpush.bf16.msra.mxu1 %v13157_v22  ;;  %v13191_v22 = vld [vmem:[%s18006_s3 + $0x388] sm:$0xff] }
  0xcb   :  { %1327 = vmatpush.bf16.msra.mxu1 %v13156_v23  ;;  %v13140_v23 = vld [vmem:[%s18006_s3 + $0x210] sm:$0xff] }
  0xcf   :  { %1328 = vmatpush.bf16.msra.mxu1 %v13155_v24  ;;  %v13190_v24 = vld [vmem:[%s18006_s3 + $0x380] sm:$0xff] }
  0xd3   :  { %1329 = vmatpush.bf16.msra.mxu1 %v13154_v25  ;;  %v13166_v25 = vld [vmem:[%s18006_s3 + $0x2d0] sm:$0xff] }
  0xd7   :  { %1330 = vmatpush.bf16.msra.mxu1 %v13153_v26  ;;  %v13189_v26 = vld [vmem:[%s18006_s3 + $0x378] sm:$0xff] }
  0xdb   :  { %1331 = vmatpush.bf16.msra.mxu1 %v13152_v27  ;;  %v13165_v27 = vld [vmem:[%s18006_s3 + $0x2c8] sm:$0xff] }
  0xdf   :  { %1332 = vmatpush.bf16.msra.mxu1 %v13151_v28  ;;  %v13188_v28 = vld [vmem:[%s18006_s3 + $0x370] sm:$0xff] }
  0xe2   :  { %1333 = vmatmul.bf16.vlgmr.msra.gmra.mxu1 %v14187_v56 }
 0x11c   :  { %v437_v29 = vpop.f32.mrf.mxu0 }
 0x11f   :  { %v451_v30 = vpop.f32.mrf.mxu1 }
 0x120   :  { %v452_v35 = vadd.f32 %v451_v30, %v437_v29  ;;  %v13164_v29 = vld [vmem:[%s18006_s3 + $0x2c0] sm:$0xff]  ;;  %v13187_v30 = vld [vmem:[%s18006_s3 + $0x368] sm:$0xff] }
 0x124   :  { %v439_v33 = vpop.f32.mrf.mxu0 }
 0x127   :  { %v453_v34 = vpop.f32.mrf.mxu1 }
 0x128   :  { %v454_v36 = vadd.f32 %v453_v34, %v439_v33  ;;  %v13162_v33 = vld [vmem:[%s18006_s3 + $0x2b0] sm:$0xff]  ;;  %v13212_v34 = vld [vmem:[%s18006_s3 + $0x420] sm:$0xff] }
 0x12b   :  { %v465_v31 = vpop.f32.mrf.mxu2 }
 0x12c   :  { %v479_v32 = vpop.f32.mrf.mxu3  ;;  %v466_v37 = vadd.f32 %v465_v31, %v452_v35  ;;  %v713_v46 = vpop.f32.mrf.mxu0  ;;  %v13163_v31 = vld [vmem:[%s18006_s3 + $0x2b8] sm:$0xff]  ;;  %v13161_v35 = vld [vmem:[%s18006_s3 + $0x2a8] sm:$0xff] }
 0x12e   :  { %v480_v41 = vadd.f32 %v479_v32, %v466_v37  ;;  %v13186_v32 = vld [vmem:[%s18006_s3 + $0x360] sm:$0xff] }
 0x12f   :  { %v727_v48 = vpop.f32.mrf.mxu1  ;;  %v13160_v37 = vld [vmem:[%s18006_s3 + $0x2a0] sm:$0xff] }
 0x133   :  { %v467_v38 = vpop.f32.mrf.mxu2 }
 0x134   :  { %v468_v39 = vadd.f32 %v467_v38, %v454_v36  ;;  %v481_v40 = vpop.f32.mrf.mxu3  ;;  %v715_v55 = vpop.f32.mrf.mxu0  ;;  %v13211_v36 = vld [vmem:[%s18006_s3 + $0x418] sm:$0xff]  ;;  %v13210_v38 = vld [vmem:[%s18006_s3 + $0x410] sm:$0xff] }
 0x136   :  { %v482_v42 = vadd.f32 %v481_v40, %v468_v39  ;;  %v13159_v39 = vld [vmem:[%s18006_s3 + $0x298] sm:$0xff]  ;;  %v13209_v40 = vld [vmem:[%s18006_s3 + $0x408] sm:$0xff] }
 0x137   :  { %v729_v61 = vpop.f32.mrf.mxu1 }
 0x138   :  { %v488_v44 = vpack.c.bf16 %v482_v42, %v480_v41  ;;  %v13185_v41 = vld [vmem:[%s18006_s3 + $0x358] sm:$0xff]  ;;  %v13208_v42 = vld [vmem:[%s18006_s3 + $0x400] sm:$0xff] }
 0x13a   :  { %810 = vmatpush.bf16.msrb.mxu3 %v488_v44  ;;  %v13207_v44 = vld [vmem:[%s18006_s3 + $0x3f8] sm:$0xff] }
 0x13b   :  { %v741_v51 = vpop.f32.mrf.mxu2 }
 0x13c   :  { %v699_v50 = vpop.f32.mrf.mxu3 }
 0x13d   :  { %8992 = vmatmul.msk.bf16.vlgmr.msrb.gmra.mxu3 %vm424_vm1, %v13095_v45  ;;  %v714_v53 = vadd.f32 %v713_v46, %v699_v50  ;;  %v13183_v45 = vld [vmem:[%s18006_s3 + $0x348] sm:$0xff]  ;;  %v13206_v46 = vld [vmem:[%s18006_s3 + $0x3f0] sm:$0xff]  ;;  %v13181_v50 = vld [vmem:[%s18006_s3 + $0x338] sm:$0xff] }
 0x13e   :  { %1072 = vmatpush.bf16.msra.mxu3 %v13148_v43  ;;  %v13184_v43 = vld [vmem:[%s18006_s3 + $0x350] sm:$0xff] }
 0x13f   :  { %v728_v58 = vadd.f32 %v727_v48, %v714_v53  ;;  %v13205_v48 = vld [vmem:[%s18006_s3 + $0x3e8] sm:$0xff]  ;;  %v13178_v53 = vld [vmem:[%s18006_s3 + $0x320] sm:$0xff] }
 0x141   :  { %v742_v1 = vadd.f32 %v741_v51, %v728_v58  ;;  %v13180_v51 = vld [vmem:[%s18006_s3 + $0x330] sm:$0xff] }
 0x142   :  { %1353 = vmatpush.bf16.msrb.mxu3 %v13174_v47  ;;  %v13182_v47 = vld [vmem:[%s18006_s3 + $0x340] sm:$0xff] }
 0x143   :  { %v743_v0 = vpop.f32.mrf.mxu2 }
 0x144   :  { %v701_v57 = vpop.f32.mrf.mxu3 }
 0x145   :  { %v716_v60 = vadd.f32 %v715_v55, %v701_v57 }
 0x146   :  { %1354 = vmatpush.bf16.msrb.mxu3 %v13173_v52  ;;  %v13179_v52 = vld [vmem:[%s18006_s3 + $0x328] sm:$0xff] }
 0x147   :  { %v730_v63 = vadd.f32 %v729_v61, %v716_v60 }
 0x149   :  { %v744_v2 = vadd.f32 %v743_v0, %v730_v63 }
 0x14a   :  { %1355 = vmatpush.bf16.msrb.mxu3 %v13172_v54 }
 0x14b   :  { %v751_v6 = vpack.c.bf16 %v744_v2, %v742_v1  ;;  %v1032_v2 = vpop.f32.mrf.mxu0 }
 0x14d   :  { %775 = vmatpush.bf16.msrb.mxu2 %v751_v6  ;;  %8993 = vmatmul.msk.bf16.gmra.mxu3 %vm424_vm1, %v13096_v3  ;;  %v1046_v3 = vpop.f32.mrf.mxu1 }
 0x14e   :  { %1356 = vmatpush.bf16.msrb.mxu3 %v13171_v62 }
 0x150   :  { %8982 = vmatmul.msk.bf16.vlgmr.msrb.gmra.mxu2 %vm424_vm1, %v13122_v8 }
 0x151   :  { %1051 = vmatpush.bf16.msra.mxu2 %v13147_v4 }
 0x152   :  { %1357 = vmatpush.bf16.msrb.mxu3 %v13170_v5 }
 0x153   :  { %v1034_v6 = vpop.f32.mrf.mxu0 }
 0x155   :  { %1052 = vmatpush.bf16.msra.mxu2 %v13146_v10  ;;  %v1048_v8 = vpop.f32.mrf.mxu1  ;;  %v1047_v10 = vadd.f32 %v1046_v3, %v1032_v2 }
 0x156   :  { %1358 = vmatpush.bf16.msrb.mxu3 %v13169_v11  ;;  %v1049_v11 = vadd.f32 %v1048_v8, %v1034_v6 }
 0x159   :  { %1053 = vmatpush.bf16.msra.mxu2 %v13145_v12 }
 0x15a   :  { %1359 = vmatpush.bf16.msrb.mxu3 %v13168_v13 }
 0x15d   :  { %1054 = vmatpush.bf16.msra.mxu2 %v13144_v14  ;;  %9144 = vmatmul.msk.bf16.vlgmr.msra.gmra.mxu3 %vm424_vm1, %v14207_v9 }
 0x15e   :  { %1360 = vmatpush.bf16.msrb.mxu3 %v13167_v15 }
 0x160   :  { %8983 = vmatmul.msk.bf16.gmra.mxu2 %vm424_vm1, %v13123_v18  ;;  %v13175_v18 = vld [vmem:[%s18006_s3 + $0x318] sm:$0xff] }
 0x161   :  { %1055 = vmatpush.bf16.msra.mxu2 %v13143_v16 }
 0x162   :  { %1641 = vmatpush.bf16.msra.mxu3 %v13193_v17 }
 0x165   :  { %1056 = vmatpush.bf16.msra.mxu2 %v13142_v19 }
 0x166   :  { %1642 = vmatpush.bf16.msra.mxu3 %v13192_v20  ;;  %v13149_v20 = vld [vmem:[%s18007_s4 + $0x20] sm:$0xff] }
 0x169   :  { %1057 = vmatpush.bf16.msra.mxu2 %v13141_v21  ;;  %v13201_v21 = vld [vmem:[%s18006_s3 + $0x3d8] sm:$0xff] }
 0x16a   :  { %1643 = vmatpush.bf16.msra.mxu3 %v13191_v22  ;;  %v13200_v22 = vld [vmem:[%s18006_s3 + $0x3d0] sm:$0xff] }
 0x16d   :  { %1058 = vmatpush.bf16.msra.mxu2 %v13140_v23  ;;  %1361 = vmatmul.bf16.vlgmr.msrb.gmra.mxu3 %v14202_v7  ;;  %v13199_v23 = vld [vmem:[%s18006_s3 + $0x3c8] sm:$0xff] }
 0x16e   :  { %1644 = vmatpush.bf16.msra.mxu3 %v13190_v24  ;;  %v13198_v24 = vld [vmem:[%s18006_s3 + $0x3c0] sm:$0xff] }
 0x170   :  { %1059 = vmatmul.bf16.vlgmr.msra.gmra.mxu2 %v14202_v7 }
 0x171   :  { %1339 = vmatpush.bf16.msrb.mxu2 %v13166_v25  ;;  %v13150_v25 = vld [vmem:[%s18007_s4 + $0x28] sm:$0xff] }
 0x172   :  { %1645 = vmatpush.bf16.msra.mxu3 %v13189_v26  ;;  %v13197_v26 = vld [vmem:[%s18006_s3 + $0x3b8] sm:$0xff] }
 0x175   :  { %1340 = vmatpush.bf16.msrb.mxu2 %v13165_v27  ;;  %v13196_v27 = vld [vmem:[%s18006_s3 + $0x3b0] sm:$0xff] }
 0x176   :  { %1646 = vmatpush.bf16.msra.mxu3 %v13188_v28  ;;  %v13195_v28 = vld [vmem:[%s18006_s3 + $0x3a8] sm:$0xff] }
 0x179   :  { %1341 = vmatpush.bf16.msrb.mxu2 %v13164_v29  ;;  %v13194_v29 = vld [vmem:[%s18006_s3 + $0x3a0] sm:$0xff] }
 0x17a   :  { %1647 = vmatpush.bf16.msra.mxu3 %v13187_v30  ;;  %v13220_v30 = vld [vmem:[%s18006_s3 + $0x460] sm:$0xff] }
 0x17d   :  { %1342 = vmatpush.bf16.msrb.mxu2 %v13163_v31  ;;  %v13219_v31 = vld [vmem:[%s18006_s3 + $0x458] sm:$0xff] }
 0x17e   :  { %1648 = vmatpush.bf16.msra.mxu3 %v13186_v32  ;;  %v13218_v32 = vld [vmem:[%s18006_s3 + $0x450] sm:$0xff] }
 0x181   :  { %1343 = vmatpush.bf16.msrb.mxu2 %v13162_v33  ;;  %1649 = vmatmul.bf16.vlgmr.msra.gmra.mxu3 %v14192_v59  ;;  %v13217_v33 = vld [vmem:[%s18006_s3 + $0x448] sm:$0xff] }
 0x182   :  { %1929 = vmatpush.bf16.msrb.mxu3 %v13212_v34  ;;  %v13216_v34 = vld [vmem:[%s18006_s3 + $0x440] sm:$0xff] }
 0x185   :  { %1344 = vmatpush.bf16.msrb.mxu2 %v13161_v35  ;;  %v13215_v35 = vld [vmem:[%s18006_s3 + $0x438] sm:$0xff] }
 0x186   :  { %1930 = vmatpush.bf16.msrb.mxu3 %v13211_v36  ;;  %v13214_v36 = vld [vmem:[%s18006_s3 + $0x430] sm:$0xff] }
 0x189   :  { %1345 = vmatpush.bf16.msrb.mxu2 %v13160_v37  ;;  %v13213_v37 = vld [vmem:[%s18006_s3 + $0x428] sm:$0xff] }
 0x18a   :  { %1931 = vmatpush.bf16.msrb.mxu3 %v13210_v38  ;;  %v13239_v38 = vld [vmem:[%s18006_s3 + $0x4e8] sm:$0xff] }
 0x18d   :  { %1346 = vmatpush.bf16.msrb.mxu2 %v13159_v39  ;;  %v13238_v39 = vld [vmem:[%s18006_s3 + $0x4e0] sm:$0xff] }
 0x18e   :  { %1932 = vmatpush.bf16.msrb.mxu3 %v13209_v40  ;;  %v13237_v40 = vld [vmem:[%s18006_s3 + $0x4d8] sm:$0xff] }
 0x190   :  { %1347 = vmatmul.bf16.vlgmr.msrb.gmra.mxu2 %v14192_v59 }
 0x191   :  { %1627 = vmatpush.bf16.msra.mxu2 %v13185_v41  ;;  %v13236_v41 = vld [vmem:[%s18006_s3 + $0x4d0] sm:$0xff] }
 0x192   :  { %1933 = vmatpush.bf16.msrb.mxu3 %v13208_v42  ;;  %v13235_v42 = vld [vmem:[%s18006_s3 + $0x4c8] sm:$0xff] }
 0x195   :  { %1628 = vmatpush.bf16.msra.mxu2 %v13184_v43  ;;  %v13234_v43 = vld [vmem:[%s18006_s3 + $0x4c0] sm:$0xff] }
 0x196   :  { %1934 = vmatpush.bf16.msrb.mxu3 %v13207_v44  ;;  %v13233_v44 = vld [vmem:[%s18006_s3 + $0x4b8] sm:$0xff] }
 0x199   :  { %1629 = vmatpush.bf16.msra.mxu2 %v13183_v45  ;;  %v13232_v45 = vld [vmem:[%s18006_s3 + $0x4b0] sm:$0xff] }
 0x19a   :  { %1935 = vmatpush.bf16.msrb.mxu3 %v13206_v46 }
 0x19d   :  { %1630 = vmatpush.bf16.msra.mxu2 %v13182_v47 }
 0x19e   :  { %1936 = vmatpush.bf16.msrb.mxu3 %v13205_v48 }
 0x1a1   :  { %1631 = vmatpush.bf16.msra.mxu2 %v13181_v50  ;;  %1937 = vmatmul.bf16.vlgmr.msrb.gmra.mxu3 %v14187_v56 }
 0x1a5   :  { %1632 = vmatpush.bf16.msra.mxu2 %v13180_v51 }
 0x1a9   :  { %1633 = vmatpush.bf16.msra.mxu2 %v13179_v52 }
 0x1ad   :  { %1634 = vmatpush.bf16.msra.mxu2 %v13178_v53  ;;  %v1334_v53 = vpop.f32.mrf.mxu1 }
 0x1b0   :  { %1635 = vmatmul.bf16.vlgmr.msra.gmra.mxu2 %v14187_v56 }
 0x1b5   :  { %v1336_v2 = vpop.f32.mrf.mxu1 }
 0x1c0   :  { %v812_v54 = vpop.f32.mrf.mxu3 }
 0x1c8   :  { %v14450_v58 = vpop.f32.mrf.mxu3 }
 0x1d0   :  { %v817_v61 = vpop.f32.mrf.mxu3 }
 0x1d3   :  { %v777_v55 = vpop.f32.mrf.mxu2 }
 0x1d4   :  { %v14448_v57 = vadd.f32 %v812_v54, %v777_v55 }
 0x1d8   :  { %v14456_v0 = vpop.f32.mrf.mxu3 }
 0x1db   :  { %v14452_v60 = vpop.f32.mrf.mxu2 }
 0x1e0   :  { %v1074_v4 = vpop.f32.mrf.mxu3 }
 0x1e3   :  { %v782_v62 = vpop.f32.mrf.mxu2 }
 0x1e4   :  { %v14454_v63 = vadd.f32 %v817_v61, %v782_v62 }
 0x1e8   :  { %v1076_v15 = vpop.f32.mrf.mxu3 }
 0x1eb   :  { %v14458_v1 = vpop.f32.mrf.mxu2 }
 0x1f0   :  { %v1362_v55 = vpop.f32.mrf.mxu3 }
 0x1f3   :  { %v1060_v5 = vpop.f32.mrf.mxu2 }
 0x1f4   :  { %v1061_v12 = vadd.f32 %v1060_v5, %v1047_v10 }
 0x1f6   :  { %v1075_v16 = vadd.f32 %v1074_v4, %v1061_v12 }
 0x1f8   :  { %v1364_v5 = vpop.f32.mrf.mxu3 }
 0x1fb   :  { %v1062_v13 = vpop.f32.mrf.mxu2 }
 0x1fc   :  { %v1063_v14 = vadd.f32 %v1062_v13, %v1049_v11  ;;  %v13176_v13 = vld [vmem:[%s18007_s4 + $0x30] sm:$0xff] }
 0x1fe   :  { %v1077_v17 = vadd.f32 %v1076_v15, %v1063_v14  ;;  %v13228_v14 = vld [vmem:[%s18006_s3 + $0x4a0] sm:$0xff]  ;;  %v13227_v15 = vld [vmem:[%s18006_s3 + $0x498] sm:$0xff] }
 0x200   :  { %v1084_v19 = vpack.c.bf16 %v1077_v17, %v1075_v16  ;;  %v13226_v16 = vld [vmem:[%s18006_s3 + $0x490] sm:$0xff]  ;;  %v13225_v17 = vld [vmem:[%s18006_s3 + $0x488] sm:$0xff] }
 0x202   :  { %1108 = vmatpush.bf16.msra.mxu0 %v1084_v19  ;;  %v13224_v19 = vld [vmem:[%s18006_s3 + $0x480] sm:$0xff] }
 0x205   :  { %9157 = vmatmul.msk.bf16.vlgmr.msra.gmra.mxu0 %vm424_vm1, %v13149_v20  ;;  %v13223_v20 = vld [vmem:[%s18006_s3 + $0x478] sm:$0xff] }
 0x206   :  { %1374 = vmatpush.bf16.msrb.mxu0 %v13175_v18  ;;  %v13177_v18 = vld [vmem:[%s18007_s4 + $0x38] sm:$0xff] }
 0x20a   :  { %1655 = vmatpush.bf16.msra.mxu0 %v13201_v21  ;;  %v13222_v21 = vld [vmem:[%s18006_s3 + $0x470] sm:$0xff] }
 0x20e   :  { %1656 = vmatpush.bf16.msra.mxu0 %v13200_v22  ;;  %v13221_v22 = vld [vmem:[%s18006_s3 + $0x468] sm:$0xff] }
 0x212   :  { %1657 = vmatpush.bf16.msra.mxu0 %v13199_v23  ;;  %v13247_v23 = vld [vmem:[%s18006_s3 + $0x528] sm:$0xff] }
 0x213   :  { %v1348_v52 = vpop.f32.mrf.mxu2 }
 0x214   :  { %v1349_v3 = vadd.f32 %v1348_v52, %v1334_v53 }
 0x215   :  { %9158 = vmatmul.msk.bf16.gmra.mxu0 %vm424_vm1, %v13150_v25  ;;  %v13245_v25 = vld [vmem:[%s18006_s3 + $0x518] sm:$0xff] }
 0x216   :  { %1658 = vmatpush.bf16.msra.mxu0 %v13198_v24  ;;  %v1363_v6 = vadd.f32 %v1362_v55, %v1349_v3  ;;  %v13246_v24 = vld [vmem:[%s18006_s3 + $0x520] sm:$0xff] }
 0x21a   :  { %1659 = vmatpush.bf16.msra.mxu0 %v13197_v26  ;;  %v13244_v26 = vld [vmem:[%s18006_s3 + $0x510] sm:$0xff] }
 0x21b   :  { %v1350_v61 = vpop.f32.mrf.mxu2 }
 0x21c   :  { %v1351_v4 = vadd.f32 %v1350_v61, %v1336_v2 }
 0x21e   :  { %1660 = vmatpush.bf16.msra.mxu0 %v13196_v27  ;;  %v13243_v27 = vld [vmem:[%s18006_s3 + $0x508] sm:$0xff] }
 0x222   :  { %1661 = vmatpush.bf16.msra.mxu0 %v13195_v28  ;;  %v13242_v28 = vld [vmem:[%s18006_s3 + $0x500] sm:$0xff] }
 0x225   :  { %9309 = vmatmul.msk.bf16.vlgmr.msrb.gmra.mxu0 %vm424_vm1, %v14207_v9 }
 0x226   :  { %1662 = vmatpush.bf16.msra.mxu0 %v13194_v29  ;;  %v13241_v29 = vld [vmem:[%s18006_s3 + $0x4f8] sm:$0xff] }
 0x22a   :  { %1943 = vmatpush.bf16.msrb.mxu0 %v13220_v30  ;;  %v13240_v30 = vld [vmem:[%s18006_s3 + $0x4f0] sm:$0xff] }
 0x22e   :  { %1944 = vmatpush.bf16.msrb.mxu0 %v13219_v31  ;;  %v13266_v31 = vld [vmem:[%s18006_s3 + $0x5b0] sm:$0xff] }
 0x232   :  { %1945 = vmatpush.bf16.msrb.mxu0 %v13218_v32  ;;  %v13265_v32 = vld [vmem:[%s18006_s3 + $0x5a8] sm:$0xff] }
 0x235   :  { %1663 = vmatmul.bf16.vlgmr.msra.gmra.mxu0 %v14202_v7 }
 0x236   :  { %1946 = vmatpush.bf16.msrb.mxu0 %v13217_v33  ;;  %v13264_v33 = vld [vmem:[%s18006_s3 + $0x5a0] sm:$0xff] }
 0x23a   :  { %1947 = vmatpush.bf16.msrb.mxu0 %v13216_v34  ;;  %v13263_v34 = vld [vmem:[%s18006_s3 + $0x598] sm:$0xff] }
 0x23e   :  { %1948 = vmatpush.bf16.msrb.mxu0 %v13215_v35  ;;  %v13262_v35 = vld [vmem:[%s18006_s3 + $0x590] sm:$0xff] }
 0x242   :  { %1949 = vmatpush.bf16.msrb.mxu0 %v13214_v36  ;;  %v13261_v36 = vld [vmem:[%s18006_s3 + $0x588] sm:$0xff] }
 0x246   :  { %1950 = vmatpush.bf16.msrb.mxu0 %v13213_v37  ;;  %v13260_v37 = vld [vmem:[%s18006_s3 + $0x580] sm:$0xff] }
 0x249   :  { %1951 = vmatmul.bf16.vlgmr.msrb.gmra.mxu0 %v14192_v59 }
 0x24a   :  { %2231 = vmatpush.bf16.msra.mxu0 %v13239_v38  ;;  %v13259_v38 = vld [vmem:[%s18006_s3 + $0x578] sm:$0xff] }
 0x24e   :  { %2232 = vmatpush.bf16.msra.mxu0 %v13238_v39 }
 0x252   :  { %2233 = vmatpush.bf16.msra.mxu0 %v13237_v40 }
 0x256   :  { %2234 = vmatpush.bf16.msra.mxu0 %v13236_v41 }
 0x25a   :  { %2235 = vmatpush.bf16.msra.mxu0 %v13235_v42 }
 0x25e   :  { %2236 = vmatpush.bf16.msra.mxu0 %v13234_v43 }
 0x262   :  { %2237 = vmatpush.bf16.msra.mxu0 %v13233_v44  ;;  %v1636_v44 = vpop.f32.mrf.mxu2 }
 0x266   :  { %2238 = vmatpush.bf16.msra.mxu0 %v13232_v45 }
 0x269   :  { %2239 = vmatmul.bf16.vlgmr.msra.gmra.mxu0 %v14187_v56 }
 0x26a   :  { %v1638_v53 = vpop.f32.mrf.mxu2 }
 0x282   :  { %v1110_v46 = vpop.f32.mrf.mxu0 }
 0x283   :  { %v14549_v47 = vadd.f32 %v1110_v46, %v14448_v57  ;;  %v1365_v57 = vadd.f32 %v1364_v5, %v1351_v4  ;;  %v1650_v46 = vpop.f32.mrf.mxu3 }
 0x28a   :  { %v14551_v48 = vpop.f32.mrf.mxu0 }
 0x28b   :  { %v1652_v55 = vpop.f32.mrf.mxu3 }
 0x28c   :  { %v1653_v2 = vadd.f32 %v1652_v55, %v1638_v53 }
 0x292   :  { %v1115_v50 = vpop.f32.mrf.mxu0 }
 0x293   :  { %v14554_v51 = vadd.f32 %v1115_v50, %v14454_v63  ;;  %v13202_v63 = vld [vmem:[%s18006_s3 + $0x3e0] sm:$0xff] }
 0x29a   :  { %v14556_v54 = vpop.f32.mrf.mxu0 }
 0x2a2   :  { %v1376_v62 = vpop.f32.mrf.mxu0 }
 0x2a3   :  { %v1377_v10 = vadd.f32 %v1376_v62, %v1363_v6  ;;  %v1651_v62 = vadd.f32 %v1650_v46, %v1636_v44  ;;  %v1938_v44 = vpop.f32.mrf.mxu3 }
 0x2aa   :  { %v1378_v8 = vpop.f32.mrf.mxu0 }
 0x2ab   :  { %v1379_v11 = vadd.f32 %v1378_v8, %v1365_v57  ;;  %v13203_v8 = vld [vmem:[%s18007_s4 + $0x40] sm:$0xff]  ;;  %v1940_v53 = vpop.f32.mrf.mxu3 }
 0x2ad   :  { %v1386_v12 = vpack.c.bf16 %v1379_v11, %v1377_v10  ;;  %v13255_v10 = vld [vmem:[%s18006_s3 + $0x568] sm:$0xff]  ;;  %v13254_v11 = vld [vmem:[%s18006_s3 + $0x560] sm:$0xff] }
 0x2af   :  { %1410 = vmatpush.bf16.msrb.mxu1 %v1386_v12  ;;  %v13252_v12 = vld [vmem:[%s18006_s3 + $0x550] sm:$0xff] }
 0x2b2   :  { %9322 = vmatmul.msk.bf16.vlgmr.msrb.gmra.mxu1 %vm424_vm1, %v13176_v13  ;;  %v1664_v50 = vpop.f32.mrf.mxu0  ;;  %v13204_v13 = vld [vmem:[%s18007_s4 + $0x48] sm:$0xff] }
 0x2b3   :  { %1676 = vmatpush.bf16.msra.mxu1 %v13202_v63  ;;  %v1665_v3 = vadd.f32 %v1664_v50, %v1651_v62  ;;  %v13253_v63 = vld [vmem:[%s18006_s3 + $0x558] sm:$0xff] }
 0x2b7   :  { %1957 = vmatpush.bf16.msrb.mxu1 %v13228_v14  ;;  %v13251_v14 = vld [vmem:[%s18006_s3 + $0x548] sm:$0xff] }
 0x2ba   :  { %v1666_v61 = vpop.f32.mrf.mxu0 }
 0x2bb   :  { %1958 = vmatpush.bf16.msrb.mxu1 %v13227_v15  ;;  %v13250_v15 = vld [vmem:[%s18006_s3 + $0x540] sm:$0xff] }
 0x2bf   :  { %1959 = vmatpush.bf16.msrb.mxu1 %v13226_v16  ;;  %v13249_v16 = vld [vmem:[%s18006_s3 + $0x538] sm:$0xff] }
 0x2c2   :  { %9323 = vmatmul.msk.bf16.gmra.mxu1 %vm424_vm1, %v13177_v18  ;;  %v13274_v18 = vld [vmem:[%s18006_s3 + $0x5f0] sm:$0xff] }
 0x2c3   :  { %1960 = vmatpush.bf16.msrb.mxu1 %v13225_v17  ;;  %v13248_v17 = vld [vmem:[%s18006_s3 + $0x530] sm:$0xff] }
 0x2c7   :  { %1961 = vmatpush.bf16.msrb.mxu1 %v13224_v19  ;;  %v13273_v19 = vld [vmem:[%s18006_s3 + $0x5e8] sm:$0xff] }
 0x2cb   :  { %1962 = vmatpush.bf16.msrb.mxu1 %v13223_v20  ;;  %v13272_v20 = vld [vmem:[%s18006_s3 + $0x5e0] sm:$0xff] }
 0x2cf   :  { %1963 = vmatpush.bf16.msrb.mxu1 %v13222_v21  ;;  %v13271_v21 = vld [vmem:[%s18006_s3 + $0x5d8] sm:$0xff] }
 0x2d2   :  { %9474 = vmatmul.msk.bf16.vlgmr.msra.gmra.mxu1 %vm424_vm1, %v14207_v9 }
 0x2d3   :  { %1964 = vmatpush.bf16.msrb.mxu1 %v13221_v22  ;;  %v13270_v22 = vld [vmem:[%s18006_s3 + $0x5d0] sm:$0xff] }
 0x2d7   :  { %2245 = vmatpush.bf16.msra.mxu1 %v13247_v23  ;;  %v13269_v23 = vld [vmem:[%s18006_s3 + $0x5c8] sm:$0xff] }
 0x2db   :  { %2246 = vmatpush.bf16.msra.mxu1 %v13246_v24  ;;  %v13268_v24 = vld [vmem:[%s18006_s3 + $0x5c0] sm:$0xff] }
 0x2df   :  { %2247 = vmatpush.bf16.msra.mxu1 %v13245_v25  ;;  %v13267_v25 = vld [vmem:[%s18006_s3 + $0x5b8] sm:$0xff] }
 0x2e2   :  { %1965 = vmatmul.bf16.vlgmr.msrb.gmra.mxu1 %v14202_v7 }
 0x2e3   :  { %2248 = vmatpush.bf16.msra.mxu1 %v13244_v26  ;;  %v13293_v26 = vld [vmem:[%s18006_s3 + $0x678] sm:$0xff] }
 0x2e7   :  { %2249 = vmatpush.bf16.msra.mxu1 %v13243_v27  ;;  %v13292_v27 = vld [vmem:[%s18006_s3 + $0x670] sm:$0xff] }
 0x2eb   :  { %2250 = vmatpush.bf16.msra.mxu1 %v13242_v28  ;;  %v13291_v28 = vld [vmem:[%s18006_s3 + $0x668] sm:$0xff] }
 0x2ef   :  { %2251 = vmatpush.bf16.msra.mxu1 %v13241_v29  ;;  %v13290_v29 = vld [vmem:[%s18006_s3 + $0x660] sm:$0xff] }
 0x2f3   :  { %2252 = vmatpush.bf16.msra.mxu1 %v13240_v30  ;;  %v13289_v30 = vld [vmem:[%s18006_s3 + $0x658] sm:$0xff] }
 0x2f6   :  { %2253 = vmatmul.bf16.vlgmr.msra.gmra.mxu1 %v14192_v59 }
 0x2f7   :  { %2533 = vmatpush.bf16.msrb.mxu1 %v13266_v31  ;;  %v13288_v31 = vld [vmem:[%s18006_s3 + $0x650] sm:$0xff] }
 0x2fb   :  { %2534 = vmatpush.bf16.msrb.mxu1 %v13265_v32  ;;  %v13287_v32 = vld [vmem:[%s18006_s3 + $0x648] sm:$0xff] }
 0x2ff   :  { %2535 = vmatpush.bf16.msrb.mxu1 %v13264_v33  ;;  %v13286_v33 = vld [vmem:[%s18006_s3 + $0x640] sm:$0xff] }
 0x303   :  { %2536 = vmatpush.bf16.msrb.mxu1 %v13263_v34 }
 0x307   :  { %2537 = vmatpush.bf16.msrb.mxu1 %v13262_v35 }
 0x30b   :  { %2538 = vmatpush.bf16.msrb.mxu1 %v13261_v36 }
 0x30f   :  { %2539 = vmatpush.bf16.msrb.mxu1 %v13260_v37 }
 0x313   :  { %2540 = vmatpush.bf16.msrb.mxu1 %v13259_v38 }
 0x316   :  { %2541 = vmatmul.bf16.vlgmr.msrb.gmra.mxu1 %v14187_v56 }
 0x32f   :  { %v1412_v39 = vpop.f32.mrf.mxu1 }
 0x330   :  { %v14647_v40 = vadd.f32 %v1412_v39, %v14549_v47  ;;  %v1667_v47 = vadd.f32 %v1666_v61, %v1653_v2  ;;  %v1952_v39 = vpop.f32.mrf.mxu0 }
 0x331   :  { %v1953_v61 = vadd.f32 %v1952_v39, %v1938_v44 }
 0x337   :  { %v14649_v41 = vpop.f32.mrf.mxu1 }
 0x33f   :  { %v1417_v42 = vpop.f32.mrf.mxu1 }
 0x340   :  { %v14652_v43 = vadd.f32 %v1417_v42, %v14554_v51  ;;  %v13229_v51 = vld [vmem:[%s18006_s3 + $0x4a8] sm:$0xff] }
 0x347   :  { %v14654_v45 = vpop.f32.mrf.mxu1 }
 0x34f   :  { %v1678_v52 = vpop.f32.mrf.mxu1 }
 0x350   :  { %v1679_v5 = vadd.f32 %v1678_v52, %v1665_v3  ;;  %v1954_v52 = vpop.f32.mrf.mxu0 }
 0x351   :  { %v1955_v62 = vadd.f32 %v1954_v52, %v1940_v53 }
 0x357   :  { %v1680_v4 = vpop.f32.mrf.mxu1 }
 0x358   :  { %v1681_v6 = vadd.f32 %v1680_v4, %v1667_v47 }
 0x35a   :  { %v1688_v57 = vpack.c.bf16 %v1681_v6, %v1679_v5  ;;  %v13230_v6 = vld [vmem:[%s18007_s4 + $0x50] sm:$0xff] }
 0x35c   :  { %1712 = vmatpush.bf16.msrb.mxu2 %v1688_v57  ;;  %v13281_v57 = vld [vmem:[%s18006_s3 + $0x628] sm:$0xff] }
 0x35f   :  { %9487 = vmatmul.msk.bf16.vlgmr.msrb.gmra.mxu2 %vm424_vm1, %v13203_v8  ;;  %v1966_v46 = vpop.f32.mrf.mxu1  ;;  %v13280_v8 = vld [vmem:[%s18006_s3 + $0x620] sm:$0xff] }
 0x360   :  { %1978 = vmatpush.bf16.msra.mxu2 %v13229_v51  ;;  %v1967_v2 = vadd.f32 %v1966_v46, %v1953_v61  ;;  %v13282_v51 = vld [vmem:[%s18006_s3 + $0x630] sm:$0xff]  ;;  %v2240_v46 = vpop.f32.mrf.mxu0 }
 0x364   :  { %2259 = vmatpush.bf16.msrb.mxu2 %v13255_v10  ;;  %v13279_v10 = vld [vmem:[%s18006_s3 + $0x618] sm:$0xff] }
 0x367   :  { %v1968_v55 = vpop.f32.mrf.mxu1 }
 0x368   :  { %2260 = vmatpush.bf16.msrb.mxu2 %v13254_v11  ;;  %v13231_v11 = vld [vmem:[%s18007_s4 + $0x58] sm:$0xff] }
 0x36c   :  { %2261 = vmatpush.bf16.msrb.mxu2 %v13253_v63  ;;  %v13278_v63 = vld [vmem:[%s18006_s3 + $0x610] sm:$0xff] }
 0x36f   :  { %9488 = vmatmul.msk.bf16.gmra.mxu2 %vm424_vm1, %v13204_v13  ;;  %v13276_v13 = vld [vmem:[%s18006_s3 + $0x600] sm:$0xff] }
 0x370   :  { %2262 = vmatpush.bf16.msrb.mxu2 %v13252_v12  ;;  %v13277_v12 = vld [vmem:[%s18006_s3 + $0x608] sm:$0xff] }
 0x373   :  { %v2254_v39 = vpop.f32.mrf.mxu1 }
 0x374   :  { %2263 = vmatpush.bf16.msrb.mxu2 %v13251_v14  ;;  %v13275_v14 = vld [vmem:[%s18006_s3 + $0x5f8] sm:$0xff] }
 0x378   :  { %2264 = vmatpush.bf16.msrb.mxu2 %v13250_v15  ;;  %v13301_v15 = vld [vmem:[%s18006_s3 + $0x6b8] sm:$0xff] }
 0x37b   :  { %v2256_v53 = vpop.f32.mrf.mxu1 }
 0x37c   :  { %2265 = vmatpush.bf16.msrb.mxu2 %v13249_v16  ;;  %v13300_v16 = vld [vmem:[%s18006_s3 + $0x6b0] sm:$0xff] }
 0x37f   :  { %9639 = vmatmul.msk.bf16.vlgmr.msra.gmra.mxu2 %vm424_vm1, %v14207_v9 }
 0x380   :  { %2266 = vmatpush.bf16.msrb.mxu2 %v13248_v17  ;;  %v13299_v17 = vld [vmem:[%s18006_s3 + $0x6a8] sm:$0xff] }
 0x384   :  { %2547 = vmatpush.bf16.msra.mxu2 %v13274_v18  ;;  %v13298_v18 = vld [vmem:[%s18006_s3 + $0x6a0] sm:$0xff] }
 0x388   :  { %2548 = vmatpush.bf16.msra.mxu2 %v13273_v19  ;;  %v13297_v19 = vld [vmem:[%s18006_s3 + $0x698] sm:$0xff] }
 0x38c   :  { %2549 = vmatpush.bf16.msra.mxu2 %v13272_v20  ;;  %v13296_v20 = vld [vmem:[%s18006_s3 + $0x690] sm:$0xff] }
 0x38f   :  { %2267 = vmatmul.bf16.vlgmr.msrb.gmra.mxu2 %v14202_v7 }
 0x390   :  { %2550 = vmatpush.bf16.msra.mxu2 %v13271_v21  ;;  %v13295_v21 = vld [vmem:[%s18006_s3 + $0x688] sm:$0xff] }
 0x394   :  { %2551 = vmatpush.bf16.msra.mxu2 %v13270_v22  ;;  %v13294_v22 = vld [vmem:[%s18006_s3 + $0x680] sm:$0xff] }
 0x398   :  { %2552 = vmatpush.bf16.msra.mxu2 %v13269_v23  ;;  %v13320_v23 = vld [vmem:[%s18006_s3 + $0x740] sm:$0xff] }
 0x39c   :  { %2553 = vmatpush.bf16.msra.mxu2 %v13268_v24  ;;  %v13319_v24 = vld [vmem:[%s18006_s3 + $0x738] sm:$0xff] }
 0x3a0   :  { %2554 = vmatpush.bf16.msra.mxu2 %v13267_v25  ;;  %v13318_v25 = vld [vmem:[%s18006_s3 + $0x730] sm:$0xff] }
 0x3a3   :  { %2555 = vmatmul.bf16.vlgmr.msra.gmra.mxu2 %v14192_v59 }
 0x3a4   :  { %2835 = vmatpush.bf16.msrb.mxu2 %v13293_v26  ;;  %v13317_v26 = vld [vmem:[%s18006_s3 + $0x728] sm:$0xff] }
 0x3a8   :  { %2836 = vmatpush.bf16.msrb.mxu2 %v13292_v27  ;;  %v13316_v27 = vld [vmem:[%s18006_s3 + $0x720] sm:$0xff] }
 0x3ac   :  { %2837 = vmatpush.bf16.msrb.mxu2 %v13291_v28  ;;  %v13315_v28 = vld [vmem:[%s18006_s3 + $0x718] sm:$0xff] }
 0x3b0   :  { %2838 = vmatpush.bf16.msrb.mxu2 %v13290_v29  ;;  %v13314_v29 = vld [vmem:[%s18006_s3 + $0x710] sm:$0xff] }
 0x3b4   :  { %2839 = vmatpush.bf16.msrb.mxu2 %v13289_v30  ;;  %v13313_v30 = vld [vmem:[%s18006_s3 + $0x708] sm:$0xff] }
 0x3b8   :  { %2840 = vmatpush.bf16.msrb.mxu2 %v13288_v31 }
 0x3bc   :  { %2841 = vmatpush.bf16.msrb.mxu2 %v13287_v32 }
 0x3c0   :  { %2842 = vmatpush.bf16.msrb.mxu2 %v13286_v33 }
 0x3c3   :  { %2843 = vmatmul.bf16.vlgmr.msrb.gmra.mxu2 %v14187_v56 }
 0x3e2   :  { %v1714_v34 = vpop.f32.mrf.mxu2 }
 0x3e3   :  { %v14745_v35 = vadd.f32 %v1714_v34, %v14647_v40  ;;  %v1969_v40 = vadd.f32 %v1968_v55, %v1955_v62  ;;  %v2242_v55 = vpop.f32.mrf.mxu0  ;;  %v2255_v62 = vadd.f32 %v2254_v39, %v2240_v46 }
 0x3ea   :  { %v14747_v36 = vpop.f32.mrf.mxu2 }
 0x3f2   :  { %v1719_v37 = vpop.f32.mrf.mxu2 }
 0x3f3   :  { %v14750_v38 = vadd.f32 %v1719_v37, %v14652_v43  ;;  %v13256_v43 = vld [vmem:[%s18006_s3 + $0x570] sm:$0xff] }
 0x3fa   :  { %v14752_v42 = vpop.f32.mrf.mxu2 }
 0x402   :  { %v1980_v50 = vpop.f32.mrf.mxu2 }
 0x403   :  { %v1981_v47 = vadd.f32 %v1980_v50, %v1967_v2  ;;  %v2257_v2 = vadd.f32 %v2256_v53, %v2242_v55  ;;  %v2542_v53 = vpop.f32.mrf.mxu1 }
 0x40a   :  { %v1982_v3 = vpop.f32.mrf.mxu2 }
 0x40b   :  { %v1983_v4 = vadd.f32 %v1982_v3, %v1969_v40 }
 0x40d   :  { %v1990_v5 = vpack.c.bf16 %v1983_v4, %v1981_v47 }
 0x40f   :  { %2014 = vmatpush.bf16.msra.mxu3 %v1990_v5  ;;  %v13257_v5 = vld [vmem:[%s18007_s4 + $0x60] sm:$0xff] }
 0x412   :  { %9652 = vmatmul.msk.bf16.vlgmr.msra.gmra.mxu3 %vm424_vm1, %v13230_v6  ;;  %v2268_v50 = vpop.f32.mrf.mxu2  ;;  %v13309_v6 = vld [vmem:[%s18006_s3 + $0x6f8] sm:$0xff] }
 0x413   :  { %2280 = vmatpush.bf16.msrb.mxu3 %v13256_v43  ;;  %v2269_v40 = vadd.f32 %v2268_v50, %v2255_v62 }
 0x417   :  { %2561 = vmatpush.bf16.msra.mxu3 %v13282_v51  ;;  %v13308_v51 = vld [vmem:[%s18006_s3 + $0x6f0] sm:$0xff] }
 0x41a   :  { %v2270_v61 = vpop.f32.mrf.mxu2 }
 0x41b   :  { %2562 = vmatpush.bf16.msra.mxu3 %v13281_v57  ;;  %v13307_v57 = vld [vmem:[%s18006_s3 + $0x6e8] sm:$0xff] }
 0x41f   :  { %2563 = vmatpush.bf16.msra.mxu3 %v13280_v8  ;;  %v13306_v8 = vld [vmem:[%s18006_s3 + $0x6e0] sm:$0xff] }
 0x422   :  { %9653 = vmatmul.msk.bf16.gmra.mxu3 %vm424_vm1, %v13231_v11  ;;  %v13305_v11 = vld [vmem:[%s18006_s3 + $0x6d8] sm:$0xff] }
 0x423   :  { %2564 = vmatpush.bf16.msra.mxu3 %v13279_v10  ;;  %v13258_v10 = vld [vmem:[%s18007_s4 + $0x68] sm:$0xff] }
 0x426   :  { %v2556_v50 = vpop.f32.mrf.mxu2 }
 0x427   :  { %2565 = vmatpush.bf16.msra.mxu3 %v13278_v63  ;;  %v13304_v63 = vld [vmem:[%s18006_s3 + $0x6d0] sm:$0xff] }
 0x42b   :  { %2566 = vmatpush.bf16.msra.mxu3 %v13277_v12  ;;  %v13303_v12 = vld [vmem:[%s18006_s3 + $0x6c8] sm:$0xff] }
 0x42e   :  { %v2558_v62 = vpop.f32.mrf.mxu2 }
 0x42f   :  { %2567 = vmatpush.bf16.msra.mxu3 %v13276_v13  ;;  %v13302_v13 = vld [vmem:[%s18006_s3 + $0x6c0] sm:$0xff] }
 0x432   :  { %9804 = vmatmul.msk.bf16.vlgmr.msrb.gmra.mxu3 %vm424_vm1, %v14207_v9 }
 0x433   :  { %2568 = vmatpush.bf16.msra.mxu3 %v13275_v14  ;;  %v13328_v14 = vld [vmem:[%s18006_s3 + $0x780] sm:$0xff] }
 0x437   :  { %2849 = vmatpush.bf16.msrb.mxu3 %v13301_v15  ;;  %v13327_v15 = vld [vmem:[%s18006_s3 + $0x778] sm:$0xff] }
 0x43b   :  { %2850 = vmatpush.bf16.msrb.mxu3 %v13300_v16  ;;  %v13326_v16 = vld [vmem:[%s18006_s3 + $0x770] sm:$0xff] }
 0x43f   :  { %2851 = vmatpush.bf16.msrb.mxu3 %v13299_v17  ;;  %v13325_v17 = vld [vmem:[%s18006_s3 + $0x768] sm:$0xff] }
 0x442   :  { %2569 = vmatmul.bf16.vlgmr.msra.gmra.mxu3 %v14202_v7 }
 0x443   :  { %2852 = vmatpush.bf16.msrb.mxu3 %v13298_v18  ;;  %v13324_v18 = vld [vmem:[%s18006_s3 + $0x760] sm:$0xff] }
 0x447   :  { %2853 = vmatpush.bf16.msrb.mxu3 %v13297_v19  ;;  %v13323_v19 = vld [vmem:[%s18006_s3 + $0x758] sm:$0xff] }
 0x44b   :  { %2854 = vmatpush.bf16.msrb.mxu3 %v13296_v20  ;;  %v13322_v20 = vld [vmem:[%s18006_s3 + $0x750] sm:$0xff] }
 0x44f   :  { %2855 = vmatpush.bf16.msrb.mxu3 %v13295_v21  ;;  %v13321_v21 = vld [vmem:[%s18006_s3 + $0x748] sm:$0xff] }
 0x453   :  { %2856 = vmatpush.bf16.msrb.mxu3 %v13294_v22  ;;  %v13347_v22 = vld [vmem:[%s18006_s3 + $0x808] sm:$0xff] }
 0x456   :  { %2857 = vmatmul.bf16.vlgmr.msrb.gmra.mxu3 %v14192_v59 }
 0x457   :  { %3137 = vmatpush.bf16.msra.mxu3 %v13320_v23  ;;  %v13346_v23 = vld [vmem:[%s18006_s3 + $0x800] sm:$0xff] }
 0x45b   :  { %3138 = vmatpush.bf16.msra.mxu3 %v13319_v24  ;;  %v13345_v24 = vld [vmem:[%s18006_s3 + $0x7f8] sm:$0xff] }
 0x45f   :  { %3139 = vmatpush.bf16.msra.mxu3 %v13318_v25  ;;  %v13344_v25 = vld [vmem:[%s18006_s3 + $0x7f0] sm:$0xff] }
 0x463   :  { %3140 = vmatpush.bf16.msra.mxu3 %v13317_v26  ;;  %v13343_v26 = vld [vmem:[%s18006_s3 + $0x7e8] sm:$0xff] }
 0x467   :  { %3141 = vmatpush.bf16.msra.mxu3 %v13316_v27  ;;  %v13342_v27 = vld [vmem:[%s18006_s3 + $0x7e0] sm:$0xff] }
 0x46b   :  { %3142 = vmatpush.bf16.msra.mxu3 %v13315_v28  ;;  %v13341_v28 = vld [vmem:[%s18006_s3 + $0x7d8] sm:$0xff] }
 0x46f   :  { %3143 = vmatpush.bf16.msra.mxu3 %v13314_v29  ;;  %v13340_v29 = vld [vmem:[%s18006_s3 + $0x7d0] sm:$0xff] }
 0x473   :  { %3144 = vmatpush.bf16.msra.mxu3 %v13313_v30 }
 0x476   :  { %3145 = vmatmul.bf16.vlgmr.msra.gmra.mxu3 %v14187_v56 }
 0x495   :  { %v2016_v31 = vpop.f32.mrf.mxu3 }
 0x496   :  { %v14843_v32 = vadd.f32 %v2016_v31, %v14745_v35  ;;  %v2271_v35 = vadd.f32 %v2270_v61, %v2257_v2  ;;  %v2544_v2 = vpop.f32.mrf.mxu1 }
 0x49d   :  { %v14845_v33 = vpop.f32.mrf.mxu3 }
 0x4a5   :  { %v2021_v34 = vpop.f32.mrf.mxu3 }
 0x4a6   :  { %v14848_v37 = vadd.f32 %v2021_v34, %v14750_v38  ;;  %v13283_v38 = vld [vmem:[%s18006_s3 + $0x638] sm:$0xff] }
 0x4ad   :  { %v14850_v44 = vpop.f32.mrf.mxu3 }
 0x4b5   :  { %v2282_v52 = vpop.f32.mrf.mxu3 }
 0x4b6   :  { %v2283_v47 = vadd.f32 %v2282_v52, %v2269_v40 }
 0x4bd   :  { %v2284_v3 = vpop.f32.mrf.mxu3 }
 0x4be   :  { %v2285_v4 = vadd.f32 %v2284_v3, %v2271_v35  ;;  %v2557_v35 = vadd.f32 %v2556_v50, %v2542_v53  ;;  %v2559_v3 = vadd.f32 %v2558_v62, %v2544_v2 }
 0x4c0   :  { %v2292_v43 = vpack.c.bf16 %v2285_v4, %v2283_v47 }
 0x4c2   :  { %2316 = vmatpush.bf16.msrb.mxu0 %v2292_v43 }
 0x4c5   :  { %9817 = vmatmul.msk.bf16.vlgmr.msrb.gmra.mxu0 %vm424_vm1, %v13257_v5  ;;  %v2570_v55 = vpop.f32.mrf.mxu3 }
 0x4c6   :  { %2582 = vmatpush.bf16.msra.mxu0 %v13283_v38  ;;  %v2571_v47 = vadd.f32 %v2570_v55, %v2557_v35 }
 0x4ca   :  { %2863 = vmatpush.bf16.msrb.mxu0 %v13309_v6  ;;  %v13284_v6 = vld [vmem:[%s18007_s4 + $0x70] sm:$0xff] }
 0x4cd   :  { %v2572_v40 = vpop.f32.mrf.mxu3 }
 0x4ce   :  { %2864 = vmatpush.bf16.msrb.mxu0 %v13308_v51  ;;  %v13336_v51 = vld [vmem:[%s18006_s3 + $0x7c0] sm:$0xff] }
 0x4d2   :  { %2865 = vmatpush.bf16.msrb.mxu0 %v13307_v57  ;;  %v13335_v57 = vld [vmem:[%s18006_s3 + $0x7b8] sm:$0xff] }
 0x4d5   :  { %9818 = vmatmul.msk.bf16.gmra.mxu0 %vm424_vm1, %v13258_v10  ;;  %v13333_v10 = vld [vmem:[%s18006_s3 + $0x7a8] sm:$0xff] }
 0x4d6   :  { %2866 = vmatpush.bf16.msrb.mxu0 %v13306_v8  ;;  %v13334_v8 = vld [vmem:[%s18006_s3 + $0x7b0] sm:$0xff] }
 0x4d9   :  { %v2858_v62 = vpop.f32.mrf.mxu3 }
 0x4da   :  { %2867 = vmatpush.bf16.msrb.mxu0 %v13305_v11  ;;  %v13285_v11 = vld [vmem:[%s18007_s4 + $0x78] sm:$0xff] }
 0x4de   :  { %2868 = vmatpush.bf16.msrb.mxu0 %v13304_v63  ;;  %v13332_v63 = vld [vmem:[%s18006_s3 + $0x7a0] sm:$0xff] }
 0x4e2   :  { %2869 = vmatpush.bf16.msrb.mxu0 %v13303_v12  ;;  %v13331_v12 = vld [vmem:[%s18006_s3 + $0x798] sm:$0xff] }
 0x4e5   :  { %9969 = vmatmul.msk.bf16.vlgmr.msra.gmra.mxu0 %vm424_vm1, %v14207_v9 }
 0x4e6   :  { %2870 = vmatpush.bf16.msrb.mxu0 %v13302_v13  ;;  %v13330_v13 = vld [vmem:[%s18006_s3 + $0x790] sm:$0xff] }
 0x4ea   :  { %3151 = vmatpush.bf16.msra.mxu0 %v13328_v14  ;;  %v13329_v14 = vld [vmem:[%s18006_s3 + $0x788] sm:$0xff] }
 0x4ee   :  { %3152 = vmatpush.bf16.msra.mxu0 %v13327_v15  ;;  %v13355_v15 = vld [vmem:[%s18006_s3 + $0x848] sm:$0xff] }
 0x4f2   :  { %3153 = vmatpush.bf16.msra.mxu0 %v13326_v16  ;;  %v13354_v16 = vld [vmem:[%s18006_s3 + $0x840] sm:$0xff] }
 0x4f5   :  { %2871 = vmatmul.bf16.vlgmr.msrb.gmra.mxu0 %v14202_v7 }
 0x4f6   :  { %3154 = vmatpush.bf16.msra.mxu0 %v13325_v17  ;;  %v13353_v17 = vld [vmem:[%s18006_s3 + $0x838] sm:$0xff] }
 0x4fa   :  { %3155 = vmatpush.bf16.msra.mxu0 %v13324_v18  ;;  %v13352_v18 = vld [vmem:[%s18006_s3 + $0x830] sm:$0xff] }
 0x4fe   :  { %3156 = vmatpush.bf16.msra.mxu0 %v13323_v19  ;;  %v13351_v19 = vld [vmem:[%s18006_s3 + $0x828] sm:$0xff] }
 0x502   :  { %3157 = vmatpush.bf16.msra.mxu0 %v13322_v20  ;;  %v13350_v20 = vld [vmem:[%s18006_s3 + $0x820] sm:$0xff] }
 0x506   :  { %3158 = vmatpush.bf16.msra.mxu0 %v13321_v21  ;;  %v13349_v21 = vld [vmem:[%s18006_s3 + $0x818] sm:$0xff] }
 0x509   :  { %3159 = vmatmul.bf16.vlgmr.msra.gmra.mxu0 %v14192_v59 }
 0x50a   :  { %3439 = vmatpush.bf16.msrb.mxu0 %v13347_v22  ;;  %v13348_v22 = vld [vmem:[%s18006_s3 + $0x810] sm:$0xff] }
 0x50e   :  { %3440 = vmatpush.bf16.msrb.mxu0 %v13346_v23  ;;  %v13374_v23 = vld [vmem:[%s18006_s3 + $0x8d0] sm:$0xff] }
 0x512   :  { %3441 = vmatpush.bf16.msrb.mxu0 %v13345_v24  ;;  %v13373_v24 = vld [vmem:[%s18006_s3 + $0x8c8] sm:$0xff] }
 0x516   :  { %3442 = vmatpush.bf16.msrb.mxu0 %v13344_v25  ;;  %v13372_v25 = vld [vmem:[%s18006_s3 + $0x8c0] sm:$0xff] }
 0x51a   :  { %3443 = vmatpush.bf16.msrb.mxu0 %v13343_v26  ;;  %v13371_v26 = vld [vmem:[%s18006_s3 + $0x8b8] sm:$0xff] }
 0x51e   :  { %3444 = vmatpush.bf16.msrb.mxu0 %v13342_v27  ;;  %v13370_v27 = vld [vmem:[%s18006_s3 + $0x8b0] sm:$0xff] }
 0x522   :  { %3445 = vmatpush.bf16.msrb.mxu0 %v13341_v28  ;;  %v13369_v28 = vld [vmem:[%s18006_s3 + $0x8a8] sm:$0xff] }
 0x526   :  { %3446 = vmatpush.bf16.msrb.mxu0 %v13340_v29  ;;  %v13368_v29 = vld [vmem:[%s18006_s3 + $0x8a0] sm:$0xff] }
 0x529   :  { %3447 = vmatmul.bf16.vlgmr.msrb.gmra.mxu0 %v14187_v56 }
 0x542   :  { %v2318_v30 = vpop.f32.mrf.mxu0 }
 0x543   :  { %v14941_v31 = vadd.f32 %v2318_v30, %v14843_v32  ;;  %v2573_v32 = vadd.f32 %v2572_v40, %v2559_v3  ;;  %v13367_v30 = vld [vmem:[%s18006_s3 + $0x898] sm:$0xff]  ;;  %v2844_v40 = vpop.f32.mrf.mxu2 }
 0x54a   :  { %v14943_v34 = vpop.f32.mrf.mxu0 }
 0x552   :  { %v2323_v39 = vpop.f32.mrf.mxu0 }
 0x553   :  { %v14946_v46 = vadd.f32 %v2323_v39, %v14848_v37  ;;  %v13310_v37 = vld [vmem:[%s18006_s3 + $0x700] sm:$0xff] }
 0x55a   :  { %v14948_v52 = vpop.f32.mrf.mxu0 }
 0x562   :  { %v2584_v61 = vpop.f32.mrf.mxu0 }
 0x563   :  { %v2585_v38 = vadd.f32 %v2584_v61, %v2571_v47  ;;  %v2860_v47 = vpop.f32.mrf.mxu3 }
 0x56a   :  { %v2586_v4 = vpop.f32.mrf.mxu0 }
 0x56b   :  { %v2587_v43 = vadd.f32 %v2586_v4, %v2573_v32  ;;  %v2846_v32 = vpop.f32.mrf.mxu2 }
 0x56d   :  { %v2594_v5 = vpack.c.bf16 %v2587_v43, %v2585_v38  ;;  %v2859_v38 = vadd.f32 %v2858_v62, %v2844_v40  ;;  %v2861_v43 = vadd.f32 %v2860_v47, %v2846_v32  ;;  %v13394_v62 = vld [vmem:[%s18006_s3 + $0x960] sm:$0xff] }
 0x56f   :  { %2618 = vmatpush.bf16.msra.mxu1 %v2594_v5 }
 0x572   :  { %9982 = vmatmul.msk.bf16.vlgmr.msra.gmra.mxu1 %vm424_vm1, %v13284_v6  ;;  %v2872_v35 = vpop.f32.mrf.mxu0 }
 0x573   :  { %2884 = vmatpush.bf16.msrb.mxu1 %v13310_v37  ;;  %v2873_v37 = vadd.f32 %v2872_v35, %v2859_v38 }
 0x577   :  { %3165 = vmatpush.bf16.msra.mxu1 %v13336_v51 }
 0x57a   :  { %v2874_v4 = vpop.f32.mrf.mxu0 }
 0x57b   :  { %3166 = vmatpush.bf16.msra.mxu1 %v13335_v57 }
 0x57f   :  { %3167 = vmatpush.bf16.msra.mxu1 %v13334_v8  ;;  %v13311_v8 = vld [vmem:[%s18007_s4 + $0x80] sm:$0xff] }
 0x582   :  { %9983 = vmatmul.msk.bf16.gmra.mxu1 %vm424_vm1, %v13285_v11  ;;  %v13362_v11 = vld [vmem:[%s18006_s3 + $0x880] sm:$0xff] }
 0x583   :  { %3168 = vmatpush.bf16.msra.mxu1 %v13333_v10  ;;  %v13363_v10 = vld [vmem:[%s18006_s3 + $0x888] sm:$0xff] }
 0x587   :  { %3169 = vmatpush.bf16.msra.mxu1 %v13332_v63  ;;  %v13361_v63 = vld [vmem:[%s18006_s3 + $0x878] sm:$0xff] }
 0x58b   :  { %3170 = vmatpush.bf16.msra.mxu1 %v13331_v12  ;;  %v13360_v12 = vld [vmem:[%s18006_s3 + $0x870] sm:$0xff] }
 0x58f   :  { %3171 = vmatpush.bf16.msra.mxu1 %v13330_v13  ;;  %v13312_v13 = vld [vmem:[%s18007_s4 + $0x88] sm:$0xff] }
 0x592   :  { %10134 = vmatmul.msk.bf16.vlgmr.msrb.gmra.mxu1 %vm424_vm1, %v14207_v9 }
 0x593   :  { %3172 = vmatpush.bf16.msra.mxu1 %v13329_v14  ;;  %v13359_v14 = vld [vmem:[%s18006_s3 + $0x868] sm:$0xff] }
 0x597   :  { %3453 = vmatpush.bf16.msrb.mxu1 %v13355_v15  ;;  %v13358_v15 = vld [vmem:[%s18006_s3 + $0x860] sm:$0xff] }
 0x59b   :  { %3454 = vmatpush.bf16.msrb.mxu1 %v13354_v16  ;;  %v13357_v16 = vld [vmem:[%s18006_s3 + $0x858] sm:$0xff] }
 0x59f   :  { %3455 = vmatpush.bf16.msrb.mxu1 %v13353_v17  ;;  %v13356_v17 = vld [vmem:[%s18006_s3 + $0x850] sm:$0xff] }
 0x5a2   :  { %3173 = vmatmul.bf16.vlgmr.msra.gmra.mxu1 %v14202_v7 }
 0x5a3   :  { %3456 = vmatpush.bf16.msrb.mxu1 %v13352_v18  ;;  %v13382_v18 = vld [vmem:[%s18006_s3 + $0x910] sm:$0xff] }
 0x5a7   :  { %3457 = vmatpush.bf16.msrb.mxu1 %v13351_v19  ;;  %v13381_v19 = vld [vmem:[%s18006_s3 + $0x908] sm:$0xff] }
 0x5ab   :  { %3458 = vmatpush.bf16.msrb.mxu1 %v13350_v20  ;;  %v13380_v20 = vld [vmem:[%s18006_s3 + $0x900] sm:$0xff] }
 0x5af   :  { %3459 = vmatpush.bf16.msrb.mxu1 %v13349_v21  ;;  %v13379_v21 = vld [vmem:[%s18006_s3 + $0x8f8] sm:$0xff] }
 0x5b3   :  { %3460 = vmatpush.bf16.msrb.mxu1 %v13348_v22  ;;  %v13378_v22 = vld [vmem:[%s18006_s3 + $0x8f0] sm:$0xff] }
 0x5b6   :  { %3461 = vmatmul.bf16.vlgmr.msrb.gmra.mxu1 %v14192_v59 }
 0x5b7   :  { %3741 = vmatpush.bf16.msra.mxu1 %v13374_v23  ;;  %v13377_v23 = vld [vmem:[%s18006_s3 + $0x8e8] sm:$0xff] }
 0x5bb   :  { %3742 = vmatpush.bf16.msra.mxu1 %v13373_v24  ;;  %v13376_v24 = vld [vmem:[%s18006_s3 + $0x8e0] sm:$0xff] }
 0x5bf   :  { %3743 = vmatpush.bf16.msra.mxu1 %v13372_v25  ;;  %v13375_v25 = vld [vmem:[%s18006_s3 + $0x8d8] sm:$0xff] }
 0x5c3   :  { %3744 = vmatpush.bf16.msra.mxu1 %v13371_v26  ;;  %v13401_v26 = vld [vmem:[%s18006_s3 + $0x998] sm:$0xff] }
 0x5c7   :  { %3745 = vmatpush.bf16.msra.mxu1 %v13370_v27  ;;  %v13400_v27 = vld [vmem:[%s18006_s3 + $0x990] sm:$0xff] }
 0x5cb   :  { %3746 = vmatpush.bf16.msra.mxu1 %v13369_v28  ;;  %v13399_v28 = vld [vmem:[%s18006_s3 + $0x988] sm:$0xff] }
 0x5cf   :  { %3747 = vmatpush.bf16.msra.mxu1 %v13368_v29  ;;  %v13398_v29 = vld [vmem:[%s18006_s3 + $0x980] sm:$0xff] }
 0x5d3   :  { %3748 = vmatpush.bf16.msra.mxu1 %v13367_v30  ;;  %v13397_v30 = vld [vmem:[%s18006_s3 + $0x978] sm:$0xff] }
 0x5d6   :  { %3749 = vmatmul.bf16.vlgmr.msra.gmra.mxu1 %v14187_v56 }
 0x5ef   :  { %v2620_v39 = vpop.f32.mrf.mxu1 }
 0x5f0   :  { %v15039_v50 = vadd.f32 %v2620_v39, %v14941_v31  ;;  %v2875_v31 = vadd.f32 %v2874_v4, %v2861_v43  ;;  %v13396_v39 = vld [vmem:[%s18006_s3 + $0x970] sm:$0xff]  ;;  %v3160_v4 = vpop.f32.mrf.mxu0  ;;  %v3146_v43 = vpop.f32.mrf.mxu3 }
 0x5f7   :  { %v15041_v53 = vpop.f32.mrf.mxu1 }
 0x5ff   :  { %v2625_v55 = vpop.f32.mrf.mxu1 }
 0x600   :  { %v15044_v61 = vadd.f32 %v2625_v55, %v14946_v46  ;;  %v13337_v46 = vld [vmem:[%s18006_s3 + $0x7c8] sm:$0xff] }
 0x601   :  { %v13395_v55 = vld [vmem:[%s18006_s3 + $0x968] sm:$0xff] }
 0x607   :  { %v15046_v2 = vpop.f32.mrf.mxu1 }
 0x60f   :  { %v2886_v3 = vpop.f32.mrf.mxu1 }
 0x610   :  { %v2887_v6 = vadd.f32 %v2886_v3, %v2873_v37 }
 0x617   :  { %v2888_v5 = vpop.f32.mrf.mxu1 }
 0x618   :  { %v2889_v51 = vadd.f32 %v2888_v5, %v2875_v31  ;;  %v3162_v5 = vpop.f32.mrf.mxu0 }
 0x61a   :  { %v2896_v57 = vpack.c.bf16 %v2889_v51, %v2887_v6  ;;  %v3148_v6 = vpop.f32.mrf.mxu3 }
 0x61c   :  { %2920 = vmatpush.bf16.msra.mxu2 %v2896_v57  ;;  %v3163_v57 = vadd.f32 %v3162_v5, %v3148_v6 }
 0x61f   :  { %10147 = vmatmul.msk.bf16.vlgmr.msra.gmra.mxu2 %vm424_vm1, %v13311_v8  ;;  %v3174_v37 = vpop.f32.mrf.mxu1 }
 0x620   :  { %3186 = vmatpush.bf16.msrb.mxu2 %v13337_v46  ;;  %v3161_v46 = vadd.f32 %v3160_v4, %v3146_v43  ;;  %v13423_v4 = vld [vmem:[%s18006_s3 + $0xa38] sm:$0xff]  ;;  %v13422_v43 = vld [vmem:[%s18006_s3 + $0xa30] sm:$0xff] }
 0x622   :  { %v3175_v8 = vadd.f32 %v3174_v37, %v3161_v46  ;;  %v13421_v37 = vld [vmem:[%s18006_s3 + $0xa28] sm:$0xff] }
 0x624   :  { %3467 = vmatpush.bf16.msra.mxu2 %v13363_v10 }
 0x627   :  { %v3176_v51 = vpop.f32.mrf.mxu1 }
 0x628   :  { %3468 = vmatpush.bf16.msra.mxu2 %v13362_v11 }
 0x62c   :  { %3469 = vmatpush.bf16.msra.mxu2 %v13361_v63 }
 0x62f   :  { %10148 = vmatmul.msk.bf16.gmra.mxu2 %vm424_vm1, %v13312_v13  ;;  %v13338_v13 = vld [vmem:[%s18007_s4 + $0x90] sm:$0xff] }
 0x630   :  { %3470 = vmatpush.bf16.msra.mxu2 %v13360_v12 }
 0x634   :  { %3471 = vmatpush.bf16.msra.mxu2 %v13359_v14  ;;  %v13390_v14 = vld [vmem:[%s18006_s3 + $0x950] sm:$0xff] }
 0x638   :  { %3472 = vmatpush.bf16.msra.mxu2 %v13358_v15  ;;  %v13389_v15 = vld [vmem:[%s18006_s3 + $0x948] sm:$0xff] }
 0x63c   :  { %3473 = vmatpush.bf16.msra.mxu2 %v13357_v16  ;;  %v13388_v16 = vld [vmem:[%s18006_s3 + $0x940] sm:$0xff] }
 0x63f   :  { %10299 = vmatmul.msk.bf16.vlgmr.msrb.gmra.mxu2 %vm424_vm1, %v14207_v9 }
 0x640   :  { %3474 = vmatpush.bf16.msra.mxu2 %v13356_v17  ;;  %v13387_v17 = vld [vmem:[%s18006_s3 + $0x938] sm:$0xff] }
 0x644   :  { %3755 = vmatpush.bf16.msrb.mxu2 %v13382_v18  ;;  %v13339_v18 = vld [vmem:[%s18007_s4 + $0x98] sm:$0xff] }
 0x648   :  { %3756 = vmatpush.bf16.msrb.mxu2 %v13381_v19  ;;  %v13386_v19 = vld [vmem:[%s18006_s3 + $0x930] sm:$0xff] }
 0x64c   :  { %3757 = vmatpush.bf16.msrb.mxu2 %v13380_v20  ;;  %v13385_v20 = vld [vmem:[%s18006_s3 + $0x928] sm:$0xff] }
 0x64f   :  { %3475 = vmatmul.bf16.vlgmr.msra.gmra.mxu2 %v14202_v7 }
 0x650   :  { %3758 = vmatpush.bf16.msrb.mxu2 %v13379_v21  ;;  %v13384_v21 = vld [vmem:[%s18006_s3 + $0x920] sm:$0xff] }
 0x654   :  { %3759 = vmatpush.bf16.msrb.mxu2 %v13378_v22  ;;  %v13383_v22 = vld [vmem:[%s18006_s3 + $0x918] sm:$0xff] }
 0x658   :  { %3760 = vmatpush.bf16.msrb.mxu2 %v13377_v23  ;;  %v13409_v23 = vld [vmem:[%s18006_s3 + $0x9d8] sm:$0xff] }
 0x65c   :  { %3761 = vmatpush.bf16.msrb.mxu2 %v13376_v24  ;;  %v13408_v24 = vld [vmem:[%s18006_s3 + $0x9d0] sm:$0xff] }
 0x660   :  { %3762 = vmatpush.bf16.msrb.mxu2 %v13375_v25  ;;  %v13407_v25 = vld [vmem:[%s18006_s3 + $0x9c8] sm:$0xff] }
 0x663   :  { %3763 = vmatmul.bf16.vlgmr.msrb.gmra.mxu2 %v14192_v59 }
 0x664   :  { %4043 = vmatpush.bf16.msra.mxu2 %v13401_v26  ;;  %v13406_v26 = vld [vmem:[%s18006_s3 + $0x9c0] sm:$0xff] }
 0x668   :  { %4044 = vmatpush.bf16.msra.mxu2 %v13400_v27  ;;  %v13405_v27 = vld [vmem:[%s18006_s3 + $0x9b8] sm:$0xff] }
 0x66c   :  { %4045 = vmatpush.bf16.msra.mxu2 %v13399_v28  ;;  %v13404_v28 = vld [vmem:[%s18006_s3 + $0x9b0] sm:$0xff] }
 0x670   :  { %4046 = vmatpush.bf16.msra.mxu2 %v13398_v29  ;;  %v13403_v29 = vld [vmem:[%s18006_s3 + $0x9a8] sm:$0xff] }
 0x674   :  { %4047 = vmatpush.bf16.msra.mxu2 %v13397_v30  ;;  %v13402_v30 = vld [vmem:[%s18006_s3 + $0x9a0] sm:$0xff] }
 0x678   :  { %4048 = vmatpush.bf16.msra.mxu2 %v13396_v39  ;;  %v13428_v39 = vld [vmem:[%s18006_s3 + $0xa60] sm:$0xff] }
 0x67c   :  { %4049 = vmatpush.bf16.msra.mxu2 %v13395_v55  ;;  %v13427_v55 = vld [vmem:[%s18006_s3 + $0xa58] sm:$0xff] }
 0x680   :  { %4050 = vmatpush.bf16.msra.mxu2 %v13394_v62  ;;  %v13426_v62 = vld [vmem:[%s18006_s3 + $0xa50] sm:$0xff] }
 0x683   :  { %4051 = vmatmul.bf16.vlgmr.msra.gmra.mxu2 %v14187_v56 }
 0x6a2   :  { %v2922_v40 = vpop.f32.mrf.mxu2 }
 0x6a3   :  { %v15137_v35 = vadd.f32 %v2922_v40, %v15039_v50  ;;  %v3177_v50 = vadd.f32 %v3176_v51, %v3163_v57  ;;  %v13425_v40 = vld [vmem:[%s18006_s3 + $0xa48] sm:$0xff]  ;;  %v3462_v57 = vpop.f32.mrf.mxu1 }
 0x6aa   :  { %v15139_v3 = vpop.f32.mrf.mxu2 }
 0x6b2   :  { %v2927_v47 = vpop.f32.mrf.mxu2 }
 0x6b3   :  { %v15142_v32 = vadd.f32 %v2927_v47, %v15044_v61  ;;  %v13364_v61 = vld [vmem:[%s18006_s3 + $0x890] sm:$0xff]  ;;  %v13424_v47 = vld [vmem:[%s18006_s3 + $0xa40] sm:$0xff] }
 0x6ba   :  { %v15144_v38 = vpop.f32.mrf.mxu2 }
 0x6c2   :  { %v3188_v31 = vpop.f32.mrf.mxu2 }
 0x6c3   :  { %v3189_v11 = vadd.f32 %v3188_v31, %v3175_v8 }
 0x6ca   :  { %v3190_v10 = vpop.f32.mrf.mxu2 }
 0x6cb   :  { %v3191_v63 = vadd.f32 %v3190_v10, %v3177_v50  ;;  %v3448_v50 = vpop.f32.mrf.mxu0 }
 0x6cd   :  { %v3198_v12 = vpack.c.bf16 %v3191_v63, %v3189_v11  ;;  %v3464_v63 = vpop.f32.mrf.mxu1 }
 0x6cf   :  { %3222 = vmatpush.bf16.msrb.mxu3 %v3198_v12 }
 0x6d2   :  { %10312 = vmatmul.msk.bf16.vlgmr.msrb.gmra.mxu3 %vm424_vm1, %v13338_v13  ;;  %v3476_v10 = vpop.f32.mrf.mxu2  ;;  %v3463_v13 = vadd.f32 %v3462_v57, %v3448_v50  ;;  %v13452_v57 = vld [vmem:[%s18006_s3 + $0xb10] sm:$0xff]  ;;  %v13451_v50 = vld [vmem:[%s18006_s3 + $0xb08] sm:$0xff] }
 0x6d3   :  { %3488 = vmatpush.bf16.msra.mxu3 %v13364_v61  ;;  %v3450_v61 = vpop.f32.mrf.mxu0 }
 0x6d7   :  { %3769 = vmatpush.bf16.msrb.mxu3 %v13390_v14  ;;  %v3465_v14 = vadd.f32 %v3464_v63, %v3450_v61  ;;  %v13448_v63 = vld [vmem:[%s18006_s3 + $0xaf0] sm:$0xff] }
 0x6da   :  { %v3478_v12 = vpop.f32.mrf.mxu2 }
 0x6db   :  { %3770 = vmatpush.bf16.msrb.mxu3 %v13389_v15  ;;  %v3477_v15 = vadd.f32 %v3476_v10, %v3463_v13  ;;  %v13450_v10 = vld [vmem:[%s18006_s3 + $0xb00] sm:$0xff] }
 0x6df   :  { %3771 = vmatpush.bf16.msrb.mxu3 %v13388_v16 }
 0x6e2   :  { %10313 = vmatmul.msk.bf16.gmra.mxu3 %vm424_vm1, %v13339_v18 }
 0x6e3   :  { %3772 = vmatpush.bf16.msrb.mxu3 %v13387_v17 }
 0x6e7   :  { %3773 = vmatpush.bf16.msrb.mxu3 %v13386_v19 }
 0x6eb   :  { %3774 = vmatpush.bf16.msrb.mxu3 %v13385_v20  ;;  %v13365_v20 = vld [vmem:[%s18007_s4 + $0xa0] sm:$0xff] }
 0x6ef   :  { %3775 = vmatpush.bf16.msrb.mxu3 %v13384_v21  ;;  %v13417_v21 = vld [vmem:[%s18006_s3 + $0xa18] sm:$0xff] }
 0x6f2   :  { %10464 = vmatmul.msk.bf16.vlgmr.msra.gmra.mxu3 %vm424_vm1, %v14207_v9 }
 0x6f3   :  { %3776 = vmatpush.bf16.msrb.mxu3 %v13383_v22  ;;  %v13416_v22 = vld [vmem:[%s18006_s3 + $0xa10] sm:$0xff] }
 0x6f7   :  { %4057 = vmatpush.bf16.msra.mxu3 %v13409_v23  ;;  %v13415_v23 = vld [vmem:[%s18006_s3 + $0xa08] sm:$0xff] }
 0x6fb   :  { %4058 = vmatpush.bf16.msra.mxu3 %v13408_v24  ;;  %v13414_v24 = vld [vmem:[%s18006_s3 + $0xa00] sm:$0xff] }
 0x6ff   :  { %4059 = vmatpush.bf16.msra.mxu3 %v13407_v25  ;;  %v13366_v25 = vld [vmem:[%s18007_s4 + $0xa8] sm:$0xff] }
 0x702   :  { %3777 = vmatmul.bf16.vlgmr.msrb.gmra.mxu3 %v14202_v7 }
 0x703   :  { %4060 = vmatpush.bf16.msra.mxu3 %v13406_v26  ;;  %v13413_v26 = vld [vmem:[%s18006_s3 + $0x9f8] sm:$0xff] }
 0x707   :  { %4061 = vmatpush.bf16.msra.mxu3 %v13405_v27  ;;  %v13412_v27 = vld [vmem:[%s18006_s3 + $0x9f0] sm:$0xff] }
 0x70b   :  { %4062 = vmatpush.bf16.msra.mxu3 %v13404_v28  ;;  %v13411_v28 = vld [vmem:[%s18006_s3 + $0x9e8] sm:$0xff] }
 0x70f   :  { %4063 = vmatpush.bf16.msra.mxu3 %v13403_v29  ;;  %v13410_v29 = vld [vmem:[%s18006_s3 + $0x9e0] sm:$0xff] }
 0x713   :  { %4064 = vmatpush.bf16.msra.mxu3 %v13402_v30  ;;  %v13436_v30 = vld [vmem:[%s18006_s3 + $0xaa0] sm:$0xff] }
 0x716   :  { %4065 = vmatmul.bf16.vlgmr.msra.gmra.mxu3 %v14192_v59 }
 0x717   :  { %4345 = vmatpush.bf16.msrb.mxu3 %v13428_v39  ;;  %v13435_v39 = vld [vmem:[%s18006_s3 + $0xa98] sm:$0xff] }
 0x71b   :  { %4346 = vmatpush.bf16.msrb.mxu3 %v13427_v55  ;;  %v13434_v55 = vld [vmem:[%s18006_s3 + $0xa90] sm:$0xff] }
 0x71f   :  { %4347 = vmatpush.bf16.msrb.mxu3 %v13426_v62  ;;  %v13433_v62 = vld [vmem:[%s18006_s3 + $0xa88] sm:$0xff] }
 0x723   :  { %4348 = vmatpush.bf16.msrb.mxu3 %v13425_v40  ;;  %v13432_v40 = vld [vmem:[%s18006_s3 + $0xa80] sm:$0xff] }
 0x727   :  { %4349 = vmatpush.bf16.msrb.mxu3 %v13424_v47  ;;  %v13431_v47 = vld [vmem:[%s18006_s3 + $0xa78] sm:$0xff] }
 0x72b   :  { %4350 = vmatpush.bf16.msrb.mxu3 %v13423_v4  ;;  %v13430_v4 = vld [vmem:[%s18006_s3 + $0xa70] sm:$0xff] }
 0x72f   :  { %4351 = vmatpush.bf16.msrb.mxu3 %v13422_v43  ;;  %v13429_v43 = vld [vmem:[%s18006_s3 + $0xa68] sm:$0xff] }
 0x733   :  { %4352 = vmatpush.bf16.msrb.mxu3 %v13421_v37  ;;  %v13455_v37 = vld [vmem:[%s18006_s3 + $0xb28] sm:$0xff] }
 0x736   :  { %4353 = vmatmul.bf16.vlgmr.msrb.gmra.mxu3 %v14187_v56 }
 0x755   :  { %v3224_v31 = vpop.f32.mrf.mxu3 }
 0x756   :  { %v15235_v5 = vadd.f32 %v3224_v31, %v15137_v35  ;;  %v3479_v35 = vadd.f32 %v3478_v12, %v3465_v14  ;;  %v13454_v31 = vld [vmem:[%s18006_s3 + $0xb20] sm:$0xff] }
 0x75d   :  { %v15237_v6 = vpop.f32.mrf.mxu3 }
 0x765   :  { %v3229_v51 = vpop.f32.mrf.mxu3 }
 0x766   :  { %v15240_v46 = vadd.f32 %v3229_v51, %v15142_v32  ;;  %v13391_v32 = vld [vmem:[%s18006_s3 + $0x958] sm:$0xff] }
 0x767   :  { %v13453_v51 = vld [vmem:[%s18006_s3 + $0xb18] sm:$0xff] }
 0x76d   :  { %v15242_v8 = vpop.f32.mrf.mxu3 }
 0x775   :  { %v3490_v11 = vpop.f32.mrf.mxu3 }
 0x776   :  { %v3491_v17 = vadd.f32 %v3490_v11, %v3477_v15  ;;  %v13449_v11 = vld [vmem:[%s18006_s3 + $0xaf8] sm:$0xff] }
 0x77d   :  { %v3492_v16 = vpop.f32.mrf.mxu3 }
 0x77e   :  { %v3493_v18 = vadd.f32 %v3492_v16, %v3479_v35  ;;  %v3764_v35 = vpop.f32.mrf.mxu2 }
 0x780   :  { %v3500_v19 = vpack.c.bf16 %v3493_v18, %v3491_v17  ;;  %v3750_v17 = vpop.f32.mrf.mxu1 }
 0x782   :  { %3524 = vmatpush.bf16.msra.mxu0 %v3500_v19 }
 0x785   :  { %10477 = vmatmul.msk.bf16.vlgmr.msra.gmra.mxu0 %vm424_vm1, %v13365_v20  ;;  %v3778_v18 = vpop.f32.mrf.mxu3 }
 0x786   :  { %3790 = vmatpush.bf16.msrb.mxu0 %v13391_v32  ;;  %v3766_v19 = vpop.f32.mrf.mxu2 }
 0x788   :  { %v3752_v20 = vpop.f32.mrf.mxu1 }
 0x78a   :  { %4071 = vmatpush.bf16.msra.mxu0 %v13417_v21 }
 0x78d   :  { %v3780_v21 = vpop.f32.mrf.mxu3 }
 0x78e   :  { %4072 = vmatpush.bf16.msra.mxu0 %v13416_v22  ;;  %v3765_v22 = vadd.f32 %v3764_v35, %v3750_v17  ;;  %v13481_v35 = vld [vmem:[%s18006_s3 + $0xbe8] sm:$0xff]  ;;  %v13480_v17 = vld [vmem:[%s18006_s3 + $0xbe0] sm:$0xff] }
 0x792   :  { %4073 = vmatpush.bf16.msra.mxu0 %v13415_v23  ;;  %v3767_v23 = vadd.f32 %v3766_v19, %v3752_v20  ;;  %v13477_v19 = vld [vmem:[%s18006_s3 + $0xbc8] sm:$0xff]  ;;  %v13476_v20 = vld [vmem:[%s18006_s3 + $0xbc0] sm:$0xff] }
 0x795   :  { %10478 = vmatmul.msk.bf16.gmra.mxu0 %vm424_vm1, %v13366_v25 }
 0x796   :  { %4074 = vmatpush.bf16.msra.mxu0 %v13414_v24  ;;  %v3779_v24 = vadd.f32 %v3778_v18, %v3765_v22  ;;  %v13479_v18 = vld [vmem:[%s18006_s3 + $0xbd8] sm:$0xff] }
 0x79a   :  { %4075 = vmatpush.bf16.msra.mxu0 %v13413_v26 }
 0x79e   :  { %4076 = vmatpush.bf16.msra.mxu0 %v13412_v27 }
 0x7a2   :  { %4077 = vmatpush.bf16.msra.mxu0 %v13411_v28 }
 0x7a5   :  { %10629 = vmatmul.msk.bf16.vlgmr.msrb.gmra.mxu0 %vm424_vm1, %v14207_v9 }
 0x7a6   :  { %4078 = vmatpush.bf16.msra.mxu0 %v13410_v29  ;;  %v13392_v29 = vld [vmem:[%s18007_s4 + $0xb0] sm:$0xff] }
 0x7aa   :  { %4359 = vmatpush.bf16.msrb.mxu0 %v13436_v30  ;;  %v13444_v30 = vld [vmem:[%s18006_s3 + $0xae0] sm:$0xff] }
 0x7ae   :  { %4360 = vmatpush.bf16.msrb.mxu0 %v13435_v39  ;;  %v13443_v39 = vld [vmem:[%s18006_s3 + $0xad8] sm:$0xff] }
 0x7b2   :  { %4361 = vmatpush.bf16.msrb.mxu0 %v13434_v55  ;;  %v13442_v55 = vld [vmem:[%s18006_s3 + $0xad0] sm:$0xff] }
 0x7b5   :  { %4079 = vmatmul.bf16.vlgmr.msra.gmra.mxu0 %v14202_v7 }
 0x7b6   :  { %4362 = vmatpush.bf16.msrb.mxu0 %v13433_v62  ;;  %v13441_v62 = vld [vmem:[%s18006_s3 + $0xac8] sm:$0xff] }
 0x7ba   :  { %4363 = vmatpush.bf16.msrb.mxu0 %v13432_v40  ;;  %v13393_v40 = vld [vmem:[%s18007_s4 + $0xb8] sm:$0xff] }
 0x7be   :  { %4364 = vmatpush.bf16.msrb.mxu0 %v13431_v47  ;;  %v13440_v47 = vld [vmem:[%s18006_s3 + $0xac0] sm:$0xff] }
 0x7c2   :  { %4365 = vmatpush.bf16.msrb.mxu0 %v13430_v4  ;;  %v13439_v4 = vld [vmem:[%s18006_s3 + $0xab8] sm:$0xff] }
 0x7c6   :  { %4366 = vmatpush.bf16.msrb.mxu0 %v13429_v43  ;;  %v13438_v43 = vld [vmem:[%s18006_s3 + $0xab0] sm:$0xff] }
 0x7c9   :  { %4367 = vmatmul.bf16.vlgmr.msrb.gmra.mxu0 %v14192_v59 }
 0x7ca   :  { %4647 = vmatpush.bf16.msra.mxu0 %v13455_v37  ;;  %v13437_v37 = vld [vmem:[%s18006_s3 + $0xaa8] sm:$0xff] }
 0x7ce   :  { %4648 = vmatpush.bf16.msra.mxu0 %v13454_v31  ;;  %v13463_v31 = vld [vmem:[%s18006_s3 + $0xb68] sm:$0xff] }
 0x7d2   :  { %4649 = vmatpush.bf16.msra.mxu0 %v13453_v51  ;;  %v13462_v51 = vld [vmem:[%s18006_s3 + $0xb60] sm:$0xff] }
 0x7d6   :  { %4650 = vmatpush.bf16.msra.mxu0 %v13452_v57  ;;  %v13461_v57 = vld [vmem:[%s18006_s3 + $0xb58] sm:$0xff] }
 0x7da   :  { %4651 = vmatpush.bf16.msra.mxu0 %v13451_v50  ;;  %v13460_v50 = vld [vmem:[%s18006_s3 + $0xb50] sm:$0xff] }
 0x7de   :  { %4652 = vmatpush.bf16.msra.mxu0 %v13450_v10  ;;  %v13459_v10 = vld [vmem:[%s18006_s3 + $0xb48] sm:$0xff] }
 0x7e2   :  { %4653 = vmatpush.bf16.msra.mxu0 %v13449_v11  ;;  %v13458_v11 = vld [vmem:[%s18006_s3 + $0xb40] sm:$0xff] }
 0x7e6   :  { %4654 = vmatpush.bf16.msra.mxu0 %v13448_v63  ;;  %v13457_v63 = vld [vmem:[%s18006_s3 + $0xb38] sm:$0xff] }
 0x7e9   :  { %4655 = vmatmul.bf16.vlgmr.msra.gmra.mxu0 %v14187_v56 }
 0x802   :  { %v3526_v61 = vpop.f32.mrf.mxu0 }
 0x803   :  { %v15333_v12 = vadd.f32 %v3526_v61, %v15235_v5  ;;  %v3781_v5 = vadd.f32 %v3780_v21, %v3767_v23  ;;  %v13456_v61 = vld [vmem:[%s18006_s3 + $0xb30] sm:$0xff]  ;;  %v13475_v21 = vld [vmem:[%s18006_s3 + $0xbb8] sm:$0xff] }
 0x80a   :  { %v15335_v13 = vpop.f32.mrf.mxu0 }
 0x812   :  { %v3531_v14 = vpop.f32.mrf.mxu0 }
 0x813   :  { %v15338_v15 = vadd.f32 %v3531_v14, %v15240_v46  ;;  %v13418_v46 = vld [vmem:[%s18006_s3 + $0xa20] sm:$0xff]  ;;  %v13482_v14 = vld [vmem:[%s18006_s3 + $0xbf0] sm:$0xff] }
 0x81a   :  { %v15340_v16 = vpop.f32.mrf.mxu0 }
 0x822   :  { %v3792_v32 = vpop.f32.mrf.mxu0 }
 0x823   :  { %v3793_v26 = vadd.f32 %v3792_v32, %v3779_v24  ;;  %v13478_v32 = vld [vmem:[%s18006_s3 + $0xbd0] sm:$0xff] }
 0x82a   :  { %v3794_v25 = vpop.f32.mrf.mxu0 }
 0x82b   :  { %v3795_v27 = vadd.f32 %v3794_v25, %v3781_v5 }
 0x82d   :  { %v3802_v28 = vpack.c.bf16 %v3795_v27, %v3793_v26  ;;  %v4066_v26 = vpop.f32.mrf.mxu3 }
 0x82f   :  { %3826 = vmatpush.bf16.msrb.mxu1 %v3802_v28 }
 0x832   :  { %10642 = vmatmul.msk.bf16.vlgmr.msrb.gmra.mxu1 %vm424_vm1, %v13392_v29  ;;  %v4080_v28 = vpop.f32.mrf.mxu0 }
 0x833   :  { %4092 = vmatpush.bf16.msra.mxu1 %v13418_v46  ;;  %v4052_v46 = vpop.f32.mrf.mxu2 }
 0x837   :  { %4373 = vmatpush.bf16.msrb.mxu1 %v13444_v30  ;;  %v4068_v30 = vpop.f32.mrf.mxu3 }
 0x83b   :  { %4374 = vmatpush.bf16.msrb.mxu1 %v13443_v39  ;;  %v4054_v39 = vpop.f32.mrf.mxu2 }
 0x83f   :  { %4375 = vmatpush.bf16.msrb.mxu1 %v13442_v55  ;;  %v4082_v55 = vpop.f32.mrf.mxu0 }
 0x842   :  { %10643 = vmatmul.msk.bf16.gmra.mxu1 %vm424_vm1, %v13393_v40 }
 0x843   :  { %4376 = vmatpush.bf16.msrb.mxu1 %v13441_v62  ;;  %v4069_v62 = vadd.f32 %v4068_v30, %v4054_v39 }
 0x847   :  { %4377 = vmatpush.bf16.msrb.mxu1 %v13440_v47  ;;  %v4368_v39 = vpop.f32.mrf.mxu0 }
 0x84b   :  { %4378 = vmatpush.bf16.msrb.mxu1 %v13439_v4 }
 0x84f   :  { %4379 = vmatpush.bf16.msrb.mxu1 %v13438_v43 }
 0x852   :  { %10794 = vmatmul.msk.bf16.vlgmr.msra.gmra.mxu1 %vm424_vm1, %v14207_v9 }
 0x853   :  { %4380 = vmatpush.bf16.msrb.mxu1 %v13437_v37 }
 0x857   :  { %4661 = vmatpush.bf16.msra.mxu1 %v13463_v31  ;;  %v13419_v31 = vld [vmem:[%s18007_s4 + $0xc0] sm:$0xff] }
 0x85b   :  { %4662 = vmatpush.bf16.msra.mxu1 %v13462_v51  ;;  %v13471_v51 = vld [vmem:[%s18006_s3 + $0xba8] sm:$0xff] }
 0x85f   :  { %4663 = vmatpush.bf16.msra.mxu1 %v13461_v57  ;;  %v13470_v57 = vld [vmem:[%s18006_s3 + $0xba0] sm:$0xff] }
 0x862   :  { %4381 = vmatmul.bf16.vlgmr.msrb.gmra.mxu1 %v14202_v7 }
 0x863   :  { %4664 = vmatpush.bf16.msra.mxu1 %v13460_v50  ;;  %v13469_v50 = vld [vmem:[%s18006_s3 + $0xb98] sm:$0xff] }
 0x867   :  { %4665 = vmatpush.bf16.msra.mxu1 %v13459_v10  ;;  %v13468_v10 = vld [vmem:[%s18006_s3 + $0xb90] sm:$0xff] }
 0x86b   :  { %4666 = vmatpush.bf16.msra.mxu1 %v13458_v11  ;;  %v13420_v11 = vld [vmem:[%s18007_s4 + $0xc8] sm:$0xff] }
 0x86f   :  { %4667 = vmatpush.bf16.msra.mxu1 %v13457_v63  ;;  %v13467_v63 = vld [vmem:[%s18006_s3 + $0xb88] sm:$0xff] }
 0x873   :  { %4668 = vmatpush.bf16.msra.mxu1 %v13456_v61  ;;  %v13466_v61 = vld [vmem:[%s18006_s3 + $0xb80] sm:$0xff] }
 0x876   :  { %4669 = vmatmul.bf16.vlgmr.msra.gmra.mxu1 %v14192_v59 }
 0x877   :  { %4949 = vmatpush.bf16.msrb.mxu1 %v13482_v14  ;;  %v13465_v14 = vld [vmem:[%s18006_s3 + $0xb78] sm:$0xff] }
 0x87b   :  { %4950 = vmatpush.bf16.msrb.mxu1 %v13481_v35  ;;  %v13464_v35 = vld [vmem:[%s18006_s3 + $0xb70] sm:$0xff] }
 0x87f   :  { %4951 = vmatpush.bf16.msrb.mxu1 %v13480_v17  ;;  %v13490_v17 = vld [vmem:[%s18006_s3 + $0xc30] sm:$0xff] }
 0x883   :  { %4952 = vmatpush.bf16.msrb.mxu1 %v13479_v18  ;;  %v13489_v18 = vld [vmem:[%s18006_s3 + $0xc28] sm:$0xff] }
 0x887   :  { %4953 = vmatpush.bf16.msrb.mxu1 %v13478_v32  ;;  %v13488_v32 = vld [vmem:[%s18006_s3 + $0xc20] sm:$0xff] }
 0x88b   :  { %4954 = vmatpush.bf16.msrb.mxu1 %v13477_v19  ;;  %v13487_v19 = vld [vmem:[%s18006_s3 + $0xc18] sm:$0xff] }
 0x88f   :  { %4955 = vmatpush.bf16.msrb.mxu1 %v13476_v20  ;;  %v13486_v20 = vld [vmem:[%s18006_s3 + $0xc10] sm:$0xff] }
 0x893   :  { %4956 = vmatpush.bf16.msrb.mxu1 %v13475_v21  ;;  %v13485_v21 = vld [vmem:[%s18006_s3 + $0xc08] sm:$0xff] }
 0x896   :  { %4957 = vmatmul.bf16.vlgmr.msrb.gmra.mxu1 %v14187_v56  ;;  %v4067_v56 = vadd.f32 %v4066_v26, %v4052_v46 }
 0x898   :  { %v4081_v40 = vadd.f32 %v4080_v28, %v4067_v56  ;;  %v4354_v56 = vpop.f32.mrf.mxu3 }
 0x8af   :  { %v3828_v22 = vpop.f32.mrf.mxu1 }
 0x8b0   :  { %v15431_v23 = vadd.f32 %v3828_v22, %v15333_v12  ;;  %v4083_v12 = vadd.f32 %v4082_v55, %v4069_v62  ;;  %v13484_v22 = vld [vmem:[%s18006_s3 + $0xc00] sm:$0xff] }
 0x8b7   :  { %v15433_v24 = vpop.f32.mrf.mxu1 }
 0x8bf   :  { %v3833_v5 = vpop.f32.mrf.mxu1 }
 0x8c0   :  { %v15436_v25 = vadd.f32 %v3833_v5, %v15338_v15  ;;  %v13445_v15 = vld [vmem:[%s18006_s3 + $0xae8] sm:$0xff]  ;;  %v13483_v5 = vld [vmem:[%s18006_s3 + $0xbf8] sm:$0xff] }
 0x8c7   :  { %v15438_v27 = vpop.f32.mrf.mxu1 }
 0x8cf   :  { %v4094_v29 = vpop.f32.mrf.mxu1 }
 0x8d0   :  { %v4095_v4 = vadd.f32 %v4094_v29, %v4081_v40 }
 0x8d7   :  { %v4096_v47 = vpop.f32.mrf.mxu1 }
 0x8d8   :  { %v4097_v43 = vadd.f32 %v4096_v47, %v4083_v12  ;;  %v4370_v12 = vpop.f32.mrf.mxu0  ;;  %v4356_v47 = vpop.f32.mrf.mxu3 }
 0x8da   :  { %v4104_v37 = vpack.c.bf16 %v4097_v43, %v4095_v4  ;;  %v4369_v43 = vadd.f32 %v4368_v39, %v4354_v56 }
 0x8dc   :  { %4128 = vmatpush.bf16.msrb.mxu2 %v4104_v37 }
 0x8df   :  { %10807 = vmatmul.msk.bf16.vlgmr.msrb.gmra.mxu2 %vm424_vm1, %v13419_v31  ;;  %v4382_v62 = vpop.f32.mrf.mxu1 }
 0x8e0   :  { %4394 = vmatpush.bf16.msra.mxu2 %v13445_v15  ;;  %v4371_v15 = vadd.f32 %v4370_v12, %v4356_v47  ;;  %v4656_v39 = vpop.f32.mrf.mxu0 }
 0x8e4   :  { %4675 = vmatpush.bf16.msrb.mxu2 %v13471_v51 }
 0x8e7   :  { %v4384_v4 = vpop.f32.mrf.mxu1 }
 0x8e8   :  { %4676 = vmatpush.bf16.msrb.mxu2 %v13470_v57  ;;  %v4385_v37 = vadd.f32 %v4384_v4, %v4371_v15  ;;  %v4658_v12 = vpop.f32.mrf.mxu0 }
 0x8ec   :  { %4677 = vmatpush.bf16.msrb.mxu2 %v13469_v50  ;;  %v13446_v50 = vld [vmem:[%s18007_s4 + $0xd0] sm:$0xff] }
 0x8ef   :  { %10808 = vmatmul.msk.bf16.gmra.mxu2 %vm424_vm1, %v13420_v11  ;;  %v13497_v11 = vld [vmem:[%s18006_s3 + $0xc68] sm:$0xff] }
 0x8f0   :  { %4678 = vmatpush.bf16.msrb.mxu2 %v13468_v10  ;;  %v13498_v10 = vld [vmem:[%s18006_s3 + $0xc70] sm:$0xff] }
 0x8f4   :  { %4679 = vmatpush.bf16.msrb.mxu2 %v13467_v63  ;;  %v13496_v63 = vld [vmem:[%s18006_s3 + $0xc60] sm:$0xff] }
 0x8f8   :  { %4680 = vmatpush.bf16.msrb.mxu2 %v13466_v61  ;;  %v13495_v61 = vld [vmem:[%s18006_s3 + $0xc58] sm:$0xff] }
 0x8fc   :  { %4681 = vmatpush.bf16.msrb.mxu2 %v13465_v14  ;;  %v13447_v14 = vld [vmem:[%s18007_s4 + $0xd8] sm:$0xff] }
 0x8ff   :  { %10959 = vmatmul.msk.bf16.vlgmr.msra.gmra.mxu2 %vm424_vm1, %v14207_v9 }
 0x900   :  { %4682 = vmatpush.bf16.msrb.mxu2 %v13464_v35  ;;  %v13494_v35 = vld [vmem:[%s18006_s3 + $0xc50] sm:$0xff] }
 0x904   :  { %4963 = vmatpush.bf16.msra.mxu2 %v13490_v17  ;;  %v13493_v17 = vld [vmem:[%s18006_s3 + $0xc48] sm:$0xff] }
 0x908   :  { %4964 = vmatpush.bf16.msra.mxu2 %v13489_v18  ;;  %v13492_v18 = vld [vmem:[%s18006_s3 + $0xc40] sm:$0xff] }
 0x90c   :  { %4965 = vmatpush.bf16.msra.mxu2 %v13488_v32  ;;  %v13491_v32 = vld [vmem:[%s18006_s3 + $0xc38] sm:$0xff] }
 0x90f   :  { %4683 = vmatmul.bf16.vlgmr.msrb.gmra.mxu2 %v14202_v7 }
 0x910   :  { %4966 = vmatpush.bf16.msra.mxu2 %v13487_v19 }
 0x914   :  { %4967 = vmatpush.bf16.msra.mxu2 %v13486_v20 }
 0x918   :  { %4968 = vmatpush.bf16.msra.mxu2 %v13485_v21 }
 0x91c   :  { %4969 = vmatpush.bf16.msra.mxu2 %v13484_v22 }
 0x920   :  { %4970 = vmatpush.bf16.msra.mxu2 %v13483_v5 }
 0x923   :  { %4971 = vmatmul.bf16.vlgmr.msra.gmra.mxu2 %v14192_v59  ;;  %v4383_v59 = vadd.f32 %v4382_v62, %v4369_v43 }
 0x962   :  { %v4130_v26 = vpop.f32.mrf.mxu2 }
 0x963   :  { %v4140_v46 = vadd.f32 %v4130_v26, %v15431_v23  ;;  %v4670_v26 = vpop.f32.mrf.mxu1 }
 0x964   :  { %v4671_v4 = vadd.f32 %v4670_v26, %v4656_v39  ;;  %v11314_v39 = vld [vmem:[%s18009_s6 + $0xa8] sm:$0x11] }
 0x96a   :  { %v15504_v28 = vpop.f32.mrf.mxu2 }
 0x972   :  { %v4135_v29 = vpop.f32.mrf.mxu2 }
 0x973   :  { %v4142_v30 = vadd.f32 %v4135_v29, %v15436_v25  ;;  %v13472_v25 = vld [vmem:[%s18006_s3 + $0xbb0] sm:$0xff] }
 0x97a   :  { %v15507_v55 = vpop.f32.mrf.mxu2 }
 0x982   :  { %v4396_v40 = vpop.f32.mrf.mxu2 }
 0x983   :  { %v4397_v23 = vadd.f32 %v4396_v40, %v4383_v59  ;;  %v4672_v40 = vpop.f32.mrf.mxu1 }
 0x984   :  { %v4673_v43 = vadd.f32 %v4672_v40, %v4658_v12 }
 0x98a   :  { %v4398_v31 = vpop.f32.mrf.mxu2 }
 0x98b   :  { %v4399_v51 = vadd.f32 %v4398_v31, %v4385_v37 }
 0x98d   :  { %v4406_v57 = vpack.c.bf16 %v4399_v51, %v4397_v23  ;;  %v13473_v23 = vld [vmem:[%s18007_s4 + $0xe0] sm:$0xff]  ;;  %v13474_v51 = vld [vmem:[%s18007_s4 + $0xe8] sm:$0xff] }
 0x98f   :  { %4430 = vmatpush.bf16.msra.mxu3 %v4406_v57 }
 0x992   :  { %10972 = vmatmul.msk.bf16.vlgmr.msra.gmra.mxu3 %vm424_vm1, %v13446_v50  ;;  %v4684_v56 = vpop.f32.mrf.mxu2 }
 0x993   :  { %4696 = vmatpush.bf16.msrb.mxu3 %v13472_v25  ;;  %v4685_v15 = vadd.f32 %v4684_v56, %v4671_v4  ;;  %v13511_v4 = vld [vmem:[%s18009_s6 + $0x44] sm:$0xf0] }
 0x997   :  { %4977 = vmatpush.bf16.msra.mxu3 %v13498_v10 }
 0x99a   :  { %v4686_v47 = vpop.f32.mrf.mxu2 }
 0x99b   :  { %4978 = vmatpush.bf16.msra.mxu3 %v13497_v11  ;;  %v4687_v59 = vadd.f32 %v4686_v47, %v4673_v43  ;;  %v5050_v11 = vld [vmem:[%s18008_s5] sm:$0xff] }
 0x99c   :  { %5056 = vperm.xlu1 %13841, %v5050_v11   ;;  %v11391_v47 = vld [vmem:[%s18009_s6 + $0x40] sm:$0xf] }
 0x99f   :  { %4979 = vmatpush.bf16.msra.mxu3 %v13496_v63 }
 0x9a2   :  { %10973 = vmatmul.msk.bf16.gmra.mxu3 %vm424_vm1, %v13447_v14 }
 0x9a3   :  { %4980 = vmatpush.bf16.msra.mxu3 %v13495_v61  ;;  %v5051_v61 = vld [vmem:[%s18008_s5 + $0x8] sm:$0xff] }
 0x9a4   :  { %5061 = vperm.xlu1 %13841, %v5051_v61   ;;  %v13520_v61 = vld [vmem:[%s18009_s6 + $0x9c] sm:$0xf] }
 0x9a6   :  { %v4972_v14 = vpop.f32.mrf.mxu2 }
 0x9a7   :  { %4981 = vmatpush.bf16.msra.mxu3 %v13494_v35 }
 0x9ab   :  { %4982 = vmatpush.bf16.msra.mxu3 %v13493_v17 }
 0x9af   :  { %4983 = vmatpush.bf16.msra.mxu3 %v13492_v18 }
 0x9b2   :  { %11124 = vmatmul.msk.bf16.vlgmr.msrb.gmra.mxu3 %vm424_vm1, %v14207_v9 }
 0x9b3   :  { %4984 = vmatpush.bf16.msra.mxu3 %v13491_v32  ;;  %v5052_v32 = vld [vmem:[%s18008_s5 + $0x10] sm:$0xff] }
 0x9b4   :  { %5066 = vperm.xlu2 %13842, %v5052_v32  }
 0x9c2   :  { %4985 = vmatmul.bf16.vlgmr.msra.gmra.mxu3 %v14202_v7 }
 0xa15   :  { %v4432_v19 = vpop.f32.mrf.mxu3 }
 0xa16   :  { %v4442_v20 = vadd.f32 %v4432_v19, %v4140_v46  ;;  %v5096_v19 = vld [vmem:[%s18009_s6 + $0x50] sm:$0x11] }
 0xa17   :  { %v5241_v26 = vunpack.c.h.b16 %v5096_v19 }
 0xa1d   :  { %v15547_v21 = vpop.f32.mrf.mxu3 }
 0xa25   :  { %v4437_v22 = vpop.f32.mrf.mxu3 }
 0xa26   :  { %v4444_v5 = vadd.f32 %v4437_v22, %v4142_v30  ;;  %v13499_v30 = vld [vmem:[%s18006_s3 + $0xc78] sm:$0xff]  ;;  %v15585_v22 = vsel %vm5174_vm2, 65535, %v13869_v49  ;;  %v5147_v49 = vunpack.c.h.b16 %v11314_v39 }
 0xa2d   :  { %v15549_v29 = vpop.f32.mrf.mxu3 }
 0xa35   :  { %v4698_v62 = vpop.f32.mrf.mxu3 }
 0xa36   :  { %v4699_v37 = vadd.f32 %v4698_v62, %v4685_v15  ;;  %v5146_v62 = vunpack.c.l.b16 %v11314_v39 }
 0xa3d   :  { %v4700_v7 = vpop.f32.mrf.mxu3 }
 0xa3e   :  { %v4701_v46 = vadd.f32 %v4700_v7, %v4687_v59  ;;  %v5158_v7 = vpack.c.b16 %v5146_v62, %v5146_v62 }
 0xa40   :  { %v4708_v31 = vpack.c.bf16 %v4701_v46, %v4699_v37  ;;  %v5053_v37 = vld [vmem:[%s18008_s5 + $0x18] sm:$0xff]  ;;  %v5253_v46 = vpack.c.b16 %v5241_v26, %v5241_v26  ;;  %v5178_v11 = vand.u32 %v15585_v22, %v5158_v7  ;;  %v13507_v7 = vld [vmem:[%s18009_s6 + $0x24] sm:$0xf0] }
 0xa41   :  { %5071 = vperm.xlu2 %13842, %v5053_v37  }
 0xa42   :  { %4732 = vmatpush.bf16.msrb.mxu0 %v4708_v31  ;;  %v11349_v31 = vld [vmem:[%s18009_s6 + $0x98] sm:$0xf]  ;;  %5185 = vmatpush.bf16.msrb.mxu2 %v5178_v11  ;;  %v5271_v39 = vand.u32 %v5253_v46, %v15585_v22 }
 0xa43   :  { %v11462_v46 = vld [vmem:[%s18009_s6 + $0x158] sm:$0x11] }
 0xa45   :  { %11137 = vmatmul.msk.bf16.vlgmr.msrb.gmra.mxu0 %vm424_vm1, %v13473_v23  ;;  %v4986_v17 = vpop.f32.mrf.mxu3  ;;  %v13521_v23 = vld [vmem:[%s18009_s6 + $0x9c] sm:$0xf0] }
 0xa46   :  { %4998 = vmatpush.bf16.msra.mxu0 %v13499_v30  ;;  %v5159_v30 = vpack.c.b16 %v5147_v49, %v5147_v49  ;;  %v11350_v26 = vor.u32 %v13521_v23, %v11349_v31  ;;  %v13518_v49 = vld [vmem:[%s18009_s6 + $0x8c] sm:$0xf]  ;;  %v13508_v31 = vld [vmem:[%s18009_s6 + $0x34] sm:$0xf] }
 0xa48   :  { %v5181_v32 = vand.u32 %v15585_v22, %v5159_v30  ;;  %5186 = vmatpush.bf16.msrb.mxu2 %v11350_v26 }
 0xa4a   :  { %5198 = vmatpush.bf16.msrb.mxu3 %v5181_v32  ;;  %v13505_v32 = vld [vmem:[%s18009_s6 + $0x14] sm:$0xf0] }
 0xa4d   :  { %v4988_v12 = vpop.f32.mrf.mxu3 }
 0xa55   :  { %11138 = vmatmul.msk.bf16.gmra.mxu0 %vm424_vm1, %v13474_v51 }
 0xa65   :  { %11289 = vmatmul.msk.bf16.vlgmr.msra.gmra.mxu0 %vm424_vm1, %v14207_v9  ;;  %v4958_v9 = vpop.f32.mrf.mxu1 }
 0xa66   :  { %v4973_v43 = vadd.f32 %v4972_v14, %v4958_v9  ;;  %v11351_v14 = vld [vmem:[%s18009_s6 + $0xa0] sm:$0xf0] }
 0xa67   :  { %v11354_v62 = vor.u32 %v13520_v61, %v11351_v14  ;;  %v13516_v61 = vld [vmem:[%s18009_s6 + $0x7c] sm:$0xf]  ;;  %v11335_v14 = vld [vmem:[%s18009_s6 + $0x80] sm:$0xf0] }
 0xa68   :  { %v4987_v51 = vadd.f32 %v4986_v17, %v4973_v43  ;;  %v11383_v17 = vld [vmem:[%s18009_s6 + $0x30] sm:$0xf]  ;;  %v11343_v43 = vld [vmem:[%s18009_s6 + $0x90] sm:$0xf0]  ;;  %v11338_v26 = vor.u32 %v13516_v61, %v11335_v14  ;;  %v11497_v61 = vld [vmem:[%s18009_s6 + $0x148] sm:$0xf] }
 0xa69   :  { %5199 = vmatpush.bf16.msrb.mxu3 %v11354_v62  ;;  %v11346_v23 = vor.u32 %v13518_v49, %v11343_v43  ;;  %v11377_v62 = vld [vmem:[%s18009_s6 + $0x28] sm:$0xf0]  ;;  %v13541_v14 = vld [vmem:[%s18009_s6 + $0x14c] sm:$0xf0] }
 0xa6d   :  { %v4960_v40 = vpop.f32.mrf.mxu1  ;;  %5200 = vmatpush.bf16.msrb.mxu3 %v11346_v23 }
 0xa71   :  { %5201 = vmatpush.bf16.msrb.mxu3 %v11338_v26  ;;  %v11498_v26 = vor.u32 %v13541_v14, %v11497_v61 }
 0xac2   :  { %v4734_v25 = vpop.f32.mrf.mxu0 }
 0xac3   :  { %v15564_v57 = vadd.f32 %v4734_v25, %v4442_v20  ;;  %v5240_v20 = vunpack.c.l.b16 %v5096_v19  ;;  %v13509_v19 = vld [vmem:[%s18009_s6 + $0x34] sm:$0xf0] }
 0xac5   :  { %v5252_v56 = vpack.c.b16 %v5240_v20, %v5240_v20 }
 0xac7   :  { %v5268_v59 = vand.u32 %v5252_v56, %v15585_v22  ;;  %v13510_v56 = vld [vmem:[%s18009_s6 + $0x44] sm:$0xf] }
 0xac9   :  { %5275 = vmatpush.bf16.msrb.mxu0 %v5268_v59  ;;  %v11375_v59 = vld [vmem:[%s18009_s6 + $0x20] sm:$0xf] }
 0xaca   :  { %v15566_v50 = vpop.f32.mrf.mxu0  ;;  %v11376_v11 = vor.u32 %v13507_v7, %v11375_v59  ;;  %v13504_v59 = vld [vmem:[%s18009_s6 + $0x14] sm:$0xf] }
 0xad2   :  { %v4739_v10 = vpop.f32.mrf.mxu0 }
 0xad3   :  { %v15571_v63 = vadd.f32 %v4739_v10, %v4444_v5  ;;  %v4974_v5 = vpop.f32.mrf.mxu2  ;;  %v11392_v10 = vor.u32 %v13511_v4, %v11391_v47  ;;  %v11393_v47 = vld [vmem:[%s18009_s6 + $0x48] sm:$0xf0]  ;;  %v11384_v4 = vor.u32 %v13509_v19, %v11383_v17  ;;  %v5448_v17 = vunpack.c.l.b16 %v11462_v46 }
 0xad4   :  { %v4975_v15 = vadd.f32 %v4974_v5, %v4960_v40  ;;  %v11341_v40 = vld [vmem:[%s18009_s6 + $0x88] sm:$0xf]  ;;  %v11396_v30 = vor.u32 %v13510_v56, %v11393_v47  ;;  %v13515_v56 = vld [vmem:[%s18009_s6 + $0x6c] sm:$0xf0]  ;;  %v11359_v47 = vld [vmem:[%s18009_s6] sm:$0xf] }
 0xad5   :  { %5276 = vmatpush.bf16.msrb.mxu0 %v11392_v10  ;;  %v11385_v10 = vld [vmem:[%s18009_s6 + $0x38] sm:$0xf0]  ;;  %v5460_v49 = vpack.c.b16 %v5448_v17, %v5448_v17  ;;  %v13502_v17 = vld [vmem:[%s18009_s6 + $0x4] sm:$0xf] }
 0xad6   :  { %v4989_v25 = vadd.f32 %v4988_v12, %v4975_v15  ;;  %v13500_v15 = vld [vmem:[%s18007_s4 + $0xf0] sm:$0xff] }
 0xad9   :  { %5277 = vmatpush.bf16.msrb.mxu0 %v11384_v4  ;;  %v13503_v4 = vld [vmem:[%s18009_s6 + $0x4] sm:$0xf0] }
 0xada   :  { %v15576_v35 = vpop.f32.mrf.mxu0  ;;  %v11360_v23 = vor.u32 %v13503_v4, %v11359_v47  ;;  %v11489_v47 = vld [vmem:[%s18009_s6 + $0x138] sm:$0xf]  ;;  %v13539_v4 = vld [vmem:[%s18009_s6 + $0x13c] sm:$0xf0] }
 0xadd   :  { %5278 = vmatpush.bf16.msrb.mxu0 %v11376_v11  ;;  %v5476_v11 = vand.u32 %v5460_v49, %v15585_v22 }
 0xae2   :  { %v5000_v18 = vpop.f32.mrf.mxu0 }
 0xae3   :  { %v5001_v20 = vadd.f32 %v5000_v18, %v4987_v51  ;;  %v13519_v18 = vld [vmem:[%s18009_s6 + $0x8c] sm:$0xf0]  ;;  %v11333_v51 = vld [vmem:[%s18009_s6 + $0x78] sm:$0xf] }
 0xae4   :  { %v11342_v37 = vor.u32 %v13519_v18, %v11341_v40  ;;  %v13514_v18 = vld [vmem:[%s18009_s6 + $0x6c] sm:$0xf] }
 0xae6   :  { %5187 = vmatpush.bf16.msrb.mxu2 %v11342_v37  ;;  %v11317_v37 = vld [vmem:[%s18009_s6 + $0x58] sm:$0xf] }
 0xaea   :  { %v5002_v9 = vpop.f32.mrf.mxu0 }
 0xaeb   :  { %v5003_v5 = vadd.f32 %v5002_v9, %v4989_v25  ;;  %v13517_v25 = vld [vmem:[%s18009_s6 + $0x7c] sm:$0xf0]  ;;  %v11367_v9 = vld [vmem:[%s18009_s6 + $0x10] sm:$0xf] }
 0xaec   :  { %v11334_v19 = vor.u32 %v13517_v25, %v11333_v51  ;;  %v11368_v40 = vor.u32 %v13505_v32, %v11367_v9  ;;  %v5449_v51 = vunpack.c.h.b16 %v11462_v46  ;;  %v13512_v25 = vld [vmem:[%s18009_s6 + $0x5c] sm:$0xf] }
 0xaed   :  { %v5010_v12 = vpack.c.bf16 %v5003_v5, %v5001_v20  ;;  %v11388_v20 = vor.u32 %v13508_v31, %v11385_v10  ;;  %v13506_v5 = vld [vmem:[%s18009_s6 + $0x24] sm:$0xf]  ;;  %v11369_v31 = vld [vmem:[%s18009_s6 + $0x18] sm:$0xf0] }
 0xaee   :  { %5188 = vmatpush.bf16.msrb.mxu2 %v11334_v19  ;;  %5279 = vmatpush.bf16.msrb.mxu0 %v11368_v40  ;;  %v11319_v10 = vld [vmem:[%s18009_s6 + $0x60] sm:$0xf0]  ;;  %v11372_v9 = vor.u32 %v13504_v59, %v11369_v31  ;;  %v11361_v19 = vld [vmem:[%s18009_s6 + $0x8] sm:$0xf0]  ;;  %v11499_v40 = vld [vmem:[%s18009_s6 + $0x150] sm:$0xf0] }
 0xaef   :  { %5034 = vmatpush.bf16.msra.mxu1 %v5010_v12  ;;  %v11327_v12 = vld [vmem:[%s18009_s6 + $0x70] sm:$0xf0]  ;;  %v11322_v32 = vor.u32 %v13512_v25, %v11319_v10  ;;  %v13538_v59 = vld [vmem:[%s18009_s6 + $0x13c] sm:$0xf] }
 0xaf0   :  { %v11330_v7 = vor.u32 %v13514_v18, %v11327_v12  ;;  %v11409_v12 = vld [vmem:[%s18009_s6 + $0x100] sm:$0x11]  ;;  %v13530_v25 = vld [vmem:[%s18009_s6 + $0xf4] sm:$0xf]  ;;  %v11446_v10 = vld [vmem:[%s18009_s6 + $0xf8] sm:$0xf0] }
 0xaf1   :  { %v5343_v49 = vunpack.c.l.b16 %v11409_v12 }
 0xaf2   :  { %11302 = vmatmul.msk.bf16.vlgmr.msra.gmra.mxu1 %vm424_vm1, %v13500_v15  ;;  %v11380_v15 = vor.u32 %v13506_v5, %v11377_v62  ;;  %5202 = vmatpush.bf16.msrb.mxu3 %v11330_v7  ;;  %v13501_v5 = vld [vmem:[%s18007_s4 + $0xf8] sm:$0xff]  ;;  %v13540_v62 = vld [vmem:[%s18009_s6 + $0x14c] sm:$0xf]  ;;  %v11491_v7 = vld [vmem:[%s18009_s6 + $0x140] sm:$0xf0] }
 0xaf3   :  { %5288 = vmatpush.bf16.msrb.mxu1 %v5271_v39  ;;  %v11325_v39 = vld [vmem:[%s18009_s6 + $0x68] sm:$0xf]  ;;  %5280 = vmatpush.bf16.msrb.mxu0 %v11360_v23  ;;  %v11502_v18 = vor.u32 %v13540_v62, %v11499_v40  ;;  %v11444_v23 = vld [vmem:[%s18009_s6 + $0xf0] sm:$0xf]  ;;  %v11438_v40 = vld [vmem:[%s18009_s6 + $0xe8] sm:$0xf0] }
 0xaf4   :  { %v11326_v43 = vor.u32 %v13515_v56, %v11325_v39  ;;  %v11364_v39 = vor.u32 %v13502_v17, %v11361_v19  ;;  %v13536_v17 = vld [vmem:[%s18009_s6 + $0x12c] sm:$0xf] }
 0xaf6   :  { %5189 = vmatpush.bf16.msrb.mxu2 %v11326_v43  ;;  %5203 = vmatpush.bf16.msrb.mxu3 %v11322_v32  ;;  %v5344_v43 = vunpack.c.h.b16 %v11409_v12  ;;  %v13537_v32 = vld [vmem:[%s18009_s6 + $0x12c] sm:$0xf0]  ;;  %v11473_v12 = vld [vmem:[%s18009_s6 + $0x118] sm:$0xf] }
 0xaf7   :  { %5289 = vmatpush.bf16.msrb.mxu1 %v11396_v30  ;;  %v13513_v30 = vld [vmem:[%s18009_s6 + $0x5c] sm:$0xf0]  ;;  %5483 = vmatpush.bf16.msra.mxu0 %v5476_v11 }
 0xaf8   :  { %v11318_v46 = vor.u32 %v13513_v30, %v11317_v37  ;;  %v11494_v37 = vor.u32 %v13538_v59, %v11491_v7  ;;  %v5355_v30 = vpack.c.b16 %v5343_v49, %v5343_v49  ;;  %v5356_v31 = vpack.c.b16 %v5344_v43, %v5344_v43  ;;  %v11475_v43 = vld [vmem:[%s18009_s6 + $0x120] sm:$0xf0]  ;;  %v11428_v59 = vld [vmem:[%s18009_s6 + $0xd0] sm:$0xf]  ;;  %v13527_v7 = vld [vmem:[%s18009_s6 + $0xd4] sm:$0xf0] }
 0xafa   :  { %5190 = vmatpush.bf16.msrb.mxu2 %v11318_v46  ;;  %v5371_v11 = vand.u32 %v5355_v30, %v15585_v22  ;;  %v5374_v61 = vand.u32 %v5356_v31, %v15585_v22  ;;  %v11449_v46 = vor.u32 %v13530_v25, %v11446_v10  ;;  %v11429_v30 = vor.u32 %v13527_v7, %v11428_v59  ;;  %v11430_v31 = vld [vmem:[%s18009_s6 + $0xd8] sm:$0xf0]  ;;  %v13533_v25 = vld [vmem:[%s18009_s6 + $0x10c] sm:$0xf0]  ;;  %v13532_v10 = vld [vmem:[%s18009_s6 + $0x10c] sm:$0xf] }
 0xafb   :  { %5290 = vmatpush.bf16.msrb.mxu1 %v11388_v20  ;;  %v5461_v20 = vpack.c.b16 %v5449_v51, %v5449_v51  ;;  %5484 = vmatpush.bf16.msra.mxu0 %v11498_v26  ;;  %v13531_v51 = vld [vmem:[%s18009_s6 + $0xf4] sm:$0xf0]  ;;  %v11436_v26 = vld [vmem:[%s18009_s6 + $0xe0] sm:$0xf] }
 0xafc   :  { %5391 = vmatpush.bf16.msra.mxu3 %v5374_v61  ;;  %v11445_v14 = vor.u32 %v13531_v51, %v11444_v23  ;;  %v11465_v51 = vld [vmem:[%s18009_s6 + $0x108] sm:$0xf]  ;;  %v11467_v61 = vld [vmem:[%s18009_s6 + $0x110] sm:$0xf0] }
 0xafd   :  { %v5479_v56 = vand.u32 %v5461_v20, %v15585_v22  ;;  %v11483_v20 = vld [vmem:[%s18009_s6 + $0x130] sm:$0xf0] }
 0xafe   :  { %5378 = vmatpush.bf16.msra.mxu2 %v5371_v11  ;;  %v11466_v11 = vor.u32 %v13533_v25, %v11465_v51 }
 0xaff   :  { %5291 = vmatpush.bf16.msrb.mxu1 %v11380_v15  ;;  %v11490_v15 = vor.u32 %v13539_v4, %v11489_v47  ;;  %v13535_v47 = vld [vmem:[%s18009_s6 + $0x11c] sm:$0xf0]  ;;  %v13534_v4 = vld [vmem:[%s18009_s6 + $0x11c] sm:$0xf] }
 0xb00   :  { %5392 = vmatpush.bf16.msra.mxu3 %v11449_v46  ;;  %v11474_v49 = vor.u32 %v13535_v47, %v11473_v12  ;;  %v11420_v46 = vld [vmem:[%s18009_s6 + $0xc0] sm:$0xf] }
 0xb01   :  { %5485 = vmatpush.bf16.msra.mxu0 %v11490_v15  ;;  %v11478_v15 = vor.u32 %v13534_v4, %v11475_v43  ;;  %v11515_v43 = vld [vmem:[%s18009_s6 + $0x1b0] sm:$0x11] }
 0xb02   :  { %11303 = vmatmul.msk.bf16.gmra.mxu1 %vm424_vm1, %v13501_v5  ;;  %5379 = vmatpush.bf16.msra.mxu2 %v11445_v14  ;;  %v11486_v5 = vor.u32 %v13536_v17, %v11483_v20  ;;  %v11470_v14 = vor.u32 %v13532_v10, %v11467_v61  ;;  %v13560_v61 = vld [vmem:[%s18009_s6 + $0x1fc] sm:$0xf] }
 0xb03   :  { %5292 = vmatpush.bf16.msrb.mxu1 %v11372_v9  ;;  %v11481_v9 = vld [vmem:[%s18009_s6 + $0x128] sm:$0xf] }
 0xb04   :  { %v11482_v19 = vor.u32 %v13537_v32, %v11481_v9  ;;  %v13525_v9 = vld [vmem:[%s18009_s6 + $0xc4] sm:$0xf0]  ;;  %v13524_v32 = vld [vmem:[%s18009_s6 + $0xc4] sm:$0xf] }
 0xb05   :  { %v11421_v17 = vor.u32 %v13525_v9, %v11420_v46 }
 0xb06   :  { %5486 = vmatpush.bf16.msra.mxu0 %v11482_v19  ;;  %v11422_v19 = vld [vmem:[%s18009_s6 + $0xc8] sm:$0xf0] }
 0xb07   :  { %5293 = vmatpush.bf16.msrb.mxu1 %v11364_v39  ;;  %v13529_v39 = vld [vmem:[%s18009_s6 + $0xe4] sm:$0xf0]  ;;  %v11425_v20 = vor.u32 %v13524_v32, %v11422_v19 }
 0xb08   :  { %v11437_v62 = vor.u32 %v13529_v39, %v11436_v26  ;;  %v13523_v26 = vld [vmem:[%s18009_s6 + $0xb4] sm:$0xf0] }
 0xb0a   :  { %5380 = vmatpush.bf16.msra.mxu2 %v11437_v62  ;;  %5487 = vmatpush.bf16.msra.mxu0 %v11474_v49  ;;  %v11414_v62 = vld [vmem:[%s18009_s6 + $0xb8] sm:$0xf0] }
 0xb0b   :  { %5496 = vmatpush.bf16.msra.mxu1 %v5479_v56  ;;  %v13528_v56 = vld [vmem:[%s18009_s6 + $0xe4] sm:$0xf] }
 0xb0e   :  { %5381 = vmatpush.bf16.msra.mxu2 %v11429_v30  ;;  %5488 = vmatpush.bf16.msra.mxu0 %v11466_v11  ;;  %v5553_v30 = vunpack.c.l.b16 %v11515_v43  ;;  %v13561_v11 = vld [vmem:[%s18009_s6 + $0x1fc] sm:$0xf0] }
 0xb0f   :  { %5497 = vmatpush.bf16.msra.mxu1 %v11502_v18  ;;  %v11441_v18 = vor.u32 %v13528_v56, %v11438_v40  ;;  %v13522_v56 = vld [vmem:[%s18009_s6 + $0xb4] sm:$0xf] }
 0xb10   :  { %v11417_v40 = vor.u32 %v13522_v56, %v11414_v62  ;;  %v5565_v46 = vpack.c.b16 %v5553_v30, %v5553_v30  ;;  %v11597_v56 = vld [vmem:[%s18009_s6 + $0x1f0] sm:$0xf0]  ;;  %v11589_v30 = vld [vmem:[%s18009_s6 + $0x1e0] sm:$0xf0] }
 0xb11   :  { %5393 = vmatpush.bf16.msra.mxu3 %v11441_v18  ;;  %v11568_v18 = vld [vmem:[%s18009_s6 + $0x208] sm:$0x11] }
 0xb12   :  { %5382 = vmatpush.bf16.msra.mxu2 %v11421_v17  ;;  %v5658_v12 = vunpack.c.l.b16 %v11568_v18  ;;  %v5659_v47 = vunpack.c.h.b16 %v11568_v18  ;;  %v5581_v62 = vand.u32 %v5565_v46, %v15585_v22  ;;  %v11550_v18 = vld [vmem:[%s18009_s6 + $0x1a0] sm:$0xf]  ;;  %v11579_v46 = vld [vmem:[%s18009_s6 + $0x1c8] sm:$0xf] }
 0xb13   :  { %5498 = vmatpush.bf16.msra.mxu1 %v11494_v37  ;;  %v13526_v37 = vld [vmem:[%s18009_s6 + $0xd4] sm:$0xf] }
 0xb14   :  { %v11433_v23 = vor.u32 %v13526_v37, %v11430_v31  ;;  %v5670_v59 = vpack.c.b16 %v5658_v12, %v5658_v12  ;;  %v5671_v7 = vpack.c.b16 %v5659_v47, %v5659_v47  ;;  %v5554_v31 = vunpack.c.h.b16 %v11515_v43  ;;  %v13551_v12 = vld [vmem:[%s18009_s6 + $0x1a4] sm:$0xf0] }
 0xb16   :  { %5394 = vmatpush.bf16.msra.mxu3 %v11433_v23  ;;  %v5686_v51 = vand.u32 %v5670_v59, %v15585_v22  ;;  %v5689_v25 = vand.u32 %v5671_v7, %v15585_v22  ;;  %v5566_v9 = vpack.c.b16 %v5554_v31, %v5554_v31  ;;  %v11587_v59 = vld [vmem:[%s18009_s6 + $0x1d8] sm:$0xf]  ;;  %v13557_v7 = vld [vmem:[%s18009_s6 + $0x1dc] sm:$0xf0]  ;;  %v11551_v31 = vor.u32 %v13551_v12, %v11550_v18  ;;  %v11536_v18 = vld [vmem:[%s18009_s6 + $0x188] sm:$0xf0] }
 0xb17   :  { %5499 = vmatpush.bf16.msra.mxu1 %v11486_v5  ;;  %v11412_v5 = vld [vmem:[%s18009_s6 + $0xb0] sm:$0xf] }
 0xb18   :  { %v11413_v39 = vor.u32 %v13523_v26, %v11412_v5  ;;  %v13559_v26 = vld [vmem:[%s18009_s6 + $0x1ec] sm:$0xf0] }
 0xb1a   :  { %5395 = vmatpush.bf16.msra.mxu3 %v11425_v20  ;;  %5383 = vmatpush.bf16.msra.mxu2 %v11413_v39  ;;  %v11595_v20 = vld [vmem:[%s18009_s6 + $0x1e8] sm:$0xf]  ;;  %v13558_v39 = vld [vmem:[%s18009_s6 + $0x1ec] sm:$0xf] }
 0xb1b   :  { %5500 = vmatpush.bf16.msra.mxu1 %v11478_v15  ;;  %v5057_v15 = vpop.permute.xlu1 %5056  ;;  %v11596_v43 = vor.u32 %v13559_v26, %v11595_v20 }
 0xb1e   :  { %5396 = vmatpush.bf16.msra.mxu3 %v11417_v40  ;;  %v5584_v40 = vand.u32 %v5566_v9, %v15585_v22  ;;  %v815_v9 = vadd.f32 %v14450_v58, %v14452_v60  ;;  %v11534_v58 = vld [vmem:[%s18009_s6 + $0x180] sm:$0xf] }
 0xb1f   :  { %5501 = vmatpush.bf16.msra.mxu1 %v11470_v14  ;;  %v11605_v14 = vld [vmem:[%s18009_s6 + $0x200] sm:$0xf0] }
 0xb20   :  { %v11608_v19 = vor.u32 %v13560_v61, %v11605_v14  ;;  %v11588_v61 = vor.u32 %v13557_v7, %v11587_v59  ;;  %v1121_v60 = vadd.f32 %v14551_v48, %v815_v9  ;;  %v11571_v48 = vld [vmem:[%s18009_s6 + $0x1b8] sm:$0xf]  ;;  %v11573_v7 = vld [vmem:[%s18009_s6 + $0x1c0] sm:$0xf0] }
 0xb6f   :  { %v5036_v4 = vpop.f32.mrf.mxu1 }
 0xb70   :  { %v5046_v49 = vadd.f32 %v5036_v4, %v15564_v57  ;;  %v11603_v57 = vld [vmem:[%s18009_s6 + $0x1f8] sm:$0xf]  ;;  %v13550_v4 = vld [vmem:[%s18009_s6 + $0x1a4] sm:$0xf] }
 0xb71   :  { %v11604_v17 = vor.u32 %v13561_v11, %v11603_v57  ;;  %v13549_v57 = vld [vmem:[%s18009_s6 + $0x194] sm:$0xf0]  ;;  %v11544_v11 = vld [vmem:[%s18009_s6 + $0x198] sm:$0xf0] }
 0xb72   :  { %v5074_v37 = vadd.f32 %v5057_v15, %v5046_v49  ;;  %v11552_v49 = vld [vmem:[%s18009_s6 + $0x1a8] sm:$0xf0]  ;;  %v11600_v15 = vor.u32 %v13558_v39, %v11597_v56 }
 0xb74   :  { %v5078_v23 = vmax.f32 %v5074_v37, 0.0  ;;  %v13556_v37 = vld [vmem:[%s18009_s6 + $0x1dc] sm:$0xf] }
 0xb75   :  { %v11592_v14 = vor.u32 %v13556_v37, %v11589_v30 }
 0xb76   :  { %v5082_v10 = vpack.c.bf16 %v5078_v23, %v5078_v23  ;;  %v11555_v23 = vor.u32 %v13550_v4, %v11552_v49  ;;  %v13553_v49 = vld [vmem:[%s18009_s6 + $0x1bc] sm:$0xf0] }
 0xb78   :  { %v5110_v32 = vunpack.c.l.b16 %v5082_v10  ;;  %11397 = vmatmul.msk.bf16.vlgmr.msrb.gmra.mxu0 %vm5170_vm3, %v5082_v10  ;;  %11398 = vmatmul.msk.bf16.vlgmr.msrb.gmra.mxu1 %vm5170_vm3, %v5082_v10  ;;  %v13548_v10 = vld [vmem:[%s18009_s6 + $0x194] sm:$0xf] }
 0xb79   :  { %5693 = vmatpush.bf16.msrb.mxu0 %v5686_v51  ;;  %5706 = vmatpush.bf16.msrb.mxu1 %v5689_v25  ;;  %v11542_v51 = vld [vmem:[%s18009_s6 + $0x190] sm:$0xf]  ;;  %v11674_v25 = vld [vmem:[%s18009_s6 + $0x2b8] sm:$0x11]  ;;  %v11547_v56 = vor.u32 %v13548_v10, %v11544_v11 }
 0xb7a   :  { %v15881_v5 = vpack.c.b16 %v5110_v32, %v5110_v32  ;;  %v13555_v32 = vld [vmem:[%s18009_s6 + $0x1cc] sm:$0xf0]  ;;  %v5868_v20 = vunpack.c.l.b16 %v11674_v25  ;;  %v5869_v26 = vunpack.c.h.b16 %v11674_v25  ;;  %v11543_v39 = vor.u32 %v13549_v57, %v11542_v51  ;;  %v13545_v11 = vld [vmem:[%s18009_s6 + $0x174] sm:$0xf0] }
 0xb7b   :  { %v11580_v12 = vor.u32 %v13555_v32, %v11579_v46  ;;  %v11572_v57 = vor.u32 %v13553_v49, %v11571_v48 }
 0xb7c   :  { %v15901_v47 = vshrl.u32 %v15881_v5, 16  ;;  %v5880_v37 = vpack.c.b16 %v5868_v20, %v5868_v20  ;;  %v5881_v30 = vpack.c.b16 %v5869_v26, %v5869_v26  ;;  %v13581_v20 = vld [vmem:[%s18009_s6 + $0x2ac] sm:$0xf0]  ;;  %v13580_v26 = vld [vmem:[%s18009_s6 + $0x2ac] sm:$0xf] }
 0xb7d   :  { %5694 = vmatpush.bf16.msrb.mxu0 %v11604_v17  ;;  %5707 = vmatpush.bf16.msrb.mxu1 %v11608_v19  ;;  %v13554_v17 = vld [vmem:[%s18009_s6 + $0x1cc] sm:$0xf]  ;;  %v11581_v19 = vld [vmem:[%s18009_s6 + $0x1d0] sm:$0xf0] }
 0xb7e   :  { %11355 = vmatmul.msk.bf16.vlgmr.msrb.gmra.mxu2 %vm5170_vm3, %v15901_v47  ;;  %11356 = vmatmul.msk.bf16.vlgmr.msrb.gmra.mxu3 %vm5170_vm3, %v15901_v47  ;;  %v11584_v4 = vor.u32 %v13554_v17, %v11581_v19  ;;  %v5416_v59 = vrot.slane %v15901_v47, 1  ;;  %v5896_v9 = vand.u32 %v5880_v37, %v15585_v22  ;;  %v5899_v32 = vand.u32 %v5881_v30, %v15585_v22  ;;  %v11709_v17 = vld [vmem:[%s18009_s6 + $0x2a8] sm:$0xf]  ;;  %v11703_v37 = vld [vmem:[%s18009_s6 + $0x2a0] sm:$0xf0] }
 0xb7f   :  { %5588 = vmatpush.bf16.msrb.mxu2 %v5581_v62  ;;  %5601 = vmatpush.bf16.msrb.mxu3 %v5584_v40  ;;  %v13547_v62 = vld [vmem:[%s18009_s6 + $0x184] sm:$0xf0]  ;;  %v13546_v40 = vld [vmem:[%s18009_s6 + $0x184] sm:$0xf]  ;;  %v11710_v49 = vor.u32 %v13581_v20, %v11709_v17  ;;  %v11648_v20 = vld [vmem:[%s18009_s6 + $0x240] sm:$0xf] }
 0xb80   :  { %v11539_v51 = vor.u32 %v13546_v40, %v11536_v18  ;;  %v5311_v40 = vrot.slane %v15881_v5, 1  ;;  %v13542_v18 = vld [vmem:[%s18009_s6 + $0x164] sm:$0xf] }
 0xb81   :  { %5695 = vmatpush.bf16.msrb.mxu0 %v11596_v43  ;;  %5708 = vmatpush.bf16.msrb.mxu1 %v11600_v15  ;;  %v13552_v43 = vld [vmem:[%s18009_s6 + $0x1bc] sm:$0xf]  ;;  %v1423_v15 = vadd.f32 %v14649_v41, %v1121_v60  ;;  %v11526_v41 = vld [vmem:[%s18009_s6 + $0x170] sm:$0xf]  ;;  %v13543_v60 = vld [vmem:[%s18009_s6 + $0x164] sm:$0xf0] }
 0xb82   :  { %v11576_v10 = vor.u32 %v13552_v43, %v11573_v7  ;;  %v13578_v7 = vld [vmem:[%s18009_s6 + $0x29c] sm:$0xf] }
 0xb83   :  { %5589 = vmatpush.bf16.msrb.mxu2 %v11551_v31  ;;  %5602 = vmatpush.bf16.msrb.mxu3 %v11555_v23  ;;  %v11621_v31 = vld [vmem:[%s18009_s6 + $0x260] sm:$0x11]  ;;  %v11535_v23 = vor.u32 %v13547_v62, %v11534_v58  ;;  %v1725_v25 = vadd.f32 %v14747_v36, %v1423_v15  ;;  %v13544_v36 = vld [vmem:[%s18009_s6 + $0x174] sm:$0xf] }
 0xb84   :  { %v5764_v46 = vunpack.c.h.b16 %v11621_v31 }
 0xb85   :  { %5696 = vmatpush.bf16.msrb.mxu0 %v11588_v61  ;;  %5709 = vmatpush.bf16.msrb.mxu1 %v11592_v14  ;;  %v11528_v61 = vld [vmem:[%s18009_s6 + $0x178] sm:$0xf0]  ;;  %v5763_v14 = vunpack.c.l.b16 %v11621_v31  ;;  %v2027_v19 = vadd.f32 %v14845_v33, %v1725_v25  ;;  %v11518_v33 = vld [vmem:[%s18009_s6 + $0x160] sm:$0xf]  ;;  %v11656_v25 = vld [vmem:[%s18009_s6 + $0x250] sm:$0xf] }
 0xb86   :  { %v11531_v58 = vor.u32 %v13544_v36, %v11528_v61  ;;  %v5776_v48 = vpack.c.b16 %v5764_v46, %v5764_v46  ;;  %v11519_v30 = vor.u32 %v13543_v60, %v11518_v33  ;;  %v11693_v36 = vld [vmem:[%s18009_s6 + $0x288] sm:$0xf]  ;;  %v13576_v46 = vld [vmem:[%s18009_s6 + $0x28c] sm:$0xf]  ;;  %v11685_v60 = vld [vmem:[%s18009_s6 + $0x278] sm:$0xf] }
 0xb87   :  { %5590 = vmatpush.bf16.msrb.mxu2 %v11543_v39  ;;  %5603 = vmatpush.bf16.msrb.mxu3 %v11547_v56  ;;  %v11711_v39 = vld [vmem:[%s18009_s6 + $0x2b0] sm:$0xf0]  ;;  %v11527_v56 = vor.u32 %v13545_v11, %v11526_v41  ;;  %v2329_v62 = vadd.f32 %v14943_v34, %v2027_v19  ;;  %v11701_v34 = vld [vmem:[%s18009_s6 + $0x298] sm:$0xf]  ;;  %v11658_v11 = vld [vmem:[%s18009_s6 + $0x258] sm:$0xf0] }
 0xb88   :  { %11503 = vmatmul.msk.bf16.vlgmr.msra.gmra.mxu0 %vm5170_vm3, %v5416_v59  ;;  %11504 = vmatmul.msk.bf16.vlgmr.msra.gmra.mxu1 %vm5170_vm3, %v5416_v59  ;;  %v11714_v43 = vor.u32 %v13580_v26, %v11711_v39  ;;  %v13579_v59 = vld [vmem:[%s18009_s6 + $0x29c] sm:$0xf0]  ;;  %v13571_v41 = vld [vmem:[%s18009_s6 + $0x254] sm:$0xf0]  ;;  %v13569_v26 = vld [vmem:[%s18009_s6 + $0x244] sm:$0xf0] }
 0xb89   :  { %5697 = vmatpush.bf16.msrb.mxu0 %v11580_v12  ;;  %5710 = vmatpush.bf16.msrb.mxu1 %v11584_v4  ;;  %v11520_v12 = vld [vmem:[%s18009_s6 + $0x168] sm:$0xf0]  ;;  %v5775_v4 = vpack.c.b16 %v5763_v14, %v5763_v14  ;;  %v2631_v15 = vadd.f32 %v15041_v53, %v2329_v62  ;;  %v13577_v14 = vld [vmem:[%s18009_s6 + $0x28c] sm:$0xf0]  ;;  %v11657_v17 = vor.u32 %v13571_v41, %v11656_v25  ;;  %v13568_v39 = vld [vmem:[%s18009_s6 + $0x244] sm:$0xf] }
 0xb8a   :  { %v11523_v53 = vor.u32 %v13542_v18, %v11520_v12  ;;  %v11650_v33 = vld [vmem:[%s18009_s6 + $0x248] sm:$0xf0]  ;;  %v13574_v18 = vld [vmem:[%s18009_s6 + $0x27c] sm:$0xf]  ;;  %v11687_v12 = vld [vmem:[%s18009_s6 + $0x280] sm:$0xf0] }
 0xb8b   :  { %5591 = vmatpush.bf16.msrb.mxu2 %v11535_v23  ;;  %5604 = vmatpush.bf16.msrb.mxu3 %v11539_v51  ;;  %v2933_v31 = vadd.f32 %v15139_v3, %v2631_v15  ;;  %v5791_v23 = vand.u32 %v5775_v4, %v15585_v22  ;;  %v5794_v51 = vand.u32 %v5776_v48, %v15585_v22  ;;  %v13570_v3 = vld [vmem:[%s18009_s6 + $0x254] sm:$0xf]  ;;  %v13567_v15 = vld [vmem:[%s18009_s6 + $0x234] sm:$0xf0] }
 0xb8c   :  { %v11661_v19 = vor.u32 %v13570_v3, %v11658_v11  ;;  %v5521_v3 = vrot.slane %v15881_v5, 2  ;;  %v5038_v11 = vpop.f32.mrf.mxu1 }
 0xb8d   :  { %5698 = vmatpush.bf16.msrb.mxu0 %v11572_v57  ;;  %5711 = vmatpush.bf16.msrb.mxu1 %v11576_v10  ;;  %v11702_v57 = vor.u32 %v13579_v59, %v11701_v34  ;;  %v11706_v10 = vor.u32 %v13578_v7, %v11703_v37  ;;  %v3235_v61 = vadd.f32 %v15237_v6, %v2933_v31  ;;  %v11640_v34 = vld [vmem:[%s18009_s6 + $0x230] sm:$0xf]  ;;  %v13566_v59 = vld [vmem:[%s18009_s6 + $0x234] sm:$0xf]  ;;  %v11642_v37 = vld [vmem:[%s18009_s6 + $0x238] sm:$0xf0] }
 0xb8e   :  { %11450 = vmatmul.msk.bf16.vlgmr.msra.gmra.mxu2 %vm5170_vm3, %v5311_v40  ;;  %11451 = vmatmul.msk.bf16.vlgmr.msra.gmra.mxu3 %vm5170_vm3, %v5311_v40  ;;  %v13575_v40 = vld [vmem:[%s18009_s6 + $0x27c] sm:$0xf0] }
 0xb8f   :  { %5592 = vmatpush.bf16.msrb.mxu2 %v11527_v56  ;;  %5605 = vmatpush.bf16.msrb.mxu3 %v11531_v58  ;;  %v3537_v6 = vadd.f32 %v15335_v13, %v3235_v61  ;;  %v5626_v13 = vrot.slane %v15901_v47, 2  ;;  %v11694_v56 = vor.u32 %v13577_v14, %v11693_v36  ;;  %v11686_v7 = vor.u32 %v13575_v40, %v11685_v60  ;;  %v11632_v61 = vld [vmem:[%s18009_s6 + $0x220] sm:$0xf]  ;;  %v13563_v40 = vld [vmem:[%s18009_s6 + $0x214] sm:$0xf0] }
 0xb90   :  { %v11645_v36 = vor.u32 %v13566_v59, %v11642_v37  ;;  %v13599_v59 = vld [vmem:[%s18009_s6 + $0x34c] sm:$0xf0] }
 0xb91   :  { %5903 = vmatpush.bf16.msra.mxu0 %v5896_v9  ;;  %5916 = vmatpush.bf16.msra.mxu1 %v5899_v32  ;;  %v11695_v9 = vld [vmem:[%s18009_s6 + $0x290] sm:$0xf0]  ;;  %v11780_v32 = vld [vmem:[%s18009_s6 + $0x368] sm:$0x11]  ;;  %v3839_v62 = vadd.f32 %v15433_v24, %v3537_v6 }
 0xb92   :  { %v11698_v58 = vor.u32 %v13576_v46, %v11695_v9  ;;  %v6082_v4 = vunpack.c.l.b16 %v11780_v32  ;;  %v6083_v48 = vunpack.c.h.b16 %v11780_v32  ;;  %v13565_v9 = vld [vmem:[%s18009_s6 + $0x224] sm:$0xf0]  ;;  %v11634_v32 = vld [vmem:[%s18009_s6 + $0x228] sm:$0xf0] }
 0xb93   :  { %5593 = vmatpush.bf16.msrb.mxu2 %v11519_v30  ;;  %5606 = vmatpush.bf16.msrb.mxu3 %v11523_v53  ;;  %v4141_v24 = vadd.f32 %v15504_v28, %v3839_v62  ;;  %v11690_v28 = vor.u32 %v13574_v18, %v11687_v12  ;;  %v11677_v30 = vld [vmem:[%s18009_s6 + $0x268] sm:$0xf]  ;;  %v13573_v53 = vld [vmem:[%s18009_s6 + $0x26c] sm:$0xf0]  ;;  %v13562_v18 = vld [vmem:[%s18009_s6 + $0x214] sm:$0xf] }
 0xb94   :  { %v6094_v25 = vpack.c.b16 %v6082_v4, %v6082_v4  ;;  %v6095_v41 = vpack.c.b16 %v6083_v48, %v6083_v48  ;;  %v11678_v14 = vor.u32 %v13573_v53, %v11677_v30  ;;  %v11624_v62 = vld [vmem:[%s18009_s6 + $0x210] sm:$0xf]  ;;  %v11626_v12 = vld [vmem:[%s18009_s6 + $0x218] sm:$0xf0]  ;;  %v5836_v53 = vrot.slane %v15901_v47, 3 }
 0xb95   :  { %5904 = vmatpush.bf16.msra.mxu0 %v11710_v49  ;;  %5917 = vmatpush.bf16.msra.mxu1 %v11714_v43  ;;  %v11649_v49 = vor.u32 %v13569_v26, %v11648_v20  ;;  %v11653_v43 = vor.u32 %v13568_v39, %v11650_v33  ;;  %v4443_v31 = vadd.f32 %v15547_v21, %v4141_v24  ;;  %v11815_v26 = vld [vmem:[%s18009_s6 + $0x358] sm:$0xf]  ;;  %v5062_v24 = vpop.permute.xlu1 %5061  ;;  %v13590_v47 = vld [vmem:[%s18009_s6 + $0x304] sm:$0xf] }
 0xb96   :  { %v11641_v21 = vor.u32 %v13567_v15, %v11640_v34  ;;  %v6113_v20 = vand.u32 %v6095_v41, %v15585_v22  ;;  %v11633_v33 = vor.u32 %v13565_v9, %v11632_v61  ;;  %v11807_v34 = vld [vmem:[%s18009_s6 + $0x348] sm:$0xf]  ;;  %v11625_v37 = vor.u32 %v13563_v40, %v11624_v62  ;;  %v11801_v61 = vld [vmem:[%s18009_s6 + $0x340] sm:$0xf0]  ;;  %v11754_v9 = vld [vmem:[%s18009_s6 + $0x2f0] sm:$0xf] }
 0xb97   :  { %5798 = vmatpush.bf16.msra.mxu2 %v5791_v23  ;;  %5811 = vmatpush.bf16.msra.mxu3 %v5794_v51  ;;  %v13572_v23 = vld [vmem:[%s18009_s6 + $0x26c] sm:$0xf]  ;;  %v11679_v51 = vld [vmem:[%s18009_s6 + $0x270] sm:$0xf0]  ;;  %v11629_v30 = vor.u32 %v13562_v18, %v11626_v12  ;;  %v11746_v18 = vld [vmem:[%s18009_s6 + $0x2e0] sm:$0xf] }
 0xb98   :  { %11609 = vmatmul.msk.bf16.vlgmr.msrb.gmra.mxu0 %vm5170_vm3, %v5626_v13  ;;  %11610 = vmatmul.msk.bf16.vlgmr.msrb.gmra.mxu1 %vm5170_vm3, %v5626_v13  ;;  %v11682_v46 = vor.u32 %v13572_v23, %v11679_v51  ;;  %v13601_v13 = vld [vmem:[%s18009_s6 + $0x35c] sm:$0xf0]  ;;  %v13587_v12 = vld [vmem:[%s18009_s6 + $0x2e4] sm:$0xf0] }
 0xb99   :  { %5905 = vmatpush.bf16.msra.mxu0 %v11702_v57  ;;  %5918 = vmatpush.bf16.msra.mxu1 %v11706_v10  ;;  %v11727_v57 = vld [vmem:[%s18009_s6 + $0x310] sm:$0x11]  ;;  %v4745_v10 = vadd.f32 %v15566_v50, %v4443_v31  ;;  %v13564_v50 = vld [vmem:[%s18009_s6 + $0x224] sm:$0xf]  ;;  %v11762_v51 = vld [vmem:[%s18009_s6 + $0x300] sm:$0xf] }
 0xb9a   :  { %v5972_v6 = vunpack.c.l.b16 %v11727_v57  ;;  %v11637_v60 = vor.u32 %v13564_v50, %v11634_v32  ;;  %v11886_v50 = vld [vmem:[%s18009_s6 + $0x418] sm:$0x11] }
 0xb9b   :  { %5799 = vmatpush.bf16.msra.mxu2 %v11657_v17  ;;  %5812 = vmatpush.bf16.msra.mxu3 %v11661_v19  ;;  %v5973_v17 = vunpack.c.h.b16 %v11727_v57  ;;  %v6110_v19 = vand.u32 %v6094_v25, %v15585_v22  ;;  %v5047_v39 = vadd.f32 %v5038_v11, %v4745_v10  ;;  %v11808_v25 = vor.u32 %v13599_v59, %v11807_v34  ;;  %v13591_v57 = vld [vmem:[%s18009_s6 + $0x304] sm:$0xf0]  ;;  %v11764_v10 = vld [vmem:[%s18009_s6 + $0x308] sm:$0xf0]  ;;  %v11799_v11 = vld [vmem:[%s18009_s6 + $0x338] sm:$0xf] }
 0xb9c   :  { %v5984_v4 = vpack.c.b16 %v5972_v6, %v5972_v6  ;;  %v13589_v32 = vld [vmem:[%s18009_s6 + $0x2f4] sm:$0xf0]  ;;  %v13588_v6 = vld [vmem:[%s18009_s6 + $0x2f4] sm:$0xf]  ;;  %v11833_v34 = vld [vmem:[%s18009_s6 + $0x3c0] sm:$0x11] }
 0xb9d   :  { %5906 = vmatpush.bf16.msra.mxu0 %v11694_v56  ;;  %5919 = vmatpush.bf16.msra.mxu1 %v11698_v58  ;;  %v13600_v56 = vld [vmem:[%s18009_s6 + $0x35c] sm:$0xf]  ;;  %v11817_v58 = vld [vmem:[%s18009_s6 + $0x360] sm:$0xf0]  ;;  %v5985_v48 = vpack.c.b16 %v5973_v17, %v5973_v17  ;;  %v5075_v15 = vadd.f32 %v5062_v24, %v5047_v39  ;;  %v11791_v39 = vld [vmem:[%s18009_s6 + $0x328] sm:$0xf]  ;;  %v11755_v62 = vor.u32 %v13589_v32, %v11754_v9 }
 0xb9e   :  { %11556 = vmatmul.msk.bf16.vlgmr.msrb.gmra.mxu2 %vm5170_vm3, %v5521_v3  ;;  %11557 = vmatmul.msk.bf16.vlgmr.msrb.gmra.mxu3 %vm5170_vm3, %v5521_v3  ;;  %v6000_v31 = vand.u32 %v5984_v4, %v15585_v22  ;;  %v11756_v17 = vld [vmem:[%s18009_s6 + $0x2f8] sm:$0xf0]  ;;  %v13586_v4 = vld [vmem:[%s18009_s6 + $0x2e4] sm:$0xf]  ;;  %v13593_v59 = vld [vmem:[%s18009_s6 + $0x31c] sm:$0xf0] }
 0xb9f   :  { %5800 = vmatpush.bf16.msra.mxu2 %v11649_v49  ;;  %5813 = vmatpush.bf16.msra.mxu3 %v11653_v43  ;;  %v11816_v49 = vor.u32 %v13601_v13, %v11815_v26  ;;  %v11820_v43 = vor.u32 %v13600_v56, %v11817_v58  ;;  %v6003_v23 = vand.u32 %v5985_v48, %v15585_v22  ;;  %v5079_v3 = vmax.f32 %v5075_v15, 0.0  ;;  %v13595_v56 = vld [vmem:[%s18009_s6 + $0x32c] sm:$0xf0]  ;;  %v13594_v58 = vld [vmem:[%s18009_s6 + $0x32c] sm:$0xf] }
 0xba0   :  { %v11759_v40 = vor.u32 %v13588_v6, %v11756_v17  ;;  %v11748_v48 = vld [vmem:[%s18009_s6 + $0x2e8] sm:$0xf0]  ;;  %v11792_v24 = vor.u32 %v13595_v56, %v11791_v39  ;;  %v11923_v32 = vld [vmem:[%s18009_s6 + $0x410] sm:$0xf0]  ;;  %v11730_v6 = vld [vmem:[%s18009_s6 + $0x2c0] sm:$0xf] }
 0xba1   :  { %5907 = vmatpush.bf16.msra.mxu0 %v11686_v7  ;;  %5920 = vmatpush.bf16.msra.mxu1 %v11690_v28  ;;  %v13598_v7 = vld [vmem:[%s18009_s6 + $0x34c] sm:$0xf]  ;;  %v11809_v28 = vld [vmem:[%s18009_s6 + $0x350] sm:$0xf0]  ;;  %v16234_v13 = vpack.c.bf16 %v5079_v3, %v5079_v3  ;;  %v13583_v17 = vld [vmem:[%s18009_s6 + $0x2c4] sm:$0xf0] }
 0xba2   :  { %v11812_v41 = vor.u32 %v13598_v7, %v11809_v28  ;;  %v13592_v7 = vld [vmem:[%s18009_s6 + $0x31c] sm:$0xf]  ;;  %v11785_v28 = vld [vmem:[%s18009_s6 + $0x320] sm:$0xf0] }
 0xba3   :  { %5801 = vmatpush.bf16.msra.mxu2 %v11641_v21  ;;  %5814 = vmatpush.bf16.msra.mxu3 %v11645_v36  ;;  %v13597_v21 = vld [vmem:[%s18009_s6 + $0x33c] sm:$0xf0]  ;;  %v13596_v36 = vld [vmem:[%s18009_s6 + $0x33c] sm:$0xf]  ;;  %v6046_v15 = vunpack.c.l.b16 %v16234_v13  ;;  %v11788_v3 = vor.u32 %v13592_v7, %v11785_v28  ;;  %v11905_v7 = vld [vmem:[%s18009_s6 + $0x3e8] sm:$0xf] }
 0xba4   :  { %v11804_v26 = vor.u32 %v13596_v36, %v11801_v61  ;;  %v11921_v61 = vld [vmem:[%s18009_s6 + $0x408] sm:$0xf]  ;;  %v13617_v28 = vld [vmem:[%s18009_s6 + $0x3ec] sm:$0xf0] }
 0xba5   :  { %5908 = vmatpush.bf16.msra.mxu0 %v11678_v14  ;;  %5921 = vmatpush.bf16.msra.mxu1 %v11682_v46  ;;  %v11763_v14 = vor.u32 %v13591_v57, %v11762_v51  ;;  %v11767_v46 = vor.u32 %v13590_v47, %v11764_v10  ;;  %v13585_v51 = vld [vmem:[%s18009_s6 + $0x2d4] sm:$0xf0]  ;;  %v6187_v57 = vunpack.c.l.b16 %v11833_v34  ;;  %v6188_v47 = vunpack.c.h.b16 %v11833_v34  ;;  %v11870_v34 = vld [vmem:[%s18009_s6 + $0x3b8] sm:$0xf0] }
 0xba7   :  { %5802 = vmatpush.bf16.msra.mxu2 %v11633_v33  ;;  %5815 = vmatpush.bf16.msra.mxu3 %v11637_v60  ;;  %v6292_v33 = vunpack.c.l.b16 %v11886_v50  ;;  %v6293_v60 = vunpack.c.h.b16 %v11886_v50  ;;  %v13620_v50 = vld [vmem:[%s18009_s6 + $0x40c] sm:$0xf]  ;;  %v6200_v39 = vpack.c.b16 %v6188_v47, %v6188_v47  ;;  %v11906_v47 = vor.u32 %v13617_v28, %v11905_v7  ;;  %v12027_v28 = vld [vmem:[%s18009_s6 + $0x4b8] sm:$0xf] }
 0xba8   :  { %11715 = vmatmul.msk.bf16.vlgmr.msra.gmra.mxu0 %vm5170_vm3, %v5836_v53  ;;  %11716 = vmatmul.msk.bf16.vlgmr.msra.gmra.mxu1 %vm5170_vm3, %v5836_v53  ;;  %v11747_v53 = vor.u32 %v13587_v12, %v11746_v18 }
 0xba9   :  { %6117 = vmatpush.bf16.msrb.mxu0 %v6110_v19  ;;  %6130 = vmatpush.bf16.msrb.mxu1 %v6113_v20  ;;  %v5731_v19 = vrot.slane %v15881_v5, 3  ;;  %v11800_v20 = vor.u32 %v13597_v21, %v11799_v11  ;;  %v11793_v5 = vld [vmem:[%s18009_s6 + $0x330] sm:$0xf0]  ;;  %v16287_v11 = vpack.c.b16 %v6046_v15, %v6046_v15  ;;  %v6218_v12 = vand.u32 %v6200_v39, %v15585_v22  ;;  %v11889_v39 = vld [vmem:[%s18009_s6 + $0x3c8] sm:$0xf] }
 0xbab   :  { %5803 = vmatpush.bf16.msra.mxu2 %v11625_v37  ;;  %5816 = vmatpush.bf16.msra.mxu3 %v11629_v30  ;;  %v6304_v37 = vpack.c.b16 %v6292_v33, %v6292_v33  ;;  %v6305_v30 = vpack.c.b16 %v6293_v60, %v6293_v60  ;;  %v16316_v56 = vshrl.u32 %v16287_v11, 16  ;;  %v11731_v33 = vor.u32 %v13583_v17, %v11730_v6  ;;  %v13606_v6 = vld [vmem:[%s18009_s6 + $0x394] sm:$0xf]  ;;  %v11854_v17 = vld [vmem:[%s18009_s6 + $0x398] sm:$0xf0] }
 0xbad   :  { %6118 = vmatpush.bf16.msrb.mxu0 %v11816_v49  ;;  %6131 = vmatpush.bf16.msrb.mxu1 %v11820_v43  ;;  %v11796_v49 = vor.u32 %v13594_v58, %v11793_v5  ;;  %v11783_v43 = vld [vmem:[%s18009_s6 + $0x318] sm:$0xf]  ;;  %v6320_v21 = vand.u32 %v6304_v37, %v15585_v22  ;;  %v6323_v36 = vand.u32 %v6305_v30, %v15585_v22  ;;  %v13616_v37 = vld [vmem:[%s18009_s6 + $0x3ec] sm:$0xf] }
 0xbae   :  { %11662 = vmatmul.msk.bf16.vlgmr.msra.gmra.mxu2 %vm5170_vm3, %v5731_v19  ;;  %11663 = vmatmul.msk.bf16.vlgmr.msra.gmra.mxu3 %vm5170_vm3, %v5731_v19  ;;  %v11784_v10 = vor.u32 %v13593_v59, %v11783_v43  ;;  %v13582_v19 = vld [vmem:[%s18009_s6 + $0x2c4] sm:$0xf]  ;;  %v11926_v5 = vor.u32 %v13620_v50, %v11923_v32  ;;  %v13610_v43 = vld [vmem:[%s18009_s6 + $0x3b4] sm:$0xf] }
 0xbaf   :  { %6007 = vmatpush.bf16.msrb.mxu2 %v6000_v31  ;;  %6020 = vmatpush.bf16.msrb.mxu3 %v6003_v23  ;;  %v11751_v31 = vor.u32 %v13586_v4, %v11748_v48  ;;  %v11738_v23 = vld [vmem:[%s18009_s6 + $0x2d0] sm:$0xf]  ;;  %v13618_v4 = vld [vmem:[%s18009_s6 + $0x3fc] sm:$0xf]  ;;  %v11915_v48 = vld [vmem:[%s18009_s6 + $0x400] sm:$0xf0] }
 0xbb0   :  { %v11918_v59 = vor.u32 %v13618_v4, %v11915_v48  ;;  %v13605_v4 = vld [vmem:[%s18009_s6 + $0x384] sm:$0xf0]  ;;  %v13604_v48 = vld [vmem:[%s18009_s6 + $0x384] sm:$0xf] }
 0xbb1   :  { %6119 = vmatpush.bf16.msrb.mxu0 %v11808_v25  ;;  %6132 = vmatpush.bf16.msrb.mxu1 %v11812_v41  ;;  %v13584_v25 = vld [vmem:[%s18009_s6 + $0x2d4] sm:$0xf]  ;;  %v11740_v41 = vld [vmem:[%s18009_s6 + $0x2d8] sm:$0xf0] }
 0xbb2   :  { %v11743_v9 = vor.u32 %v13584_v25, %v11740_v41  ;;  %v13608_v25 = vld [vmem:[%s18009_s6 + $0x3a4] sm:$0xf]  ;;  %v11862_v41 = vld [vmem:[%s18009_s6 + $0x3a8] sm:$0xf0] }
 0xbb3   :  { %6008 = vmatpush.bf16.msrb.mxu2 %v11763_v14  ;;  %6021 = vmatpush.bf16.msrb.mxu3 %v11767_v46  ;;  %v13621_v14 = vld [vmem:[%s18009_s6 + $0x40c] sm:$0xf0]  ;;  %v11739_v46 = vor.u32 %v13585_v51, %v11738_v23  ;;  %v11860_v23 = vld [vmem:[%s18009_s6 + $0x3a0] sm:$0xf]  ;;  %v13609_v51 = vld [vmem:[%s18009_s6 + $0x3a4] sm:$0xf0] }
 0xbb4   :  { %v11922_v58 = vor.u32 %v13621_v14, %v11921_v61  ;;  %v11861_v61 = vor.u32 %v13609_v51, %v11860_v23  ;;  %v11899_v14 = vld [vmem:[%s18009_s6 + $0x3e0] sm:$0xf0]  ;;  %v11836_v51 = vld [vmem:[%s18009_s6 + $0x370] sm:$0xf] }
 0xbb5   :  { %6120 = vmatpush.bf16.msrb.mxu0 %v11800_v20  ;;  %6133 = vmatpush.bf16.msrb.mxu1 %v11804_v26  ;;  %v11732_v20 = vld [vmem:[%s18009_s6 + $0x2c8] sm:$0xf0]  ;;  %v6199_v26 = vpack.c.b16 %v6187_v57, %v6187_v57  ;;  %v12029_v23 = vld [vmem:[%s18009_s6 + $0x4c0] sm:$0xf0] }
 0xbb6   :  { %v11735_v60 = vor.u32 %v13582_v19, %v11732_v20  ;;  %v11992_v57 = vld [vmem:[%s18009_s6 + $0x4c8] sm:$0x11] }
 0xbb7   :  { %6009 = vmatpush.bf16.msrb.mxu2 %v11755_v62  ;;  %6022 = vmatpush.bf16.msrb.mxu3 %v11759_v40  ;;  %v11913_v62 = vld [vmem:[%s18009_s6 + $0x3f8] sm:$0xf]  ;;  %v13619_v40 = vld [vmem:[%s18009_s6 + $0x3fc] sm:$0xf0]  ;;  %v6215_v18 = vand.u32 %v6199_v26, %v15585_v22  ;;  %v6502_v50 = vunpack.c.l.b16 %v11992_v57  ;;  %v6503_v32 = vunpack.c.h.b16 %v11992_v57  ;;  %v11838_v57 = vld [vmem:[%s18009_s6 + $0x378] sm:$0xf0] }
 0xbb8   :  { %v11914_v15 = vor.u32 %v13619_v40, %v11913_v62  ;;  %v11891_v62 = vld [vmem:[%s18009_s6 + $0x3d0] sm:$0xf0] }
 0xbb9   :  { %6121 = vmatpush.bf16.msrb.mxu0 %v11792_v24  ;;  %6134 = vmatpush.bf16.msrb.mxu1 %v11796_v49  ;;  %v11868_v24 = vld [vmem:[%s18009_s6 + $0x3b0] sm:$0xf]  ;;  %v13611_v49 = vld [vmem:[%s18009_s6 + $0x3b4] sm:$0xf0]  ;;  %v6514_v40 = vpack.c.b16 %v6502_v50, %v6502_v50 }
 0xbba   :  { %v11869_v30 = vor.u32 %v13611_v49, %v11868_v24  ;;  %v11846_v24 = vld [vmem:[%s18009_s6 + $0x388] sm:$0xf0] }
 0xbbb   :  { %6010 = vmatpush.bf16.msrb.mxu2 %v11747_v53  ;;  %6023 = vmatpush.bf16.msrb.mxu3 %v11751_v31  ;;  %v11873_v53 = vor.u32 %v13610_v43, %v11870_v34  ;;  %v11907_v31 = vld [vmem:[%s18009_s6 + $0x3f0] sm:$0xf0] }
 0xbbd   :  { %6122 = vmatpush.bf16.msrb.mxu0 %v11784_v10  ;;  %6135 = vmatpush.bf16.msrb.mxu1 %v11788_v3  ;;  %v11910_v10 = vor.u32 %v13616_v37, %v11907_v31  ;;  %v11897_v3 = vld [vmem:[%s18009_s6 + $0x3d8] sm:$0xf]  ;;  %v13641_v37 = vld [vmem:[%s18009_s6 + $0x4bc] sm:$0xf0]  ;;  %v13640_v31 = vld [vmem:[%s18009_s6 + $0x4bc] sm:$0xf] }
 0xbbf   :  { %6011 = vmatpush.bf16.msrb.mxu2 %v11739_v46  ;;  %6024 = vmatpush.bf16.msrb.mxu3 %v11743_v9  ;;  %v11852_v46 = vld [vmem:[%s18009_s6 + $0x390] sm:$0xf]  ;;  %v13607_v9 = vld [vmem:[%s18009_s6 + $0x394] sm:$0xf0] }
 0xbc0   :  { %11821 = vmatmul.msk.bf16.vlgmr.msrb.gmra.mxu0 %vm5170_vm3, %v16316_v56  ;;  %11822 = vmatmul.msk.bf16.vlgmr.msrb.gmra.mxu1 %vm5170_vm3, %v16316_v56  ;;  %v11853_v26 = vor.u32 %v13607_v9, %v11852_v46  ;;  %v13639_v46 = vld [vmem:[%s18009_s6 + $0x4ac] sm:$0xf0] }
 0xbc1   :  { %6327 = vmatpush.bf16.msra.mxu0 %v6320_v21  ;;  %6340 = vmatpush.bf16.msra.mxu1 %v6323_v36  ;;  %v13615_v21 = vld [vmem:[%s18009_s6 + $0x3dc] sm:$0xf0]  ;;  %v13614_v36 = vld [vmem:[%s18009_s6 + $0x3dc] sm:$0xf] }
 0xbc2   :  { %v11898_v19 = vor.u32 %v13615_v21, %v11897_v3  ;;  %v11902_v20 = vor.u32 %v13614_v36, %v11899_v14  ;;  %v6260_v3 = vrot.slane %v16316_v56, 1  ;;  %v12028_v21 = vor.u32 %v13641_v37, %v12027_v28  ;;  %v12019_v14 = vld [vmem:[%s18009_s6 + $0x4a8] sm:$0xf]  ;;  %v13634_v28 = vld [vmem:[%s18009_s6 + $0x48c] sm:$0xf] }
 0xbc3   :  { %6012 = vmatpush.bf16.msrb.mxu2 %v11731_v33  ;;  %6025 = vmatpush.bf16.msrb.mxu3 %v11735_v60  ;;  %v13613_v33 = vld [vmem:[%s18009_s6 + $0x3cc] sm:$0xf0]  ;;  %v13612_v60 = vld [vmem:[%s18009_s6 + $0x3cc] sm:$0xf]  ;;  %v12032_v36 = vor.u32 %v13640_v31, %v12029_v23  ;;  %v11958_v31 = vld [vmem:[%s18009_s6 + $0x440] sm:$0xf] }
 0xbc4   :  { %v11890_v34 = vor.u32 %v13613_v33, %v11889_v39  ;;  %v6155_v39 = vrot.slane %v16287_v11, 1  ;;  %v12011_v33 = vld [vmem:[%s18009_s6 + $0x498] sm:$0xf]  ;;  %v13627_v23 = vld [vmem:[%s18009_s6 + $0x444] sm:$0xf0] }
 0xbc5   :  { %6328 = vmatpush.bf16.msra.mxu0 %v11922_v58  ;;  %6341 = vmatpush.bf16.msra.mxu1 %v11926_v5  ;;  %v11939_v58 = vld [vmem:[%s18009_s6 + $0x470] sm:$0x11]  ;;  %v11857_v5 = vor.u32 %v13606_v6, %v11854_v17  ;;  %v11974_v17 = vld [vmem:[%s18009_s6 + $0x460] sm:$0xf] }
 0xbc6   :  { %11768 = vmatmul.msk.bf16.vlgmr.msrb.gmra.mxu2 %vm5170_vm3, %v16234_v13  ;;  %11769 = vmatmul.msk.bf16.vlgmr.msrb.gmra.mxu3 %vm5170_vm3, %v16234_v13  ;;  %v11865_v13 = vor.u32 %v13608_v25, %v11862_v41  ;;  %v6397_v49 = vunpack.c.l.b16 %v11939_v58  ;;  %v6398_v43 = vunpack.c.h.b16 %v11939_v58  ;;  %v13603_v25 = vld [vmem:[%s18009_s6 + $0x374] sm:$0xf0]  ;;  %v13602_v41 = vld [vmem:[%s18009_s6 + $0x374] sm:$0xf]  ;;  %v12020_v58 = vor.u32 %v13639_v46, %v12019_v14  ;;  %v13632_v14 = vld [vmem:[%s18009_s6 + $0x47c] sm:$0xf] }
 0xbc7   :  { %6222 = vmatpush.bf16.msra.mxu2 %v6215_v18  ;;  %6235 = vmatpush.bf16.msra.mxu3 %v6218_v12  ;;  %v6515_v18 = vpack.c.b16 %v6503_v32, %v6503_v32  ;;  %v11844_v12 = vld [vmem:[%s18009_s6 + $0x380] sm:$0xf]  ;;  %v13638_v32 = vld [vmem:[%s18009_s6 + $0x4ac] sm:$0xf]  ;;  %v12021_v6 = vld [vmem:[%s18009_s6 + $0x4b0] sm:$0xf0] }
 0xbc8   :  { %v11997_v46 = vld [vmem:[%s18009_s6 + $0x480] sm:$0xf0] }
 0xbc9   :  { %6329 = vmatpush.bf16.msra.mxu0 %v11914_v15  ;;  %6342 = vmatpush.bf16.msra.mxu1 %v11918_v59  ;;  %v11894_v15 = vor.u32 %v13612_v60, %v11891_v62  ;;  %v6530_v59 = vand.u32 %v6514_v40, %v15585_v22  ;;  %v6533_v7 = vand.u32 %v6515_v18, %v15585_v22  ;;  %v13637_v60 = vld [vmem:[%s18009_s6 + $0x49c] sm:$0xf0]  ;;  %v13636_v62 = vld [vmem:[%s18009_s6 + $0x49c] sm:$0xf] }
 0xbcb   :  { %6223 = vmatpush.bf16.msra.mxu2 %v11869_v30  ;;  %6236 = vmatpush.bf16.msra.mxu3 %v11873_v53  ;;  %v11845_v30 = vor.u32 %v13605_v4, %v11844_v12  ;;  %v11849_v53 = vor.u32 %v13604_v48, %v11846_v24  ;;  %v12013_v12 = vld [vmem:[%s18009_s6 + $0x4a0] sm:$0xf0]  ;;  %v11966_v4 = vld [vmem:[%s18009_s6 + $0x450] sm:$0xf]  ;;  %v13629_v48 = vld [vmem:[%s18009_s6 + $0x454] sm:$0xf0] }
 0xbcc   :  { %v13628_v24 = vld [vmem:[%s18009_s6 + $0x454] sm:$0xf]  ;;  %v11967_v37 = vor.u32 %v13629_v48, %v11966_v4  ;;  %v11942_v48 = vld [vmem:[%s18009_s6 + $0x420] sm:$0xf] }
 0xbcd   :  { %6330 = vmatpush.bf16.msra.mxu0 %v11906_v47  ;;  %6343 = vmatpush.bf16.msra.mxu1 %v11910_v10  ;;  %v6409_v47 = vpack.c.b16 %v6397_v49, %v6397_v49  ;;  %v6410_v10 = vpack.c.b16 %v6398_v43, %v6398_v43  ;;  %v11968_v49 = vld [vmem:[%s18009_s6 + $0x458] sm:$0xf0]  ;;  %v12135_v4 = vld [vmem:[%s18009_s6 + $0x570] sm:$0xf0] }
 0xbce   :  { %v12098_v43 = vld [vmem:[%s18009_s6 + $0x578] sm:$0x11] }
 0xbcf   :  { %6224 = vmatpush.bf16.msra.mxu2 %v11861_v61  ;;  %6237 = vmatpush.bf16.msra.mxu3 %v11865_v13  ;;  %v11837_v61 = vor.u32 %v13603_v25, %v11836_v51  ;;  %v11841_v13 = vor.u32 %v13602_v41, %v11838_v57  ;;  %v6425_v9 = vand.u32 %v6409_v47, %v15585_v22  ;;  %v6712_v51 = vunpack.c.l.b16 %v12098_v43  ;;  %v13626_v41 = vld [vmem:[%s18009_s6 + $0x444] sm:$0xf]  ;;  %v11960_v57 = vld [vmem:[%s18009_s6 + $0x448] sm:$0xf0] }
 0xbd0   :  { %v6428_v50 = vand.u32 %v6410_v10, %v15585_v22  ;;  %v6713_v25 = vunpack.c.h.b16 %v12098_v43  ;;  %v13622_v43 = vld [vmem:[%s18009_s6 + $0x424] sm:$0xf] }
 0xbd1   :  { %6331 = vmatpush.bf16.msra.mxu0 %v11898_v19  ;;  %6344 = vmatpush.bf16.msra.mxu1 %v11902_v20  ;;  %v13631_v19 = vld [vmem:[%s18009_s6 + $0x464] sm:$0xf0]  ;;  %v13630_v20 = vld [vmem:[%s18009_s6 + $0x464] sm:$0xf] }
 0xbd2   :  { %v11975_v40 = vor.u32 %v13631_v19, %v11974_v17  ;;  %v13624_v17 = vld [vmem:[%s18009_s6 + $0x434] sm:$0xf]  ;;  %v11952_v19 = vld [vmem:[%s18009_s6 + $0x438] sm:$0xf0] }
 0xbd3   :  { %6225 = vmatpush.bf16.msra.mxu2 %v11853_v26  ;;  %6238 = vmatpush.bf16.msra.mxu3 %v11857_v5  ;;  %v11976_v26 = vld [vmem:[%s18009_s6 + $0x468] sm:$0xf0]  ;;  %v12024_v5 = vor.u32 %v13638_v32, %v12021_v6  ;;  %v11950_v32 = vld [vmem:[%s18009_s6 + $0x430] sm:$0xf]  ;;  %v13625_v6 = vld [vmem:[%s18009_s6 + $0x434] sm:$0xf0] }
 0xbd4   :  { %v11979_v18 = vor.u32 %v13630_v20, %v11976_v26 }
 0xbd5   :  { %6332 = vmatpush.bf16.msra.mxu0 %v11890_v34  ;;  %6345 = vmatpush.bf16.msra.mxu1 %v11894_v15  ;;  %v12012_v34 = vor.u32 %v13637_v60, %v12011_v33  ;;  %v12016_v15 = vor.u32 %v13636_v62, %v12013_v12  ;;  %v12133_v60 = vld [vmem:[%s18009_s6 + $0x568] sm:$0xf]  ;;  %v13661_v62 = vld [vmem:[%s18009_s6 + $0x56c] sm:$0xf0]  ;;  %v13660_v12 = vld [vmem:[%s18009_s6 + $0x56c] sm:$0xf] }
 0xbd7   :  { %6226 = vmatpush.bf16.msra.mxu2 %v11845_v30  ;;  %6239 = vmatpush.bf16.msra.mxu3 %v11849_v53  ;;  %v11971_v30 = vor.u32 %v13628_v24, %v11968_v49  ;;  %v12005_v53 = vld [vmem:[%s18009_s6 + $0x490] sm:$0xf0]  ;;  %v16583_v24 = vpop.f32.mrf.mxu1  ;;  %v13623_v49 = vld [vmem:[%s18009_s6 + $0x424] sm:$0xf0] }
 0xbd8   :  { %11927 = vmatmul.msk.bf16.vlgmr.msra.gmra.mxu0 %vm5170_vm3, %v6260_v3  ;;  %11928 = vmatmul.msk.bf16.vlgmr.msra.gmra.mxu1 %vm5170_vm3, %v6260_v3  ;;  %v12008_v10 = vor.u32 %v13634_v28, %v12005_v53  ;;  %v11959_v3 = vor.u32 %v13627_v23, %v11958_v31  ;;  %v12134_v28 = vor.u32 %v13661_v62, %v12133_v60  ;;  %v12125_v31 = vld [vmem:[%s18009_s6 + $0x558] sm:$0xf]  ;;  %v13659_v23 = vld [vmem:[%s18009_s6 + $0x55c] sm:$0xf0] }
 0xbd9   :  { %6537 = vmatpush.bf16.msrb.mxu0 %v6530_v59  ;;  %6550 = vmatpush.bf16.msrb.mxu1 %v6533_v7  ;;  %v12003_v59 = vld [vmem:[%s18009_s6 + $0x488] sm:$0xf]  ;;  %v13635_v7 = vld [vmem:[%s18009_s6 + $0x48c] sm:$0xf0]  ;;  %v12109_v60 = vld [vmem:[%s18009_s6 + $0x538] sm:$0xf] }
 0xbda   :  { %v12004_v47 = vor.u32 %v13635_v7, %v12003_v59  ;;  %v6470_v7 = vrot.slane %v16316_v56, 2  ;;  %v13655_v62 = vld [vmem:[%s18009_s6 + $0x53c] sm:$0xf0] }
 0xbdb   :  { %6227 = vmatpush.bf16.msra.mxu2 %v11837_v61  ;;  %6240 = vmatpush.bf16.msra.mxu3 %v11841_v13  ;;  %v11963_v61 = vor.u32 %v13626_v41, %v11960_v57  ;;  %v13633_v13 = vld [vmem:[%s18009_s6 + $0x47c] sm:$0xf0]  ;;  %v13658_v41 = vld [vmem:[%s18009_s6 + $0x55c] sm:$0xf]  ;;  %v12127_v57 = vld [vmem:[%s18009_s6 + $0x560] sm:$0xf0] }
 0xbdd   :  { %6538 = vmatpush.bf16.msrb.mxu0 %v12028_v21  ;;  %6551 = vmatpush.bf16.msrb.mxu1 %v12032_v36  ;;  %v11995_v21 = vld [vmem:[%s18009_s6 + $0x478] sm:$0xf]  ;;  %v12045_v36 = vld [vmem:[%s18009_s6 + $0x520] sm:$0x11] }
 0xbde   :  { %11874 = vmatmul.msk.bf16.vlgmr.msra.gmra.mxu2 %vm5170_vm3, %v6155_v39  ;;  %11875 = vmatmul.msk.bf16.vlgmr.msra.gmra.mxu3 %vm5170_vm3, %v6155_v39  ;;  %v6607_v20 = vunpack.c.l.b16 %v12045_v36  ;;  %v6608_v26 = vunpack.c.h.b16 %v12045_v36  ;;  %v11996_v39 = vor.u32 %v13633_v13, %v11995_v21  ;;  %v12082_v21 = vld [vmem:[%s18009_s6 + $0x518] sm:$0xf0]  ;;  %v6365_v36 = vrot.slane %v16287_v11, 2 }
 0xbdf   :  { %6432 = vmatpush.bf16.msrb.mxu2 %v6425_v9  ;;  %6445 = vmatpush.bf16.msrb.mxu3 %v6428_v50  ;;  %v6724_v9 = vpack.c.b16 %v6712_v51, %v6712_v51  ;;  %v6725_v50 = vpack.c.b16 %v6713_v25, %v6713_v25  ;;  %v12130_v13 = vor.u32 %v13658_v41, %v12127_v57 }
 0xbe0   :  { %v6620_v59 = vpack.c.b16 %v6608_v26, %v6608_v26  ;;  %v12074_v26 = vld [vmem:[%s18009_s6 + $0x508] sm:$0xf0] }
 0xbe1   :  { %6539 = vmatpush.bf16.msrb.mxu0 %v12020_v58  ;;  %6552 = vmatpush.bf16.msrb.mxu1 %v12024_v5  ;;  %v12000_v58 = vor.u32 %v13632_v14, %v11997_v46  ;;  %v6740_v5 = vand.u32 %v6724_v9, %v15585_v22  ;;  %v6743_v33 = vand.u32 %v6725_v50, %v15585_v22  ;;  %v12117_v14 = vld [vmem:[%s18009_s6 + $0x548] sm:$0xf]  ;;  %v13657_v46 = vld [vmem:[%s18009_s6 + $0x54c] sm:$0xf0]  ;;  %v13656_v9 = vld [vmem:[%s18009_s6 + $0x54c] sm:$0xf] }
 0xbe2   :  { %v6638_v25 = vand.u32 %v6620_v59, %v15585_v22  ;;  %v12066_v59 = vld [vmem:[%s18009_s6 + $0x4f8] sm:$0xf0] }
 0xbe3   :  { %6433 = vmatpush.bf16.msrb.mxu2 %v11975_v40  ;;  %6446 = vmatpush.bf16.msrb.mxu3 %v11979_v18  ;;  %v11951_v40 = vor.u32 %v13625_v6, %v11950_v32  ;;  %v11955_v18 = vor.u32 %v13624_v17, %v11952_v19  ;;  %v12119_v6 = vld [vmem:[%s18009_s6 + $0x550] sm:$0xf0]  ;;  %v12072_v17 = vld [vmem:[%s18009_s6 + $0x500] sm:$0xf]  ;;  %v13649_v19 = vld [vmem:[%s18009_s6 + $0x504] sm:$0xf0] }
 0xbe5   :  { %6540 = vmatpush.bf16.msrb.mxu0 %v12012_v34  ;;  %6553 = vmatpush.bf16.msrb.mxu1 %v12016_v15  ;;  %v11944_v34 = vld [vmem:[%s18009_s6 + $0x428] sm:$0xf0]  ;;  %v6619_v15 = vpack.c.b16 %v6607_v20, %v6607_v20  ;;  %v13648_v20 = vld [vmem:[%s18009_s6 + $0x504] sm:$0xf] }
 0xbe6   :  { %v11947_v53 = vor.u32 %v13622_v43, %v11944_v34 }
 0xbe7   :  { %6434 = vmatpush.bf16.msrb.mxu2 %v11967_v37  ;;  %6447 = vmatpush.bf16.msrb.mxu3 %v11971_v30  ;;  %v12138_v37 = vor.u32 %v13660_v12, %v12135_v4  ;;  %v11943_v30 = vor.u32 %v13623_v49, %v11942_v48  ;;  %v6635_v51 = vand.u32 %v6619_v15, %v15585_v22  ;;  %v12111_v4 = vld [vmem:[%s18009_s6 + $0x540] sm:$0xf0]  ;;  %v12064_v48 = vld [vmem:[%s18009_s6 + $0x4f0] sm:$0xf]  ;;  %v13647_v49 = vld [vmem:[%s18009_s6 + $0x4f4] sm:$0xf0] }
 0xbe8   :  { %v12077_v12 = vor.u32 %v13648_v20, %v12074_v26  ;;  %v13646_v15 = vld [vmem:[%s18009_s6 + $0x4f4] sm:$0xf]  ;;  %v5067_v20 = vpop.permute.xlu2 %5066 }
 0xbe9   :  { %6541 = vmatpush.bf16.msrb.mxu0 %v12004_v47  ;;  %6554 = vmatpush.bf16.msrb.mxu1 %v12008_v10  ;;  %v12080_v47 = vld [vmem:[%s18009_s6 + $0x510] sm:$0xf]  ;;  %v13651_v10 = vld [vmem:[%s18009_s6 + $0x514] sm:$0xf0] }
 0xbea   :  { %v12081_v50 = vor.u32 %v13651_v10, %v12080_v47  ;;  %v12056_v47 = vld [vmem:[%s18009_s6 + $0x4e0] sm:$0xf] }
 0xbeb   :  { %6435 = vmatpush.bf16.msrb.mxu2 %v11959_v3  ;;  %6448 = vmatpush.bf16.msrb.mxu3 %v11963_v61  ;;  %v13650_v3 = vld [vmem:[%s18009_s6 + $0x514] sm:$0xf]  ;;  %v12126_v61 = vor.u32 %v13659_v23, %v12125_v31  ;;  %v12069_v31 = vor.u32 %v13646_v15, %v12066_v59  ;;  %v13653_v23 = vld [vmem:[%s18009_s6 + $0x52c] sm:$0xf0]  ;;  %v12231_v15 = vld [vmem:[%s18009_s6 + $0x608] sm:$0xf] }
 0xbec   :  { %v12085_v32 = vor.u32 %v13650_v3, %v12082_v21  ;;  %v13645_v21 = vld [vmem:[%s18009_s6 + $0x4e4] sm:$0xf0]  ;;  %v13679_v59 = vld [vmem:[%s18009_s6 + $0x60c] sm:$0xf0] }
 0xbed   :  { %6542 = vmatpush.bf16.msrb.mxu0 %v11996_v39  ;;  %6555 = vmatpush.bf16.msrb.mxu1 %v12000_v58  ;;  %v12204_v39 = vld [vmem:[%s18009_s6 + $0x628] sm:$0x11]  ;;  %v16651_v58 = vpop.f32.mrf.mxu1  ;;  %v12057_v26 = vor.u32 %v13645_v21, %v12056_v47  ;;  %v12232_v47 = vor.u32 %v13679_v59, %v12231_v15  ;;  %v12257_v59 = vld [vmem:[%s18009_s6 + $0x680] sm:$0x11] }
 0xbee   :  { %v6926_v43 = vunpack.c.l.b16 %v12204_v39  ;;  %v6927_v34 = vunpack.c.h.b16 %v12204_v39  ;;  %v12172_v15 = vld [vmem:[%s18009_s6 + $0x5a8] sm:$0xf0] }
 0xbef   :  { %6436 = vmatpush.bf16.msrb.mxu2 %v11951_v40  ;;  %6449 = vmatpush.bf16.msrb.mxu3 %v11955_v18  ;;  %v13654_v40 = vld [vmem:[%s18009_s6 + $0x53c] sm:$0xf]  ;;  %v12073_v18 = vor.u32 %v13649_v19, %v12072_v17  ;;  %v12239_v17 = vld [vmem:[%s18009_s6 + $0x618] sm:$0xf]  ;;  %v13681_v19 = vld [vmem:[%s18009_s6 + $0x61c] sm:$0xf0] }
 0xbf0   :  { %12033 = vmatmul.msk.bf16.vlgmr.msrb.gmra.mxu0 %vm5170_vm3, %v6470_v7  ;;  %12034 = vmatmul.msk.bf16.vlgmr.msrb.gmra.mxu1 %vm5170_vm3, %v6470_v7  ;;  %v12110_v7 = vor.u32 %v13655_v62, %v12109_v60  ;;  %v6938_v41 = vpack.c.b16 %v6926_v43, %v6926_v43  ;;  %v6939_v57 = vpack.c.b16 %v6927_v34, %v6927_v34  ;;  %v13642_v60 = vld [vmem:[%s18009_s6 + $0x4d4] sm:$0xf]  ;;  %v12050_v62 = vld [vmem:[%s18009_s6 + $0x4d8] sm:$0xf0] }
 0xbf1   :  { %6747 = vmatpush.bf16.msra.mxu0 %v6740_v5  ;;  %6760 = vmatpush.bf16.msra.mxu1 %v6743_v33  ;;  %v12118_v5 = vor.u32 %v13657_v46, %v12117_v14  ;;  %v12122_v33 = vor.u32 %v13656_v9, %v12119_v6  ;;  %v12053_v34 = vor.u32 %v13642_v60, %v12050_v62 }
 0xbf2   :  { %v6957_v6 = vand.u32 %v6939_v57, %v15585_v22  ;;  %v6575_v57 = vrot.slane %v16287_v11, 3 }
 0xbf3   :  { %6437 = vmatpush.bf16.msrb.mxu2 %v11943_v30  ;;  %6450 = vmatpush.bf16.msrb.mxu3 %v11947_v53  ;;  %v12101_v30 = vld [vmem:[%s18009_s6 + $0x528] sm:$0xf]  ;;  %v12151_v53 = vld [vmem:[%s18009_s6 + $0x5d0] sm:$0x11] }
 0xbf4   :  { %v6817_v14 = vunpack.c.h.b16 %v12151_v53  ;;  %v12102_v46 = vor.u32 %v13653_v23, %v12101_v30  ;;  %v13678_v30 = vld [vmem:[%s18009_s6 + $0x60c] sm:$0xf]  ;;  %v13671_v23 = vld [vmem:[%s18009_s6 + $0x5c4] sm:$0xf0] }
 0xbf5   :  { %6748 = vmatpush.bf16.msra.mxu0 %v12134_v28  ;;  %6761 = vmatpush.bf16.msra.mxu1 %v12138_v37  ;;  %v12114_v28 = vor.u32 %v13654_v40, %v12111_v4  ;;  %v12065_v37 = vor.u32 %v13647_v49, %v12064_v48  ;;  %v16697_v10 = vpop.f32.mrf.mxu0  ;;  %v16699_v3 = vpop.f32.mrf.mxu1  ;;  %v6680_v4 = vrot.slane %v16316_v56, 3  ;;  %v12240_v48 = vor.u32 %v13681_v19, %v12239_v17 }
 0xbf6   :  { %11980 = vmatmul.msk.bf16.vlgmr.msrb.gmra.mxu2 %vm5170_vm3, %v6365_v36  ;;  %11981 = vmatmul.msk.bf16.vlgmr.msrb.gmra.mxu3 %vm5170_vm3, %v6365_v36  ;;  %v13644_v36 = vld [vmem:[%s18009_s6 + $0x4e4] sm:$0xf] }
 0xbf7   :  { %6642 = vmatpush.bf16.msra.mxu2 %v6635_v51  ;;  %6655 = vmatpush.bf16.msra.mxu3 %v6638_v25  ;;  %v13652_v51 = vld [vmem:[%s18009_s6 + $0x52c] sm:$0xf]  ;;  %v12103_v25 = vld [vmem:[%s18009_s6 + $0x530] sm:$0xf0] }
 0xbf8   :  { %v12106_v9 = vor.u32 %v13652_v51, %v12103_v25  ;;  %v13670_v51 = vld [vmem:[%s18009_s6 + $0x5c4] sm:$0xf]  ;;  %v12188_v25 = vld [vmem:[%s18009_s6 + $0x5c8] sm:$0xf0] }
 0xbf9   :  { %6749 = vmatpush.bf16.msra.mxu0 %v12126_v61  ;;  %6762 = vmatpush.bf16.msra.mxu1 %v12130_v13  ;;  %v12058_v61 = vld [vmem:[%s18009_s6 + $0x4e8] sm:$0xf0]  ;;  %v6816_v13 = vunpack.c.l.b16 %v12151_v53  ;;  %v12233_v53 = vld [vmem:[%s18009_s6 + $0x610] sm:$0xf0]  ;;  %v12191_v11 = vor.u32 %v13670_v51, %v12188_v25  ;;  %v13673_v51 = vld [vmem:[%s18009_s6 + $0x5dc] sm:$0xf0] }
 0xbfa   :  { %v12061_v39 = vor.u32 %v13644_v36, %v12058_v61  ;;  %v12236_v21 = vor.u32 %v13678_v30, %v12233_v53  ;;  %v12223_v36 = vld [vmem:[%s18009_s6 + $0x5f8] sm:$0xf]  ;;  %v13677_v61 = vld [vmem:[%s18009_s6 + $0x5fc] sm:$0xf0]  ;;  %v13672_v25 = vld [vmem:[%s18009_s6 + $0x5dc] sm:$0xf] }
 0xbfb   :  { %6643 = vmatpush.bf16.msra.mxu2 %v12081_v50  ;;  %6656 = vmatpush.bf16.msra.mxu3 %v12085_v32  ;;  %v5048_v50 = vadd.f32 %v16583_v24, %v15571_v63  ;;  %v6954_v32 = vand.u32 %v6938_v41, %v15585_v22  ;;  %v13680_v63 = vld [vmem:[%s18009_s6 + $0x61c] sm:$0xf]  ;;  %v12241_v24 = vld [vmem:[%s18009_s6 + $0x620] sm:$0xf0]  ;;  %v6828_v40 = vpack.c.b16 %v6816_v13, %v6816_v13 }
 0xbfc   :  { %v12244_v49 = vor.u32 %v13680_v63, %v12241_v24  ;;  %v13676_v13 = vld [vmem:[%s18009_s6 + $0x5fc] sm:$0xf]  ;;  %v12215_v24 = vld [vmem:[%s18009_s6 + $0x5e8] sm:$0xf] }
 0xbfd   :  { %6750 = vmatpush.bf16.msra.mxu0 %v12118_v5  ;;  %6763 = vmatpush.bf16.msra.mxu1 %v12122_v33  ;;  %v12048_v5 = vld [vmem:[%s18009_s6 + $0x4d0] sm:$0xf]  ;;  %v13643_v33 = vld [vmem:[%s18009_s6 + $0x4d4] sm:$0xf0]  ;;  %v6844_v56 = vand.u32 %v6828_v40, %v15585_v22 }
 0xbfe   :  { %v12049_v43 = vor.u32 %v13643_v33, %v12048_v5  ;;  %v13675_v5 = vld [vmem:[%s18009_s6 + $0x5ec] sm:$0xf0]  ;;  %v13674_v33 = vld [vmem:[%s18009_s6 + $0x5ec] sm:$0xf] }
 0xbff   :  { %6644 = vmatpush.bf16.msra.mxu2 %v12073_v18  ;;  %6657 = vmatpush.bf16.msra.mxu3 %v12077_v12  ;;  %v6829_v18 = vpack.c.b16 %v6817_v14, %v6817_v14  ;;  %v5076_v12 = vadd.f32 %v5067_v20, %v5048_v50  ;;  %v12225_v50 = vld [vmem:[%s18009_s6 + $0x600] sm:$0xf0]  ;;  %v13668_v20 = vld [vmem:[%s18009_s6 + $0x5b4] sm:$0xf] }
 0xc00   :  { %v12228_v63 = vor.u32 %v13676_v13, %v12225_v50  ;;  %v13664_v13 = vld [vmem:[%s18009_s6 + $0x594] sm:$0xf] }
 0xc01   :  { %6751 = vmatpush.bf16.msra.mxu0 %v12110_v7  ;;  %6764 = vmatpush.bf16.msra.mxu1 %v12114_v28  ;;  %v6847_v7 = vand.u32 %v6829_v18, %v15585_v22  ;;  %v5284_v28 = vpop.f32.mrf.mxu0  ;;  %v5080_v41 = vmax.f32 %v5076_v12, 0.0  ;;  %v12217_v12 = vld [vmem:[%s18009_s6 + $0x5f0] sm:$0xf0] }
 0xc03   :  { %6645 = vmatpush.bf16.msra.mxu2 %v12065_v37  ;;  %6658 = vmatpush.bf16.msra.mxu3 %v12069_v31  ;;  %v5297_v37 = vpop.f32.mrf.mxu1  ;;  %v12186_v31 = vld [vmem:[%s18009_s6 + $0x5c0] sm:$0xf] }
 0xc04   :  { %v12187_v14 = vor.u32 %v13671_v23, %v12186_v31  ;;  %v12207_v37 = vld [vmem:[%s18009_s6 + $0x5d8] sm:$0xf] }
 0xc05   :  { %6752 = vmatpush.bf16.msra.mxu0 %v12102_v46  ;;  %6765 = vmatpush.bf16.msra.mxu1 %v12106_v9  ;;  %v5192_v46 = vpop.f32.mrf.mxu2  ;;  %v5205_v9 = vpop.f32.mrf.mxu3 }
 0xc06   :  { %v16787_v17 = vadd.f32 %v16697_v10, %v5192_v46  ;;  %v16790_v19 = vadd.f32 %v16699_v3, %v5205_v9  ;;  %v16803_v10 = vpack.c.bf16 %v5080_v41, %v5080_v41  ;;  %v12224_v3 = vor.u32 %v13677_v61, %v12223_v36  ;;  %v12209_v41 = vld [vmem:[%s18009_s6 + $0x5e0] sm:$0xf0]  ;;  %v13665_v61 = vld [vmem:[%s18009_s6 + $0x594] sm:$0xf0] }
 0xc07   :  { %6646 = vmatpush.bf16.msra.mxu2 %v12057_v26  ;;  %6659 = vmatpush.bf16.msra.mxu3 %v12061_v39  ;;  %v12180_v26 = vld [vmem:[%s18009_s6 + $0x5b8] sm:$0xf0]  ;;  %v7031_v36 = vunpack.c.l.b16 %v12257_v59  ;;  %v12208_v46 = vor.u32 %v13673_v51, %v12207_v37  ;;  %v12212_v9 = vor.u32 %v13672_v25, %v12209_v41  ;;  %v12339_v41 = vld [vmem:[%s18009_s6 + $0x6c0] sm:$0xf0] }
 0xc08   :  { %12139 = vmatmul.msk.bf16.vlgmr.msra.gmra.mxu0 %vm5170_vm3, %v6680_v4  ;;  %12140 = vmatmul.msk.bf16.vlgmr.msra.gmra.mxu1 %vm5170_vm3, %v6680_v4  ;;  %v12310_v39 = vld [vmem:[%s18009_s6 + $0x6d8] sm:$0x11]  ;;  %v12183_v62 = vor.u32 %v13668_v20, %v12180_v26  ;;  %v12170_v4 = vld [vmem:[%s18009_s6 + $0x5a0] sm:$0xf]  ;;  %v6890_v30 = vunpack.c.l.b16 %v16803_v10 }
 0xc09   :  { %6961 = vmatpush.bf16.msrb.mxu0 %v6954_v32  ;;  %6974 = vmatpush.bf16.msrb.mxu1 %v6957_v6  ;;  %v12178_v32 = vld [vmem:[%s18009_s6 + $0x5b0] sm:$0xf]  ;;  %v13669_v6 = vld [vmem:[%s18009_s6 + $0x5b4] sm:$0xf0]  ;;  %v16814_v40 = vpop.f32.mrf.mxu0  ;;  %v13698_v25 = vld [vmem:[%s18009_s6 + $0x6bc] sm:$0xf] }
 0xc0a   :  { %v12179_v60 = vor.u32 %v13669_v6, %v12178_v32  ;;  %v16861_v50 = vpack.c.b16 %v6890_v30, %v6890_v30  ;;  %v12337_v30 = vld [vmem:[%s18009_s6 + $0x6b8] sm:$0xf] }
 0xc0b   :  { %6647 = vmatpush.bf16.msra.mxu2 %v12049_v43  ;;  %6660 = vmatpush.bf16.msra.mxu3 %v12053_v34  ;;  %v16816_v18 = vpop.f32.mrf.mxu1  ;;  %v7137_v43 = vunpack.c.h.b16 %v12310_v39  ;;  %v13666_v34 = vld [vmem:[%s18009_s6 + $0x5a4] sm:$0xf] }
 0xc0c   :  { %v12175_v53 = vor.u32 %v13666_v34, %v12172_v15 }
 0xc0d   :  { %6962 = vmatpush.bf16.msrb.mxu0 %v12240_v48  ;;  %6975 = vmatpush.bf16.msrb.mxu1 %v12244_v49  ;;  %v13667_v48 = vld [vmem:[%s18009_s6 + $0x5a4] sm:$0xf0]  ;;  %v7136_v49 = vunpack.c.l.b16 %v12310_v39  ;;  %v5194_v31 = vpop.f32.mrf.mxu2  ;;  %v5207_v23 = vpop.f32.mrf.mxu3 }
 0xc0e   :  { %12086 = vmatmul.msk.bf16.vlgmr.msra.gmra.mxu2 %vm5170_vm3, %v6575_v57  ;;  %12087 = vmatmul.msk.bf16.vlgmr.msra.gmra.mxu3 %vm5170_vm3, %v6575_v57  ;;  %v12171_v28 = vor.u32 %v13667_v48, %v12170_v4  ;;  %v12345_v39 = vld [vmem:[%s18009_s6 + $0x6c8] sm:$0xf]  ;;  %v13662_v4 = vld [vmem:[%s18009_s6 + $0x584] sm:$0xf]  ;;  %v12156_v48 = vld [vmem:[%s18009_s6 + $0x588] sm:$0xf0] }
 0xc0f   :  { %6851 = vmatpush.bf16.msrb.mxu2 %v6844_v56  ;;  %6864 = vmatpush.bf16.msrb.mxu3 %v6847_v7  ;;  %v12216_v56 = vor.u32 %v13675_v5, %v12215_v24  ;;  %v12220_v7 = vor.u32 %v13674_v33, %v12217_v12  ;;  %v7148_v57 = vpack.c.b16 %v7136_v49, %v7136_v49  ;;  %v13700_v5 = vld [vmem:[%s18009_s6 + $0x6cc] sm:$0xf]  ;;  %v12347_v33 = vld [vmem:[%s18009_s6 + $0x6d0] sm:$0xf0]  ;;  %v13663_v12 = vld [vmem:[%s18009_s6 + $0x584] sm:$0xf0] }
 0xc10   :  { %v12350_v15 = vor.u32 %v13700_v5, %v12347_v33 }
 0xc11   :  { %6963 = vmatpush.bf16.msrb.mxu0 %v12232_v47  ;;  %6976 = vmatpush.bf16.msrb.mxu1 %v12236_v21  ;;  %v7149_v47 = vpack.c.b16 %v7137_v43, %v7137_v43  ;;  %v12162_v21 = vld [vmem:[%s18009_s6 + $0x590] sm:$0xf]  ;;  %v7164_v32 = vand.u32 %v7148_v57, %v15585_v22  ;;  %v5492_v20 = vpop.f32.mrf.mxu0  ;;  %v16890_v43 = vshrl.u32 %v16861_v50, 16 }
 0xc12   :  { %v12292_v57 = vld [vmem:[%s18009_s6 + $0x670] sm:$0xf]  ;;  %v12284_v20 = vld [vmem:[%s18009_s6 + $0x660] sm:$0xf] }
 0xc13   :  { %6852 = vmatpush.bf16.msrb.mxu2 %v12187_v14  ;;  %6865 = vmatpush.bf16.msrb.mxu3 %v12191_v11  ;;  %v12164_v14 = vld [vmem:[%s18009_s6 + $0x598] sm:$0xf0]  ;;  %v7032_v11 = vunpack.c.h.b16 %v12257_v59  ;;  %v7167_v6 = vand.u32 %v7149_v47, %v15585_v22  ;;  %v5505_v26 = vpop.f32.mrf.mxu1 }
 0xc14   :  { %v12167_v24 = vor.u32 %v13664_v13, %v12164_v14  ;;  %v12294_v47 = vld [vmem:[%s18009_s6 + $0x678] sm:$0xf0]  ;;  %v12416_v26 = vld [vmem:[%s18009_s6 + $0x788] sm:$0x11] }
 0xc15   :  { %6964 = vmatpush.bf16.msrb.mxu0 %v12224_v3  ;;  %6977 = vmatpush.bf16.msrb.mxu1 %v12228_v63  ;;  %v13701_v3 = vld [vmem:[%s18009_s6 + $0x6cc] sm:$0xf0]  ;;  %v12163_v63 = vor.u32 %v13665_v61, %v12162_v21  ;;  %v7044_v49 = vpack.c.b16 %v7032_v11, %v7032_v11  ;;  %v12342_v11 = vor.u32 %v13698_v25, %v12339_v41 }
 0xc16   :  { %v12346_v34 = vor.u32 %v13701_v3, %v12345_v39  ;;  %v13689_v39 = vld [vmem:[%s18009_s6 + $0x664] sm:$0xf0]  ;;  %v13688_v3 = vld [vmem:[%s18009_s6 + $0x664] sm:$0xf]  ;;  %v12363_v25 = vld [vmem:[%s18009_s6 + $0x730] sm:$0x11] }
 0xc17   :  { %6853 = vmatpush.bf16.msrb.mxu2 %v12179_v60  ;;  %6866 = vmatpush.bf16.msrb.mxu3 %v12183_v62  ;;  %v12154_v60 = vld [vmem:[%s18009_s6 + $0x580] sm:$0xf]  ;;  %v7043_v62 = vpack.c.b16 %v7031_v36, %v7031_v36  ;;  %v7062_v51 = vand.u32 %v7044_v49, %v15585_v22 }
 0xc18   :  { %v12155_v59 = vor.u32 %v13663_v12, %v12154_v60  ;;  %v13695_v12 = vld [vmem:[%s18009_s6 + $0x69c] sm:$0xf0] }
 0xc19   :  { %6965 = vmatpush.bf16.msrb.mxu0 %v12216_v56  ;;  %6978 = vmatpush.bf16.msrb.mxu1 %v12220_v7  ;;  %v12159_v56 = vor.u32 %v13662_v4, %v12156_v48  ;;  %v5385_v7 = vpop.f32.mrf.mxu2  ;;  %v7059_v37 = vand.u32 %v7043_v62, %v15585_v22  ;;  %v16924_v21 = vpop.f32.mrf.mxu0  ;;  %v12321_v62 = vld [vmem:[%s18009_s6 + $0x698] sm:$0xf]  ;;  %v7346_v4 = vunpack.c.l.b16 %v12416_v26  ;;  %v12285_v48 = vor.u32 %v13689_v39, %v12284_v20 }
 0xc1a   :  { %v5402_v31 = vadd.f32 %v5385_v7, %v16787_v17  ;;  %v13691_v17 = vld [vmem:[%s18009_s6 + $0x674] sm:$0xf0]  ;;  %v13686_v7 = vld [vmem:[%s18009_s6 + $0x654] sm:$0xf] }
 0xc1b   :  { %6854 = vmatpush.bf16.msrb.mxu2 %v12171_v28  ;;  %6867 = vmatpush.bf16.msrb.mxu3 %v12175_v53  ;;  %v5398_v28 = vpop.f32.mrf.mxu3  ;;  %v13699_v53 = vld [vmem:[%s18009_s6 + $0x6bc] sm:$0xf0]  ;;  %v16926_v36 = vpop.f32.mrf.mxu1 }
 0xc1c   :  { %v5403_v23 = vadd.f32 %v5398_v28, %v16790_v19  ;;  %v13690_v19 = vld [vmem:[%s18009_s6 + $0x674] sm:$0xf]  ;;  %v16929_v61 = vadd.f32 %v16814_v40, %v5402_v31  ;;  %v12338_v14 = vor.u32 %v13699_v53, %v12337_v30  ;;  %v13696_v40 = vld [vmem:[%s18009_s6 + $0x6ac] sm:$0xf]  ;;  %v12278_v28 = vld [vmem:[%s18009_s6 + $0x658] sm:$0xf0]  ;;  %v12322_v53 = vor.u32 %v13695_v12, %v12321_v62 }
 0xc1d   :  { %6966 = vmatpush.bf16.msrb.mxu0 %v12208_v46  ;;  %6979 = vmatpush.bf16.msrb.mxu1 %v12212_v9  ;;  %v12329_v46 = vld [vmem:[%s18009_s6 + $0x6a8] sm:$0xf]  ;;  %v13697_v9 = vld [vmem:[%s18009_s6 + $0x6ac] sm:$0xf0] }
 0xc1e   :  { %v16932_v13 = vadd.f32 %v16816_v18, %v5403_v23  ;;  %v12293_v18 = vor.u32 %v13691_v17, %v12292_v57  ;;  %v12313_v23 = vld [vmem:[%s18009_s6 + $0x688] sm:$0xf]  ;;  %v12281_v57 = vor.u32 %v13686_v7, %v12278_v28  ;;  %v13693_v17 = vld [vmem:[%s18009_s6 + $0x68c] sm:$0xf0] }
 0xc1f   :  { %6855 = vmatpush.bf16.msrb.mxu2 %v12163_v63  ;;  %6868 = vmatpush.bf16.msrb.mxu3 %v12167_v24  ;;  %v12286_v63 = vld [vmem:[%s18009_s6 + $0x668] sm:$0xf0]  ;;  %v12330_v24 = vor.u32 %v13697_v9, %v12329_v46  ;;  %v13685_v46 = vld [vmem:[%s18009_s6 + $0x644] sm:$0xf0]  ;;  %v13684_v9 = vld [vmem:[%s18009_s6 + $0x644] sm:$0xf] }
 0xc20   :  { %12245 = vmatmul.msk.bf16.vlgmr.msrb.gmra.mxu0 %vm5170_vm3, %v16890_v43  ;;  %12246 = vmatmul.msk.bf16.vlgmr.msrb.gmra.mxu1 %vm5170_vm3, %v16890_v43  ;;  %v12289_v49 = vor.u32 %v13688_v3, %v12286_v63 }
 0xc21   :  { %7171 = vmatpush.bf16.msra.mxu0 %v7164_v32  ;;  %7184 = vmatpush.bf16.msra.mxu1 %v7167_v6  ;;  %v12297_v32 = vor.u32 %v13690_v19, %v12294_v47  ;;  %v12331_v6 = vld [vmem:[%s18009_s6 + $0x6b0] sm:$0xf0]  ;;  %v5387_v33 = vpop.f32.mrf.mxu2  ;;  %v13692_v19 = vld [vmem:[%s18009_s6 + $0x68c] sm:$0xf] }
 0xc22   :  { %v12334_v5 = vor.u32 %v13696_v40, %v12331_v6  ;;  %v12315_v47 = vld [vmem:[%s18009_s6 + $0x690] sm:$0xf0]  ;;  %v12270_v40 = vld [vmem:[%s18009_s6 + $0x648] sm:$0xf0]  ;;  %v12314_v6 = vor.u32 %v13693_v17, %v12313_v23  ;;  %v12451_v33 = vld [vmem:[%s18009_s6 + $0x778] sm:$0xf] }
 0xc23   :  { %6856 = vmatpush.bf16.msrb.mxu2 %v12155_v59  ;;  %6869 = vmatpush.bf16.msrb.mxu3 %v12159_v56  ;;  %v5400_v60 = vpop.f32.mrf.mxu3  ;;  %v7347_v59 = vunpack.c.h.b16 %v12416_v26  ;;  %v13687_v56 = vld [vmem:[%s18009_s6 + $0x654] sm:$0xf0]  ;;  %v5715_v30 = vpop.f32.mrf.mxu1  ;;  %v12318_v20 = vor.u32 %v13692_v19, %v12315_v47  ;;  %v12273_v12 = vor.u32 %v13684_v9, %v12270_v40  ;;  %v12398_v17 = vld [vmem:[%s18009_s6 + $0x720] sm:$0xf]  ;;  %v820_v19 = vadd.f32 %v14456_v0, %v14458_v1  ;;  %v12400_v9 = vld [vmem:[%s18009_s6 + $0x728] sm:$0xf0] }
 0xc24   :  { %v13721_v60 = vld [vmem:[%s18009_s6 + $0x77c] sm:$0xf0]  ;;  %v6999_v40 = vrot.slane %v16861_v50, 1 }
 0xc25   :  { %7172 = vmatpush.bf16.msra.mxu0 %v12346_v34  ;;  %7185 = vmatpush.bf16.msra.mxu1 %v12350_v15  ;;  %v12323_v34 = vld [vmem:[%s18009_s6 + $0x6a0] sm:$0xf0]  ;;  %v12276_v15 = vld [vmem:[%s18009_s6 + $0x650] sm:$0xf]  ;;  %v12452_v30 = vor.u32 %v13721_v60, %v12451_v33  ;;  %v1123_v0 = vadd.f32 %v14556_v54, %v820_v19  ;;  %v13709_v60 = vld [vmem:[%s18009_s6 + $0x714] sm:$0xf0] }
 0xc26   :  { %12192 = vmatmul.msk.bf16.vlgmr.msrb.gmra.mxu2 %vm5170_vm3, %v16803_v10  ;;  %12193 = vmatmul.msk.bf16.vlgmr.msrb.gmra.mxu3 %vm5170_vm3, %v16803_v10  ;;  %v13694_v10 = vld [vmem:[%s18009_s6 + $0x69c] sm:$0xf]  ;;  %v12277_v41 = vor.u32 %v13687_v56, %v12276_v15 }
 0xc27   :  { %7066 = vmatpush.bf16.msra.mxu2 %v7059_v37  ;;  %7079 = vmatpush.bf16.msra.mxu3 %v7062_v51  ;;  %v5702_v37 = vpop.f32.mrf.mxu0  ;;  %v12326_v31 = vor.u32 %v13694_v10, %v12323_v34  ;;  %v7358_v51 = vpack.c.b16 %v7346_v4, %v7346_v4  ;;  %v13720_v4 = vld [vmem:[%s18009_s6 + $0x77c] sm:$0xf]  ;;  %v13683_v10 = vld [vmem:[%s18009_s6 + $0x634] sm:$0xf0]  ;;  %v13682_v34 = vld [vmem:[%s18009_s6 + $0x634] sm:$0xf]  ;;  %v1425_v33 = vadd.f32 %v14654_v45, %v1123_v0 }
 0xc28   :  { %v12262_v15 = vld [vmem:[%s18009_s6 + $0x638] sm:$0xf0]  ;;  %v7104_v37 = vrot.slane %v16890_v43, 1  ;;  %v12427_v45 = vld [vmem:[%s18009_s6 + $0x748] sm:$0xf] }
 0xc29   :  { %7173 = vmatpush.bf16.msra.mxu0 %v12338_v14  ;;  %7186 = vmatpush.bf16.msra.mxu1 %v12342_v11  ;;  %v7359_v14 = vpack.c.b16 %v7347_v59, %v7347_v59  ;;  %v12268_v11 = vld [vmem:[%s18009_s6 + $0x640] sm:$0xf]  ;;  %v7374_v26 = vand.u32 %v7358_v51, %v15585_v22  ;;  %v5595_v39 = vpop.f32.mrf.mxu2  ;;  %v12265_v23 = vor.u32 %v13682_v34, %v12262_v15  ;;  %v13714_v34 = vld [vmem:[%s18009_s6 + $0x74c] sm:$0xf]  ;;  %v12429_v15 = vld [vmem:[%s18009_s6 + $0x750] sm:$0xf0] }
 0xc2a   :  { %v12269_v62 = vor.u32 %v13685_v46, %v12268_v11  ;;  %v13711_v11 = vld [vmem:[%s18009_s6 + $0x724] sm:$0xf0]  ;;  %v13710_v46 = vld [vmem:[%s18009_s6 + $0x724] sm:$0xf] }
 0xc2b   :  { %7067 = vmatpush.bf16.msra.mxu2 %v12293_v18  ;;  %7080 = vmatpush.bf16.msra.mxu3 %v12297_v32  ;;  %v7241_v18 = vunpack.c.l.b16 %v12363_v25  ;;  %v7242_v32 = vunpack.c.h.b16 %v12363_v25  ;;  %v5608_v3 = vpop.f32.mrf.mxu3  ;;  %v7377_v63 = vand.u32 %v7359_v14, %v15585_v22  ;;  %v12403_v54 = vor.u32 %v13710_v46, %v12400_v9  ;;  %v12421_v46 = vld [vmem:[%s18009_s6 + $0x740] sm:$0xf0] }
 0xc2d   :  { %7174 = vmatpush.bf16.msra.mxu0 %v12330_v24  ;;  %7187 = vmatpush.bf16.msra.mxu1 %v12334_v5  ;;  %v5612_v24 = vadd.f32 %v5595_v39, %v16929_v61  ;;  %v5613_v5 = vadd.f32 %v5608_v3, %v16932_v13  ;;  %v12453_v61 = vld [vmem:[%s18009_s6 + $0x780] sm:$0xf0]  ;;  %v12260_v13 = vld [vmem:[%s18009_s6 + $0x630] sm:$0xf]  ;;  %v7253_v59 = vpack.c.b16 %v7241_v18, %v7241_v18 }
 0xc2e   :  { %v7254_v56 = vpack.c.b16 %v7242_v32, %v7242_v32  ;;  %v12435_v32 = vld [vmem:[%s18009_s6 + $0x758] sm:$0xf]  ;;  %v12437_v39 = vld [vmem:[%s18009_s6 + $0x760] sm:$0xf0] }
 0xc2f   :  { %7068 = vmatpush.bf16.msra.mxu2 %v12285_v48  ;;  %7081 = vmatpush.bf16.msra.mxu3 %v12289_v49  ;;  %v17035_v48 = vpop.f32.mrf.mxu0  ;;  %v17037_v49 = vpop.f32.mrf.mxu1  ;;  %v17049_v7 = vadd.f32 %v16924_v21, %v5612_v24  ;;  %v17052_v28 = vadd.f32 %v16926_v36, %v5613_v5  ;;  %v12443_v21 = vld [vmem:[%s18009_s6 + $0x768] sm:$0xf]  ;;  %v13719_v36 = vld [vmem:[%s18009_s6 + $0x76c] sm:$0xf0]  ;;  %v7269_v51 = vand.u32 %v7253_v59, %v15585_v22  ;;  %v12522_v5 = vld [vmem:[%s18009_s6 + $0x838] sm:$0x11] }
 0xc30   :  { %v7272_v25 = vand.u32 %v7254_v56, %v15585_v22  ;;  %v12444_v1 = vor.u32 %v13719_v36, %v12443_v21  ;;  %v12390_v24 = vld [vmem:[%s18009_s6 + $0x710] sm:$0xf]  ;;  %v12382_v59 = vld [vmem:[%s18009_s6 + $0x700] sm:$0xf]  ;;  %v7556_v56 = vunpack.c.l.b16 %v12522_v5 }
 0xc31   :  { %7175 = vmatpush.bf16.msra.mxu0 %v12322_v53  ;;  %7188 = vmatpush.bf16.msra.mxu1 %v12326_v31  ;;  %v12456_v53 = vor.u32 %v13720_v4, %v12453_v61  ;;  %v12261_v31 = vor.u32 %v13683_v10, %v12260_v13  ;;  %v5597_v47 = vpop.f32.mrf.mxu2  ;;  %v13715_v4 = vld [vmem:[%s18009_s6 + $0x74c] sm:$0xf0]  ;;  %v1727_v61 = vadd.f32 %v14752_v42, %v1425_v33 }
 0xc32   :  { %v12391_v42 = vor.u32 %v13709_v60, %v12390_v24 }
 0xc33   :  { %7069 = vmatpush.bf16.msra.mxu2 %v12277_v41  ;;  %7082 = vmatpush.bf16.msra.mxu3 %v12281_v57  ;;  %v13718_v41 = vld [vmem:[%s18009_s6 + $0x76c] sm:$0xf]  ;;  %v12445_v57 = vld [vmem:[%s18009_s6 + $0x770] sm:$0xf0]  ;;  %v5610_v14 = vpop.f32.mrf.mxu3  ;;  %v2029_v21 = vadd.f32 %v14850_v44, %v1727_v61  ;;  %v12469_v44 = vld [vmem:[%s18009_s6 + $0x7e0] sm:$0x11] }
 0xc34   :  { %v12448_v18 = vor.u32 %v13718_v41, %v12445_v57  ;;  %v12432_v41 = vor.u32 %v13714_v34, %v12429_v15  ;;  %v12419_v14 = vld [vmem:[%s18009_s6 + $0x738] sm:$0xf]  ;;  %v12559_v61 = vld [vmem:[%s18009_s6 + $0x830] sm:$0xf0]  ;;  %v12368_v34 = vld [vmem:[%s18009_s6 + $0x6e8] sm:$0xf0] }
 0xc35   :  { %7176 = vmatpush.bf16.msra.mxu0 %v12314_v6  ;;  %7189 = vmatpush.bf16.msra.mxu1 %v12318_v20  ;;  %v13717_v6 = vld [vmem:[%s18009_s6 + $0x75c] sm:$0xf0]  ;;  %v13716_v20 = vld [vmem:[%s18009_s6 + $0x75c] sm:$0xf] }
 0xc36   :  { %v12436_v13 = vor.u32 %v13717_v6, %v12435_v32  ;;  %v12440_v10 = vor.u32 %v13716_v20, %v12437_v39  ;;  %v13705_v32 = vld [vmem:[%s18009_s6 + $0x6f4] sm:$0xf0]  ;;  %v13704_v6 = vld [vmem:[%s18009_s6 + $0x6f4] sm:$0xf]  ;;  %v7452_v20 = vunpack.c.h.b16 %v12469_v44 }
 0xc37   :  { %7070 = vmatpush.bf16.msra.mxu2 %v12269_v62  ;;  %7083 = vmatpush.bf16.msra.mxu3 %v12273_v12  ;;  %v5912_v3 = vpop.f32.mrf.mxu0  ;;  %v13708_v62 = vld [vmem:[%s18009_s6 + $0x714] sm:$0xf]  ;;  %v12392_v12 = vld [vmem:[%s18009_s6 + $0x718] sm:$0xf0] }
 0xc38   :  { %12351 = vmatmul.msk.bf16.vlgmr.msra.gmra.mxu0 %vm5170_vm3, %v7104_v37  ;;  %12352 = vmatmul.msk.bf16.vlgmr.msra.gmra.mxu1 %vm5170_vm3, %v7104_v37  ;;  %v12395_v37 = vor.u32 %v13708_v62, %v12392_v12 }
 0xc39   :  { %7381 = vmatpush.bf16.msrb.mxu0 %v7374_v26  ;;  %7394 = vmatpush.bf16.msrb.mxu1 %v7377_v63  ;;  %v12399_v26 = vor.u32 %v13711_v11, %v12398_v17  ;;  %v5925_v63 = vpop.f32.mrf.mxu1  ;;  %v5805_v36 = vpop.f32.mrf.mxu2  ;;  %v7568_v11 = vpack.c.b16 %v7556_v56, %v7556_v56 }
 0xc3a   :  { %v5822_v57 = vadd.f32 %v5805_v36, %v17049_v7  ;;  %v13713_v7 = vld [vmem:[%s18009_s6 + $0x73c] sm:$0xf0] }
 0xc3b   :  { %7071 = vmatpush.bf16.msra.mxu2 %v12261_v31  ;;  %7084 = vmatpush.bf16.msra.mxu3 %v12265_v23  ;;  %v12384_v31 = vld [vmem:[%s18009_s6 + $0x708] sm:$0xf0]  ;;  %v7557_v23 = vunpack.c.h.b16 %v12522_v5  ;;  %v7584_v63 = vand.u32 %v7568_v11, %v15585_v22  ;;  %v12557_v5 = vld [vmem:[%s18009_s6 + $0x828] sm:$0xf]  ;;  %v12506_v11 = vld [vmem:[%s18009_s6 + $0x7d8] sm:$0xf0] }
 0xc3d   :  { %7382 = vmatpush.bf16.msrb.mxu0 %v12452_v30  ;;  %7395 = vmatpush.bf16.msrb.mxu1 %v12456_v53  ;;  %v13707_v30 = vld [vmem:[%s18009_s6 + $0x704] sm:$0xf0]  ;;  %v13706_v53 = vld [vmem:[%s18009_s6 + $0x704] sm:$0xf]  ;;  %v7569_v9 = vpack.c.b16 %v7557_v23, %v7557_v23 }
 0xc3e   :  { %12298 = vmatmul.msk.bf16.vlgmr.msra.gmra.mxu2 %vm5170_vm3, %v6999_v40  ;;  %12299 = vmatmul.msk.bf16.vlgmr.msra.gmra.mxu3 %vm5170_vm3, %v6999_v40  ;;  %v12383_v19 = vor.u32 %v13707_v30, %v12382_v59  ;;  %v12387_v47 = vor.u32 %v13706_v53, %v12384_v31  ;;  %v17161_v40 = vadd.f32 %v17035_v48, %v5822_v57  ;;  %v12376_v48 = vld [vmem:[%s18009_s6 + $0x6f8] sm:$0xf0] }
 0xc3f   :  { %7276 = vmatpush.bf16.msrb.mxu2 %v7269_v51  ;;  %7289 = vmatpush.bf16.msrb.mxu3 %v7272_v25  ;;  %v5818_v51 = vpop.f32.mrf.mxu3  ;;  %v12428_v25 = vor.u32 %v13715_v4, %v12427_v45  ;;  %v17180_v39 = vpop.f32.mrf.mxu0  ;;  %v7587_v24 = vand.u32 %v7569_v9, %v15585_v22  ;;  %v12379_v62 = vor.u32 %v13704_v6, %v12376_v48  ;;  %v13740_v4 = vld [vmem:[%s18009_s6 + $0x82c] sm:$0xf]  ;;  %v13729_v48 = vld [vmem:[%s18009_s6 + $0x7c4] sm:$0xf0] }
 0xc40   :  { %v5823_v17 = vadd.f32 %v5818_v51, %v17052_v28  ;;  %v13712_v28 = vld [vmem:[%s18009_s6 + $0x73c] sm:$0xf]  ;;  %v7464_v59 = vpack.c.b16 %v7452_v20, %v7452_v20  ;;  %v12562_v30 = vor.u32 %v13740_v4, %v12559_v61  ;;  %v12498_v20 = vld [vmem:[%s18009_s6 + $0x7c8] sm:$0xf0]  ;;  %v13727_v4 = vld [vmem:[%s18009_s6 + $0x7b4] sm:$0xf0] }
 0xc41   :  { %7383 = vmatpush.bf16.msrb.mxu0 %v12444_v1  ;;  %7396 = vmatpush.bf16.msrb.mxu1 %v12448_v18  ;;  %v2331_v1 = vadd.f32 %v14948_v52, %v2029_v21  ;;  %v12374_v18 = vld [vmem:[%s18009_s6 + $0x6f0] sm:$0xf]  ;;  %v17182_v3 = vpop.f32.mrf.mxu1  ;;  %v5807_v12 = vpop.f32.mrf.mxu2  ;;  %v12549_v21 = vld [vmem:[%s18009_s6 + $0x818] sm:$0xf]  ;;  %v13738_v51 = vld [vmem:[%s18009_s6 + $0x81c] sm:$0xf] }
 0xc42   :  { %v17164_v0 = vadd.f32 %v17037_v49, %v5823_v17  ;;  %v7451_v49 = vunpack.c.l.b16 %v12469_v44  ;;  %v12375_v60 = vor.u32 %v13705_v32, %v12374_v18  ;;  %v7209_v44 = vrot.slane %v16861_v50, 2  ;;  %v12543_v18 = vld [vmem:[%s18009_s6 + $0x810] sm:$0xf0]  ;;  %v12496_v32 = vld [vmem:[%s18009_s6 + $0x7c0] sm:$0xf] }
 0xc43   :  { %7277 = vmatpush.bf16.msrb.mxu2 %v12399_v26  ;;  %7290 = vmatpush.bf16.msrb.mxu3 %v12403_v54  ;;  %v2633_v52 = vadd.f32 %v15046_v2, %v2331_v1  ;;  %v12420_v26 = vor.u32 %v13713_v7, %v12419_v14  ;;  %v12424_v54 = vor.u32 %v13712_v28, %v12421_v46  ;;  %v13741_v2 = vld [vmem:[%s18009_s6 + $0x82c] sm:$0xf0]  ;;  %v13730_v14 = vld [vmem:[%s18009_s6 + $0x7d4] sm:$0xf]  ;;  %v13736_v1 = vld [vmem:[%s18009_s6 + $0x80c] sm:$0xf] }
 0xc44   :  { %v7463_v15 = vpack.c.b16 %v7451_v49, %v7451_v49  ;;  %v13737_v7 = vld [vmem:[%s18009_s6 + $0x80c] sm:$0xf0]  ;;  %v13728_v49 = vld [vmem:[%s18009_s6 + $0x7c4] sm:$0xf]  ;;  %v13735_v12 = vld [vmem:[%s18009_s6 + $0x7fc] sm:$0xf0] }
 0xc45   :  { %7384 = vmatpush.bf16.msrb.mxu0 %v12436_v13  ;;  %7397 = vmatpush.bf16.msrb.mxu1 %v12440_v10  ;;  %v2935_v33 = vadd.f32 %v15144_v38, %v2633_v52  ;;  %v12366_v13 = vld [vmem:[%s18009_s6 + $0x6e0] sm:$0xf]  ;;  %v13703_v38 = vld [vmem:[%s18009_s6 + $0x6e4] sm:$0xf0]  ;;  %v13702_v10 = vld [vmem:[%s18009_s6 + $0x6e4] sm:$0xf] }
 0xc46   :  { %v12367_v31 = vor.u32 %v13703_v38, %v12366_v13  ;;  %v12371_v23 = vor.u32 %v13702_v10, %v12368_v34  ;;  %v7479_v36 = vand.u32 %v7463_v15, %v15585_v22  ;;  %v13726_v34 = vld [vmem:[%s18009_s6 + $0x7b4] sm:$0xf]  ;;  %v12490_v15 = vld [vmem:[%s18009_s6 + $0x7b8] sm:$0xf0] }
 0xc47   :  { %7278 = vmatpush.bf16.msrb.mxu2 %v12391_v42  ;;  %7291 = vmatpush.bf16.msrb.mxu3 %v12395_v37  ;;  %v5820_v45 = vpop.f32.mrf.mxu3  ;;  %v3237_v56 = vadd.f32 %v15242_v8, %v2935_v33  ;;  %v7314_v42 = vrot.slane %v16890_v43, 2  ;;  %v12558_v37 = vor.u32 %v13741_v2, %v12557_v5  ;;  %v13739_v8 = vld [vmem:[%s18009_s6 + $0x81c] sm:$0xf0]  ;;  %v6126_v17 = vpop.f32.mrf.mxu0  ;;  %v12546_v33 = vor.u32 %v13736_v1, %v12543_v18 }
 0xc48   :  { %v12550_v46 = vor.u32 %v13739_v8, %v12549_v21  ;;  %v13734_v45 = vld [vmem:[%s18009_s6 + $0x7fc] sm:$0xf]  ;;  %v12482_v17 = vld [vmem:[%s18009_s6 + $0x7a8] sm:$0xf0] }
 0xc49   :  { %7385 = vmatpush.bf16.msrb.mxu0 %v12428_v25  ;;  %7398 = vmatpush.bf16.msrb.mxu1 %v12432_v41  ;;  %v3539_v53 = vadd.f32 %v15340_v16, %v3237_v56  ;;  %v7482_v16 = vand.u32 %v7464_v59, %v15585_v22  ;;  %v12551_v25 = vld [vmem:[%s18009_s6 + $0x820] sm:$0xf0]  ;;  %v12504_v41 = vld [vmem:[%s18009_s6 + $0x7d0] sm:$0xf] }
 0xc4a   :  { %v12554_v9 = vor.u32 %v13738_v51, %v12551_v25  ;;  %v12480_v51 = vld [vmem:[%s18009_s6 + $0x7a0] sm:$0xf]  ;;  %v5072_v25 = vpop.permute.xlu2 %5071 }
 0xc4b   :  { %7279 = vmatpush.bf16.msrb.mxu2 %v12383_v19  ;;  %7292 = vmatpush.bf16.msrb.mxu3 %v12387_v47  ;;  %v3841_v57 = vadd.f32 %v15438_v27, %v3539_v53  ;;  %v6139_v19 = vpop.f32.mrf.mxu1  ;;  %v13731_v47 = vld [vmem:[%s18009_s6 + $0x7d4] sm:$0xf0]  ;;  %v12541_v27 = vld [vmem:[%s18009_s6 + $0x808] sm:$0xf]  ;;  %v13732_v53 = vld [vmem:[%s18009_s6 + $0x7ec] sm:$0xf] }
 0xc4c   :  { %v12505_v6 = vor.u32 %v13731_v47, %v12504_v41  ;;  %v13725_v41 = vld [vmem:[%s18009_s6 + $0x7a4] sm:$0xf0] }
 0xc4d   :  { %7386 = vmatpush.bf16.msrb.mxu0 %v12420_v26  ;;  %7399 = vmatpush.bf16.msrb.mxu1 %v12424_v54  ;;  %v4143_v28 = vadd.f32 %v15507_v55, %v3841_v57  ;;  %v12509_v55 = vor.u32 %v13730_v14, %v12506_v11  ;;  %v6014_v26 = vpop.f32.mrf.mxu2  ;;  %v13724_v57 = vld [vmem:[%s18009_s6 + $0x7a4] sm:$0xf]  ;;  %v12481_v1 = vor.u32 %v13725_v41, %v12480_v51 }
 0xc4e   :  { %v6031_v5 = vadd.f32 %v6014_v26, %v17161_v40  ;;  %v12535_v40 = vld [vmem:[%s18009_s6 + $0x800] sm:$0xf0]  ;;  %v12485_v18 = vor.u32 %v13724_v57, %v12482_v17 }
 0xc4f   :  { %7280 = vmatpush.bf16.msrb.mxu2 %v12375_v60  ;;  %7293 = vmatpush.bf16.msrb.mxu3 %v12379_v62  ;;  %v4445_v52 = vadd.f32 %v15549_v29, %v4143_v28  ;;  %v6027_v54 = vpop.f32.mrf.mxu3  ;;  %v12497_v60 = vor.u32 %v13729_v48, %v12496_v32  ;;  %v12501_v29 = vor.u32 %v13728_v49, %v12498_v20  ;;  %v12533_v62 = vld [vmem:[%s18009_s6 + $0x7f8] sm:$0xf]  ;;  %v13760_v32 = vld [vmem:[%s18009_s6 + $0x8dc] sm:$0xf]  ;;  %v13722_v49 = vld [vmem:[%s18009_s6 + $0x794] sm:$0xf] }
 0xc50   :  { %12457 = vmatmul.msk.bf16.vlgmr.msrb.gmra.mxu0 %vm5170_vm3, %v7314_v42  ;;  %12458 = vmatmul.msk.bf16.vlgmr.msrb.gmra.mxu1 %vm5170_vm3, %v7314_v42  ;;  %v6032_v2 = vadd.f32 %v6027_v54, %v17164_v0  ;;  %v12488_v0 = vld [vmem:[%s18009_s6 + $0x7b0] sm:$0xf]  ;;  %v17296_v38 = vadd.f32 %v17180_v39, %v6031_v5  ;;  %v12534_v56 = vor.u32 %v13735_v12, %v12533_v62  ;;  %v12525_v39 = vld [vmem:[%s18009_s6 + $0x7e8] sm:$0xf]  ;;  %v12663_v28 = vld [vmem:[%s18009_s6 + $0x8d8] sm:$0xf] }
 0xc51   :  { %7591 = vmatpush.bf16.msra.mxu0 %v7584_v63  ;;  %7604 = vmatpush.bf16.msra.mxu1 %v7587_v24  ;;  %v12628_v63 = vld [vmem:[%s18009_s6 + $0x8e8] sm:$0x11]  ;;  %v12542_v24 = vor.u32 %v13737_v7, %v12541_v27  ;;  %v4747_v59 = vadd.f32 %v15576_v35, %v4445_v52  ;;  %v12538_v42 = vor.u32 %v13734_v45, %v12535_v40  ;;  %v13733_v35 = vld [vmem:[%s18009_s6 + $0x7ec] sm:$0xf0]  ;;  %v13723_v48 = vld [vmem:[%s18009_s6 + $0x794] sm:$0xf0] }
 0xc52   :  { %v7770_v61 = vunpack.c.l.b16 %v12628_v63  ;;  %v7771_v13 = vunpack.c.h.b16 %v12628_v63  ;;  %v17299_v10 = vadd.f32 %v17182_v3, %v6032_v2  ;;  %v12575_v3 = vld [vmem:[%s18009_s6 + $0x890] sm:$0x11]  ;;  %v12526_v47 = vor.u32 %v13733_v35, %v12525_v39  ;;  %v12474_v20 = vld [vmem:[%s18009_s6 + $0x798] sm:$0xf0]  ;;  %v13758_v12 = vld [vmem:[%s18009_s6 + $0x8cc] sm:$0xf] }
 0xc53   :  { %7281 = vmatpush.bf16.msrb.mxu2 %v12367_v31  ;;  %7294 = vmatpush.bf16.msrb.mxu3 %v12371_v23  ;;  %v12527_v31 = vld [vmem:[%s18009_s6 + $0x7f0] sm:$0xf0]  ;;  %v5049_v8 = vadd.f32 %v16651_v58, %v4747_v59  ;;  %v7660_v58 = vunpack.c.l.b16 %v12575_v3  ;;  %v7661_v19 = vunpack.c.h.b16 %v12575_v3  ;;  %v7524_v54 = vrot.slane %v16890_v43, 3  ;;  %v12610_v40 = vld [vmem:[%s18009_s6 + $0x880] sm:$0xf] }
 0xc54   :  { %v7782_v23 = vpack.c.b16 %v7770_v61, %v7770_v61  ;;  %v7783_v21 = vpack.c.b16 %v7771_v13, %v7771_v13  ;;  %v12530_v14 = vor.u32 %v13732_v53, %v12527_v31  ;;  %v12657_v45 = vld [vmem:[%s18009_s6 + $0x8d0] sm:$0xf0]  ;;  %v13751_v61 = vld [vmem:[%s18009_s6 + $0x884] sm:$0xf0]  ;;  %v13750_v13 = vld [vmem:[%s18009_s6 + $0x884] sm:$0xf] }
 0xc55   :  { %7592 = vmatpush.bf16.msra.mxu0 %v12558_v37  ;;  %7605 = vmatpush.bf16.msra.mxu1 %v12562_v30  ;;  %v12489_v37 = vor.u32 %v13727_v4, %v12488_v0  ;;  %v12493_v30 = vor.u32 %v13726_v34, %v12490_v15  ;;  %v17336_v11 = vpop.f32.mrf.mxu0  ;;  %v7672_v52 = vpack.c.b16 %v7660_v58, %v7660_v58  ;;  %v12612_v34 = vld [vmem:[%s18009_s6 + $0x888] sm:$0xf0]  ;;  %v7419_v15 = vrot.slane %v16861_v50, 3  ;;  %v12647_v59 = vld [vmem:[%s18009_s6 + $0x8b8] sm:$0xf] }
 0xc56   :  { %12404 = vmatmul.msk.bf16.vlgmr.msrb.gmra.mxu2 %vm5170_vm3, %v7209_v44  ;;  %12405 = vmatmul.msk.bf16.vlgmr.msrb.gmra.mxu3 %vm5170_vm3, %v7209_v44  ;;  %v17338_v44 = vpop.f32.mrf.mxu1  ;;  %v7798_v27 = vand.u32 %v7782_v23, %v15585_v22  ;;  %v7801_v7 = vand.u32 %v7783_v21, %v15585_v22  ;;  %v7673_v26 = vpack.c.b16 %v7661_v19, %v7661_v19  ;;  %v13756_v39 = vld [vmem:[%s18009_s6 + $0x8bc] sm:$0xf]  ;;  %v12649_v50 = vld [vmem:[%s18009_s6 + $0x8c0] sm:$0xf0]  ;;  %v12602_v3 = vld [vmem:[%s18009_s6 + $0x870] sm:$0xf] }
 0xc57   :  { %7486 = vmatpush.bf16.msra.mxu2 %v7479_v36  ;;  %7499 = vmatpush.bf16.msra.mxu3 %v7482_v16  ;;  %v6016_v36 = vpop.f32.mrf.mxu2  ;;  %v6029_v16 = vpop.f32.mrf.mxu3  ;;  %v7688_v43 = vand.u32 %v7672_v52, %v15585_v22  ;;  %v12615_v35 = vor.u32 %v13750_v13, %v12612_v34  ;;  %v13749_v53 = vld [vmem:[%s18009_s6 + $0x874] sm:$0xf0]  ;;  %v13748_v31 = vld [vmem:[%s18009_s6 + $0x874] sm:$0xf]  ;;  %v12604_v23 = vld [vmem:[%s18009_s6 + $0x878] sm:$0xf0]  ;;  %v12652_v57 = vor.u32 %v13756_v39, %v12649_v50 }
 0xc58   :  { %v7691_v62 = vand.u32 %v7673_v26, %v15585_v22  ;;  %v12734_v16 = vld [vmem:[%s18009_s6 + $0x998] sm:$0x11]  ;;  %v12603_v17 = vor.u32 %v13749_v53, %v12602_v3  ;;  %v12607_v58 = vor.u32 %v13748_v31, %v12604_v23  ;;  %v12639_v19 = vld [vmem:[%s18009_s6 + $0x8a8] sm:$0xf]  ;;  %v12633_v26 = vld [vmem:[%s18009_s6 + $0x8a0] sm:$0xf0] }
 0xc59   :  { %7593 = vmatpush.bf16.msra.mxu0 %v12550_v46  ;;  %7606 = vmatpush.bf16.msra.mxu1 %v12554_v9  ;;  %v13761_v46 = vld [vmem:[%s18009_s6 + $0x8dc] sm:$0xf0]  ;;  %v5077_v9 = vadd.f32 %v5072_v25, %v5049_v8  ;;  %v13752_v52 = vld [vmem:[%s18009_s6 + $0x89c] sm:$0xf]  ;;  %v12769_v34 = vld [vmem:[%s18009_s6 + $0x988] sm:$0xf] }
 0xc5a   :  { %v12664_v63 = vor.u32 %v13761_v46, %v12663_v28  ;;  %v7981_v28 = vunpack.c.h.b16 %v12734_v16  ;;  %v12578_v39 = vld [vmem:[%s18009_s6 + $0x840] sm:$0xf]  ;;  %v13743_v50 = vld [vmem:[%s18009_s6 + $0x844] sm:$0xf0]  ;;  %v13742_v3 = vld [vmem:[%s18009_s6 + $0x844] sm:$0xf] }
 0xc5b   :  { %7487 = vmatpush.bf16.msra.mxu2 %v12505_v6  ;;  %7500 = vmatpush.bf16.msra.mxu3 %v12509_v55  ;;  %v12665_v6 = vld [vmem:[%s18009_s6 + $0x8e0] sm:$0xf0]  ;;  %v12472_v55 = vld [vmem:[%s18009_s6 + $0x790] sm:$0xf]  ;;  %v5081_v5 = vmax.f32 %v5077_v9, 0.0 }
 0xc5c   :  { %v12473_v2 = vor.u32 %v13723_v48, %v12472_v55 }
 0xc5d   :  { %7594 = vmatpush.bf16.msra.mxu0 %v12542_v24  ;;  %7607 = vmatpush.bf16.msra.mxu1 %v12546_v33  ;;  %v12668_v24 = vor.u32 %v13760_v32, %v12665_v6  ;;  %v12477_v33 = vor.u32 %v13722_v49, %v12474_v20  ;;  %v6336_v0 = vpop.f32.mrf.mxu0  ;;  %v17420_v21 = vpack.c.bf16 %v5081_v5, %v5081_v5  ;;  %v13753_v20 = vld [vmem:[%s18009_s6 + $0x89c] sm:$0xf0] }
 0xc5e   :  { %v6349_v4 = vpop.f32.mrf.mxu1 }
 0xc5f   :  { %7488 = vmatpush.bf16.msra.mxu2 %v12497_v60  ;;  %7501 = vmatpush.bf16.msra.mxu3 %v12501_v29  ;;  %v12655_v60 = vld [vmem:[%s18009_s6 + $0x8c8] sm:$0xf]  ;;  %v13759_v29 = vld [vmem:[%s18009_s6 + $0x8cc] sm:$0xf0]  ;;  %v7734_v48 = vunpack.c.l.b16 %v17420_v21 }
 0xc61   :  { %7595 = vmatpush.bf16.msra.mxu0 %v12534_v56  ;;  %7608 = vmatpush.bf16.msra.mxu1 %v12538_v42  ;;  %v13757_v56 = vld [vmem:[%s18009_s6 + $0x8bc] sm:$0xf0]  ;;  %v12656_v42 = vor.u32 %v13759_v29, %v12655_v60  ;;  %v6229_v8 = vpop.f32.mrf.mxu2  ;;  %v6242_v36 = vpop.f32.mrf.mxu3  ;;  %v13744_v60 = vld [vmem:[%s18009_s6 + $0x854] sm:$0xf]  ;;  %v12588_v29 = vld [vmem:[%s18009_s6 + $0x858] sm:$0xf0]  ;;  %v17491_v4 = vpack.c.b16 %v7734_v48, %v7734_v48 }
 0xc62   :  { %v12648_v51 = vor.u32 %v13757_v56, %v12647_v59  ;;  %v6246_v25 = vadd.f32 %v6229_v8, %v17296_v38  ;;  %v6247_v41 = vadd.f32 %v6242_v36, %v17299_v10  ;;  %v12641_v38 = vld [vmem:[%s18009_s6 + $0x8b0] sm:$0xf0]  ;;  %v12594_v10 = vld [vmem:[%s18009_s6 + $0x860] sm:$0xf]  ;;  %v12591_v56 = vor.u32 %v13744_v60, %v12588_v29  ;;  %v13769_v48 = vld [vmem:[%s18009_s6 + $0x924] sm:$0xf0] }
 0xc63   :  { %7489 = vmatpush.bf16.msra.mxu2 %v12489_v37  ;;  %7502 = vmatpush.bf16.msra.mxu3 %v12493_v30  ;;  %v12660_v37 = vor.u32 %v13758_v12, %v12657_v45  ;;  %v12611_v30 = vor.u32 %v13751_v61, %v12610_v40  ;;  %v12636_v45 = vor.u32 %v13752_v52, %v12633_v26  ;;  %v17520_v31 = vshrl.u32 %v17491_v4, 16  ;;  %v12745_v29 = vld [vmem:[%s18009_s6 + $0x958] sm:$0xf] }
 0xc64   :  { %v17448_v46 = vadd.f32 %v17336_v11, %v6246_v25  ;;  %v17451_v9 = vadd.f32 %v17338_v44, %v6247_v41  ;;  %v12631_v11 = vld [vmem:[%s18009_s6 + $0x898] sm:$0xf]  ;;  %v12681_v44 = vld [vmem:[%s18009_s6 + $0x940] sm:$0x11]  ;;  %v12579_v36 = vor.u32 %v13743_v50, %v12578_v39  ;;  %v13773_v39 = vld [vmem:[%s18009_s6 + $0x94c] sm:$0xf0] }
 0xc65   :  { %7596 = vmatpush.bf16.msra.mxu0 %v12526_v47  ;;  %7609 = vmatpush.bf16.msra.mxu1 %v12530_v14  ;;  %v13755_v47 = vld [vmem:[%s18009_s6 + $0x8ac] sm:$0xf0]  ;;  %v13754_v14 = vld [vmem:[%s18009_s6 + $0x8ac] sm:$0xf]  ;;  %v12632_v12 = vor.u32 %v13753_v20, %v12631_v11  ;;  %v13779_v25 = vld [vmem:[%s18009_s6 + $0x97c] sm:$0xf0] }
 0xc66   :  { %v12640_v32 = vor.u32 %v13755_v47, %v12639_v19  ;;  %v12644_v6 = vor.u32 %v13754_v14, %v12641_v38  ;;  %v12716_v19 = vld [vmem:[%s18009_s6 + $0x930] sm:$0xf]  ;;  %v13771_v38 = vld [vmem:[%s18009_s6 + $0x934] sm:$0xf0]  ;;  %v12710_v20 = vld [vmem:[%s18009_s6 + $0x928] sm:$0xf0] }
 0xc67   :  { %7490 = vmatpush.bf16.msra.mxu2 %v12481_v1  ;;  %7503 = vmatpush.bf16.msra.mxu3 %v12485_v18  ;;  %v13746_v1 = vld [vmem:[%s18009_s6 + $0x864] sm:$0xf]  ;;  %v12596_v18 = vld [vmem:[%s18009_s6 + $0x868] sm:$0xf0]  ;;  %v12717_v11 = vor.u32 %v13771_v38, %v12716_v19  ;;  %v12875_v38 = vld [vmem:[%s18009_s6 + $0xa38] sm:$0xf] }
 0xc68   :  { %12563 = vmatmul.msk.bf16.vlgmr.msra.gmra.mxu0 %vm5170_vm3, %v7524_v54  ;;  %12564 = vmatmul.msk.bf16.vlgmr.msra.gmra.mxu1 %vm5170_vm3, %v7524_v54  ;;  %v12599_v49 = vor.u32 %v13746_v1, %v12596_v18  ;;  %v13772_v50 = vld [vmem:[%s18009_s6 + $0x94c] sm:$0xf] }
 0xc69   :  { %7805 = vmatpush.bf16.msrb.mxu0 %v7798_v27  ;;  %7818 = vmatpush.bf16.msrb.mxu1 %v7801_v7  ;;  %v13747_v27 = vld [vmem:[%s18009_s6 + $0x864] sm:$0xf0]  ;;  %v7980_v7 = vunpack.c.l.b16 %v12734_v16  ;;  %v6244_v5 = vpop.f32.mrf.mxu3 }
 0xc6a   :  { %v12595_v55 = vor.u32 %v13747_v27, %v12594_v10  ;;  %v13770_v10 = vld [vmem:[%s18009_s6 + $0x934] sm:$0xf]  ;;  %v12718_v27 = vld [vmem:[%s18009_s6 + $0x938] sm:$0xf0] }
 0xc6b   :  { %7491 = vmatpush.bf16.msra.mxu2 %v12473_v2  ;;  %7504 = vmatpush.bf16.msra.mxu3 %v12477_v33  ;;  %v7992_v54 = vpack.c.b16 %v7980_v7, %v7980_v7  ;;  %v12586_v2 = vld [vmem:[%s18009_s6 + $0x850] sm:$0xf]  ;;  %v13745_v33 = vld [vmem:[%s18009_s6 + $0x854] sm:$0xf0]  ;;  %v12753_v7 = vld [vmem:[%s18009_s6 + $0x968] sm:$0xf] }
 0xc6c   :  { %v12587_v59 = vor.u32 %v13745_v33, %v12586_v2 }
 0xc6d   :  { %7806 = vmatpush.bf16.msrb.mxu0 %v12664_v63  ;;  %7819 = vmatpush.bf16.msrb.mxu1 %v12668_v24  ;;  %v7993_v63 = vpack.c.b16 %v7981_v28, %v7981_v28  ;;  %v6231_v24 = vpop.f32.mrf.mxu2  ;;  %v17487_v40 = vpop.f32.mrf.mxu0  ;;  %v8008_v61 = vand.u32 %v7992_v54, %v15585_v22  ;;  %v13777_v28 = vld [vmem:[%s18009_s6 + $0x96c] sm:$0xf0]  ;;  %v12840_v54 = vld [vmem:[%s18009_s6 + $0xa48] sm:$0x11] }
 0xc6e   :  { %12510 = vmatmul.msk.bf16.vlgmr.msra.gmra.mxu2 %vm5170_vm3, %v7419_v15  ;;  %12511 = vmatmul.msk.bf16.vlgmr.msra.gmra.mxu3 %vm5170_vm3, %v7419_v15  ;;  %v17489_v0 = vpop.f32.mrf.mxu1  ;;  %v13781_v15 = vld [vmem:[%s18009_s6 + $0x98c] sm:$0xf0] }
 0xc6f   :  { %7695 = vmatpush.bf16.msrb.mxu2 %v7688_v43  ;;  %7708 = vmatpush.bf16.msrb.mxu3 %v7691_v62  ;;  %v7875_v43 = vunpack.c.l.b16 %v12681_v44  ;;  %v7876_v62 = vunpack.c.h.b16 %v12681_v44  ;;  %v8011_v13 = vand.u32 %v7993_v63, %v15585_v22  ;;  %v12770_v23 = vor.u32 %v13781_v15, %v12769_v34  ;;  %v13766_v34 = vld [vmem:[%s18009_s6 + $0x914] sm:$0xf]  ;;  %v12702_v15 = vld [vmem:[%s18009_s6 + $0x918] sm:$0xf0] }
 0xc70   :  { %v12721_v44 = vor.u32 %v13770_v10, %v12718_v27  ;;  %v12754_v63 = vor.u32 %v13777_v28, %v12753_v7  ;;  %v13801_v10 = vld [vmem:[%s18009_s6 + $0xa3c] sm:$0xf0]  ;;  %v13800_v28 = vld [vmem:[%s18009_s6 + $0xa3c] sm:$0xf] }
 0xc71   :  { %7807 = vmatpush.bf16.msrb.mxu0 %v12656_v42  ;;  %7820 = vmatpush.bf16.msrb.mxu1 %v12660_v37  ;;  %v13780_v42 = vld [vmem:[%s18009_s6 + $0x98c] sm:$0xf]  ;;  %v12771_v37 = vld [vmem:[%s18009_s6 + $0x990] sm:$0xf0]  ;;  %v7888_v53 = vpack.c.b16 %v7876_v62, %v7876_v62  ;;  %v13767_v62 = vld [vmem:[%s18009_s6 + $0x914] sm:$0xf0] }
 0xc72   :  { %v12774_v8 = vor.u32 %v13780_v42, %v12771_v37  ;;  %v12705_v37 = vor.u32 %v13766_v34, %v12702_v15 }
 0xc73   :  { %7696 = vmatpush.bf16.msrb.mxu2 %v12611_v30  ;;  %7709 = vmatpush.bf16.msrb.mxu3 %v12615_v35  ;;  %v12580_v30 = vld [vmem:[%s18009_s6 + $0x848] sm:$0xf0]  ;;  %v7887_v35 = vpack.c.b16 %v7875_v43, %v7875_v43  ;;  %v13775_v43 = vld [vmem:[%s18009_s6 + $0x95c] sm:$0xf0] }
 0xc74   :  { %v12583_v16 = vor.u32 %v13742_v3, %v12580_v30  ;;  %v12739_v3 = vld [vmem:[%s18009_s6 + $0x950] sm:$0xf0] }
 0xc75   :  { %7808 = vmatpush.bf16.msrb.mxu0 %v12648_v51  ;;  %7821 = vmatpush.bf16.msrb.mxu1 %v12652_v57  ;;  %v12761_v51 = vld [vmem:[%s18009_s6 + $0x978] sm:$0xf]  ;;  %v7903_v41 = vand.u32 %v7887_v35, %v15585_v22  ;;  %v7906_v57 = vand.u32 %v7888_v53, %v15585_v22  ;;  %v6546_v47 = vpop.f32.mrf.mxu0 }
 0xc76   :  { %v6559_v14 = vpop.f32.mrf.mxu1  ;;  %v12762_v1 = vor.u32 %v13779_v25, %v12761_v51  ;;  %v12694_v51 = vld [vmem:[%s18009_s6 + $0x908] sm:$0xf0] }
 0xc77   :  { %7697 = vmatpush.bf16.msrb.mxu2 %v12603_v17  ;;  %7710 = vmatpush.bf16.msrb.mxu3 %v12607_v58  ;;  %v13778_v17 = vld [vmem:[%s18009_s6 + $0x97c] sm:$0xf]  ;;  %v12763_v58 = vld [vmem:[%s18009_s6 + $0x980] sm:$0xf0] }
 0xc78   :  { %v12766_v18 = vor.u32 %v13778_v17, %v12763_v58  ;;  %v12742_v17 = vor.u32 %v13772_v50, %v12739_v3  ;;  %v12816_v50 = vld [vmem:[%s18009_s6 + $0x9d8] sm:$0xf0] }
 0xc79   :  { %7809 = vmatpush.bf16.msrb.mxu0 %v12640_v32  ;;  %7822 = vmatpush.bf16.msrb.mxu1 %v12644_v6  ;;  %v13776_v32 = vld [vmem:[%s18009_s6 + $0x96c] sm:$0xf]  ;;  %v12755_v6 = vld [vmem:[%s18009_s6 + $0x970] sm:$0xf0]  ;;  %v6439_v52 = vpop.f32.mrf.mxu2  ;;  %v6452_v26 = vpop.f32.mrf.mxu3 }
 0xc7a   :  { %v6456_v24 = vadd.f32 %v6439_v52, %v17448_v46  ;;  %v6457_v5 = vadd.f32 %v6452_v26, %v17451_v9  ;;  %v12758_v2 = vor.u32 %v13776_v32, %v12755_v6  ;;  %v12747_v46 = vld [vmem:[%s18009_s6 + $0x960] sm:$0xf0]  ;;  %v12700_v9 = vld [vmem:[%s18009_s6 + $0x910] sm:$0xf]  ;;  %v13763_v32 = vld [vmem:[%s18009_s6 + $0x8f4] sm:$0xf0] }
 0xc7b   :  { %7698 = vmatpush.bf16.msrb.mxu2 %v12595_v55  ;;  %7711 = vmatpush.bf16.msrb.mxu3 %v12599_v49  ;;  %v12708_v55 = vld [vmem:[%s18009_s6 + $0x920] sm:$0xf]  ;;  %v13768_v49 = vld [vmem:[%s18009_s6 + $0x924] sm:$0xf]  ;;  %v12701_v42 = vor.u32 %v13767_v62, %v12700_v9  ;;  %v13762_v6 = vld [vmem:[%s18009_s6 + $0x8f4] sm:$0xf] }
 0xc7c   :  { %v12709_v33 = vor.u32 %v13769_v48, %v12708_v55  ;;  %v12713_v60 = vor.u32 %v13768_v49, %v12710_v20  ;;  %v12686_v55 = vld [vmem:[%s18009_s6 + $0x8f8] sm:$0xf0]  ;;  %v7948_v48 = vrot.slane %v17520_v31, 1  ;;  %v12876_v49 = vor.u32 %v13801_v10, %v12875_v38  ;;  %v12824_v9 = vld [vmem:[%s18009_s6 + $0x9e8] sm:$0xf0] }
 0xc7d   :  { %7810 = vmatpush.bf16.msrb.mxu0 %v12632_v12  ;;  %7823 = vmatpush.bf16.msrb.mxu1 %v12636_v45  ;;  %v8190_v12 = vunpack.c.l.b16 %v12840_v54  ;;  %v8191_v45 = vunpack.c.h.b16 %v12840_v54  ;;  %v12689_v26 = vor.u32 %v13762_v6, %v12686_v55  ;;  %v12867_v54 = vld [vmem:[%s18009_s6 + $0xa28] sm:$0xf]  ;;  %v7843_v62 = vrot.slane %v17491_v4, 1  ;;  %v13793_v6 = vld [vmem:[%s18009_s6 + $0x9fc] sm:$0xf0] }
 0xc7e   :  { %v13792_v55 = vld [vmem:[%s18009_s6 + $0x9fc] sm:$0xf] }
 0xc7f   :  { %7699 = vmatpush.bf16.msrb.mxu2 %v12587_v59  ;;  %7712 = vmatpush.bf16.msrb.mxu3 %v12591_v56  ;;  %v12746_v59 = vor.u32 %v13775_v43, %v12745_v29  ;;  %v8202_v30 = vpack.c.b16 %v8190_v12, %v8190_v12  ;;  %v8203_v35 = vpack.c.b16 %v8191_v45, %v8191_v45  ;;  %v12859_v12 = vld [vmem:[%s18009_s6 + $0xa18] sm:$0xf]  ;;  %v13797_v45 = vld [vmem:[%s18009_s6 + $0xa1c] sm:$0xf0] }
 0xc80   :  { %12669 = vmatmul.msk.bf16.vlgmr.msrb.gmra.mxu0 %vm5170_vm3, %v17520_v31  ;;  %12670 = vmatmul.msk.bf16.vlgmr.msrb.gmra.mxu1 %vm5170_vm3, %v17520_v31 }
 0xc81   :  { %8015 = vmatpush.bf16.msra.mxu0 %v8008_v61  ;;  %8028 = vmatpush.bf16.msra.mxu1 %v8011_v13  ;;  %v17604_v61 = vadd.f32 %v17487_v40, %v6456_v24  ;;  %v17607_v13 = vadd.f32 %v17489_v0, %v6457_v5  ;;  %v12737_v40 = vld [vmem:[%s18009_s6 + $0x948] sm:$0xf]  ;;  %v12787_v0 = vld [vmem:[%s18009_s6 + $0x9f0] sm:$0x11]  ;;  %v6441_v53 = vpop.f32.mrf.mxu2  ;;  %v8218_v47 = vand.u32 %v8202_v30, %v15585_v22 }
 0xc82   :  { %v8085_v25 = vunpack.c.l.b16 %v12787_v0  ;;  %v8221_v14 = vand.u32 %v8203_v35, %v15585_v22  ;;  %v12946_v35 = vld [vmem:[%s18009_s6 + $0xaf8] sm:$0x11]  ;;  %v12860_v53 = vor.u32 %v13797_v45, %v12859_v12  ;;  %v13820_v45 = vld [vmem:[%s18009_s6 + $0xaec] sm:$0xf] }
 0xc83   :  { %7700 = vmatpush.bf16.msrb.mxu2 %v12579_v36  ;;  %7713 = vmatpush.bf16.msrb.mxu3 %v12583_v16  ;;  %v13765_v36 = vld [vmem:[%s18009_s6 + $0x904] sm:$0xf0]  ;;  %v13764_v16 = vld [vmem:[%s18009_s6 + $0x904] sm:$0xf] }
 0xc84   :  { %v12697_v7 = vor.u32 %v13764_v16, %v12694_v51 }
 0xc85   :  { %8016 = vmatpush.bf16.msra.mxu0 %v12770_v23  ;;  %8029 = vmatpush.bf16.msra.mxu1 %v12774_v8  ;;  %v6454_v23 = vpop.f32.mrf.mxu3  ;;  %v12692_v8 = vld [vmem:[%s18009_s6 + $0x900] sm:$0xf]  ;;  %v17642_v58 = vpop.f32.mrf.mxu0 }
 0xc86   :  { %12616 = vmatmul.msk.bf16.vlgmr.msrb.gmra.mxu2 %vm5170_vm3, %v17420_v21  ;;  %12617 = vmatmul.msk.bf16.vlgmr.msrb.gmra.mxu3 %vm5170_vm3, %v17420_v21  ;;  %v13774_v21 = vld [vmem:[%s18009_s6 + $0x95c] sm:$0xf]  ;;  %v17644_v19 = vpop.f32.mrf.mxu1  ;;  %v12693_v27 = vor.u32 %v13765_v36, %v12692_v8 }
 0xc87   :  { %7910 = vmatpush.bf16.msra.mxu2 %v7903_v41  ;;  %7923 = vmatpush.bf16.msra.mxu3 %v7906_v57  ;;  %v12750_v56 = vor.u32 %v13774_v21, %v12747_v46  ;;  %v8086_v41 = vunpack.c.h.b16 %v12787_v0  ;;  %v12738_v57 = vor.u32 %v13773_v39, %v12737_v40  ;;  %v13791_v21 = vld [vmem:[%s18009_s6 + $0x9e4] sm:$0xf0]  ;;  %v13790_v46 = vld [vmem:[%s18009_s6 + $0x9e4] sm:$0xf]  ;;  %v13788_v39 = vld [vmem:[%s18009_s6 + $0x9d4] sm:$0xf] }
 0xc88   :  { %v12827_v0 = vor.u32 %v13790_v46, %v12824_v9  ;;  %v12819_v51 = vor.u32 %v13788_v39, %v12816_v50  ;;  %v12981_v46 = vld [vmem:[%s18009_s6 + $0xae8] sm:$0xf]  ;;  %v13821_v9 = vld [vmem:[%s18009_s6 + $0xaec] sm:$0xf0] }
 0xc89   :  { %8017 = vmatpush.bf16.msra.mxu0 %v12762_v1  ;;  %8030 = vmatpush.bf16.msra.mxu1 %v12766_v18  ;;  %v12877_v1 = vld [vmem:[%s18009_s6 + $0xa40] sm:$0xf0]  ;;  %v12684_v18 = vld [vmem:[%s18009_s6 + $0x8f0] sm:$0xf]  ;;  %v12982_v39 = vor.u32 %v13821_v9, %v12981_v46 }
 0xc8a   :  { %v12880_v20 = vor.u32 %v13800_v28, %v12877_v1  ;;  %v12685_v52 = vor.u32 %v13763_v32, %v12684_v18 }
 0xc8b   :  { %7911 = vmatpush.bf16.msra.mxu2 %v12717_v11  ;;  %7924 = vmatpush.bf16.msra.mxu3 %v12721_v44  ;;  %v8097_v11 = vpack.c.b16 %v8085_v25, %v8085_v25  ;;  %v8098_v44 = vpack.c.b16 %v8086_v41, %v8086_v41  ;;  %v12851_v25 = vld [vmem:[%s18009_s6 + $0xa08] sm:$0xf]  ;;  %v13795_v41 = vld [vmem:[%s18009_s6 + $0xa0c] sm:$0xf0] }
 0xc8c   :  { %v12852_v28 = vor.u32 %v13795_v41, %v12851_v25 }
 0xc8d   :  { %8018 = vmatpush.bf16.msra.mxu0 %v12754_v63  ;;  %8031 = vmatpush.bf16.msra.mxu1 %v12758_v2  ;;  %v13799_v63 = vld [vmem:[%s18009_s6 + $0xa2c] sm:$0xf0]  ;;  %v8113_v24 = vand.u32 %v8097_v11, %v15585_v22  ;;  %v8116_v5 = vand.u32 %v8098_v44, %v15585_v22  ;;  %v13798_v2 = vld [vmem:[%s18009_s6 + $0xa2c] sm:$0xf]  ;;  %v6756_v29 = vpop.f32.mrf.mxu0  ;;  %v12845_v11 = vld [vmem:[%s18009_s6 + $0xa00] sm:$0xf0] }
 0xc8e   :  { %v6769_v43 = vpop.f32.mrf.mxu1  ;;  %v12868_v34 = vor.u32 %v13799_v63, %v12867_v54  ;;  %v13784_v54 = vld [vmem:[%s18009_s6 + $0x9b4] sm:$0xf]  ;;  %v12800_v63 = vld [vmem:[%s18009_s6 + $0x9b8] sm:$0xf0] }
 0xc8f   :  { %7912 = vmatpush.bf16.msra.mxu2 %v12709_v33  ;;  %7925 = vmatpush.bf16.msra.mxu3 %v12713_v60  ;;  %v12869_v33 = vld [vmem:[%s18009_s6 + $0xa30] sm:$0xf0]  ;;  %v12822_v60 = vld [vmem:[%s18009_s6 + $0x9e0] sm:$0xf]  ;;  %v12803_v12 = vor.u32 %v13784_v54, %v12800_v63 }
 0xc90   :  { %v12872_v15 = vor.u32 %v13798_v2, %v12869_v33  ;;  %v12823_v40 = vor.u32 %v13791_v21, %v12822_v60  ;;  %v12848_v33 = vor.u32 %v13792_v55, %v12845_v11  ;;  %v13808_v55 = vld [vmem:[%s18009_s6 + $0xa84] sm:$0xf]  ;;  %v12922_v11 = vld [vmem:[%s18009_s6 + $0xa88] sm:$0xf0]  ;;  %v13815_v54 = vld [vmem:[%s18009_s6 + $0xabc] sm:$0xf0] }
 0xc91   :  { %8019 = vmatpush.bf16.msra.mxu0 %v12746_v59  ;;  %8032 = vmatpush.bf16.msra.mxu1 %v12750_v56  ;;  %v13796_v59 = vld [vmem:[%s18009_s6 + $0xa1c] sm:$0xf]  ;;  %v12861_v56 = vld [vmem:[%s18009_s6 + $0xa20] sm:$0xf0]  ;;  %v6649_v3 = vpop.f32.mrf.mxu2  ;;  %v6662_v30 = vpop.f32.mrf.mxu3  ;;  %v12925_v63 = vor.u32 %v13808_v55, %v12922_v11 }
 0xc92   :  { %v6666_v23 = vadd.f32 %v6649_v3, %v17604_v61  ;;  %v6667_v8 = vadd.f32 %v6662_v30, %v17607_v13  ;;  %v12864_v36 = vor.u32 %v13796_v59, %v12861_v56  ;;  %v12853_v61 = vld [vmem:[%s18009_s6 + $0xa10] sm:$0xf0]  ;;  %v12806_v13 = vld [vmem:[%s18009_s6 + $0x9c0] sm:$0xf]  ;;  %v13783_v59 = vld [vmem:[%s18009_s6 + $0x9a4] sm:$0xf0] }
 0xc93   :  { %7913 = vmatpush.bf16.msra.mxu2 %v12701_v42  ;;  %7926 = vmatpush.bf16.msra.mxu3 %v12705_v37  ;;  %v12814_v42 = vld [vmem:[%s18009_s6 + $0x9d0] sm:$0xf]  ;;  %v13789_v37 = vld [vmem:[%s18009_s6 + $0x9d4] sm:$0xf0]  ;;  %v13782_v56 = vld [vmem:[%s18009_s6 + $0x9a4] sm:$0xf] }
 0xc94   :  { %v12815_v16 = vor.u32 %v13789_v37, %v12814_v42  ;;  %v17752_v38 = vadd.f32 %v17642_v58, %v6666_v23  ;;  %v17755_v10 = vadd.f32 %v17644_v19, %v6667_v8  ;;  %v12843_v58 = vld [vmem:[%s18009_s6 + $0x9f8] sm:$0xf]  ;;  %v12893_v19 = vld [vmem:[%s18009_s6 + $0xaa0] sm:$0x11]  ;;  %v12792_v42 = vld [vmem:[%s18009_s6 + $0x9a8] sm:$0xf0] }
 0xc95   :  { %8020 = vmatpush.bf16.msra.mxu0 %v12738_v57  ;;  %8033 = vmatpush.bf16.msra.mxu1 %v12742_v17  ;;  %v13794_v57 = vld [vmem:[%s18009_s6 + $0xa0c] sm:$0xf]  ;;  %v13787_v17 = vld [vmem:[%s18009_s6 + $0x9c4] sm:$0xf0]  ;;  %v12844_v2 = vor.u32 %v13793_v6, %v12843_v58  ;;  %v8158_v37 = vrot.slane %v17520_v31, 2  ;;  %v12795_v30 = vor.u32 %v13782_v56, %v12792_v42 }
 0xc96   :  { %v12856_v1 = vor.u32 %v13794_v57, %v12853_v61  ;;  %v12807_v18 = vor.u32 %v13787_v17, %v12806_v13  ;;  %v13811_v57 = vld [vmem:[%s18009_s6 + $0xa94] sm:$0xf0]  ;;  %v12930_v61 = vld [vmem:[%s18009_s6 + $0xa98] sm:$0xf0]  ;;  %v8053_v13 = vrot.slane %v17491_v4, 2 }
 0xc97   :  { %7914 = vmatpush.bf16.msra.mxu2 %v12693_v27  ;;  %7927 = vmatpush.bf16.msra.mxu3 %v12697_v7  ;;  %v13786_v27 = vld [vmem:[%s18009_s6 + $0x9c4] sm:$0xf]  ;;  %v12808_v7 = vld [vmem:[%s18009_s6 + $0x9c8] sm:$0xf0]  ;;  %v12920_v58 = vld [vmem:[%s18009_s6 + $0xa80] sm:$0xf] }
 0xc98   :  { %12775 = vmatmul.msk.bf16.vlgmr.msra.gmra.mxu0 %vm5170_vm3, %v7948_v48  ;;  %12776 = vmatmul.msk.bf16.vlgmr.msra.gmra.mxu1 %vm5170_vm3, %v7948_v48  ;;  %v12811_v32 = vor.u32 %v13786_v27, %v12808_v7  ;;  %v13817_v27 = vld [vmem:[%s18009_s6 + $0xacc] sm:$0xf0]  ;;  %v13816_v7 = vld [vmem:[%s18009_s6 + $0xacc] sm:$0xf]  ;;  %v13805_v42 = vld [vmem:[%s18009_s6 + $0xa64] sm:$0xf0] }
 0xc99   :  { %8225 = vmatpush.bf16.msrb.mxu0 %v8218_v47  ;;  %8238 = vmatpush.bf16.msrb.mxu1 %v8221_v14  ;;  %v8400_v47 = vunpack.c.l.b16 %v12946_v35  ;;  %v8401_v14 = vunpack.c.h.b16 %v12946_v35  ;;  %v12973_v35 = vld [vmem:[%s18009_s6 + $0xad8] sm:$0xf] }
 0xc9b   :  { %7915 = vmatpush.bf16.msra.mxu2 %v12685_v52  ;;  %7928 = vmatpush.bf16.msra.mxu3 %v12689_v26  ;;  %v8412_v44 = vpack.c.b16 %v8400_v47, %v8400_v47  ;;  %v8413_v48 = vpack.c.b16 %v8401_v14, %v8401_v14  ;;  %v12798_v52 = vld [vmem:[%s18009_s6 + $0x9b0] sm:$0xf]  ;;  %v13785_v26 = vld [vmem:[%s18009_s6 + $0x9b4] sm:$0xf0]  ;;  %v12965_v14 = vld [vmem:[%s18009_s6 + $0xac8] sm:$0xf] }
 0xc9d   :  { %8226 = vmatpush.bf16.msrb.mxu0 %v12876_v49  ;;  %8239 = vmatpush.bf16.msrb.mxu1 %v12880_v20  ;;  %v6651_v49 = vpop.f32.mrf.mxu2  ;;  %v6664_v20 = vpop.f32.mrf.mxu3  ;;  %v8428_v43 = vand.u32 %v8412_v44, %v15585_v22  ;;  %v8431_v21 = vand.u32 %v8413_v48, %v15585_v22 }
 0xc9e   :  { %12722 = vmatmul.msk.bf16.vlgmr.msra.gmra.mxu2 %vm5170_vm3, %v7843_v62  ;;  %12723 = vmatmul.msk.bf16.vlgmr.msra.gmra.mxu3 %vm5170_vm3, %v7843_v62  ;;  %v17790_v60 = vpop.f32.mrf.mxu0  ;;  %v17792_v29 = vpop.f32.mrf.mxu1  ;;  %v12799_v62 = vor.u32 %v13785_v26, %v12798_v52  ;;  %v12966_v49 = vor.u32 %v13817_v27, %v12965_v14  ;;  %v12957_v26 = vld [vmem:[%s18009_s6 + $0xab8] sm:$0xf] }
 0xc9f   :  { %8120 = vmatpush.bf16.msrb.mxu2 %v8113_v24  ;;  %8133 = vmatpush.bf16.msrb.mxu3 %v8116_v5  ;;  %v8295_v24 = vunpack.c.l.b16 %v12893_v19  ;;  %v8296_v5 = vunpack.c.h.b16 %v12893_v19  ;;  %v13809_v19 = vld [vmem:[%s18009_s6 + $0xa84] sm:$0xf0]  ;;  %v12958_v46 = vor.u32 %v13815_v54, %v12957_v26 }
 0xca0   :  { %v12921_v52 = vor.u32 %v13809_v19, %v12920_v58 }
 0xca1   :  { %8227 = vmatpush.bf16.msrb.mxu0 %v12868_v34  ;;  %8240 = vmatpush.bf16.msrb.mxu1 %v12872_v15  ;;  %v12983_v34 = vld [vmem:[%s18009_s6 + $0xaf0] sm:$0xf0]  ;;  %v12790_v15 = vld [vmem:[%s18009_s6 + $0x9a0] sm:$0xf] }
 0xca2   :  { %v12986_v50 = vor.u32 %v13820_v45, %v12983_v34  ;;  %v12791_v3 = vor.u32 %v13783_v59, %v12790_v15  ;;  %v13812_v45 = vld [vmem:[%s18009_s6 + $0xaac] sm:$0xf]  ;;  %v12951_v34 = vld [vmem:[%s18009_s6 + $0xab0] sm:$0xf0]  ;;  %v12904_v15 = vld [vmem:[%s18009_s6 + $0xa60] sm:$0xf] }
 0xca3   :  { %8121 = vmatpush.bf16.msrb.mxu2 %v12823_v40  ;;  %8134 = vmatpush.bf16.msrb.mxu3 %v12827_v0  ;;  %v8307_v40 = vpack.c.b16 %v8295_v24, %v8295_v24  ;;  %v8308_v0 = vpack.c.b16 %v8296_v5, %v8296_v5  ;;  %v12912_v24 = vld [vmem:[%s18009_s6 + $0xa70] sm:$0xf] }
 0xca5   :  { %8228 = vmatpush.bf16.msrb.mxu0 %v12860_v53  ;;  %8241 = vmatpush.bf16.msrb.mxu1 %v12864_v36  ;;  %v13819_v53 = vld [vmem:[%s18009_s6 + $0xadc] sm:$0xf0]  ;;  %v8323_v23 = vand.u32 %v8307_v40, %v15585_v22  ;;  %v8326_v8 = vand.u32 %v8308_v0, %v15585_v22  ;;  %v13818_v36 = vld [vmem:[%s18009_s6 + $0xadc] sm:$0xf]  ;;  %v13810_v22 = vld [vmem:[%s18009_s6 + $0xa94] sm:$0xf] }
 0xca6   :  { %v6970_v25 = vpop.f32.mrf.mxu0  ;;  %v6983_v41 = vpop.f32.mrf.mxu1  ;;  %v12974_v17 = vor.u32 %v13819_v53, %v12973_v35  ;;  %v13804_v40 = vld [vmem:[%s18009_s6 + $0xa64] sm:$0xf]  ;;  %v12906_v0 = vld [vmem:[%s18009_s6 + $0xa68] sm:$0xf0]  ;;  %v12896_v53 = vld [vmem:[%s18009_s6 + $0xa50] sm:$0xf] }
 0xca7   :  { %8122 = vmatpush.bf16.msrb.mxu2 %v12815_v16  ;;  %8135 = vmatpush.bf16.msrb.mxu3 %v12819_v51  ;;  %v12975_v16 = vld [vmem:[%s18009_s6 + $0xae0] sm:$0xf0]  ;;  %v12928_v51 = vld [vmem:[%s18009_s6 + $0xa90] sm:$0xf]  ;;  %v12909_v35 = vor.u32 %v13804_v40, %v12906_v0  ;;  %v13829_v40 = vld [vmem:[%s18011_s8 + $0x38] sm:$0xff] }
 0xca8   :  { %v12978_v47 = vor.u32 %v13818_v36, %v12975_v16  ;;  %v12898_v36 = vld [vmem:[%s18009_s6 + $0xa58] sm:$0xf0]  ;;  %v8368_v16 = vrot.slane %v17520_v31, 3 }
 0xca9   :  { %8229 = vmatpush.bf16.msrb.mxu0 %v12852_v28  ;;  %8242 = vmatpush.bf16.msrb.mxu1 %v12856_v1  ;;  %v12929_v28 = vor.u32 %v13811_v57, %v12928_v51  ;;  %v12933_v1 = vor.u32 %v13810_v22, %v12930_v61  ;;  %v6871_v6 = vpop.f32.mrf.mxu3  ;;  %v8263_v22 = vrot.slane %v17491_v4, 3  ;;  %v13837_v0 = vld [vmem:[%s18011_s8 + $0x78] sm:$0xff] }
 0xcaa   :  { %v6876_v48 = vadd.f32 %v6871_v6, %v17755_v10  ;;  %v12959_v10 = vld [vmem:[%s18009_s6 + $0xac0] sm:$0xf0] }
 0xcab   :  { %8123 = vmatpush.bf16.msrb.mxu2 %v12807_v18  ;;  %8136 = vmatpush.bf16.msrb.mxu3 %v12811_v32  ;;  %v12967_v18 = vld [vmem:[%s18009_s6 + $0xad0] sm:$0xf0]  ;;  %v6858_v32 = vpop.f32.mrf.mxu2 }
 0xcac   :  { %v6875_v44 = vadd.f32 %v6858_v32, %v17752_v38  ;;  %v12970_v20 = vor.u32 %v13816_v7, %v12967_v18  ;;  %v13814_v38 = vld [vmem:[%s18009_s6 + $0xabc] sm:$0xf] }
 0xcad   :  { %8230 = vmatpush.bf16.msrb.mxu0 %v12844_v2  ;;  %8243 = vmatpush.bf16.msrb.mxu1 %v12848_v33  ;;  %v6986_v2 = vadd.f32 %v17792_v29, %v6876_v48  ;;  %v13807_v33 = vld [vmem:[%s18009_s6 + $0xa74] sm:$0xf0]  ;;  %v12962_v9 = vor.u32 %v13814_v38, %v12959_v10  ;;  %v13813_v29 = vld [vmem:[%s18009_s6 + $0xaac] sm:$0xf0] }
 0xcae   :  { %v6985_v5 = vadd.f32 %v17790_v60, %v6875_v44  ;;  %v12949_v60 = vld [vmem:[%s18009_s6 + $0xaa8] sm:$0xf] }
 0xcaf   :  { %8124 = vmatpush.bf16.msrb.mxu2 %v12799_v62  ;;  %8137 = vmatpush.bf16.msrb.mxu3 %v12803_v12  ;;  %v12913_v62 = vor.u32 %v13807_v33, %v12912_v24 }
 0xcb0   :  { %12881 = vmatmul.msk.bf16.vlgmr.msrb.gmra.mxu0 %vm5170_vm3, %v8158_v37  ;;  %12882 = vmatmul.msk.bf16.vlgmr.msrb.gmra.mxu1 %vm5170_vm3, %v8158_v37  ;;  %v12950_v37 = vor.u32 %v13813_v29, %v12949_v60 }
 0xcb1   :  { %8435 = vmatpush.bf16.msra.mxu0 %v8428_v43  ;;  %8448 = vmatpush.bf16.msra.mxu1 %v8431_v21  ;;  %v13806_v43 = vld [vmem:[%s18009_s6 + $0xa74] sm:$0xf]  ;;  %v12914_v21 = vld [vmem:[%s18009_s6 + $0xa78] sm:$0xf0]  ;;  %v6873_v56 = vpop.f32.mrf.mxu3 }
 0xcb2   :  { %v12917_v12 = vor.u32 %v13806_v43, %v12914_v21 }
 0xcb3   :  { %8125 = vmatpush.bf16.msrb.mxu2 %v12791_v3  ;;  %8138 = vmatpush.bf16.msrb.mxu3 %v12795_v30  ;;  %v6860_v59 = vpop.f32.mrf.mxu2  ;;  %v12905_v30 = vor.u32 %v13805_v42, %v12904_v15 }
 0xcb5   :  { %8436 = vmatpush.bf16.msra.mxu0 %v12982_v39  ;;  %8449 = vmatpush.bf16.msra.mxu1 %v12986_v50  ;;  %v12954_v39 = vor.u32 %v13812_v45, %v12951_v34  ;;  %v7178_v50 = vpop.f32.mrf.mxu0  ;;  %v7191_v3 = vpop.f32.mrf.mxu1 }
 0xcb6   :  { %12828 = vmatmul.msk.bf16.vlgmr.msrb.gmra.mxu2 %vm5170_vm3, %v8053_v13  ;;  %12829 = vmatmul.msk.bf16.vlgmr.msrb.gmra.mxu3 %vm5170_vm3, %v8053_v13 }
 0xcb7   :  { %8330 = vmatpush.bf16.msra.mxu2 %v8323_v23  ;;  %8343 = vmatpush.bf16.msra.mxu3 %v8326_v8  ;;  %v13803_v23 = vld [vmem:[%s18009_s6 + $0xa54] sm:$0xf0]  ;;  %v13802_v8 = vld [vmem:[%s18009_s6 + $0xa54] sm:$0xf] }
 0xcb8   :  { %v12897_v51 = vor.u32 %v13803_v23, %v12896_v53  ;;  %v12901_v25 = vor.u32 %v13802_v8, %v12898_v36  ;;  %v13826_v8 = vld [vmem:[%s18011_s8 + $0x20] sm:$0xff] }
 0xcb9   :  { %8437 = vmatpush.bf16.msra.mxu0 %v12974_v17  ;;  %8450 = vmatpush.bf16.msra.mxu1 %v12978_v47  ;;  %v13834_v36 = vld [vmem:[%s18011_s8 + $0x60] sm:$0xff] }
 0xcbb   :  { %8331 = vmatpush.bf16.msra.mxu2 %v12929_v28  ;;  %8344 = vmatpush.bf16.msra.mxu3 %v12933_v1 }
 0xcbd   :  { %8438 = vmatpush.bf16.msra.mxu0 %v12966_v49  ;;  %8451 = vmatpush.bf16.msra.mxu1 %v12970_v20  ;;  %v7180_v41 = vpop.f32.mrf.mxu0  ;;  %v7193_v57 = vpop.f32.mrf.mxu1 }
 0xcbf   :  { %8332 = vmatpush.bf16.msra.mxu2 %v12921_v52  ;;  %8345 = vmatpush.bf16.msra.mxu3 %v12925_v63 }
 0xcc1   :  { %8439 = vmatpush.bf16.msra.mxu0 %v12958_v46  ;;  %8452 = vmatpush.bf16.msra.mxu1 %v12962_v9  ;;  %v7073_v61 = vpop.f32.mrf.mxu2  ;;  %v7086_v13 = vpop.f32.mrf.mxu3 }
 0xcc2   :  { %v7090_v17 = vadd.f32 %v7073_v61, %v6985_v5  ;;  %v7091_v31 = vadd.f32 %v7086_v13, %v6986_v2  ;;  %v13824_v61 = vld [vmem:[%s18011_s8 + $0x10] sm:$0xff] }
 0xcc3   :  { %8333 = vmatpush.bf16.msra.mxu2 %v12913_v62  ;;  %8346 = vmatpush.bf16.msra.mxu3 %v12917_v12  ;;  %v13832_v13 = vld [vmem:[%s18011_s8 + $0x50] sm:$0xff] }
 0xcc4   :  { %v7195_v47 = vadd.f32 %v7178_v50, %v7090_v17  ;;  %v7196_v14 = vadd.f32 %v7191_v3, %v7091_v31  ;;  %v13823_v17 = vld [vmem:[%s18011_s8 + $0x8] sm:$0xff] }
 0xcc5   :  { %8440 = vmatpush.bf16.msra.mxu0 %v12950_v37  ;;  %8453 = vmatpush.bf16.msra.mxu1 %v12954_v39  ;;  %v13828_v37 = vld [vmem:[%s18011_s8 + $0x30] sm:$0xff]  ;;  %v13831_v31 = vld [vmem:[%s18011_s8 + $0x48] sm:$0xff] }
 0xcc6   :  { %v13836_v39 = vld [vmem:[%s18011_s8 + $0x70] sm:$0xff] }
 0xcc7   :  { %8334 = vmatpush.bf16.msra.mxu2 %v12905_v30  ;;  %8347 = vmatpush.bf16.msra.mxu3 %v12909_v35  ;;  %v13827_v30 = vld [vmem:[%s18011_s8 + $0x28] sm:$0xff] }
 0xcc8   :  { %12987 = vmatmul.msk.bf16.vlgmr.msra.gmra.mxu0 %vm5170_vm3, %v8368_v16  ;;  %12988 = vmatmul.msk.bf16.vlgmr.msra.gmra.mxu1 %vm5170_vm3, %v8368_v16  ;;  %v13835_v35 = vld [vmem:[%s18011_s8 + $0x68] sm:$0xff]  ;;  %v13825_v16 = vld [vmem:[%s18011_s8 + $0x18] sm:$0xff] }
 0xcc9   :  { %v7075_v27 = vpop.f32.mrf.mxu2  ;;  %v7088_v7 = vpop.f32.mrf.mxu3 }
 0xcca   :  { %v13822_v27 = vld [vmem:[%s18011_s8] sm:$0xff] }
 0xccb   :  { %8335 = vmatpush.bf16.msra.mxu2 %v12897_v51  ;;  %8348 = vmatpush.bf16.msra.mxu3 %v12901_v25  ;;  %v13833_v51 = vld [vmem:[%s18011_s8 + $0x58] sm:$0xff]  ;;  %v13830_v7 = vld [vmem:[%s18011_s8 + $0x40] sm:$0xff] }
 0xccd   :  { %v7388_v28 = vpop.f32.mrf.mxu0  ;;  %v7401_v1 = vpop.f32.mrf.mxu1 }
 0xcce   :  { %12934 = vmatmul.msk.bf16.vlgmr.msra.gmra.mxu2 %vm5170_vm3, %v8263_v22  ;;  %12935 = vmatmul.msk.bf16.vlgmr.msra.gmra.mxu3 %vm5170_vm3, %v8263_v22 }
 0xccf   :  { %8602 = vmatpush.bf16.msrb.mxu2 %v13829_v40  ;;  %8615 = vmatpush.bf16.msrb.mxu3 %v13837_v0 }
 0xcd3   :  { %8603 = vmatpush.bf16.msrb.mxu2 %v13828_v37  ;;  %8616 = vmatpush.bf16.msrb.mxu3 %v13836_v39 }
 0xcd5   :  { %v7390_v18 = vpop.f32.mrf.mxu0  ;;  %v7403_v58 = vpop.f32.mrf.mxu1 }
 0xcd7   :  { %8604 = vmatpush.bf16.msrb.mxu2 %v13827_v30  ;;  %8617 = vmatpush.bf16.msrb.mxu3 %v13835_v35 }
 0xcd9   :  { %v7283_v19 = vpop.f32.mrf.mxu2  ;;  %v7296_v32 = vpop.f32.mrf.mxu3 }
 0xcda   :  { %v7300_v6 = vadd.f32 %v7283_v19, %v7195_v47  ;;  %v7301_v4 = vadd.f32 %v7296_v32, %v7196_v14 }
 0xcdb   :  { %8605 = vmatpush.bf16.msrb.mxu2 %v13826_v8  ;;  %8618 = vmatpush.bf16.msrb.mxu3 %v13834_v36 }
 0xcdc   :  { %v7405_v55 = vadd.f32 %v7388_v28, %v7300_v6  ;;  %v7406_v11 = vadd.f32 %v7401_v1, %v7301_v4 }
 0xcdf   :  { %8606 = vmatpush.bf16.msrb.mxu2 %v13825_v16  ;;  %8619 = vmatpush.bf16.msrb.mxu3 %v13833_v51 }
 0xce1   :  { %v7285_v44 = vpop.f32.mrf.mxu2  ;;  %v7298_v48 = vpop.f32.mrf.mxu3 }
 0xce3   :  { %8607 = vmatpush.bf16.msrb.mxu2 %v13824_v61  ;;  %8620 = vmatpush.bf16.msrb.mxu3 %v13832_v13 }
 0xce5   :  { %v7598_v49 = vpop.f32.mrf.mxu0  ;;  %v7611_v20 = vpop.f32.mrf.mxu1 }
 0xce7   :  { %8608 = vmatpush.bf16.msrb.mxu2 %v13823_v17  ;;  %8621 = vmatpush.bf16.msrb.mxu3 %v13831_v31 }
 0xceb   :  { %8609 = vmatpush.bf16.msrb.mxu2 %v13822_v27  ;;  %8622 = vmatpush.bf16.msrb.mxu3 %v13830_v7 }
 0xced   :  { %v7600_v52 = vpop.f32.mrf.mxu0  ;;  %v7613_v26 = vpop.f32.mrf.mxu1 }
 0xcee   :  { %v8461_v52 = vld [vmem:[%s18010_s7] sm:$0x3] }
 0xcf1   :  { %v7493_v54 = vpop.f32.mrf.mxu2  ;;  %v7506_v63 = vpop.f32.mrf.mxu3 }
 0xcf2   :  { %v7510_v38 = vadd.f32 %v7493_v54, %v7405_v55  ;;  %v7511_v10 = vadd.f32 %v7506_v63, %v7406_v11 }
 0xcf4   :  { %v7615_v24 = vadd.f32 %v7598_v49, %v7510_v38  ;;  %v7616_v5 = vadd.f32 %v7611_v20, %v7511_v10 }
 0xcf9   :  { %v7495_v2 = vpop.f32.mrf.mxu2  ;;  %v7508_v33 = vpop.f32.mrf.mxu3 }
 0xcfa   :  { %v8464_v2 = vperm.slane %v8461_v52, 1 }
 0xcfd   :  { %v7812_v43 = vpop.f32.mrf.mxu0  ;;  %v7825_v21 = vpop.f32.mrf.mxu1 }
 0xd05   :  { %v7814_v46 = vpop.f32.mrf.mxu0  ;;  %v7827_v9 = vpop.f32.mrf.mxu1 }
 0xd09   :  { %v7702_v60 = vpop.f32.mrf.mxu2  ;;  %v7715_v29 = vpop.f32.mrf.mxu3 }
 0xd0a   :  { %v7719_v62 = vadd.f32 %v7702_v60, %v7615_v24  ;;  %v7720_v12 = vadd.f32 %v7715_v29, %v7616_v5  ;;  %v8463_v24 = vperm.slane %v8461_v52, 0 }
 0xd0c   :  { %v7829_v45 = vadd.f32 %v7812_v43, %v7719_v62  ;;  %v7830_v34 = vadd.f32 %v7825_v21, %v7720_v12 }
 0xd11   :  { %v7704_v15 = vpop.f32.mrf.mxu2  ;;  %v7717_v59 = vpop.f32.mrf.mxu3 }
 0xd15   :  { %v8022_v56 = vpop.f32.mrf.mxu0  ;;  %v8035_v42 = vpop.f32.mrf.mxu1 }
 0xd1d   :  { %v8024_v50 = vpop.f32.mrf.mxu0  ;;  %v8037_v3 = vpop.f32.mrf.mxu1 }
 0xd21   :  { %v7917_v53 = vpop.f32.mrf.mxu2  ;;  %v7930_v23 = vpop.f32.mrf.mxu3 }
 0xd22   :  { %v7934_v19 = vadd.f32 %v7917_v53, %v7829_v45  ;;  %v7935_v32 = vadd.f32 %v7930_v23, %v7830_v34  ;;  %v8505_v34 = vld [vmem:[%s18012_s9] sm:$0x1] }
 0xd24   :  { %v8039_v55 = vadd.f32 %v8022_v56, %v7934_v19  ;;  %v8040_v11 = vadd.f32 %v8035_v42, %v7935_v32 }
 0xd29   :  { %v7919_v25 = vpop.f32.mrf.mxu2  ;;  %v7932_v41 = vpop.f32.mrf.mxu3 }
 0xd2d   :  { %v8232_v57 = vpop.f32.mrf.mxu0  ;;  %v8245_v22 = vpop.f32.mrf.mxu1 }
 0xd35   :  { %v8234_v47 = vpop.f32.mrf.mxu0  ;;  %v8247_v14 = vpop.f32.mrf.mxu1 }
 0xd39   :  { %v8127_v28 = vpop.f32.mrf.mxu2  ;;  %v8140_v1 = vpop.f32.mrf.mxu3 }
 0xd3a   :  { %v8144_v44 = vadd.f32 %v8127_v28, %v8039_v55  ;;  %v8145_v48 = vadd.f32 %v8140_v1, %v8040_v11 }
 0xd3c   :  { %v8249_v26 = vadd.f32 %v8232_v57, %v8144_v44  ;;  %v8250_v54 = vadd.f32 %v8245_v22, %v8145_v48 }
 0xd41   :  { %v8129_v18 = vpop.f32.mrf.mxu2  ;;  %v8142_v58 = vpop.f32.mrf.mxu3 }
 0xd45   :  { %v8442_v6 = vpop.f32.mrf.mxu0  ;;  %v8455_v4 = vpop.f32.mrf.mxu1 }
 0xd4d   :  { %v8444_v49 = vpop.f32.mrf.mxu0  ;;  %v8457_v20 = vpop.f32.mrf.mxu1 }
 0xd51   :  { %v8337_v63 = vpop.f32.mrf.mxu2  ;;  %v8350_v38 = vpop.f32.mrf.mxu3 }
 0xd52   :  { %v8354_v10 = vadd.f32 %v8337_v63, %v8249_v26  ;;  %v8355_v5 = vadd.f32 %v8350_v38, %v8250_v54 }
 0xd54   :  { %v8459_v33 = vadd.f32 %v8442_v6, %v8354_v10  ;;  %v8460_v43 = vadd.f32 %v8455_v4, %v8355_v5 }
 0xd56   :  { %v8467_v21 = vadd.f32 %v8463_v24, %v8459_v33  ;;  %v8468_v46 = vadd.f32 %v8464_v2, %v8460_v43 }
 0xd58   :  { %v8469_v9 = vmax.f32 %v8467_v21, 0.0  ;;  %v8470_v60 = vmax.f32 %v8468_v46, 0.0 }
 0xd59   :  { %v8339_v29 = vpop.f32.mrf.mxu2  ;;  %v8352_v62 = vpop.f32.mrf.mxu3 }
 0xd5a   :  { %v8471_v12 = vpack.c.bf16 %v8469_v9, %v8469_v9  ;;  %v8472_v45 = vpack.c.bf16 %v8470_v60, %v8470_v60 }
 0xd5c   :  { %8610 = vmatmul.bf16.vlgmr.msrb.gmra.mxu2 %v8471_v12  ;;  %8623 = vmatmul.bf16.vlgmr.msrb.gmra.mxu3 %v8472_v45 }
 0xddf   :  { %v8611_v15 = vpop.f32.mrf.mxu2  ;;  %v8624_v59 = vpop.f32.mrf.mxu3 }
 0xde0   :  { %v8612_v56 = vadd.f32 %v8611_v15, %v8505_v34 }
 0xde2   :  { %v8625_v42 = vadd.f32 %v8624_v59, %v8612_v56 }
 0xde4   :  { %8629 = vst.msk [vmem:[#allocation2] sm:$0x1] %vm8628_vm4, %v8625_v42 }
 0xde5   :  { %8640 = dma.vmem_to_hbm [thread:$0]  %s8636_s21, 16, %s8638_s24, [#allocation3]  }
 0xde7   :  { %v8613_v40 = vpop.f32.mrf.mxu2  ;;  %v8626_v0 = vpop.f32.mrf.mxu3 }
 0xde8   :  { %13867 = dma.done.wait [#allocation3], 16  }
 0xde9   :  { %13868 = vsyncadd [#allocation3], 4294967280 }
 0xdea   :  { %8645 = vsyncpa [#allocation3], 1 }

</bundles_post_ra>
